<compile_context>
chip_gen: v7x
topology: tpu7x:2x2x1
jax: 0.10.0
libtpu: 0.0.40
codegen_flags: <defaults>
</compile_context>

<pallas_src>
import functools

import jax
import jax.numpy as jnp
from jax import lax
from jax.experimental import pallas as pl
from jax.experimental.pallas import tpu as pltpu


def _round_up(x, m):
    return ((x + m - 1) // m) * m


# ---------------------------------------------------------------------------
# Pallas kernels
# ---------------------------------------------------------------------------
def _conv_gemm_kernel(p_ref, w_ref, b_ref, o_ref):
    # p_ref: [K, tl] bf16 column-packed patches (tl columns span several batch
    #        elements' spatial positions); w_ref: [O, K] bf16; b_ref: [O, 1] f32;
    # o_ref: [O, tl] bf16 (lane-dense store).
    acc = jnp.dot(w_ref[...], p_ref[...],
                  preferred_element_type=jnp.float32)          # [O, tl] f32 (MXU)
    acc = jnp.maximum(acc + b_ref[...], 0.0)                   # bias + ReLU in f32
    o_ref[...] = acc.astype(o_ref.dtype)


def _fused_head_kernel(x_ref, w1_ref, b1_ref, w2_ref, b2_ref, o_ref, *,
                       action_size):
    # x_ref:  [tm, 3136] bf16       w1_ref: [3136, 1024] bf16 (adv | val)
    # b1_ref: [1, 1024] f32         w2_ref: [1024, A1p] bf16 (adv cols | val col | 0)
    # b2_ref: [1, A1p] f32          o_ref:  [tm, A1p] f32, A1p = round_up(A+1, 128)
    h = jnp.dot(x_ref[...], w1_ref[...],
                preferred_element_type=jnp.float32)            # [tm, 1024] f32
    h = jnp.maximum(h + b1_ref[...], 0.0)                      # fc1 bias + ReLU
    av = jnp.dot(h.astype(w2_ref.dtype), w2_ref[...],
                 preferred_element_type=jnp.float32)           # [tm, A1p] f32
    av = av + b2_ref[...]
    adv = av[:, :action_size]                                  # [tm, A]
    val = av[:, action_size:action_size + 1]                   # [tm, 1]
    adv_mean = jnp.mean(adv, axis=1, keepdims=True)
    # Full 128-lane (unmasked) store: columns < A hold Q = val + adv - mean(adv);
    # the remaining columns hold junk and are sliced off by the wrapper.
    o_ref[...] = av + (val - adv_mean)


# ---------------------------------------------------------------------------
# Pallas wrappers
# ---------------------------------------------------------------------------
def _pick_col_tile(K, BL, target_bytes=4 * 1024 * 1024):
    """Column tile (multiple of 128) so one patches block is ~target_bytes."""
    tl = max(128, (target_bytes // (K * 2)) // 128 * 128)
    if tl >= BL:
        return BL                                   # single full-array block
    ntiles = pl.cdiv(BL, tl)
    return _round_up(pl.cdiv(BL, ntiles), 128)      # even out the last block


def pallas_conv_gemm(patches, w, b):
    """patches: [K, B*L] bf16; w: [O, K] bf16; b: [O, 1] f32 -> [O, B*L] bf16."""
    K, BL = patches.shape
    O = w.shape[0]
    tl = _pick_col_tile(K, BL)
    return pl.pallas_call(
        _conv_gemm_kernel,
        out_shape=jax.ShapeDtypeStruct((O, BL), jnp.bfloat16),
        grid=(pl.cdiv(BL, tl),),
        in_specs=[
            pl.BlockSpec((K, tl), lambda i: (0, i)),   # column tile of patches
            pl.BlockSpec((O, K), lambda i: (0, 0)),    # weight (fetched once)
            pl.BlockSpec((O, 1), lambda i: (0, 0)),    # bias
        ],
        out_specs=pl.BlockSpec((O, tl), lambda i: (0, i)),
        compiler_params=pltpu.CompilerParams(
            dimension_semantics=("parallel",)),
    )(patches, w, b)


def _pick_head_tile(B):
    """Batch tile: >=2 grid steps when possible (v7x has 2 TensorCores), up to
    256 rows to fill the 256-wide MXU on v6e/v7x."""
    Bp = _round_up(B, 8)
    if Bp < 32:
        return Bp, Bp                                # too small to split
    for tm in (256, 128, 64, 32, 16, 8):
        if Bp % tm == 0 and Bp // tm >= 2:
            return tm, Bp
    return 8, Bp


def pallas_fused_head(x, w1, b1, w2, b2, *, action_size):
    """Fused fc1(adv|val) + fc2(adv|val) + dueling combine.

    x: [B, 3136] bf16; w1: [3136, 1024] bf16; b1: [1, 1024] f32;
    w2: [1024, A1p] bf16; b2: [1, A1p] f32  ->  Q: [B, A] f32.
    """
    B, K = x.shape
    H2 = w1.shape[1]
    A1p = w2.shape[1]

    tm, Bp = _pick_head_tile(B)
    if Bp != B:
        x = jnp.pad(x, ((0, Bp - B), (0, 0)))

    out = pl.pallas_call(
        functools.partial(_fused_head_kernel, action_size=action_size),
        out_shape=jax.ShapeDtypeStruct((Bp, A1p), jnp.float32),
        grid=(Bp // tm,),
        in_specs=[
            pl.BlockSpec((tm, K), lambda i: (i, 0)),           # activation tiles
            pl.BlockSpec((K, H2), lambda i: (0, 0)),           # fused fc1 weight
            pl.BlockSpec((1, H2), lambda i: (0, 0)),
            pl.BlockSpec((H2, A1p), lambda i: (0, 0)),         # fused fc2 weight
            pl.BlockSpec((1, A1p), lambda i: (0, 0)),
        ],
        out_specs=pl.BlockSpec((tm, A1p), lambda i: (i, 0)),
        compiler_params=pltpu.CompilerParams(
            dimension_semantics=("parallel",),
            vmem_limit_bytes=32 * 1024 * 1024),
    )(x, w1, b1, w2, b2)
    return out[:B, :action_size]


# ---------------------------------------------------------------------------
# Conv glue: patch extraction (pure data movement) + Pallas GEMM, CNHW layout
# ---------------------------------------------------------------------------
def conv2d_relu(x, w2d, b, *, ksize, stride, input_layout):
    """VALID conv + ReLU as a column-packed Pallas GEMM.

    x: activations in `input_layout` ("NCHW" for the network input, "CNHW"
    for the chain); w2d: [O, C*k*k] bf16 (torch .view(O,-1) order); b: [O,1]
    f32.  Returns activations in CNHW layout: [O, B, OH, OW] bf16.
    """
    O, K = w2d.shape
    patches = lax.conv_general_dilated_patches(
        x, (ksize, ksize), (stride, stride), "VALID",
        dimension_numbers=(input_layout, "OIHW", "CNHW"))      # [K, B, OH, OW]
    Kp, B, OH, OW = patches.shape
    assert Kp == K, (Kp, K)
    y = pallas_conv_gemm(patches.reshape(K, B * OH * OW), w2d, b)
    return y.reshape(O, B, OH, OW)


# ---------------------------------------------------------------------------
# Parameters (PyTorch-default-style U(-1/sqrt(fan_in), +1/sqrt(fan_in)))
# ---------------------------------------------------------------------------
def init_params(key, state_size, action_size):
    def uni(k, shape, fan_in):
        bound = 1.0 / float(fan_in) ** 0.5
        return jax.random.uniform(k, shape, jnp.float32, -bound, bound)

    ks = jax.random.split(key, 14)
    flat = 7 * 7 * 64
    return {
        "conv1_w": uni(ks[0], (32, state_size, 8, 8), state_size * 8 * 8),
        "conv1_b": uni(ks[1], (32,), state_size * 8 * 8),
        "conv2_w": uni(ks[2], (64, 32, 4, 4), 32 * 4 * 4),
        "conv2_b": uni(ks[3], (64,), 32 * 4 * 4),
        "conv3_w": uni(ks[4], (64, 64, 3, 3), 64 * 3 * 3),
        "conv3_b": uni(ks[5], (64,), 64 * 3 * 3),
        "fc1_adv_w": uni(ks[6], (flat, 512), flat),
        "fc1_adv_b": uni(ks[7], (512,), flat),
        "fc1_val_w": uni(ks[8], (flat, 512), flat),
        "fc1_val_b": uni(ks[9], (512,), flat),
        "fc2_adv_w": uni(ks[10], (512, action_size), 512),
        "fc2_adv_b": uni(ks[11], (action_size,), 512),
        "fc2_val_w": uni(ks[12], (512, 1), 512),
        "fc2_val_b": uni(ks[13], (1,), 512),
    }


def prepare_params(params, action_size):
    """One-time weight prep: bf16 casts, conv-weight flattening, fc fusion."""
    A = action_size
    H = params["fc2_adv_w"].shape[0]                           # 512
    A1p = _round_up(A + 1, 128)                                # lane-dense head out
    # fc1_adv | fc1_val side by side -> one [3136, 1024] GEMM.
    w1 = jnp.concatenate([params["fc1_adv_w"], params["fc1_val_w"]],
                         axis=1).astype(jnp.bfloat16)
    b1 = jnp.concatenate([params["fc1_adv_b"],
                          params["fc1_val_b"]])[None, :].astype(jnp.float32)
    # Block-structured fc2 padded to a full 128-lane block:
    # rows 0:512 feed adv columns [0:A), rows 512:1024 feed the val column [A].
    w2 = jnp.zeros((2 * H, A1p), jnp.float32)
    w2 = w2.at[:H, :A].set(params["fc2_adv_w"])
    w2 = w2.at[H:, A:A + 1].set(params["fc2_val_w"])
    b2 = jnp.zeros((1, A1p), jnp.float32)
    b2 = b2.at[0, :A].set(params["fc2_adv_b"])
    b2 = b2.at[0, A].set(params["fc2_val_b"][0])

    def cw(w):   # [O, C, k, k] -> [O, C*k*k] bf16 (torch .view(O, -1) order)
        return w.reshape(w.shape[0], -1).astype(jnp.bfloat16)

    def cb(b):
        return b.reshape(-1, 1).astype(jnp.float32)

    return {
        "conv1_w": cw(params["conv1_w"]), "conv1_b": cb(params["conv1_b"]),
        "conv2_w": cw(params["conv2_w"]), "conv2_b": cb(params["conv2_b"]),
        "conv3_w": cw(params["conv3_w"]), "conv3_b": cb(params["conv3_b"]),
        "w1": w1, "b1": b1, "w2": w2.astype(jnp.bfloat16), "b2": b2,
    }


# ---------------------------------------------------------------------------
# Forward pass (mirrors DDQN.forward)
# ---------------------------------------------------------------------------
def conv_features(prepared, x):
    """Conv stack; returns flattened features [B, 3136] (torch .view order)."""
    x = x.astype(jnp.bfloat16)                                  # [B, C, 84, 84]
    y = conv2d_relu(x, prepared["conv1_w"], prepared["conv1_b"],
                    ksize=8, stride=4, input_layout="NCHW")     # [32, B, 20, 20]
    y = conv2d_relu(y, prepared["conv2_w"], prepared["conv2_b"],
                    ksize=4, stride=2, input_layout="CNHW")     # [64, B, 9, 9]
    y = conv2d_relu(y, prepared["conv3_w"], prepared["conv3_b"],
                    ksize=3, stride=1, input_layout="CNHW")     # [64, B, 7, 7]
    B = y.shape[1]
    # Single small transpose back to batch-major for the flatten (== torch view).
    return jnp.transpose(y, (1, 0, 2, 3)).reshape(B, -1)        # [B, 3136] bf16


def ddqn_forward(prepared, x, *, action_size):
    feats = conv_features(prepared, x)
    return pallas_fused_head(feats, prepared["w1"], prepared["b1"],
                             prepared["w2"], prepared["b2"],
                             action_size=action_size)           # [B, A] f32


# ---------------------------------------------------------------------------
# Pure-XLA reference (same bf16 rounding discipline, f32 accumulation) -- used
# to numerically validate the channel-major im2col ordering and the head math.
# ---------------------------------------------------------------------------
def ddqn_forward_ref(params, x):
    bf16, f32 = jnp.bfloat16, jnp.float32
    hi = lax.Precision.HIGHEST

    def conv(h, w, b, stride):
        y = lax.conv_general_dilated(
            h.astype(bf16).astype(f32), w.astype(bf16).astype(f32),
            (stride, stride), "VALID",
            dimension_numbers=("NCHW", "OIHW", "NCHW"), precision=hi)
        y = jnp.maximum(y + b.astype(f32).reshape(1, -1, 1, 1), 0.0)
        return y.astype(bf16).astype(f32)

    def linear(a, w, b):
        return jnp.dot(a.astype(bf16).astype(f32), w.astype(bf16).astype(f32),
                       precision=hi) + b.astype(f32)

    h = conv(x.astype(f32), params["conv1_w"], params["conv1_b"], 4)
    h = conv(h, params["conv2_w"], params["conv2_b"], 2)
    h = conv(h, params["conv3_w"], params["conv3_b"], 1)
    feats = h.reshape(h.shape[0], -1)                           # [B, 3136]
    adv = jnp.maximum(linear(feats, params["fc1_adv_w"], params["fc1_adv_b"]), 0.0)
    val = jnp.maximum(linear(feats, params["fc1_val_w"], params["fc1_val_b"]), 0.0)
    adv = linear(adv, params["fc2_adv_w"], params["fc2_adv_b"])
    val = linear(val, params["fc2_val_w"], params["fc2_val_b"])
    q = val + adv - jnp.mean(adv, axis=1, keepdims=True)
    return feats, q


if __name__ == "__main__":
    state_size, action_size, batch = 4, 6, 2
    key = jax.random.PRNGKey(0)
    pkey, xkey = jax.random.split(key)
    params = init_params(pkey, state_size, action_size)
    prepared = prepare_params(params, action_size)
    # 84x84 spatial input is what the module's 7*7*64 flatten implies.
    x = jax.random.uniform(xkey, (batch, state_size, 84, 84), jnp.float32)

    fwd = jax.jit(functools.partial(ddqn_forward, action_size=action_size))
    feats_fn = jax.jit(conv_features)
    ref_fn = jax.jit(ddqn_forward_ref)

    out = jax.block_until_ready(fwd(prepared, x))
    feats = jax.block_until_ready(feats_fn(prepared, x))
    ref_feats, ref_out = jax.block_until_ready(ref_fn(params, x))

    assert out.shape == (batch, action_size)
    assert bool(jnp.all(jnp.isfinite(out)))
    # One-time numerical check vs. the XLA reference (identical bf16 rounding;
    # remaining differences are accumulation-order only, far below tolerance;
    # a filter-ordering mismatch would blow way past it).
    assert bool(jnp.allclose(feats.astype(jnp.float32), ref_feats,
                             atol=5e-3, rtol=5e-2)), "conv feature mismatch"
    assert bool(jnp.allclose(out, ref_out, atol=5e-3, rtol=5e-2)), "Q mismatch"
    print("KERNEL_OK")
</pallas_src>

<mosaic_0001>
module attributes {stable_mosaic.version = 11 : i64} {
  func.func @_conv_gemm_kernel(%arg0: i32, %arg1: memref<256x800xbf16, #tpu.memory_space<vmem>>, %arg2: memref<32x256xbf16, #tpu.memory_space<vmem>>, %arg3: memref<32x1xf32, #tpu.memory_space<vmem>>, %arg4: memref<32x800xbf16, #tpu.memory_space<vmem>>) attributes {dimension_semantics = [#tpu.dimension_semantics<parallel>], iteration_bounds = array<i64: 1>, scalar_prefetch = 0 : i64, scratch_operands = 0 : i64, tpu.core_type = #tpu.core_type<tc>, window_params = [{transform_indices = @transform_0, window_bounds = array<i64: 256, 800>}, {pipeline_mode = #tpu.pipeline_mode<synchronous>, transform_indices = @transform_1, window_bounds = array<i64: 32, 256>}, {pipeline_mode = #tpu.pipeline_mode<synchronous>, transform_indices = @transform_2, window_bounds = array<i64: 32, 1>}, {transform_indices = @transform_3, window_bounds = array<i64: 32, 800>}]} {
    %c0 = arith.constant 0 : index
    %c0_0 = arith.constant 0 : index
    %0 = vector.load %arg2[%c0, %c0_0] : memref<32x256xbf16, #tpu.memory_space<vmem>>, vector<32x256xbf16>
    %c0_1 = arith.constant 0 : index
    %c0_2 = arith.constant 0 : index
    %1 = vector.load %arg1[%c0_1, %c0_2] : memref<256x800xbf16, #tpu.memory_space<vmem>>, vector<256x800xbf16>
    %cst = arith.constant dense<0.000000e+00> : vector<32x800xf32>
    %2 = tpu.matmul %0, %1, %cst {dimension_numbers = #tpu.dot_dimension_numbers<[1], [0], [0], [1], [0, 0, 1, 1], [], []>} : vector<32x256xbf16>, vector<256x800xbf16>, vector<32x800xf32> -> vector<32x800xf32>
    %c0_3 = arith.constant 0 : index
    %c0_4 = arith.constant 0 : index
    %3 = vector.load %arg3[%c0_3, %c0_4] : memref<32x1xf32, #tpu.memory_space<vmem>>, vector<32x1xf32>
    %4 = vector.broadcast %3 : vector<32x1xf32> to vector<32x800xf32>
    %5 = arith.addf %2, %4 : vector<32x800xf32>
    %cst_5 = arith.constant 0.000000e+00 : f32
    %6 = vector.broadcast %cst_5 : f32 to vector<32x800xf32>
    %7 = arith.maximumf %5, %6 : vector<32x800xf32>
    %8 = arith.truncf %7 : vector<32x800xf32> to vector<32x800xbf16>
    %c0_6 = arith.constant 0 : index
    %c0_7 = arith.constant 0 : index
    %9 = vector.load %arg4[%c0_6, %c0_7] : memref<32x800xbf16, #tpu.memory_space<vmem>>, vector<32x800xbf16>
    tpu.vector_store %arg4[%c0_6, %c0_7], %8 {strides = array<i32>} : memref<32x800xbf16, #tpu.memory_space<vmem>>, vector<32x800xbf16>,
    return
  }
  func.func @transform_0(%arg0: i32) -> (i32, i32) {
    %c0_i32 = arith.constant 0 : i32
    %c0_i32_0 = arith.constant 0 : i32
    return %c0_i32, %arg0 : i32, i32
  }
  func.func @transform_1(%arg0: i32) -> (i32, i32) {
    %c0_i32 = arith.constant 0 : i32
    %c0_i32_0 = arith.constant 0 : i32
    %c0_i32_1 = arith.constant 0 : i32
    return %c0_i32, %c0_i32_0 : i32, i32
  }
  func.func @transform_2(%arg0: i32) -> (i32, i32) {
    %c0_i32 = arith.constant 0 : i32
    %c0_i32_0 = arith.constant 0 : i32
    %c0_i32_1 = arith.constant 0 : i32
    return %c0_i32, %c0_i32_0 : i32, i32
  }
  func.func @transform_3(%arg0: i32) -> (i32, i32) {
    %c0_i32 = arith.constant 0 : i32
    %c0_i32_0 = arith.constant 0 : i32
    return %c0_i32, %arg0 : i32, i32
  }
}

module attributes {stable_mosaic.version = 11 : i64} {
  func.func @_conv_gemm_kernel(%arg0: i32, %arg1: memref<512x162xbf16, #tpu.memory_space<vmem>>, %arg2: memref<64x512xbf16, #tpu.memory_space<vmem>>, %arg3: memref<64x1xf32, #tpu.memory_space<vmem>>, %arg4: memref<64x162xbf16, #tpu.memory_space<vmem>>) attributes {dimension_semantics = [#tpu.dimension_semantics<parallel>], iteration_bounds = array<i64: 1>, scalar_prefetch = 0 : i64, scratch_operands = 0 : i64, tpu.core_type = #tpu.core_type<tc>, window_params = [{transform_indices = @transform_0, window_bounds = array<i64: 512, 162>}, {pipeline_mode = #tpu.pipeline_mode<synchronous>, transform_indices = @transform_1, window_bounds = array<i64: 64, 512>}, {pipeline_mode = #tpu.pipeline_mode<synchronous>, transform_indices = @transform_2, window_bounds = array<i64: 64, 1>}, {transform_indices = @transform_3, window_bounds = array<i64: 64, 162>}]} {
    %c0 = arith.constant 0 : index
    %c0_0 = arith.constant 0 : index
    %0 = vector.load %arg2[%c0, %c0_0] : memref<64x512xbf16, #tpu.memory_space<vmem>>, vector<64x512xbf16>
    %c0_1 = arith.constant 0 : index
    %c0_2 = arith.constant 0 : index
    %1 = vector.load %arg1[%c0_1, %c0_2] : memref<512x162xbf16, #tpu.memory_space<vmem>>, vector<512x162xbf16>
    %cst = arith.constant dense<0.000000e+00> : vector<64x162xf32>
    %2 = tpu.matmul %0, %1, %cst {dimension_numbers = #tpu.dot_dimension_numbers<[1], [0], [0], [1], [0, 0, 1, 1], [], []>} : vector<64x512xbf16>, vector<512x162xbf16>, vector<64x162xf32> -> vector<64x162xf32>
    %c0_3 = arith.constant 0 : index
    %c0_4 = arith.constant 0 : index
    %3 = vector.load %arg3[%c0_3, %c0_4] : memref<64x1xf32, #tpu.memory_space<vmem>>, vector<64x1xf32>
    %4 = vector.broadcast %3 : vector<64x1xf32> to vector<64x162xf32>
    %5 = arith.addf %2, %4 : vector<64x162xf32>
    %cst_5 = arith.constant 0.000000e+00 : f32
    %6 = vector.broadcast %cst_5 : f32 to vector<64x162xf32>
    %7 = arith.maximumf %5, %6 : vector<64x162xf32>
    %8 = arith.truncf %7 : vector<64x162xf32> to vector<64x162xbf16>
    %c0_6 = arith.constant 0 : index
    %c0_7 = arith.constant 0 : index
    %9 = vector.load %arg4[%c0_6, %c0_7] : memref<64x162xbf16, #tpu.memory_space<vmem>>, vector<64x162xbf16>
    tpu.vector_store %arg4[%c0_6, %c0_7], %8 {strides = array<i32>} : memref<64x162xbf16, #tpu.memory_space<vmem>>, vector<64x162xbf16>,
    return
  }
  func.func @transform_0(%arg0: i32) -> (i32, i32) {
    %c0_i32 = arith.constant 0 : i32
    %c0_i32_0 = arith.constant 0 : i32
    return %c0_i32, %arg0 : i32, i32
  }
  func.func @transform_1(%arg0: i32) -> (i32, i32) {
    %c0_i32 = arith.constant 0 : i32
    %c0_i32_0 = arith.constant 0 : i32
    %c0_i32_1 = arith.constant 0 : i32
    return %c0_i32, %c0_i32_0 : i32, i32
  }
  func.func @transform_2(%arg0: i32) -> (i32, i32) {
    %c0_i32 = arith.constant 0 : i32
    %c0_i32_0 = arith.constant 0 : i32
    %c0_i32_1 = arith.constant 0 : i32
    return %c0_i32, %c0_i32_0 : i32, i32
  }
  func.func @transform_3(%arg0: i32) -> (i32, i32) {
    %c0_i32 = arith.constant 0 : i32
    %c0_i32_0 = arith.constant 0 : i32
    return %c0_i32, %arg0 : i32, i32
  }
}

module attributes {stable_mosaic.version = 11 : i64} {
  func.func @_conv_gemm_kernel(%arg0: i32, %arg1: memref<576x98xbf16, #tpu.memory_space<vmem>>, %arg2: memref<64x576xbf16, #tpu.memory_space<vmem>>, %arg3: memref<64x1xf32, #tpu.memory_space<vmem>>, %arg4: memref<64x98xbf16, #tpu.memory_space<vmem>>) attributes {dimension_semantics = [#tpu.dimension_semantics<parallel>], iteration_bounds = array<i64: 1>, scalar_prefetch = 0 : i64, scratch_operands = 0 : i64, tpu.core_type = #tpu.core_type<tc>, window_params = [{transform_indices = @transform_0, window_bounds = array<i64: 576, 98>}, {pipeline_mode = #tpu.pipeline_mode<synchronous>, transform_indices = @transform_1, window_bounds = array<i64: 64, 576>}, {pipeline_mode = #tpu.pipeline_mode<synchronous>, transform_indices = @transform_2, window_bounds = array<i64: 64, 1>}, {transform_indices = @transform_3, window_bounds = array<i64: 64, 98>}]} {
    %c0 = arith.constant 0 : index
    %c0_0 = arith.constant 0 : index
    %0 = vector.load %arg2[%c0, %c0_0] : memref<64x576xbf16, #tpu.memory_space<vmem>>, vector<64x576xbf16>
    %c0_1 = arith.constant 0 : index
    %c0_2 = arith.constant 0 : index
    %1 = vector.load %arg1[%c0_1, %c0_2] : memref<576x98xbf16, #tpu.memory_space<vmem>>, vector<576x98xbf16>
    %cst = arith.constant dense<0.000000e+00> : vector<64x98xf32>
    %2 = tpu.matmul %0, %1, %cst {dimension_numbers = #tpu.dot_dimension_numbers<[1], [0], [0], [1], [0, 0, 1, 1], [], []>} : vector<64x576xbf16>, vector<576x98xbf16>, vector<64x98xf32> -> vector<64x98xf32>
    %c0_3 = arith.constant 0 : index
    %c0_4 = arith.constant 0 : index
    %3 = vector.load %arg3[%c0_3, %c0_4] : memref<64x1xf32, #tpu.memory_space<vmem>>, vector<64x1xf32>
    %4 = vector.broadcast %3 : vector<64x1xf32> to vector<64x98xf32>
    %5 = arith.addf %2, %4 : vector<64x98xf32>
    %cst_5 = arith.constant 0.000000e+00 : f32
    %6 = vector.broadcast %cst_5 : f32 to vector<64x98xf32>
    %7 = arith.maximumf %5, %6 : vector<64x98xf32>
    %8 = arith.truncf %7 : vector<64x98xf32> to vector<64x98xbf16>
    %c0_6 = arith.constant 0 : index
    %c0_7 = arith.constant 0 : index
    %9 = vector.load %arg4[%c0_6, %c0_7] : memref<64x98xbf16, #tpu.memory_space<vmem>>, vector<64x98xbf16>
    tpu.vector_store %arg4[%c0_6, %c0_7], %8 {strides = array<i32>} : memref<64x98xbf16, #tpu.memory_space<vmem>>, vector<64x98xbf16>,
    return
  }
  func.func @transform_0(%arg0: i32) -> (i32, i32) {
    %c0_i32 = arith.constant 0 : i32
    %c0_i32_0 = arith.constant 0 : i32
    return %c0_i32, %arg0 : i32, i32
  }
  func.func @transform_1(%arg0: i32) -> (i32, i32) {
    %c0_i32 = arith.constant 0 : i32
    %c0_i32_0 = arith.constant 0 : i32
    %c0_i32_1 = arith.constant 0 : i32
    return %c0_i32, %c0_i32_0 : i32, i32
  }
  func.func @transform_2(%arg0: i32) -> (i32, i32) {
    %c0_i32 = arith.constant 0 : i32
    %c0_i32_0 = arith.constant 0 : i32
    %c0_i32_1 = arith.constant 0 : i32
    return %c0_i32, %c0_i32_0 : i32, i32
  }
  func.func @transform_3(%arg0: i32) -> (i32, i32) {
    %c0_i32 = arith.constant 0 : i32
    %c0_i32_0 = arith.constant 0 : i32
    return %c0_i32, %arg0 : i32, i32
  }
}

module attributes {stable_mosaic.version = 11 : i64} {
  func.func @_fused_head_kernel(%arg0: i32, %arg1: memref<8x3136xbf16, #tpu.memory_space<vmem>>, %arg2: memref<3136x1024xbf16, #tpu.memory_space<vmem>>, %arg3: memref<1x1024xf32, #tpu.memory_space<vmem>>, %arg4: memref<1024x128xbf16, #tpu.memory_space<vmem>>, %arg5: memref<1x128xf32, #tpu.memory_space<vmem>>, %arg6: memref<8x128xf32, #tpu.memory_space<vmem>>) attributes {dimension_semantics = [#tpu.dimension_semantics<parallel>], iteration_bounds = array<i64: 1>, scalar_prefetch = 0 : i64, scratch_operands = 0 : i64, tpu.core_type = #tpu.core_type<tc>, window_params = [{transform_indices = @transform_0, window_bounds = array<i64: 8, 3136>}, {pipeline_mode = #tpu.pipeline_mode<synchronous>, transform_indices = @transform_1, window_bounds = array<i64: 3136, 1024>}, {pipeline_mode = #tpu.pipeline_mode<synchronous>, transform_indices = @transform_2, window_bounds = array<i64: 1, 1024>}, {pipeline_mode = #tpu.pipeline_mode<synchronous>, transform_indices = @transform_3, window_bounds = array<i64: 1024, 128>}, {pipeline_mode = #tpu.pipeline_mode<synchronous>, transform_indices = @transform_4, window_bounds = array<i64: 1, 128>}, {transform_indices = @transform_5, window_bounds = array<i64: 8, 128>}]} {
    %c0 = arith.constant 0 : index
    %c0_0 = arith.constant 0 : index
    %0 = vector.load %arg1[%c0, %c0_0] : memref<8x3136xbf16, #tpu.memory_space<vmem>>, vector<8x3136xbf16>
    %c0_1 = arith.constant 0 : index
    %c0_2 = arith.constant 0 : index
    %1 = vector.load %arg2[%c0_1, %c0_2] : memref<3136x1024xbf16, #tpu.memory_space<vmem>>, vector<3136x1024xbf16>
    %cst = arith.constant dense<0.000000e+00> : vector<8x1024xf32>
    %2 = tpu.matmul %0, %1, %cst {dimension_numbers = #tpu.dot_dimension_numbers<[1], [0], [0], [1], [0, 0, 1, 1], [], []>} : vector<8x3136xbf16>, vector<3136x1024xbf16>, vector<8x1024xf32> -> vector<8x1024xf32>
    %c0_3 = arith.constant 0 : index
    %c0_4 = arith.constant 0 : index
    %3 = vector.load %arg3[%c0_3, %c0_4] : memref<1x1024xf32, #tpu.memory_space<vmem>>, vector<1x1024xf32>
    %4 = vector.broadcast %3 : vector<1x1024xf32> to vector<8x1024xf32>
    %5 = arith.addf %2, %4 : vector<8x1024xf32>
    %cst_5 = arith.constant 0.000000e+00 : f32
    %6 = vector.broadcast %cst_5 : f32 to vector<8x1024xf32>
    %7 = arith.maximumf %5, %6 : vector<8x1024xf32>
    %8 = arith.truncf %7 : vector<8x1024xf32> to vector<8x1024xbf16>
    %c0_6 = arith.constant 0 : index
    %c0_7 = arith.constant 0 : index
    %9 = vector.load %arg4[%c0_6, %c0_7] : memref<1024x128xbf16, #tpu.memory_space<vmem>>, vector<1024x128xbf16>
    %cst_8 = arith.constant dense<0.000000e+00> : vector<8x128xf32>
    %10 = tpu.matmul %8, %9, %cst_8 {dimension_numbers = #tpu.dot_dimension_numbers<[1], [0], [0], [1], [0, 0, 1, 1], [], []>} : vector<8x1024xbf16>, vector<1024x128xbf16>, vector<8x128xf32> -> vector<8x128xf32>
    %c0_9 = arith.constant 0 : index
    %c0_10 = arith.constant 0 : index
    %11 = vector.load %arg5[%c0_9, %c0_10] : memref<1x128xf32, #tpu.memory_space<vmem>>, vector<1x128xf32>
    %12 = vector.broadcast %11 : vector<1x128xf32> to vector<8x128xf32>
    %13 = arith.addf %10, %12 : vector<8x128xf32>
    %14 = vector.extract_strided_slice %13 {offsets = [0, 0], sizes = [8, 6], strides = [1, 1]} : vector<8x128xf32> to vector<8x6xf32>
    %15 = vector.extract_strided_slice %13 {offsets = [0, 6], sizes = [8, 1], strides = [1, 1]} : vector<8x128xf32> to vector<8x1xf32>
    %cst_11 = arith.constant dense<0.000000e+00> : vector<8xf32>
    %16 = vector.multi_reduction <add>, %14, %cst_11 [1] : vector<8x6xf32> to vector<8xf32>
    %17 = vector.shape_cast %16 : vector<8xf32> to vector<8x1xf32>
    %cst_12 = arith.constant 6.000000e+00 : f32
    %18 = vector.broadcast %cst_12 : f32 to vector<8x1xf32>
    %19 = arith.divf %17, %18 : vector<8x1xf32>
    %20 = arith.subf %15, %19 : vector<8x1xf32>
    %21 = vector.broadcast %20 : vector<8x1xf32> to vector<8x128xf32>
    %22 = arith.addf %13, %21 : vector<8x128xf32>
    %c0_13 = arith.constant 0 : index
    %c0_14 = arith.constant 0 : index
    %23 = vector.load %arg6[%c0_13, %c0_14] : memref<8x128xf32, #tpu.memory_space<vmem>>, vector<8x128xf32>
    tpu.vector_store %arg6[%c0_13, %c0_14], %22 {strides = array<i32>} : memref<8x128xf32, #tpu.memory_space<vmem>>, vector<8x128xf32>,
    return
  }
  func.func @transform_0(%arg0: i32) -> (i32, i32) {
    %c0_i32 = arith.constant 0 : i32
    %c0_i32_0 = arith.constant 0 : i32
    return %arg0, %c0_i32 : i32, i32
  }
  func.func @transform_1(%arg0: i32) -> (i32, i32) {
    %c0_i32 = arith.constant 0 : i32
    %c0_i32_0 = arith.constant 0 : i32
    %c0_i32_1 = arith.constant 0 : i32
    return %c0_i32, %c0_i32_0 : i32, i32
  }
  func.func @transform_2(%arg0: i32) -> (i32, i32) {
    %c0_i32 = arith.constant 0 : i32
    %c0_i32_0 = arith.constant 0 : i32
    %c0_i32_1 = arith.constant 0 : i32
    return %c0_i32, %c0_i32_0 : i32, i32
  }
  func.func @transform_3(%arg0: i32) -> (i32, i32) {
    %c0_i32 = arith.constant 0 : i32
    %c0_i32_0 = arith.constant 0 : i32
    %c0_i32_1 = arith.constant 0 : i32
    return %c0_i32, %c0_i32_0 : i32, i32
  }
  func.func @transform_4(%arg0: i32) -> (i32, i32) {
    %c0_i32 = arith.constant 0 : i32
    %c0_i32_0 = arith.constant 0 : i32
    %c0_i32_1 = arith.constant 0 : i32
    return %c0_i32, %c0_i32_0 : i32, i32
  }
  func.func @transform_5(%arg0: i32) -> (i32, i32) {
    %c0_i32 = arith.constant 0 : i32
    %c0_i32_0 = arith.constant 0 : i32
    return %arg0, %c0_i32 : i32, i32
  }
}

</mosaic_0001>

<bundles_post_ra>
// kernel: ddqn_forward.4
= control target key start
LH: loop header
LB: loop body
LE: loop exit
PB: predicated region body
PF: predicated region fallthrough
CT: control target
= control target key end

     0   :  { %v1457_v11 = vmov 0   ;;  %vm1094_vm0 = vcmask 257024   ;;  %s1950_s0 = inlined_call_operand.vmem [shape: bf16[256,800], index: 0, kind: input, shape index: {}]   ;;  %s1951_s1 = inlined_call_operand.vmem [shape: bf16[32,256], index: 1, kind: input, shape index: {}]   ;;  %s1952_s2 = inlined_call_operand.vmem [shape: f32[32,1], index: 2, kind: input, shape index: {}]   ;;  %s1953_s3 = inlined_call_operand.vmem [shape: bf16[32,800], index: 3, kind: output, shape index: {}]  }
   0x1   :  { %v1291_v0 = vld [vmem:[%s1950_s0 + $0x4] ss:$28 sps:$4 sm:$0xff]   ;;  %v1294_v2 = vld [vmem:[%s1950_s0 + $0x3c] ss:$28 sps:$4 sm:$0xff]   ;;  %v1297_v4 = vld [vmem:[%s1950_s0 + $0x74] ss:$28 sps:$4 sm:$0xff]   ;;  %1289 = vset.pattern.permute.xlu0 %v1457_v11  ;;  %1290 = vset.pattern.permute.xlu1 %v1457_v11 }
   0x2   :  { %v1293_v1 = vld [vmem:[%s1950_s0] ss:$28 sps:$4 sm:$0xff]   ;;  %767 = vmatprep.subr.bf16.mxu0 %v1291_v0  ;;  %v1296_v3 = vld [vmem:[%s1950_s0 + $0x38] ss:$28 sps:$4 sm:$0xff]   ;;  %v1299_v5 = vld [vmem:[%s1950_s0 + $0x70] ss:$28 sps:$4 sm:$0xff]  }
   0x3   :  { %768 = vmatpush1.bf16.msra.mxu0 %v1293_v1  ;;  %v1300_v6 = vld [vmem:[%s1950_s0 + $0xac] ss:$28 sps:$4 sm:$0xff]   ;;  %v1303_v10 = vld [vmem:[%s1950_s0 + $0xe4] ss:$28 sps:$4 sm:$0xff]   ;;  %v1324_v15 = vld [vmem:[%s1950_s0 + $0x7c] ss:$28 sps:$4 sm:$0xff]  }
   0x4   :  { %769 = vmatprep.subr.bf16.mxu0 %v1294_v2  ;;  %v1312_v7 = vld [vmem:[%s1950_s0 + $0xc] ss:$28 sps:$4 sm:$0xff]   ;;  %v1318_v12 = vld [vmem:[%s1950_s0 + $0x44] ss:$28 sps:$4 sm:$0xff]   ;;  %v1306_v16 = vld [vmem:[%s1950_s0 + $0x11c] ss:$28 sps:$4 sm:$0xff]  }
   0x5   :  { %v1314_v8 = vld [vmem:[%s1950_s0 + $0x8] ss:$28 sps:$4 sm:$0xff]   ;;  %820 = vmatprep.subr.bf16.mxu1 %v1312_v7  ;;  %v1320_v13 = vld [vmem:[%s1950_s0 + $0x40] ss:$28 sps:$4 sm:$0xff]   ;;  %v1326_v17 = vld [vmem:[%s1950_s0 + $0x78] ss:$28 sps:$4 sm:$0xff]  }
   0x6   :  { %v1302_v9 = vld [vmem:[%s1950_s0 + $0xa8] ss:$28 sps:$4 sm:$0xff]   ;;  %821 = vmatpush1.bf16.msra.mxu1 %v1314_v8  ;;  %v1305_v14 = vld [vmem:[%s1950_s0 + $0xe0] ss:$28 sps:$4 sm:$0xff]   ;;  %v1330_v18 = vld [vmem:[%s1950_s0 + $0xb4] ss:$28 sps:$4 sm:$0xff]  }
   0x7   :  { %770 = vmatpush1.bf16.msra.mxu0 %v1296_v3  ;;  %822 = vmatprep.subr.bf16.mxu1 %v1318_v12  ;;  %v1308_v19 = vld [vmem:[%s1950_s0 + $0x118] ss:$28 sps:$4 sm:$0xff]   ;;  %v1332_v21 = vld [vmem:[%s1950_s0 + $0xb0] ss:$28 sps:$4 sm:$0xff]   ;;  %v1338_v25 = vld [vmem:[%s1950_s0 + $0xe8] ss:$28 sps:$4 sm:$0xff]  }
   0x8   :  { %771 = vmatprep.subr.bf16.mxu0 %v1297_v4  ;;  %v1309_v20 = vld [vmem:[%s1950_s0 + $0x154] ss:$28 sps:$4 sm:$0xff]   ;;  %v1336_v22 = vld [vmem:[%s1950_s0 + $0xec] ss:$28 sps:$4 sm:$0xff]   ;;  %v1342_v26 = vld [vmem:[%s1950_s0 + $0x124] ss:$28 sps:$4 sm:$0xff]  }
   0x9   :  { %v1311_v23 = vld [vmem:[%s1950_s0 + $0x150] ss:$28 sps:$4 sm:$0xff]   ;;  %v1317_v27 = vld [vmem:[%s1950_s0 + $0x188] ss:$28 sps:$4 sm:$0xff]   ;;  %v1344_v29 = vld [vmem:[%s1950_s0 + $0x120] ss:$28 sps:$4 sm:$0xff]  }
   0xa   :  { %823 = vmatpush1.bf16.msra.mxu1 %v1320_v13  ;;  %v1315_v24 = vld [vmem:[%s1950_s0 + $0x18c] ss:$28 sps:$4 sm:$0xff]   ;;  %v1321_v28 = vld [vmem:[%s1950_s0 + $0x1c4] ss:$28 sps:$4 sm:$0xff]   ;;  %v1348_v30 = vld [vmem:[%s1950_s0 + $0x15c] ss:$28 sps:$4 sm:$0xff]  }
   0xb   :  { %772 = vmatpush1.bf16.msra.mxu0 %v1299_v5  ;;  %824 = vmatprep.subr.bf16.mxu1 %v1324_v15  ;;  %v1323_v31 = vld [vmem:[%s1950_s0 + $0x1c0] ss:$28 sps:$4 sm:$0xff]   ;;  %v1350_v33 = vld [vmem:[%s1950_s0 + $0x158] ss:$28 sps:$4 sm:$0xff]   ;;  %v1586_v36 = vld [vmem:[%s1951_s1 + $0x4] ss:$8 sps:$4 sm:$0xff]  }
   0xc   :  { %773 = vmatprep.subr.bf16.mxu0 %v1300_v6  ;;  %v1327_v32 = vld [vmem:[%s1950_s0 + $0x1fc] ss:$28 sps:$4 sm:$0xff]   ;;  %v1354_v34 = vld [vmem:[%s1950_s0 + $0x194] ss:$28 sps:$4 sm:$0xff]   ;;  %799 = vmatprep.mubr.bf16.mxu0 %v1586_v36  ;;  %v1360_v39 = vld [vmem:[%s1950_s0 + $0x1cc] ss:$28 sps:$4 sm:$0xff]  }
   0xd   :  { %v1329_v35 = vld [vmem:[%s1950_s0 + $0x1f8] ss:$28 sps:$4 sm:$0xff]   ;;  %v1356_v38 = vld [vmem:[%s1950_s0 + $0x190] ss:$28 sps:$4 sm:$0xff]   ;;  %852 = vmatprep.mubr.bf16.mxu1 %v1586_v36  ;;  %v1362_v42 = vld [vmem:[%s1950_s0 + $0x1c8] ss:$28 sps:$4 sm:$0xff]  }
   0xe   :  { %825 = vmatpush1.bf16.msra.mxu1 %v1326_v17  ;;  %v1333_v37 = vld [vmem:[%s1950_s0 + $0x234] ss:$28 sps:$4 sm:$0xff]   ;;  %v1339_v41 = vld [vmem:[%s1950_s0 + $0x26c] ss:$28 sps:$4 sm:$0xff]   ;;  %v1366_v43 = vld [vmem:[%s1950_s0 + $0x204] ss:$28 sps:$4 sm:$0xff]  }
   0xf   :  { %774 = vmatpush1.bf16.msra.mxu0 %v1302_v9  ;;  %826 = vmatprep.subr.bf16.mxu1 %v1330_v18  ;;  %v1335_v40 = vld [vmem:[%s1950_s0 + $0x230] ss:$28 sps:$4 sm:$0xff]   ;;  %v1341_v44 = vld [vmem:[%s1950_s0 + $0x268] ss:$28 sps:$4 sm:$0xff]   ;;  %v1370_v46 = vld [vmem:[%s1950_s0 + $0x200] ss:$28 sps:$4 sm:$0xff]  }
  0x10   :  { %775 = vmatprep.subr.bf16.mxu0 %v1303_v10  ;;  %v1345_v45 = vld [vmem:[%s1950_s0 + $0x2a4] ss:$28 sps:$4 sm:$0xff]   ;;  %v1375_v47 = vld [vmem:[%s1950_s0 + $0x23c] ss:$28 sps:$4 sm:$0xff]   ;;  %v1381_v51 = vld [vmem:[%s1950_s0 + $0x274] ss:$28 sps:$4 sm:$0xff]  }
  0x11   :  { %v1347_v48 = vld [vmem:[%s1950_s0 + $0x2a0] ss:$28 sps:$4 sm:$0xff]   ;;  %v1377_v50 = vld [vmem:[%s1950_s0 + $0x238] ss:$28 sps:$4 sm:$0xff]   ;;  %v1383_v54 = vld [vmem:[%s1950_s0 + $0x270] ss:$28 sps:$4 sm:$0xff]  }
  0x12   :  { %827 = vmatpush1.bf16.msra.mxu1 %v1332_v21  ;;  %v1351_v49 = vld [vmem:[%s1950_s0 + $0x2dc] ss:$28 sps:$4 sm:$0xff]   ;;  %v1357_v53 = vld [vmem:[%s1950_s0 + $0x314] ss:$28 sps:$4 sm:$0xff]   ;;  %v1387_v55 = vld [vmem:[%s1950_s0 + $0x2ac] ss:$28 sps:$4 sm:$0xff]  }
  0x13   :  { %776 = vmatpush1.bf16.msra.mxu0 %v1305_v14  ;;  %828 = vmatprep.subr.bf16.mxu1 %v1336_v22  ;;  %v1353_v52 = vld [vmem:[%s1950_s0 + $0x2d8] ss:$28 sps:$4 sm:$0xff]   ;;  %v1359_v56 = vld [vmem:[%s1950_s0 + $0x310] ss:$28 sps:$4 sm:$0xff]   ;;  %v1389_v58 = vld [vmem:[%s1950_s0 + $0x2a8] ss:$28 sps:$4 sm:$0xff]  }
  0x14   :  { %777 = vmatprep.subr.bf16.mxu0 %v1306_v16  ;;  %v1363_v57 = vld [vmem:[%s1950_s0 + $0x34c] ss:$28 sps:$4 sm:$0xff]   ;;  %v1393_v59 = vld [vmem:[%s1950_s0 + $0x2e4] ss:$28 sps:$4 sm:$0xff]   ;;  %v1374_v62 = vld [vmem:[%s1950_s0 + $0x14] ss:$28 sps:$4 sm:$0xff]  }
  0x15   :  { %v1365_v60 = vld [vmem:[%s1950_s0 + $0x348] ss:$28 sps:$4 sm:$0xff]   ;;  %v1395_v63 = vld [vmem:[%s1950_s0 + $0x2e0] ss:$28 sps:$4 sm:$0xff]   ;;  %v1372_v1 = vld [vmem:[%s1950_s0 + $0x10] ss:$28 sps:$4 sm:$0xff]  }
  0x16   :  { %829 = vmatpush1.bf16.msra.mxu1 %v1338_v25  ;;  %v1665_v61 = vld [vmem:[%s1951_s1] ss:$8 sps:$4 sm:$0xff]   ;;  %v1399_v0 = vld [vmem:[%s1950_s0 + $0x31c] ss:$28 sps:$4 sm:$0xff]   ;;  %v1405_v4 = vld [vmem:[%s1950_s0 + $0x354] ss:$28 sps:$4 sm:$0xff]  }
  0x17   :  { %778 = vmatpush1.bf16.msra.mxu0 %v1308_v19  ;;  %830 = vmatprep.subr.bf16.mxu1 %v1342_v26  ;;  %v1380_v2 = vld [vmem:[%s1950_s0 + $0x4c] ss:$28 sps:$4 sm:$0xff]   ;;  %v1401_v3 = vld [vmem:[%s1950_s0 + $0x318] ss:$28 sps:$4 sm:$0xff]   ;;  %v1386_v6 = vld [vmem:[%s1950_s0 + $0x84] ss:$28 sps:$4 sm:$0xff]  }
  0x18   :  { %779 = vmatprep.subr.bf16.mxu0 %v1309_v20  ;;  %v1378_v5 = vld [vmem:[%s1950_s0 + $0x48] ss:$28 sps:$4 sm:$0xff]   ;;  %v1407_v7 = vld [vmem:[%s1950_s0 + $0x350] ss:$28 sps:$4 sm:$0xff]   ;;  %v1411_v8 = vld [vmem:[%s1950_s0 + $0x1d8] ss:$28 sps:$4 sm:$0xff]  }
  0x19   :  { %v1384_v9 = vld [vmem:[%s1950_s0 + $0x80] ss:$28 sps:$4 sm:$0xff]   ;;  %v1412_v11 = vld [vmem:[%s1950_s0 + $0x18] ss:$28 sps:$4 sm:$0xff]   ;;  %v1416_v12 = vld [vmem:[%s1950_s0 + $0x210] ss:$28 sps:$4 sm:$0xff]  }
  0x1a   :  { %831 = vmatpush1.bf16.msra.mxu1 %v1344_v29  ;;  %v1392_v10 = vld [vmem:[%s1950_s0 + $0xbc] ss:$28 sps:$4 sm:$0xff]   ;;  %v1398_v15 = vld [vmem:[%s1950_s0 + $0xf4] ss:$28 sps:$4 sm:$0xff]   ;;  %v1421_v17 = vld [vmem:[%s1950_s0 + $0x248] ss:$28 sps:$4 sm:$0xff]  }
  0x1b   :  { %780 = vmatpush1.bf16.msra.mxu0 %v1311_v23  ;;  %832 = vmatprep.subr.bf16.mxu1 %v1348_v30  ;;  %v1716_v13 = vld [vmem:[%s1951_s1 + $0x14] ss:$8 sps:$4 sm:$0xff]   ;;  %v1417_v16 = vld [vmem:[%s1950_s0 + $0x50] ss:$28 sps:$4 sm:$0xff]   ;;  %v1422_v21 = vld [vmem:[%s1950_s0 + $0x88] ss:$28 sps:$4 sm:$0xff]  }
  0x1c   :  { %781 = vmatprep.subr.bf16.mxu0 %v1315_v24  ;;  %v1390_v14 = vld [vmem:[%s1950_s0 + $0xb8] ss:$28 sps:$4 sm:$0xff]   ;;  %v1396_v19 = vld [vmem:[%s1950_s0 + $0xf0] ss:$28 sps:$4 sm:$0xff]   ;;  %v1426_v22 = vld [vmem:[%s1950_s0 + $0x280] ss:$28 sps:$4 sm:$0xff]  }
  0x1d   :  { %v1735_v18 = vld [vmem:[%s1951_s1 + $0x10] ss:$8 sps:$4 sm:$0xff]   ;;  %v1404_v20 = vld [vmem:[%s1950_s0 + $0x12c] ss:$28 sps:$4 sm:$0xff]   ;;  %v147_v23 = vld [vmem:[%s1952_s2] sm:$0xff] }
  0x1e   :  { %833 = vmatpush1.bf16.msra.mxu1 %v1350_v33  ;;  %v1402_v24 = vld [vmem:[%s1950_s0 + $0x128] ss:$28 sps:$4 sm:$0xff]   ;;  %153 = vperm.xlu0 %1289, %v147_v23   ;;  %v149_v25 = vld [vmem:[%s1952_s2 + $0x10] sm:$0xff]  ;;  %v1408_v30 = vld [vmem:[%s1950_s0 + $0x160] ss:$28 sps:$4 sm:$0xff]  }
  0x1f   :  { %782 = vmatpush1.bf16.msra.mxu0 %v1317_v27  ;;  %834 = vmatprep.subr.bf16.mxu1 %v1354_v34  ;;  %v1410_v26 = vld [vmem:[%s1950_s0 + $0x164] ss:$28 sps:$4 sm:$0xff]   ;;  %v148_v27 = vld [vmem:[%s1952_s2 + $0x8] sm:$0xff]  ;;  %v1431_v29 = vld [vmem:[%s1950_s0 + $0x2b8] ss:$28 sps:$4 sm:$0xff]  }
  0x20   :  { %783 = vmatprep.subr.bf16.mxu0 %v1321_v28  ;;  %v1427_v28 = vld [vmem:[%s1950_s0 + $0xc0] ss:$28 sps:$4 sm:$0xff]   ;;  %163 = vperm.xlu1 %1290, %v149_v25   ;;  %v1432_v33 = vld [vmem:[%s1950_s0 + $0xf8] ss:$28 sps:$4 sm:$0xff]   ;;  %v1436_v34 = vld [vmem:[%s1950_s0 + $0x2f0] ss:$28 sps:$4 sm:$0xff]  }
  0x22   :  { %835 = vmatpush1.bf16.msra.mxu1 %v1356_v38  ;;  %158 = vperm.xlu0 %1289, %v148_v27   ;;  %v1444_v38 = vld [vmem:[%s1950_s0 + $0x328] ss:$28 sps:$4 sm:$0xff]  }
  0x23   :  { %784 = vmatpush1.bf16.msra.mxu0 %v1323_v31  ;;  %836 = vmatprep.subr.bf16.mxu1 %v1360_v39  ;;  %v150_v31 = vld [vmem:[%s1952_s2 + $0x18] sm:$0xff]  ;;  %v1418_v39 = vld [vmem:[%s1950_s0 + $0x1d0] ss:$28 sps:$4 sm:$0xff]  }
  0x24   :  { %785 = vmatprep.subr.bf16.mxu0 %v1327_v32  ;;  %v1415_v32 = vld [vmem:[%s1950_s0 + $0x19c] ss:$28 sps:$4 sm:$0xff]   ;;  %168 = vperm.xlu1 %1290, %v150_v31  }
  0x26   :  { %837 = vmatpush1.bf16.msra.mxu1 %v1362_v42  ;;  %v1449_v42 = vld [vmem:[%s1950_s0 + $0x360] ss:$28 sps:$4 sm:$0xff]  }
  0x27   :  { %786 = vmatpush1.bf16.msra.mxu0 %v1329_v35  ;;  %838 = vmatprep.subr.bf16.mxu1 %v1366_v43  ;;  %v1413_v35 = vld [vmem:[%s1950_s0 + $0x198] ss:$28 sps:$4 sm:$0xff]   ;;  %v1423_v43 = vld [vmem:[%s1950_s0 + $0x208] ss:$28 sps:$4 sm:$0xff]  }
  0x28   :  { %787 = vmatprep.subr.bf16.mxu0 %v1333_v37  ;;  %v1437_v37 = vld [vmem:[%s1950_s0 + $0x130] ss:$28 sps:$4 sm:$0xff]  }
  0x2a   :  { %839 = vmatpush1.bf16.msra.mxu1 %v1370_v46  ;;  %v1428_v46 = vld [vmem:[%s1950_s0 + $0x240] ss:$28 sps:$4 sm:$0xff]  }
  0x2b   :  { %788 = vmatpush1.bf16.msra.mxu0 %v1335_v40  ;;  %840 = vmatprep.subr.bf16.mxu1 %v1375_v47  ;;  %v1425_v40 = vld [vmem:[%s1950_s0 + $0x20c] ss:$28 sps:$4 sm:$0xff]   ;;  %v1435_v47 = vld [vmem:[%s1950_s0 + $0x27c] ss:$28 sps:$4 sm:$0xff]  }
  0x2c   :  { %789 = vmatprep.subr.bf16.mxu0 %v1339_v41  ;;  %v1445_v41 = vld [vmem:[%s1950_s0 + $0x168] ss:$28 sps:$4 sm:$0xff]  }
  0x2e   :  { %841 = vmatpush1.bf16.msra.mxu1 %v1377_v50  ;;  %v1438_v50 = vld [vmem:[%s1950_s0 + $0x2b0] ss:$28 sps:$4 sm:$0xff]  }
  0x2f   :  { %790 = vmatpush1.bf16.msra.mxu0 %v1341_v44  ;;  %842 = vmatprep.subr.bf16.mxu1 %v1381_v51  ;;  %v1430_v44 = vld [vmem:[%s1950_s0 + $0x244] ss:$28 sps:$4 sm:$0xff]   ;;  %v1448_v51 = vld [vmem:[%s1950_s0 + $0x2ec] ss:$28 sps:$4 sm:$0xff]  }
  0x30   :  { %791 = vmatprep.subr.bf16.mxu0 %v1345_v45  ;;  %v1450_v45 = vld [vmem:[%s1950_s0 + $0x1a0] ss:$28 sps:$4 sm:$0xff]  }
  0x32   :  { %843 = vmatpush1.bf16.msra.mxu1 %v1383_v54  ;;  %v1451_v54 = vld [vmem:[%s1950_s0 + $0x320] ss:$28 sps:$4 sm:$0xff]  }
  0x33   :  { %792 = vmatpush1.bf16.msra.mxu0 %v1347_v48  ;;  %844 = vmatprep.subr.bf16.mxu1 %v1387_v55  ;;  %v1433_v48 = vld [vmem:[%s1950_s0 + $0x278] ss:$28 sps:$4 sm:$0xff]  }
  0x34   :  { %793 = vmatprep.subr.bf16.mxu0 %v1351_v49  ;;  %v1440_v49 = vld [vmem:[%s1950_s0 + $0x2b4] ss:$28 sps:$4 sm:$0xff]   ;;  %v1456_v55 = vld [vmem:[%s1950_s0 + $0x35c] ss:$28 sps:$4 sm:$0xff]  }
  0x36   :  { %845 = vmatpush1.bf16.msra.mxu1 %v1389_v58 }
  0x37   :  { %794 = vmatpush1.bf16.msra.mxu0 %v1353_v52  ;;  %846 = vmatprep.subr.bf16.mxu1 %v1393_v59  ;;  %v1446_v52 = vld [vmem:[%s1950_s0 + $0x2e8] ss:$28 sps:$4 sm:$0xff]  }
  0x38   :  { %795 = vmatprep.subr.bf16.mxu0 %v1357_v53  ;;  %v1453_v53 = vld [vmem:[%s1950_s0 + $0x324] ss:$28 sps:$4 sm:$0xff]  }
  0x3a   :  { %847 = vmatpush1.bf16.msra.mxu1 %v1395_v63 }
  0x3b   :  { %796 = vmatpush1.bf16.msra.mxu0 %v1359_v56  ;;  %848 = vmatprep.subr.bf16.mxu1 %v1399_v0  ;;  %v1454_v56 = vld [vmem:[%s1950_s0 + $0x358] ss:$28 sps:$4 sm:$0xff]  }
  0x3c   :  { %797 = vmatprep.subr.bf16.mxu0 %v1363_v57 }
  0x3e   :  { %849 = vmatpush1.bf16.msra.mxu1 %v1401_v3 }
  0x3f   :  { %798 = vmatpush1.bf16.msra.mxu0 %v1365_v60  ;;  %850 = vmatprep.subr.bf16.mxu1 %v1405_v4 }
  0x40   :  { %873 = vmatprep.subr.bf16.mxu0 %v1374_v62 }
  0x42   :  { %800 = vmatmul.mubr.bf16.vlgmr.msra.gmra.mrb[0].mxu0 %v1665_v61  ;;  %851 = vmatpush1.bf16.msra.mxu1 %v1407_v7 }
  0x43   :  { %874 = vmatpush1.bf16.msra.mxu0 %v1372_v1  ;;  %1260 = vmatprep.subr.bf16.mxu1 %v1411_v8 }
  0x44   :  { %875 = vmatprep.subr.bf16.mxu0 %v1380_v2  ;;  %809 = vmatprep.mubr.bf16.mxu0 %v1716_v13 }
  0x45   :  { %853 = vmatmul.mubr.bf16.vlgmr.msra.gmra.mrb[0].mxu1 %v1665_v61 }
  0x46   :  { %1261 = vmatpush3.bf16.msra.mxu1 %v1412_v11  ;;  %862 = vmatprep.mubr.bf16.mxu1 %v1716_v13 }
  0x47   :  { %876 = vmatpush1.bf16.msra.mxu0 %v1378_v5  ;;  %1262 = vmatprep.subr.bf16.mxu1 %v1416_v12 }
  0x48   :  { %877 = vmatprep.subr.bf16.mxu0 %v1386_v6 }
  0x4a   :  { %810 = vmatmul.mubr.bf16.gmra.mrb[4].mxu0 %v1735_v18  ;;  %1263 = vmatpush3.bf16.msra.mxu1 %v1417_v16 }
  0x4b   :  { %878 = vmatpush1.bf16.msra.mxu0 %v1384_v9  ;;  %905 = vmatprep.mubr.bf16.mxu0 %v1586_v36 }
  0x4c   :  { %879 = vmatprep.subr.bf16.mxu0 %v1392_v10  ;;  %1264 = vmatprep.subr.bf16.mxu1 %v1421_v17 }
  0x4d   :  { %863 = vmatmul.mubr.bf16.gmra.mrb[4].mxu1 %v1735_v18 }
  0x4e   :  { %1265 = vmatpush3.bf16.msra.mxu1 %v1422_v21  ;;  %958 = vmatprep.mubr.bf16.mxu1 %v1586_v36  ;;  %v1420_v36 = vld [vmem:[%s1950_s0 + $0x1d4] ss:$28 sps:$4 sm:$0xff]  }
  0x4f   :  { %880 = vmatpush1.bf16.msra.mxu0 %v1390_v14  ;;  %1266 = vmatprep.subr.bf16.mxu1 %v1426_v22 }
  0x50   :  { %881 = vmatprep.subr.bf16.mxu0 %v1398_v15 }
  0x52   :  { %1267 = vmatpush3.bf16.msra.mxu1 %v1427_v28 }
  0x53   :  { %882 = vmatpush1.bf16.msra.mxu0 %v1396_v19  ;;  %1268 = vmatprep.subr.bf16.mxu1 %v1431_v29 }
  0x54   :  { %883 = vmatprep.subr.bf16.mxu0 %v1404_v20 }
  0x56   :  { %1269 = vmatpush3.bf16.msra.mxu1 %v1432_v33 }
  0x57   :  { %884 = vmatpush1.bf16.msra.mxu0 %v1402_v24  ;;  %1270 = vmatprep.subr.bf16.mxu1 %v1436_v34 }
  0x58   :  { %885 = vmatprep.subr.bf16.mxu0 %v1410_v26 }
  0x5a   :  { %1271 = vmatpush3.bf16.msra.mxu1 %v1437_v37 }
  0x5b   :  { %886 = vmatpush1.bf16.msra.mxu0 %v1408_v30  ;;  %1272 = vmatprep.subr.bf16.mxu1 %v1444_v38 }
  0x5c   :  { %887 = vmatprep.subr.bf16.mxu0 %v1415_v32 }
  0x5e   :  { %1273 = vmatpush3.bf16.msra.mxu1 %v1445_v41 }
  0x5f   :  { %888 = vmatpush1.bf16.msra.mxu0 %v1413_v35  ;;  %1274 = vmatprep.subr.bf16.mxu1 %v1449_v42 }
  0x60   :  { %889 = vmatprep.subr.bf16.mxu0 %v1420_v36 }
  0x62   :  { %1275 = vmatpush3.bf16.msra.mxu1 %v1450_v45 }
  0x63   :  { %890 = vmatpush1.bf16.msra.mxu0 %v1418_v39 }
  0x64   :  { %891 = vmatprep.subr.bf16.mxu0 %v1425_v40 }
  0x65   :  { %959 = vmatmul.mubr.bf16.vlgmr.msra.gmra.mrb[8].mxu1 %v1665_v61 }
  0x66   :  { %966 = vmatprep.mubr.bf16.mxu1 %v1716_v13 }
  0x67   :  { %892 = vmatpush1.bf16.msra.mxu0 %v1423_v43 }
  0x68   :  { %893 = vmatprep.subr.bf16.mxu0 %v1430_v44 }
  0x6b   :  { %894 = vmatpush1.bf16.msra.mxu0 %v1428_v46 }
  0x6c   :  { %895 = vmatprep.subr.bf16.mxu0 %v1435_v47 }
  0x6d   :  { %967 = vmatmul.mubr.bf16.gmra.mrb[12].mxu1 %v1735_v18 }
  0x6f   :  { %896 = vmatpush1.bf16.msra.mxu0 %v1433_v48 }
  0x70   :  { %897 = vmatprep.subr.bf16.mxu0 %v1440_v49 }
  0x73   :  { %898 = vmatpush1.bf16.msra.mxu0 %v1438_v50 }
  0x74   :  { %899 = vmatprep.subr.bf16.mxu0 %v1448_v51 }
  0x77   :  { %900 = vmatpush1.bf16.msra.mxu0 %v1446_v52 }
  0x78   :  { %901 = vmatprep.subr.bf16.mxu0 %v1453_v53 }
  0x7b   :  { %902 = vmatpush1.bf16.msra.mxu0 %v1451_v54 }
  0x7c   :  { %903 = vmatprep.subr.bf16.mxu0 %v1456_v55 }
  0x7f   :  { %904 = vmatpush1.bf16.msra.mxu0 %v1454_v56 }
  0x82   :  { %906 = vmatmul.mubr.bf16.vlgmr.msra.gmra.mrb[8].mxu0 %v1665_v61 }
  0x83   :  { %915 = vmatprep.mubr.bf16.mxu0 %v1716_v13 }
  0x8a   :  { %916 = vmatmul.mubr.bf16.gmra.mrb[12].mxu0 %v1735_v18 }
  0x9d   :  { %v1862_v57 = vpop.permute.xlu0 %153 }
  0x9f   :  { %v1876_v10 = vpop.permute.xlu1 %163 }
  0xa1   :  { %v1864_v59 = vpop.permute.xlu0 %158 }
  0xa3   :  { %v1883_v26 = vpop.permute.xlu1 %168 }
 0x115   :  { %v801_v58 = vpop.f32.mrb[0].mxu0 }
 0x116   :  { %v802_v60 = vadd.f32 %v801_v58, %v1862_v57  ;;  %v803_v62 = vpop.f32.mrb[1].mxu0 }
 0x117   :  { %v804_v63 = vadd.f32 %v803_v62, %v1862_v57  ;;  %v805_v0 = vpop.f32.mrb[2].mxu0 }
 0x118   :  { %v975_v1 = vmax.f32 %v802_v60, 0.0  ;;  %v806_v2 = vadd.f32 %v805_v0, %v1864_v59  ;;  %v807_v3 = vpop.f32.mrb[3].mxu0  ;;  %v854_v9 = vpop.f32.mrb[0].mxu1 }
 0x119   :  { %v976_v61 = vmax.f32 %v804_v63, 0.0  ;;  %v808_v4 = vadd.f32 %v807_v3, %v1864_v59  ;;  %v855_v11 = vadd.f32 %v854_v9, %v1862_v57  ;;  %v856_v12 = vpop.f32.mrb[1].mxu1 }
 0x11a   :  { %v982_v5 = vmax.f32 %v806_v2, 0.0  ;;  %v857_v13 = vadd.f32 %v856_v12, %v1862_v57  ;;  %v858_v14 = vpop.f32.mrb[2].mxu1 }
 0x11b   :  { %v1244_v6 = vpack.c.bf16 %v976_v61, %v975_v1  ;;  %v983_v7 = vmax.f32 %v808_v4, 0.0  ;;  %v977_v15 = vmax.f32 %v855_v11, 0.0  ;;  %v859_v16 = vadd.f32 %v858_v14, %v1864_v59  ;;  %v860_v17 = vpop.f32.mrb[3].mxu1 }
 0x11c   :  { %v978_v18 = vmax.f32 %v857_v13, 0.0  ;;  %v861_v19 = vadd.f32 %v860_v17, %v1864_v59 }
 0x11d   :  { %1091 = vst [vmem:[%s1953_s3] sm:$0xff] %v1244_v6  ;;  %v1248_v8 = vpack.c.bf16 %v983_v7, %v982_v5  ;;  %v811_v20 = vpop.f32.mrb[4].mxu0  ;;  %v984_v21 = vmax.f32 %v859_v16, 0.0 }
 0x11e   :  { %v812_v22 = vadd.f32 %v811_v20, %v1876_v10  ;;  %v813_v23 = vpop.f32.mrb[5].mxu0  ;;  %v1245_v24 = vpack.c.bf16 %v978_v18, %v977_v15  ;;  %v985_v25 = vmax.f32 %v861_v19, 0.0 }
 0x11f   :  { %1096 = vst [vmem:[%s1953_s3 + $0x1c] sm:$0xff] %v1248_v8  ;;  %v814_v27 = vadd.f32 %v813_v23, %v1876_v10  ;;  %v815_v28 = vpop.f32.mrb[6].mxu0 }
 0x120   :  { %v989_v29 = vmax.f32 %v812_v22, 0.0  ;;  %v816_v30 = vadd.f32 %v815_v28, %v1883_v26  ;;  %v817_v31 = vpop.f32.mrb[7].mxu0  ;;  %1092 = vst [vmem:[%s1953_s3 + $0x8] sm:$0xff] %v1245_v24  ;;  %v1249_v32 = vpack.c.bf16 %v985_v25, %v984_v21  ;;  %v864_v33 = vpop.f32.mrb[4].mxu1 }
 0x121   :  { %v990_v34 = vmax.f32 %v814_v27, 0.0  ;;  %v818_v35 = vadd.f32 %v817_v31, %v1883_v26  ;;  %v865_v36 = vadd.f32 %v864_v33, %v1876_v10  ;;  %v866_v37 = vpop.f32.mrb[5].mxu1 }
 0x122   :  { %v996_v38 = vmax.f32 %v816_v30, 0.0  ;;  %1097 = vst [vmem:[%s1953_s3 + $0x24] sm:$0xff] %v1249_v32  ;;  %v867_v39 = vadd.f32 %v866_v37, %v1876_v10  ;;  %v868_v40 = vpop.f32.mrb[6].mxu1 }
 0x123   :  { %v1252_v41 = vpack.c.bf16 %v990_v34, %v989_v29  ;;  %v997_v42 = vmax.f32 %v818_v35, 0.0  ;;  %v991_v43 = vmax.f32 %v865_v36, 0.0  ;;  %v869_v44 = vadd.f32 %v868_v40, %v1883_v26  ;;  %v870_v45 = vpop.f32.mrb[7].mxu1 }
 0x124   :  { %v992_v46 = vmax.f32 %v867_v39, 0.0  ;;  %v871_v47 = vadd.f32 %v870_v45, %v1883_v26 }
 0x125   :  { %1100 = vst [vmem:[%s1953_s3 + $0x38] sm:$0xff] %v1252_v41  ;;  %v1256_v48 = vpack.c.bf16 %v997_v42, %v996_v38  ;;  %v998_v49 = vmax.f32 %v869_v44, 0.0 }
 0x126   :  { %v1253_v50 = vpack.c.bf16 %v992_v46, %v991_v43  ;;  %v999_v51 = vmax.f32 %v871_v47, 0.0 }
 0x127   :  { %1104 = vst [vmem:[%s1953_s3 + $0x54] sm:$0xff] %v1256_v48 }
 0x128   :  { %1101 = vst [vmem:[%s1953_s3 + $0x40] sm:$0xff] %v1253_v50  ;;  %v1257_v52 = vpack.c.bf16 %v999_v51, %v998_v49 }
 0x12a   :  { %1105 = vst [vmem:[%s1953_s3 + $0x5c] sm:$0xff] %v1257_v52 }
 0x138   :  { %v1276_v53 = vpop.f32.mrb[8].mxu1 }
 0x139   :  { %v1277_v54 = vpop.f32.mrb[9].mxu1 }
 0x13a   :  { %v1278_v55 = vadd.f32 %v1277_v54, %v1276_v53  ;;  %v1279_v56 = vpop.f32.mrb[10].mxu1 }
 0x13b   :  { %v1280_v58 = vpop.f32.mrb[11].mxu1 }
 0x13c   :  { %v961_v60 = vadd.f32 %v1278_v55, %v1862_v57  ;;  %v1281_v62 = vadd.f32 %v1280_v58, %v1279_v56 }
 0x13e   :  { %v981_v63 = vmax.f32 %v961_v60, 0.0  ;;  %v964_v0 = vadd.f32 %v1281_v62, %v1864_v59 }
 0x140   :  { %v1247_v1 = vpack.c.bf16 %v981_v63, %v981_v63  ;;  %v988_v2 = vmax.f32 %v964_v0, 0.0  ;;  %v1282_v3 = vpop.f32.mrb[12].mxu1 }
 0x141   :  { %v1283_v61 = vpop.f32.mrb[13].mxu1 }
 0x142   :  { %1095 = vst.msk [vmem:[%s1953_s3 + $0x18] sm:$0xf] %vm1094_vm0, %v1247_v1  ;;  %v1251_v4 = vpack.c.bf16 %v988_v2, %v988_v2  ;;  %v1284_v5 = vadd.f32 %v1283_v61, %v1282_v3  ;;  %v1285_v6 = vpop.f32.mrb[14].mxu1 }
 0x143   :  { %v1286_v7 = vpop.f32.mrb[15].mxu1 }
 0x144   :  { %1099 = vst.msk [vmem:[%s1953_s3 + $0x34] sm:$0xf] %vm1094_vm0, %v1251_v4  ;;  %v969_v8 = vadd.f32 %v1284_v5, %v1876_v10  ;;  %v1287_v9 = vadd.f32 %v1286_v7, %v1285_v6 }
 0x146   :  { %v995_v11 = vmax.f32 %v969_v8, 0.0  ;;  %v972_v12 = vadd.f32 %v1287_v9, %v1883_v26 }
 0x148   :  { %v1255_v13 = vpack.c.bf16 %v995_v11, %v995_v11  ;;  %v1002_v14 = vmax.f32 %v972_v12, 0.0 }
 0x14a   :  { %1103 = vst.msk [vmem:[%s1953_s3 + $0x50] sm:$0xf] %vm1094_vm0, %v1255_v13  ;;  %v1259_v15 = vpack.c.bf16 %v1002_v14, %v1002_v14 }
 0x14c   :  { %1107 = vst.msk [vmem:[%s1953_s3 + $0x6c] sm:$0xf] %vm1094_vm0, %v1259_v15 }
 0x155   :  { %v907_v16 = vpop.f32.mrb[8].mxu0 }
 0x156   :  { %v908_v17 = vadd.f32 %v907_v16, %v1862_v57  ;;  %v909_v18 = vpop.f32.mrb[9].mxu0 }
 0x157   :  { %v910_v19 = vadd.f32 %v909_v18, %v1862_v57  ;;  %v911_v20 = vpop.f32.mrb[10].mxu0 }
 0x158   :  { %v979_v21 = vmax.f32 %v908_v17, 0.0  ;;  %v912_v22 = vadd.f32 %v911_v20, %v1864_v59  ;;  %v913_v23 = vpop.f32.mrb[11].mxu0 }
 0x159   :  { %v980_v24 = vmax.f32 %v910_v19, 0.0  ;;  %v914_v25 = vadd.f32 %v913_v23, %v1864_v59 }
 0x15a   :  { %v986_v27 = vmax.f32 %v912_v22, 0.0 }
 0x15b   :  { %v1246_v28 = vpack.c.bf16 %v980_v24, %v979_v21  ;;  %v987_v29 = vmax.f32 %v914_v25, 0.0 }
 0x15d   :  { %1093 = vst [vmem:[%s1953_s3 + $0x10] sm:$0xff] %v1246_v28  ;;  %v1250_v30 = vpack.c.bf16 %v987_v29, %v986_v27  ;;  %v917_v31 = vpop.f32.mrb[12].mxu0 }
 0x15e   :  { %v918_v32 = vadd.f32 %v917_v31, %v1876_v10  ;;  %v919_v57 = vpop.f32.mrb[13].mxu0 }
 0x15f   :  { %1098 = vst [vmem:[%s1953_s3 + $0x2c] sm:$0xff] %v1250_v30  ;;  %v920_v33 = vadd.f32 %v919_v57, %v1876_v10  ;;  %v921_v34 = vpop.f32.mrb[14].mxu0 }
 0x160   :  { %v993_v59 = vmax.f32 %v918_v32, 0.0  ;;  %v922_v35 = vadd.f32 %v921_v34, %v1883_v26  ;;  %v923_v36 = vpop.f32.mrb[15].mxu0 }
 0x161   :  { %v994_v37 = vmax.f32 %v920_v33, 0.0  ;;  %v924_v38 = vadd.f32 %v923_v36, %v1883_v26 }
 0x162   :  { %v1000_v39 = vmax.f32 %v922_v35, 0.0 }
 0x163   :  { %v1254_v40 = vpack.c.bf16 %v994_v37, %v993_v59  ;;  %v1001_v41 = vmax.f32 %v924_v38, 0.0 }
 0x165   :  { %1102 = vst [vmem:[%s1953_s3 + $0x48] sm:$0xff] %v1254_v40  ;;  %v1258_v42 = vpack.c.bf16 %v1001_v41, %v1000_v39 }
 0x167   :  { %1106 = vst [vmem:[%s1953_s3 + $0x64] sm:$0xff] %v1258_v42 }

// kernel: ddqn_forward.5
= control target key start
LH: loop header
LB: loop body
LE: loop exit
PB: predicated region body
PF: predicated region fallthrough
CT: control target
= control target key end

     0   :  { %v1018_v1 = vmov 0   ;;  %vm752_vm0 = vcmask 1043456   ;;  %vm753_vm1 = vcmask 277508   ;;  %s1347_s0 = inlined_call_operand.vmem [shape: bf16[512,162], index: 0, kind: input, shape index: {}]   ;;  %s1348_s1 = inlined_call_operand.vmem [shape: bf16[64,512], index: 1, kind: input, shape index: {}]   ;;  %s1349_s2 = inlined_call_operand.vmem [shape: f32[64,1], index: 2, kind: input, shape index: {}]   ;;  %s1350_s3 = inlined_call_operand.vmem [shape: bf16[64,162], index: 3, kind: output, shape index: {}]  }
   0x1   :  { %v898_v0 = vld [vmem:[%s1347_s0 + $0x4] ss:$8 sps:$4 sm:$0xff]   ;;  %896 = vset.pattern.permute.xlu0 %v1018_v1  ;;  %897 = vset.pattern.permute.xlu1 %v1018_v1  ;;  %v902_v3 = vld [vmem:[%s1347_s0] ss:$8 sps:$4 sm:$0xff]   ;;  %v904_v5 = vld [vmem:[%s1347_s0 + $0x14] ss:$8 sps:$4 sm:$0xff]  }
   0x2   :  { %v900_v2 = vld [vmem:[%s1347_s0 + $0x104] ss:$8 sps:$4 sm:$0xff]   ;;  %542 = vmatprep.subr.bf16.mxu1 %v898_v0  ;;  %v903_v4 = vld [vmem:[%s1347_s0 + $0x100] ss:$8 sps:$4 sm:$0xff]   ;;  %v906_v6 = vld [vmem:[%s1347_s0 + $0x114] ss:$8 sps:$4 sm:$0xff]  }
   0x3   :  { %615 = vmatprep.subr.bf16.mxu0 %v900_v2  ;;  %543 = vmatpush1.bf16.msra.mxu1 %v902_v3  ;;  %v908_v7 = vld [vmem:[%s1347_s0 + $0x10] ss:$8 sps:$4 sm:$0xff]   ;;  %v910_v9 = vld [vmem:[%s1347_s0 + $0x24] ss:$8 sps:$4 sm:$0xff]   ;;  %v914_v11 = vld [vmem:[%s1347_s0 + $0x20] ss:$8 sps:$4 sm:$0xff]  }
   0x4   :  { %616 = vmatpush1.bf16.msra.mxu0 %v903_v4  ;;  %544 = vmatprep.subr.bf16.mxu1 %v904_v5  ;;  %v909_v8 = vld [vmem:[%s1347_s0 + $0x110] ss:$8 sps:$4 sm:$0xff]   ;;  %v912_v10 = vld [vmem:[%s1347_s0 + $0x124] ss:$8 sps:$4 sm:$0xff]   ;;  %v915_v12 = vld [vmem:[%s1347_s0 + $0x120] ss:$8 sps:$4 sm:$0xff]  }
   0x5   :  { %617 = vmatprep.subr.bf16.mxu0 %v906_v6  ;;  %v916_v13 = vld [vmem:[%s1347_s0 + $0x34] ss:$8 sps:$4 sm:$0xff]   ;;  %v920_v15 = vld [vmem:[%s1347_s0 + $0x30] ss:$8 sps:$4 sm:$0xff]   ;;  %v922_v17 = vld [vmem:[%s1347_s0 + $0x44] ss:$8 sps:$4 sm:$0xff]  }
   0x6   :  { %v918_v14 = vld [vmem:[%s1347_s0 + $0x134] ss:$8 sps:$4 sm:$0xff]   ;;  %v921_v16 = vld [vmem:[%s1347_s0 + $0x130] ss:$8 sps:$4 sm:$0xff]   ;;  %v924_v18 = vld [vmem:[%s1347_s0 + $0x144] ss:$8 sps:$4 sm:$0xff]  }
   0x7   :  { %545 = vmatpush1.bf16.msra.mxu1 %v908_v7  ;;  %v926_v19 = vld [vmem:[%s1347_s0 + $0x40] ss:$8 sps:$4 sm:$0xff]   ;;  %v928_v21 = vld [vmem:[%s1347_s0 + $0x54] ss:$8 sps:$4 sm:$0xff]   ;;  %v932_v23 = vld [vmem:[%s1347_s0 + $0x50] ss:$8 sps:$4 sm:$0xff]  }
   0x8   :  { %618 = vmatpush1.bf16.msra.mxu0 %v909_v8  ;;  %546 = vmatprep.subr.bf16.mxu1 %v910_v9  ;;  %v927_v20 = vld [vmem:[%s1347_s0 + $0x140] ss:$8 sps:$4 sm:$0xff]   ;;  %v930_v22 = vld [vmem:[%s1347_s0 + $0x154] ss:$8 sps:$4 sm:$0xff]   ;;  %v933_v24 = vld [vmem:[%s1347_s0 + $0x150] ss:$8 sps:$4 sm:$0xff]  }
   0x9   :  { %619 = vmatprep.subr.bf16.mxu0 %v912_v10  ;;  %v934_v25 = vld [vmem:[%s1347_s0 + $0x64] ss:$8 sps:$4 sm:$0xff]   ;;  %v938_v27 = vld [vmem:[%s1347_s0 + $0x60] ss:$8 sps:$4 sm:$0xff]   ;;  %v940_v29 = vld [vmem:[%s1347_s0 + $0x74] ss:$8 sps:$4 sm:$0xff]  }
   0xa   :  { %v936_v26 = vld [vmem:[%s1347_s0 + $0x164] ss:$8 sps:$4 sm:$0xff]   ;;  %v939_v28 = vld [vmem:[%s1347_s0 + $0x160] ss:$8 sps:$4 sm:$0xff]   ;;  %v942_v30 = vld [vmem:[%s1347_s0 + $0x174] ss:$8 sps:$4 sm:$0xff]  }
   0xb   :  { %547 = vmatpush1.bf16.msra.mxu1 %v914_v11  ;;  %v944_v31 = vld [vmem:[%s1347_s0 + $0x70] ss:$8 sps:$4 sm:$0xff]   ;;  %v946_v33 = vld [vmem:[%s1347_s0 + $0x84] ss:$8 sps:$4 sm:$0xff]   ;;  %v950_v35 = vld [vmem:[%s1347_s0 + $0x80] ss:$8 sps:$4 sm:$0xff]  }
   0xc   :  { %620 = vmatpush1.bf16.msra.mxu0 %v915_v12  ;;  %548 = vmatprep.subr.bf16.mxu1 %v916_v13  ;;  %v945_v32 = vld [vmem:[%s1347_s0 + $0x170] ss:$8 sps:$4 sm:$0xff]   ;;  %v948_v34 = vld [vmem:[%s1347_s0 + $0x184] ss:$8 sps:$4 sm:$0xff]   ;;  %v951_v36 = vld [vmem:[%s1347_s0 + $0x180] ss:$8 sps:$4 sm:$0xff]  }
   0xd   :  { %621 = vmatprep.subr.bf16.mxu0 %v918_v14  ;;  %v952_v37 = vld [vmem:[%s1347_s0 + $0x94] ss:$8 sps:$4 sm:$0xff]   ;;  %v956_v39 = vld [vmem:[%s1347_s0 + $0x90] ss:$8 sps:$4 sm:$0xff]   ;;  %v958_v41 = vld [vmem:[%s1347_s0 + $0xa4] ss:$8 sps:$4 sm:$0xff]  }
   0xe   :  { %v954_v38 = vld [vmem:[%s1347_s0 + $0x194] ss:$8 sps:$4 sm:$0xff]   ;;  %v957_v40 = vld [vmem:[%s1347_s0 + $0x190] ss:$8 sps:$4 sm:$0xff]   ;;  %v960_v42 = vld [vmem:[%s1347_s0 + $0x1a4] ss:$8 sps:$4 sm:$0xff]  }
   0xf   :  { %549 = vmatpush1.bf16.msra.mxu1 %v920_v15  ;;  %v962_v43 = vld [vmem:[%s1347_s0 + $0xa0] ss:$8 sps:$4 sm:$0xff]   ;;  %v964_v45 = vld [vmem:[%s1347_s0 + $0xb4] ss:$8 sps:$4 sm:$0xff]   ;;  %v968_v47 = vld [vmem:[%s1347_s0 + $0xb0] ss:$8 sps:$4 sm:$0xff]  }
  0x10   :  { %622 = vmatpush1.bf16.msra.mxu0 %v921_v16  ;;  %550 = vmatprep.subr.bf16.mxu1 %v922_v17  ;;  %v963_v44 = vld [vmem:[%s1347_s0 + $0x1a0] ss:$8 sps:$4 sm:$0xff]   ;;  %v966_v46 = vld [vmem:[%s1347_s0 + $0x1b4] ss:$8 sps:$4 sm:$0xff]   ;;  %v969_v48 = vld [vmem:[%s1347_s0 + $0x1b0] ss:$8 sps:$4 sm:$0xff]  }
  0x11   :  { %623 = vmatprep.subr.bf16.mxu0 %v924_v18  ;;  %v970_v49 = vld [vmem:[%s1347_s0 + $0xc4] ss:$8 sps:$4 sm:$0xff]   ;;  %v974_v53 = vld [vmem:[%s1347_s0 + $0xc0] ss:$8 sps:$4 sm:$0xff]   ;;  %v976_v55 = vld [vmem:[%s1347_s0 + $0xd4] ss:$8 sps:$4 sm:$0xff]  }
  0x12   :  { %v996_v50 = vld [vmem:[%s1348_s1 + $0x4] ss:$16 sps:$4 sm:$0xff]   ;;  %v999_v52 = vld [vmem:[%s1348_s1 + $0xc] ss:$16 sps:$4 sm:$0xff]   ;;  %v975_v54 = vld [vmem:[%s1347_s0 + $0x1c0] ss:$8 sps:$4 sm:$0xff]  }
  0x13   :  { %551 = vmatpush1.bf16.msra.mxu1 %v926_v19  ;;  %v972_v51 = vld [vmem:[%s1347_s0 + $0x1c4] ss:$8 sps:$4 sm:$0xff]   ;;  %574 = vmatprep.mubr.bf16.mxu1 %v996_v50  ;;  %v978_v56 = vld [vmem:[%s1347_s0 + $0x1d4] ss:$8 sps:$4 sm:$0xff]   ;;  %v980_v57 = vld [vmem:[%s1347_s0 + $0xd0] ss:$8 sps:$4 sm:$0xff]  }
  0x14   :  { %624 = vmatpush1.bf16.msra.mxu0 %v927_v20  ;;  %552 = vmatprep.subr.bf16.mxu1 %v928_v21  ;;  %v981_v58 = vld [vmem:[%s1347_s0 + $0x1d0] ss:$8 sps:$4 sm:$0xff]   ;;  %v982_v59 = vld [vmem:[%s1347_s0 + $0xe4] ss:$8 sps:$4 sm:$0xff]   ;;  %v986_v0 = vld [vmem:[%s1347_s0 + $0xe0] ss:$8 sps:$4 sm:$0xff]  }
  0x15   :  { %625 = vmatprep.subr.bf16.mxu0 %v930_v22  ;;  %647 = vmatprep.mubr.bf16.mxu0 %v999_v52  ;;  %v984_v60 = vld [vmem:[%s1347_s0 + $0x1e4] ss:$8 sps:$4 sm:$0xff]   ;;  %v96_v62 = vld [vmem:[%s1349_s2 + $0x10] sm:$0xff]  ;;  %v987_v1 = vld [vmem:[%s1347_s0 + $0x1e0] ss:$8 sps:$4 sm:$0xff]  }
  0x16   :  { %v94_v61 = vld [vmem:[%s1349_s2] sm:$0xff]  ;;  %v95_v63 = vld [vmem:[%s1349_s2 + $0x8] sm:$0xff]  ;;  %114 = vperm.xlu1 %897, %v96_v62   ;;  %v97_v2 = vld [vmem:[%s1349_s2 + $0x18] sm:$0xff] }
  0x17   :  { %553 = vmatpush1.bf16.msra.mxu1 %v932_v23  ;;  %104 = vperm.xlu0 %896, %v94_v61   ;;  %v988_v3 = vld [vmem:[%s1347_s0 + $0xf4] ss:$8 sps:$4 sm:$0xff]   ;;  %v98_v5 = vld [vmem:[%s1349_s2 + $0x20] sm:$0xff]  ;;  %v992_v6 = vld [vmem:[%s1347_s0 + $0xf0] ss:$8 sps:$4 sm:$0xff]  }
  0x18   :  { %626 = vmatpush1.bf16.msra.mxu0 %v933_v24  ;;  %554 = vmatprep.subr.bf16.mxu1 %v934_v25  ;;  %v990_v4 = vld [vmem:[%s1347_s0 + $0x1f4] ss:$8 sps:$4 sm:$0xff]   ;;  %v993_v7 = vld [vmem:[%s1347_s0 + $0x1f0] ss:$8 sps:$4 sm:$0xff]   ;;  %v99_v8 = vld [vmem:[%s1349_s2 + $0x28] sm:$0xff] }
  0x19   :  { %627 = vmatprep.subr.bf16.mxu0 %v936_v26  ;;  %v994_v9 = vld [vmem:[%s1348_s1] ss:$16 sps:$4 sm:$0xff]   ;;  %v997_v10 = vld [vmem:[%s1348_s1 + $0x8] ss:$16 sps:$4 sm:$0xff]   ;;  %v1000_v12 = vld [vmem:[%s1348_s1 + $0x24] ss:$16 sps:$4 sm:$0xff]  }
  0x1a   :  { %119 = vperm.xlu1 %897, %v97_v2   ;;  %v100_v11 = vld [vmem:[%s1349_s2 + $0x30] sm:$0xff]  ;;  %v1002_v13 = vld [vmem:[%s1348_s1 + $0x2c] ss:$16 sps:$4 sm:$0xff]   ;;  %v1005_v16 = vld [vmem:[%s1348_s1 + $0x28] ss:$16 sps:$4 sm:$0xff]  }
  0x1b   :  { %555 = vmatpush1.bf16.msra.mxu1 %v938_v27  ;;  %109 = vperm.xlu0 %896, %v95_v63   ;;  %v101_v14 = vld [vmem:[%s1349_s2 + $0x38] sm:$0xff]  ;;  %v1004_v15 = vld [vmem:[%s1348_s1 + $0x20] ss:$16 sps:$4 sm:$0xff]   ;;  %v1006_v17 = vld [vmem:[%s1348_s1 + $0x44] ss:$16 sps:$4 sm:$0xff]  }
  0x1c   :  { %628 = vmatpush1.bf16.msra.mxu0 %v939_v28  ;;  %556 = vmatprep.subr.bf16.mxu1 %v940_v29  ;;  %v1008_v18 = vld [vmem:[%s1348_s1 + $0x4c] ss:$16 sps:$4 sm:$0xff]   ;;  %v1010_v19 = vld [vmem:[%s1348_s1 + $0x40] ss:$16 sps:$4 sm:$0xff]   ;;  %v1011_v20 = vld [vmem:[%s1348_s1 + $0x48] ss:$16 sps:$4 sm:$0xff]  }
  0x1d   :  { %629 = vmatprep.subr.bf16.mxu0 %v942_v30  ;;  %v1012_v21 = vld [vmem:[%s1348_s1 + $0x64] ss:$16 sps:$4 sm:$0xff]   ;;  %v1014_v22 = vld [vmem:[%s1348_s1 + $0x6c] ss:$16 sps:$4 sm:$0xff]   ;;  %v1016_v23 = vld [vmem:[%s1348_s1 + $0x60] ss:$16 sps:$4 sm:$0xff]  }
  0x1e   :  { %129 = vperm.xlu1 %897, %v99_v8   ;;  %v1017_v24 = vld [vmem:[%s1348_s1 + $0x68] ss:$16 sps:$4 sm:$0xff]   ;;  %vm1303_vm2 = vmor %vm753_vm1, %vm752_vm0 }
  0x1f   :  { %557 = vmatpush1.bf16.msra.mxu1 %v944_v31  ;;  %124 = vperm.xlu0 %896, %v98_v5  }
  0x20   :  { %630 = vmatpush1.bf16.msra.mxu0 %v945_v32  ;;  %558 = vmatprep.subr.bf16.mxu1 %v946_v33 }
  0x21   :  { %631 = vmatprep.subr.bf16.mxu0 %v948_v34 }
  0x22   :  { %139 = vperm.xlu1 %897, %v101_v14  }
  0x23   :  { %559 = vmatpush1.bf16.msra.mxu1 %v950_v35  ;;  %134 = vperm.xlu0 %896, %v100_v11  }
  0x24   :  { %632 = vmatpush1.bf16.msra.mxu0 %v951_v36  ;;  %560 = vmatprep.subr.bf16.mxu1 %v952_v37 }
  0x25   :  { %633 = vmatprep.subr.bf16.mxu0 %v954_v38 }
  0x27   :  { %561 = vmatpush1.bf16.msra.mxu1 %v956_v39 }
  0x28   :  { %634 = vmatpush1.bf16.msra.mxu0 %v957_v40  ;;  %562 = vmatprep.subr.bf16.mxu1 %v958_v41 }
  0x29   :  { %635 = vmatprep.subr.bf16.mxu0 %v960_v42 }
  0x2b   :  { %563 = vmatpush1.bf16.msra.mxu1 %v962_v43 }
  0x2c   :  { %636 = vmatpush1.bf16.msra.mxu0 %v963_v44  ;;  %564 = vmatprep.subr.bf16.mxu1 %v964_v45 }
  0x2d   :  { %637 = vmatprep.subr.bf16.mxu0 %v966_v46 }
  0x2f   :  { %565 = vmatpush1.bf16.msra.mxu1 %v968_v47 }
  0x30   :  { %638 = vmatpush1.bf16.msra.mxu0 %v969_v48  ;;  %566 = vmatprep.subr.bf16.mxu1 %v970_v49 }
  0x31   :  { %639 = vmatprep.subr.bf16.mxu0 %v972_v51 }
  0x33   :  { %567 = vmatpush1.bf16.msra.mxu1 %v974_v53 }
  0x34   :  { %640 = vmatpush1.bf16.msra.mxu0 %v975_v54  ;;  %568 = vmatprep.subr.bf16.mxu1 %v976_v55 }
  0x35   :  { %641 = vmatprep.subr.bf16.mxu0 %v978_v56 }
  0x37   :  { %569 = vmatpush1.bf16.msra.mxu1 %v980_v57 }
  0x38   :  { %642 = vmatpush1.bf16.msra.mxu0 %v981_v58  ;;  %570 = vmatprep.subr.bf16.mxu1 %v982_v59 }
  0x39   :  { %643 = vmatprep.subr.bf16.mxu0 %v984_v60 }
  0x3b   :  { %571 = vmatpush1.bf16.msra.mxu1 %v986_v0 }
  0x3c   :  { %644 = vmatpush1.bf16.msra.mxu0 %v987_v1  ;;  %572 = vmatprep.subr.bf16.mxu1 %v988_v3 }
  0x3d   :  { %645 = vmatprep.subr.bf16.mxu0 %v990_v4 }
  0x3f   :  { %573 = vmatpush1.bf16.msra.mxu1 %v992_v6 }
  0x40   :  { %646 = vmatpush1.bf16.msra.mxu0 %v993_v7 }
  0x42   :  { %575 = vmatmul.mubr.bf16.vlgmr.msra.gmra.mrb[0].mxu1 %v994_v9 }
  0x43   :  { %648 = vmatmul.mubr.bf16.vlgmr.msra.gmra.mrb[0].mxu0 %v997_v10  ;;  %584 = vmatprep.mubr.bf16.mxu1 %v1000_v12 }
  0x44   :  { %657 = vmatprep.mubr.bf16.mxu0 %v1002_v13 }
  0x4a   :  { %585 = vmatmul.mubr.bf16.gmra.mrb[4].mxu1 %v1004_v15 }
  0x4b   :  { %658 = vmatmul.mubr.bf16.gmra.mrb[4].mxu0 %v1005_v16  ;;  %594 = vmatprep.mubr.bf16.mxu1 %v1006_v17 }
  0x4c   :  { %667 = vmatprep.mubr.bf16.mxu0 %v1008_v18 }
  0x52   :  { %595 = vmatmul.mubr.bf16.gmra.mrb[8].mxu1 %v1010_v19 }
  0x53   :  { %668 = vmatmul.mubr.bf16.gmra.mrb[8].mxu0 %v1011_v20  ;;  %604 = vmatprep.mubr.bf16.mxu1 %v1012_v21 }
  0x54   :  { %677 = vmatprep.mubr.bf16.mxu0 %v1014_v22 }
  0x5a   :  { %605 = vmatmul.mubr.bf16.gmra.mrb[12].mxu1 %v1016_v23 }
  0x5b   :  { %678 = vmatmul.mubr.bf16.gmra.mrb[12].mxu0 %v1017_v24 }
  0x95   :  { %v115_v27 = vpop.permute.xlu1 %114 }
  0x96   :  { %v105_v25 = vpop.permute.xlu0 %104 }
  0x99   :  { %v120_v48 = vpop.permute.xlu1 %119 }
  0x9a   :  { %v110_v26 = vpop.permute.xlu0 %109 }
  0x9d   :  { %v130_v7 = vpop.permute.xlu1 %129 }
  0x9e   :  { %v125_v8 = vpop.permute.xlu0 %124 }
 0x115   :  { %v576_v28 = vpop.f32.mrb[0].mxu1 }
 0x116   :  { %v649_v29 = vpop.f32.mrb[0].mxu0  ;;  %v577_v30 = vadd.f32 %v576_v28, %v105_v25  ;;  %v578_v31 = vpop.f32.mrb[1].mxu1 }
 0x117   :  { %v651_v32 = vpop.f32.mrb[1].mxu0  ;;  %v579_v33 = vadd.f32 %v578_v31, %v105_v25  ;;  %v580_v34 = vpop.f32.mrb[2].mxu1 }
 0x118   :  { %v653_v35 = vpop.f32.mrb[2].mxu0  ;;  %v650_v36 = vadd.f32 %v649_v29, %v577_v30  ;;  %v581_v37 = vadd.f32 %v580_v34, %v110_v26  ;;  %v582_v38 = vpop.f32.mrb[3].mxu1 }
 0x119   :  { %v655_v39 = vpop.f32.mrb[3].mxu0  ;;  %v652_v40 = vadd.f32 %v651_v32, %v579_v33  ;;  %v583_v41 = vadd.f32 %v582_v38, %v110_v26  ;;  %v140_v30 = vpop.permute.xlu1 %139 }
 0x11a   :  { %v688_v42 = vmax.f32 %v650_v36, 0.0  ;;  %v654_v43 = vadd.f32 %v653_v35, %v581_v37  ;;  %v135_v31 = vpop.permute.xlu0 %134 }
 0x11b   :  { %v689_v44 = vmax.f32 %v652_v40, 0.0  ;;  %v656_v45 = vadd.f32 %v655_v39, %v583_v41 }
 0x11c   :  { %v690_v47 = vmax.f32 %v654_v43, 0.0 }
 0x11d   :  { %v855_v49 = vpack.c.bf16 %v689_v44, %v688_v42  ;;  %v691_v50 = vmax.f32 %v656_v45, 0.0  ;;  %v586_v51 = vpop.f32.mrb[4].mxu1 }
 0x11e   :  { %v659_v52 = vpop.f32.mrb[4].mxu0  ;;  %v587_v53 = vadd.f32 %v586_v51, %v115_v27  ;;  %v588_v54 = vpop.f32.mrb[5].mxu1 }
 0x11f   :  { %v661_v55 = vpop.f32.mrb[5].mxu0  ;;  %755 = vst.msk [vmem:[%s1350_s3] sm:$0xff] %vm1303_vm2, %v855_v49  ;;  %v856_v56 = vpack.c.bf16 %v691_v50, %v690_v47  ;;  %v589_v57 = vadd.f32 %v588_v54, %v115_v27  ;;  %v590_v58 = vpop.f32.mrb[6].mxu1 }
 0x120   :  { %v663_v59 = vpop.f32.mrb[6].mxu0  ;;  %v660_v60 = vadd.f32 %v659_v52, %v587_v53  ;;  %v591_v61 = vadd.f32 %v590_v58, %v120_v48  ;;  %v592_v62 = vpop.f32.mrb[7].mxu1 }
 0x121   :  { %v665_v63 = vpop.f32.mrb[7].mxu0  ;;  %756 = vst.msk [vmem:[%s1350_s3 + $0x8] sm:$0xff] %vm1303_vm2, %v856_v56  ;;  %v662_v0 = vadd.f32 %v661_v55, %v589_v57  ;;  %v593_v1 = vadd.f32 %v592_v62, %v120_v48 }
 0x122   :  { %v692_v2 = vmax.f32 %v660_v60, 0.0  ;;  %v664_v3 = vadd.f32 %v663_v59, %v591_v61 }
 0x123   :  { %v693_v4 = vmax.f32 %v662_v0, 0.0  ;;  %v666_v5 = vadd.f32 %v665_v63, %v593_v1 }
 0x124   :  { %v694_v6 = vmax.f32 %v664_v3, 0.0 }
 0x125   :  { %v857_v9 = vpack.c.bf16 %v693_v4, %v692_v2  ;;  %v695_v10 = vmax.f32 %v666_v5, 0.0  ;;  %v596_v11 = vpop.f32.mrb[8].mxu1 }
 0x126   :  { %v669_v12 = vpop.f32.mrb[8].mxu0  ;;  %v597_v13 = vadd.f32 %v596_v11, %v125_v8  ;;  %v598_v14 = vpop.f32.mrb[9].mxu1 }
 0x127   :  { %v671_v15 = vpop.f32.mrb[9].mxu0  ;;  %757 = vst.msk [vmem:[%s1350_s3 + $0x10] sm:$0xff] %vm1303_vm2, %v857_v9  ;;  %v858_v16 = vpack.c.bf16 %v695_v10, %v694_v6  ;;  %v599_v17 = vadd.f32 %v598_v14, %v125_v8  ;;  %v600_v18 = vpop.f32.mrb[10].mxu1 }
 0x128   :  { %v673_v19 = vpop.f32.mrb[10].mxu0  ;;  %v670_v20 = vadd.f32 %v669_v12, %v597_v13  ;;  %v601_v21 = vadd.f32 %v600_v18, %v130_v7  ;;  %v602_v22 = vpop.f32.mrb[11].mxu1 }
 0x129   :  { %v675_v23 = vpop.f32.mrb[11].mxu0  ;;  %758 = vst.msk [vmem:[%s1350_s3 + $0x18] sm:$0xff] %vm1303_vm2, %v858_v16  ;;  %v672_v24 = vadd.f32 %v671_v15, %v599_v17  ;;  %v603_v25 = vadd.f32 %v602_v22, %v130_v7 }
 0x12a   :  { %v696_v26 = vmax.f32 %v670_v20, 0.0  ;;  %v674_v27 = vadd.f32 %v673_v19, %v601_v21 }
 0x12b   :  { %v697_v28 = vmax.f32 %v672_v24, 0.0  ;;  %v676_v29 = vadd.f32 %v675_v23, %v603_v25 }
 0x12c   :  { %v698_v32 = vmax.f32 %v674_v27, 0.0 }
 0x12d   :  { %v859_v33 = vpack.c.bf16 %v697_v28, %v696_v26  ;;  %v699_v34 = vmax.f32 %v676_v29, 0.0  ;;  %v606_v35 = vpop.f32.mrb[12].mxu1 }
 0x12e   :  { %v679_v36 = vpop.f32.mrb[12].mxu0  ;;  %v607_v37 = vadd.f32 %v606_v35, %v135_v31  ;;  %v608_v38 = vpop.f32.mrb[13].mxu1 }
 0x12f   :  { %v681_v39 = vpop.f32.mrb[13].mxu0  ;;  %759 = vst.msk [vmem:[%s1350_s3 + $0x20] sm:$0xff] %vm1303_vm2, %v859_v33  ;;  %v860_v40 = vpack.c.bf16 %v699_v34, %v698_v32  ;;  %v609_v41 = vadd.f32 %v608_v38, %v135_v31  ;;  %v610_v42 = vpop.f32.mrb[14].mxu1 }
 0x130   :  { %v683_v43 = vpop.f32.mrb[14].mxu0  ;;  %v680_v44 = vadd.f32 %v679_v36, %v607_v37  ;;  %v611_v45 = vadd.f32 %v610_v42, %v140_v30  ;;  %v612_v47 = vpop.f32.mrb[15].mxu1 }
 0x131   :  { %v685_v48 = vpop.f32.mrb[15].mxu0  ;;  %760 = vst.msk [vmem:[%s1350_s3 + $0x28] sm:$0xff] %vm1303_vm2, %v860_v40  ;;  %v682_v49 = vadd.f32 %v681_v39, %v609_v41  ;;  %v613_v50 = vadd.f32 %v612_v47, %v140_v30 }
 0x132   :  { %v700_v51 = vmax.f32 %v680_v44, 0.0  ;;  %v684_v52 = vadd.f32 %v683_v43, %v611_v45 }
 0x133   :  { %v701_v53 = vmax.f32 %v682_v49, 0.0  ;;  %v686_v54 = vadd.f32 %v685_v48, %v613_v50 }
 0x134   :  { %v702_v55 = vmax.f32 %v684_v52, 0.0 }
 0x135   :  { %v861_v56 = vpack.c.bf16 %v701_v53, %v700_v51  ;;  %v703_v57 = vmax.f32 %v686_v54, 0.0 }
 0x137   :  { %761 = vst.msk [vmem:[%s1350_s3 + $0x30] sm:$0xff] %vm1303_vm2, %v861_v56  ;;  %v862_v58 = vpack.c.bf16 %v703_v57, %v702_v55 }
 0x139   :  { %762 = vst.msk [vmem:[%s1350_s3 + $0x38] sm:$0xff] %vm1303_vm2, %v862_v58 }

// kernel: ddqn_forward.6
= control target key start
LH: loop header
LB: loop body
LE: loop exit
PB: predicated region body
PF: predicated region fallthrough
CT: control target
= control target key end

     0   :  { %v991_v1 = vmov 0   ;;  %vm475_vm0 = vcmask 523264   ;;  %vm723_vm1 = vcmask 797696   ;;  %s1243_s0 = inlined_call_operand.vmem [shape: bf16[576,98], index: 0, kind: input, shape index: {}]   ;;  %s1244_s1 = inlined_call_operand.vmem [shape: bf16[64,576], index: 1, kind: input, shape index: {}]   ;;  %s1245_s2 = inlined_call_operand.vmem [shape: f32[64,1], index: 2, kind: input, shape index: {}]   ;;  %s1246_s3 = inlined_call_operand.vmem [shape: bf16[64,98], index: 3, kind: output, shape index: {}]  }
   0x1   :  { %v927_v0 = vld [vmem:[%s1243_s0 + $0x40] sm:$0xff]   ;;  %925 = vset.pattern.permute.xlu0 %v991_v1  ;;  %926 = vset.pattern.permute.xlu1 %v991_v1  ;;  %v931_v5 = vld [vmem:[%s1243_s0 + $0x48] sm:$0xff]   ;;  %v935_v9 = vld [vmem:[%s1243_s0 + $0x50] sm:$0xff]  }
   0x2   :  { %v928_v2 = vld [vmem:[%s1243_s0 + $0xc0] sm:$0xff]   ;;  %812 = vmatprep.subr.bf16.mxu0 %v927_v0  ;;  %v932_v6 = vld [vmem:[%s1243_s0 + $0xc8] sm:$0xff]   ;;  %v936_v10 = vld [vmem:[%s1243_s0 + $0xd0] sm:$0xff]  }
   0x3   :  { %v929_v3 = vld [vmem:[%s1243_s0] sm:$0xff]   ;;  %852 = vmatprep.subr.bf16.mxu1 %v928_v2  ;;  %v933_v7 = vld [vmem:[%s1243_s0 + $0x8] sm:$0xff]   ;;  %v937_v11 = vld [vmem:[%s1243_s0 + $0x10] sm:$0xff]  }
   0x4   :  { %v930_v4 = vld [vmem:[%s1243_s0 + $0x80] sm:$0xff]   ;;  %813 = vmatpush3.bf16.msra.mxu0 %v929_v3  ;;  %v934_v8 = vld [vmem:[%s1243_s0 + $0x88] sm:$0xff]   ;;  %v938_v12 = vld [vmem:[%s1243_s0 + $0x90] sm:$0xff]  }
   0x5   :  { %853 = vmatpush3.bf16.msra.mxu1 %v930_v4  ;;  %814 = vmatprep.subr.bf16.mxu0 %v931_v5  ;;  %v939_v13 = vld [vmem:[%s1243_s0 + $0x58] sm:$0xff]   ;;  %v943_v17 = vld [vmem:[%s1243_s0 + $0x60] sm:$0xff]   ;;  %v947_v21 = vld [vmem:[%s1243_s0 + $0x68] sm:$0xff]  }
   0x6   :  { %854 = vmatprep.subr.bf16.mxu1 %v932_v6  ;;  %v940_v14 = vld [vmem:[%s1243_s0 + $0xd8] sm:$0xff]   ;;  %v944_v18 = vld [vmem:[%s1243_s0 + $0xe0] sm:$0xff]   ;;  %v948_v22 = vld [vmem:[%s1243_s0 + $0xe8] sm:$0xff]  }
   0x7   :  { %v941_v15 = vld [vmem:[%s1243_s0 + $0x18] sm:$0xff]   ;;  %v945_v19 = vld [vmem:[%s1243_s0 + $0x20] sm:$0xff]   ;;  %v949_v23 = vld [vmem:[%s1243_s0 + $0x28] sm:$0xff]  }
   0x8   :  { %815 = vmatpush3.bf16.msra.mxu0 %v933_v7  ;;  %v942_v16 = vld [vmem:[%s1243_s0 + $0x98] sm:$0xff]   ;;  %v946_v20 = vld [vmem:[%s1243_s0 + $0xa0] sm:$0xff]   ;;  %v950_v24 = vld [vmem:[%s1243_s0 + $0xa8] sm:$0xff]  }
   0x9   :  { %855 = vmatpush3.bf16.msra.mxu1 %v934_v8  ;;  %816 = vmatprep.subr.bf16.mxu0 %v935_v9  ;;  %v951_v25 = vld [vmem:[%s1243_s0 + $0x70] sm:$0xff]   ;;  %v955_v29 = vld [vmem:[%s1243_s0 + $0x78] sm:$0xff]   ;;  %v964_v36 = vld [vmem:[%s1244_s1 + $0xc] ss:$20 sps:$4 sm:$0xff]  }
   0xa   :  { %856 = vmatprep.subr.bf16.mxu1 %v936_v10  ;;  %v952_v26 = vld [vmem:[%s1243_s0 + $0xf0] sm:$0xff]   ;;  %v956_v30 = vld [vmem:[%s1243_s0 + $0xf8] sm:$0xff]   ;;  %v965_v37 = vld [vmem:[%s1243_s0 + $0x100] sm:$0xff]   ;;  %585 = vmatprep.mubr.bf16.mxu1 %v964_v36 }
   0xb   :  { %v953_v27 = vld [vmem:[%s1243_s0 + $0x30] sm:$0xff]   ;;  %v957_v31 = vld [vmem:[%s1243_s0 + $0x38] sm:$0xff]   ;;  %v966_v38 = vld [vmem:[%s1244_s1 + $0x2c] ss:$20 sps:$4 sm:$0xff]  }
   0xc   :  { %817 = vmatpush3.bf16.msra.mxu0 %v937_v11  ;;  %v954_v28 = vld [vmem:[%s1243_s0 + $0xb0] sm:$0xff]   ;;  %v958_v32 = vld [vmem:[%s1243_s0 + $0xb8] sm:$0xff]   ;;  %v972_v40 = vld [vmem:[%s1243_s0 + $0x108] sm:$0xff]  }
   0xd   :  { %857 = vmatpush3.bf16.msra.mxu1 %v938_v12  ;;  %818 = vmatprep.subr.bf16.mxu0 %v939_v13  ;;  %v959_v33 = vld [vmem:[%s1244_s1] ss:$20 sps:$4 sm:$0xff]   ;;  %v961_v34 = vld [vmem:[%s1244_s1 + $0x4] ss:$20 sps:$4 sm:$0xff]   ;;  %v962_v35 = vld [vmem:[%s1244_s1 + $0x8] ss:$20 sps:$4 sm:$0xff]  }
   0xe   :  { %858 = vmatprep.subr.bf16.mxu1 %v940_v14  ;;  %520 = vmatprep.mubr.bf16.mxu0 %v961_v34  ;;  %v968_v39 = vld [vmem:[%s1244_s1 + $0x34] ss:$20 sps:$4 sm:$0xff]   ;;  %v971_v42 = vld [vmem:[%s1244_s1 + $0x30] ss:$20 sps:$4 sm:$0xff]   ;;  %v986_v46 = vld [vmem:[%s1243_s0 + $0x118] sm:$0xff]  }
   0xf   :  { %v970_v41 = vld [vmem:[%s1244_s1 + $0x28] ss:$20 sps:$4 sm:$0xff]   ;;  %v979_v45 = vld [vmem:[%s1243_s0 + $0x110] sm:$0xff]   ;;  %v978_v48 = vld [vmem:[%s1244_s1 + $0x58] ss:$20 sps:$4 sm:$0xff]  }
  0x10   :  { %819 = vmatpush3.bf16.msra.mxu0 %v941_v15  ;;  %v973_v43 = vld [vmem:[%s1244_s1 + $0x54] ss:$20 sps:$4 sm:$0xff]   ;;  %v975_v44 = vld [vmem:[%s1244_s1 + $0x5c] ss:$20 sps:$4 sm:$0xff]   ;;  %v982_v50 = vld [vmem:[%s1244_s1 + $0x84] ss:$20 sps:$4 sm:$0xff]  }
  0x11   :  { %859 = vmatpush3.bf16.msra.mxu1 %v942_v16  ;;  %820 = vmatprep.subr.bf16.mxu0 %v943_v17  ;;  %v977_v47 = vld [vmem:[%s1244_s1 + $0x50] ss:$20 sps:$4 sm:$0xff]   ;;  %v112_v53 = vld [vmem:[%s1245_s2 + $0x8] sm:$0xff]  ;;  %v114_v54 = vld [vmem:[%s1245_s2 + $0x18] sm:$0xff] }
  0x12   :  { %860 = vmatprep.subr.bf16.mxu1 %v944_v18  ;;  %v980_v49 = vld [vmem:[%s1244_s1 + $0x7c] ss:$20 sps:$4 sm:$0xff]   ;;  %v111_v51 = vld [vmem:[%s1245_s2] sm:$0xff]  ;;  %v984_v55 = vld [vmem:[%s1244_s1 + $0x78] ss:$20 sps:$4 sm:$0xff]  }
  0x13   :  { %v113_v52 = vld [vmem:[%s1245_s2 + $0x10] sm:$0xff]  ;;  %121 = vperm.xlu0 %925, %v111_v51   ;;  %v115_v58 = vld [vmem:[%s1245_s2 + $0x20] sm:$0xff]  ;;  %v116_v60 = vld [vmem:[%s1245_s2 + $0x28] sm:$0xff] }
  0x14   :  { %821 = vmatpush3.bf16.msra.mxu0 %v945_v19  ;;  %131 = vperm.xlu1 %926, %v113_v52   ;;  %v985_v56 = vld [vmem:[%s1244_s1 + $0x80] ss:$20 sps:$4 sm:$0xff]   ;;  %v987_v57 = vld [vmem:[%s1244_s1 + $0x10] ss:$20 sps:$4 sm:$0xff]   ;;  %v118_v62 = vld [vmem:[%s1245_s2 + $0x38] sm:$0xff] }
  0x15   :  { %861 = vmatpush3.bf16.msra.mxu1 %v946_v20  ;;  %822 = vmatprep.subr.bf16.mxu0 %v947_v21  ;;  %v988_v59 = vld [vmem:[%s1244_s1 + $0x60] ss:$20 sps:$4 sm:$0xff]   ;;  %v989_v63 = vld [vmem:[%s1244_s1 + $0x38] ss:$20 sps:$4 sm:$0xff]   ;;  %v990_v0 = vld [vmem:[%s1244_s1 + $0x88] ss:$20 sps:$4 sm:$0xff]  }
  0x16   :  { %862 = vmatprep.subr.bf16.mxu1 %v948_v22  ;;  %v117_v61 = vld [vmem:[%s1245_s2 + $0x30] sm:$0xff] }
  0x17   :  { %126 = vperm.xlu0 %925, %v112_v53  }
  0x18   :  { %823 = vmatpush3.bf16.msra.mxu0 %v949_v23  ;;  %136 = vperm.xlu1 %926, %v114_v54  }
  0x19   :  { %863 = vmatpush3.bf16.msra.mxu1 %v950_v24  ;;  %824 = vmatprep.subr.bf16.mxu0 %v951_v25 }
  0x1a   :  { %864 = vmatprep.subr.bf16.mxu1 %v952_v26 }
  0x1b   :  { %141 = vperm.xlu0 %925, %v115_v58  }
  0x1c   :  { %825 = vmatpush3.bf16.msra.mxu0 %v953_v27  ;;  %146 = vperm.xlu1 %926, %v116_v60  }
  0x1d   :  { %865 = vmatpush3.bf16.msra.mxu1 %v954_v28  ;;  %826 = vmatprep.subr.bf16.mxu0 %v955_v29 }
  0x1e   :  { %866 = vmatprep.subr.bf16.mxu1 %v956_v30 }
  0x1f   :  { %151 = vperm.xlu0 %925, %v117_v61  }
  0x20   :  { %827 = vmatpush3.bf16.msra.mxu0 %v957_v31  ;;  %156 = vperm.xlu1 %926, %v118_v62  }
  0x21   :  { %867 = vmatpush3.bf16.msra.mxu1 %v958_v32  ;;  %900 = vmatprep.subr.bf16.mxu0 %v965_v37 }
  0x22   :  { %916 = vmatprep.subr.bf16.mxu1 %v965_v37 }
  0x23   :  { %521 = vmatmul.mubr.bf16.vlgmr.msra.gmra.mrb[0].mxu0 %v959_v33 }
  0x24   :  { %586 = vmatmul.mubr.bf16.vlgmr.msra.gmra.mrb[0].mxu1 %v962_v35  ;;  %901 = vmatpush3.bf16.msra.mxu0 %v965_v37 }
  0x25   :  { %920 = vmatpush3.bf16.msra.mxu1 %v965_v37  ;;  %528 = vmatprep.mubr.bf16.mxu0 %v966_v38 }
  0x26   :  { %593 = vmatprep.mubr.bf16.mxu1 %v968_v39  ;;  %902 = vmatprep.subr.bf16.mxu0 %v972_v40 }
  0x27   :  { %917 = vmatprep.subr.bf16.mxu1 %v972_v40 }
  0x28   :  { %903 = vmatpush3.bf16.msra.mxu0 %v972_v40 }
  0x29   :  { %921 = vmatpush3.bf16.msra.mxu1 %v972_v40  ;;  %904 = vmatprep.subr.bf16.mxu0 %v979_v45 }
  0x2a   :  { %918 = vmatprep.subr.bf16.mxu1 %v979_v45 }
  0x2b   :  { %529 = vmatmul.mubr.bf16.gmra.mrb[4].mxu0 %v970_v41 }
  0x2c   :  { %594 = vmatmul.mubr.bf16.gmra.mrb[4].mxu1 %v971_v42  ;;  %536 = vmatprep.mubr.bf16.mxu0 %v973_v43 }
  0x2d   :  { %601 = vmatprep.mubr.bf16.mxu1 %v975_v44  ;;  %905 = vmatpush3.bf16.msra.mxu0 %v979_v45 }
  0x2e   :  { %922 = vmatpush3.bf16.msra.mxu1 %v979_v45  ;;  %906 = vmatprep.subr.bf16.mxu0 %v986_v46 }
  0x2f   :  { %919 = vmatprep.subr.bf16.mxu1 %v986_v46 }
  0x31   :  { %907 = vmatpush3.bf16.msra.mxu0 %v986_v46 }
  0x32   :  { %923 = vmatpush3.bf16.msra.mxu1 %v986_v46 }
  0x33   :  { %537 = vmatmul.mubr.bf16.gmra.mrb[8].mxu0 %v977_v47 }
  0x34   :  { %602 = vmatmul.mubr.bf16.gmra.mrb[8].mxu1 %v978_v48  ;;  %544 = vmatprep.mubr.bf16.mxu0 %v980_v49 }
  0x35   :  { %609 = vmatprep.mubr.bf16.mxu1 %v982_v50 }
  0x3b   :  { %545 = vmatmul.mubr.bf16.gmra.mrb[12].mxu0 %v984_v55 }
  0x3c   :  { %610 = vmatmul.mubr.bf16.gmra.mrb[12].mxu1 %v985_v56  ;;  %908 = vmatprep.mubr.msk.bf16.mxu0 %vm475_vm0, %v987_v57 }
  0x3d   :  { %912 = vmatprep.mubr.msk.bf16.mxu1 %vm475_vm0, %v988_v59 }
  0x43   :  { %909 = vmatmul.mubr.msk.bf16.vlgmr.msra.gmra.mrb[16].mxu0 %vm475_vm0, %v989_v63 }
  0x44   :  { %913 = vmatmul.mubr.msk.bf16.vlgmr.msra.gmra.mrb[16].mxu1 %vm475_vm0, %v990_v0 }
  0x92   :  { %v122_v1 = vpop.permute.xlu0 %121 }
  0x93   :  { %v132_v18 = vpop.permute.xlu1 %131 }
  0x96   :  { %v127_v3 = vpop.permute.xlu0 %126 }
  0x97   :  { %v137_v33 = vpop.permute.xlu1 %136 }
  0x9a   :  { %v142_v36 = vpop.permute.xlu0 %141 }
  0x9b   :  { %v147_v50 = vpop.permute.xlu1 %146 }
  0x9e   :  { %v152_v54 = vpop.permute.xlu0 %151 }
  0xf6   :  { %v828_v2 = vpop.f32.mrb[0].mxu0 }
  0xf7   :  { %v868_v4 = vpop.f32.mrb[0].mxu1  ;;  %v829_v5 = vpop.f32.mrb[1].mxu0 }
  0xf8   :  { %v830_v6 = vadd.f32 %v829_v5, %v828_v2  ;;  %v869_v7 = vpop.f32.mrb[1].mxu1  ;;  %v831_v8 = vpop.f32.mrb[2].mxu0 }
  0xf9   :  { %v870_v9 = vadd.f32 %v869_v7, %v868_v4  ;;  %v871_v10 = vpop.f32.mrb[2].mxu1  ;;  %v832_v11 = vpop.f32.mrb[3].mxu0 }
  0xfa   :  { %v523_v12 = vadd.f32 %v830_v6, %v122_v1  ;;  %v833_v13 = vadd.f32 %v832_v11, %v831_v8  ;;  %v872_v14 = vpop.f32.mrb[3].mxu1  ;;  %v157_v4 = vpop.permute.xlu1 %156 }
  0xfb   :  { %v873_v15 = vadd.f32 %v872_v14, %v871_v10 }
  0xfc   :  { %v526_v16 = vadd.f32 %v833_v13, %v127_v3  ;;  %v588_v17 = vadd.f32 %v870_v9, %v523_v12 }
  0xfe   :  { %v834_v19 = vpop.f32.mrb[4].mxu0  ;;  %v1208_v20 = vadd.f32 %v873_v15, %v526_v16 }
  0xff   :  { %v874_v21 = vpop.f32.mrb[4].mxu1  ;;  %v835_v22 = vpop.f32.mrb[5].mxu0 }
 0x100   :  { %v836_v23 = vadd.f32 %v835_v22, %v834_v19  ;;  %v875_v24 = vpop.f32.mrb[5].mxu1  ;;  %v837_v25 = vpop.f32.mrb[6].mxu0 }
 0x101   :  { %v876_v26 = vadd.f32 %v875_v24, %v874_v21  ;;  %v877_v27 = vpop.f32.mrb[6].mxu1  ;;  %v838_v28 = vpop.f32.mrb[7].mxu0 }
 0x102   :  { %v531_v29 = vadd.f32 %v836_v23, %v132_v18  ;;  %v839_v30 = vadd.f32 %v838_v28, %v837_v25  ;;  %v878_v31 = vpop.f32.mrb[7].mxu1 }
 0x103   :  { %v879_v32 = vadd.f32 %v878_v31, %v877_v27 }
 0x104   :  { %v534_v34 = vadd.f32 %v839_v30, %v137_v33  ;;  %v596_v35 = vadd.f32 %v876_v26, %v531_v29 }
 0x106   :  { %v840_v37 = vpop.f32.mrb[8].mxu0  ;;  %v599_v38 = vadd.f32 %v879_v32, %v534_v34 }
 0x107   :  { %v880_v39 = vpop.f32.mrb[8].mxu1  ;;  %v841_v40 = vpop.f32.mrb[9].mxu0 }
 0x108   :  { %v842_v41 = vadd.f32 %v841_v40, %v840_v37  ;;  %v881_v42 = vpop.f32.mrb[9].mxu1  ;;  %v843_v43 = vpop.f32.mrb[10].mxu0 }
 0x109   :  { %v882_v44 = vadd.f32 %v881_v42, %v880_v39  ;;  %v883_v45 = vpop.f32.mrb[10].mxu1  ;;  %v844_v46 = vpop.f32.mrb[11].mxu0 }
 0x10a   :  { %v539_v47 = vadd.f32 %v842_v41, %v142_v36  ;;  %v845_v48 = vadd.f32 %v844_v46, %v843_v43  ;;  %v884_v49 = vpop.f32.mrb[11].mxu1 }
 0x10b   :  { %v885_v51 = vadd.f32 %v884_v49, %v883_v45 }
 0x10c   :  { %v542_v52 = vadd.f32 %v845_v48, %v147_v50  ;;  %v604_v53 = vadd.f32 %v882_v44, %v539_v47 }
 0x10e   :  { %v846_v55 = vpop.f32.mrb[12].mxu0  ;;  %v607_v56 = vadd.f32 %v885_v51, %v542_v52 }
 0x10f   :  { %v886_v57 = vpop.f32.mrb[12].mxu1  ;;  %v847_v58 = vpop.f32.mrb[13].mxu0 }
 0x110   :  { %v848_v59 = vadd.f32 %v847_v58, %v846_v55  ;;  %v887_v60 = vpop.f32.mrb[13].mxu1  ;;  %v849_v61 = vpop.f32.mrb[14].mxu0 }
 0x111   :  { %v888_v62 = vadd.f32 %v887_v60, %v886_v57  ;;  %v889_v63 = vpop.f32.mrb[14].mxu1  ;;  %v850_v0 = vpop.f32.mrb[15].mxu0 }
 0x112   :  { %v547_v1 = vadd.f32 %v848_v59, %v152_v54  ;;  %v851_v2 = vadd.f32 %v850_v0, %v849_v61  ;;  %v890_v3 = vpop.f32.mrb[15].mxu1 }
 0x113   :  { %v891_v5 = vadd.f32 %v890_v3, %v889_v63 }
 0x114   :  { %v550_v6 = vadd.f32 %v851_v2, %v157_v4  ;;  %v612_v7 = vadd.f32 %v888_v62, %v547_v1 }
 0x116   :  { %v910_v8 = vpop.f32.mrb[16].mxu0  ;;  %v615_v9 = vadd.f32 %v891_v5, %v550_v6 }
 0x117   :  { %v661_v10 = vadd.f32 %v910_v8, %v596_v35  ;;  %v914_v11 = vpop.f32.mrb[16].mxu1  ;;  %v652_v12 = vpop.f32.mrb[17].mxu0 }
 0x118   :  { %v677_v13 = vadd.f32 %v914_v11, %v612_v7  ;;  %v653_v14 = vadd.f32 %v652_v12, %v588_v17  ;;  %v668_v15 = vpop.f32.mrb[17].mxu1  ;;  %v911_v16 = vpop.f32.mrb[18].mxu0 }
 0x119   :  { %v685_v18 = vmax.f32 %v661_v10, 0.0  ;;  %v669_v19 = vadd.f32 %v668_v15, %v604_v53  ;;  %v664_v21 = vadd.f32 %v911_v16, %v599_v38  ;;  %v915_v22 = vpop.f32.mrb[18].mxu1  ;;  %v655_v23 = vpop.f32.mrb[19].mxu0 }
 0x11a   :  { %v689_v24 = vmax.f32 %v677_v13, 0.0  ;;  %v683_v25 = vmax.f32 %v653_v14, 0.0  ;;  %v680_v26 = vadd.f32 %v915_v22, %v615_v9  ;;  %v656_v27 = vadd.f32 %v655_v23, %v1208_v20  ;;  %v671_v28 = vpop.f32.mrb[19].mxu1 }
 0x11b   :  { %v806_v29 = vpack.c.bf16 %v685_v18, %v685_v18  ;;  %v687_v30 = vmax.f32 %v669_v19, 0.0  ;;  %v686_v31 = vmax.f32 %v664_v21, 0.0  ;;  %v672_v32 = vadd.f32 %v671_v28, %v607_v56 }
 0x11c   :  { %v810_v33 = vpack.c.bf16 %v689_v24, %v689_v24  ;;  %v804_v17 = vpack.c.bf16 %v683_v25, %v683_v25  ;;  %v690_v34 = vmax.f32 %v680_v26, 0.0  ;;  %v684_v35 = vmax.f32 %v656_v27, 0.0 }
 0x11d   :  { %726 = vst.msk [vmem:[%s1246_s3 + $0x8] sm:$0xf] %vm723_vm1, %v806_v29  ;;  %v808_v36 = vpack.c.bf16 %v687_v30, %v687_v30  ;;  %v807_v37 = vpack.c.bf16 %v686_v31, %v686_v31  ;;  %v688_v38 = vmax.f32 %v672_v32, 0.0 }
 0x11e   :  { %730 = vst.msk [vmem:[%s1246_s3 + $0x18] sm:$0xf] %vm723_vm1, %v810_v33  ;;  %724 = vst.msk [vmem:[%s1246_s3] sm:$0xf] %vm723_vm1, %v804_v17  ;;  %v811_v20 = vpack.c.bf16 %v690_v34, %v690_v34  ;;  %v805_v39 = vpack.c.bf16 %v684_v35, %v684_v35 }
 0x11f   :  { %728 = vst.msk [vmem:[%s1246_s3 + $0x10] sm:$0xf] %vm723_vm1, %v808_v36  ;;  %727 = vst.msk [vmem:[%s1246_s3 + $0xc] sm:$0xf] %vm723_vm1, %v807_v37  ;;  %v809_v40 = vpack.c.bf16 %v688_v38, %v688_v38 }
 0x120   :  { %731 = vst.msk [vmem:[%s1246_s3 + $0x1c] sm:$0xf] %vm723_vm1, %v811_v20  ;;  %725 = vst.msk [vmem:[%s1246_s3 + $0x4] sm:$0xf] %vm723_vm1, %v805_v39 }
 0x121   :  { %729 = vst.msk [vmem:[%s1246_s3 + $0x14] sm:$0xf] %vm723_vm1, %v809_v40 }

// kernel: ddqn_forward.7
= control target key start
LH: loop header
LB: loop body
LE: loop exit
PB: predicated region body
PF: predicated region fallthrough
CT: control target
= control target key end

     0   :  { %vm9571_vm0 = vcmask 523264   ;;  %vm12402_vm1 = vcmask 48128   ;;  %s19698_s1 = inlined_call_operand.vmem [shape: bf16[3136,1024], index: 1, kind: input, shape index: {}]   ;;  %s19699_s0 = inlined_call_operand.vmem [shape: bf16[8,3136], index: 0, kind: input, shape index: {}]   ;;  %s19700_s3 = inlined_call_operand.vmem [shape: bf16[1024,128], index: 3, kind: input, shape index: {}]   ;;  %s19701_s2 = inlined_call_operand.vmem [shape: f32[1,1024], index: 2, kind: input, shape index: {}]   ;;  %s19702_s4 = inlined_call_operand.vmem [shape: f32[1,128], index: 4, kind: input, shape index: {}]   ;;  %s19703_s5 = inlined_call_operand.vmem [shape: f32[8,128], index: 5, kind: output, shape index: {}]  }
   0x1   :  { %v34_v0 = vld [vmem:[%s19698_s1] sm:$0xff]  ;;  %v35_v2 = vld [vmem:[%s19698_s1 + $0x8] sm:$0xff] }
   0x2   :  { %v38_v1 = vld [vmem:[%s19698_s1 + $0x20] sm:$0xff]  ;;  %v39_v4 = vld [vmem:[%s19698_s1 + $0x28] sm:$0xff] }
   0x3   :  { %v12446_v3 = vcombine.high %v34_v0, %v38_v1  ;;  %v12445_v5 = vcombine.low %v34_v0, %v38_v1  ;;  %v42_v6 = vld [vmem:[%s19698_s1 + $0x40] sm:$0xff]  ;;  %v12448_v8 = vcombine.high %v35_v2, %v39_v4  ;;  %v12447_v9 = vcombine.low %v35_v2, %v39_v4  ;;  %v43_v11 = vld [vmem:[%s19698_s1 + $0x48] sm:$0xff] }
   0x4   :  { %v46_v7 = vld [vmem:[%s19698_s1 + $0x60] sm:$0xff]  ;;  %v47_v12 = vld [vmem:[%s19698_s1 + $0x68] sm:$0xff] }
   0x5   :  { %v12454_v10 = vcombine.high %v42_v6, %v46_v7  ;;  %v50_v13 = vld [vmem:[%s19698_s1 + $0x80] sm:$0xff]  ;;  %9575 = vmatprep.subr.bf16.mxu0 %v12446_v3  ;;  %v12456_v14 = vcombine.high %v43_v11, %v47_v12  ;;  %v51_v16 = vld [vmem:[%s19698_s1 + $0x88] sm:$0xff]  ;;  %10108 = vmatprep.subr.bf16.mxu1 %v12448_v8  ;;  %v12453_v18 = vcombine.low %v42_v6, %v46_v7 }
   0x6   :  { %v54_v15 = vld [vmem:[%s19698_s1 + $0xa0] sm:$0xff]  ;;  %v55_v17 = vld [vmem:[%s19698_s1 + $0xa8] sm:$0xff]  ;;  %9576 = vmatpush1.bf16.msra.mxu0 %v12445_v5  ;;  %10109 = vmatpush1.bf16.msra.mxu1 %v12447_v9  ;;  %v12455_v19 = vcombine.low %v43_v11, %v47_v12 }
   0x7   :  { %9577 = vmatprep.subr.bf16.mxu0 %v12454_v10  ;;  %v12462_v20 = vcombine.high %v50_v13, %v54_v15  ;;  %10110 = vmatprep.subr.bf16.mxu1 %v12456_v14  ;;  %v12464_v21 = vcombine.high %v51_v16, %v55_v17  ;;  %v58_v22 = vld [vmem:[%s19698_s1 + $0xc0] sm:$0xff]  ;;  %v59_v24 = vld [vmem:[%s19698_s1 + $0xc8] sm:$0xff]  ;;  %v12461_v26 = vcombine.low %v50_v13, %v54_v15 }
   0x8   :  { %v62_v23 = vld [vmem:[%s19698_s1 + $0xe0] sm:$0xff]  ;;  %v63_v25 = vld [vmem:[%s19698_s1 + $0xe8] sm:$0xff]  ;;  %v12463_v27 = vcombine.low %v51_v16, %v55_v17 }
   0x9   :  { %v12470_v28 = vcombine.high %v58_v22, %v62_v23  ;;  %v12472_v29 = vcombine.high %v59_v24, %v63_v25  ;;  %v66_v30 = vld [vmem:[%s19698_s1 + $0x100] sm:$0xff]  ;;  %v67_v32 = vld [vmem:[%s19698_s1 + $0x108] sm:$0xff]  ;;  %v12469_v34 = vcombine.low %v58_v22, %v62_v23  ;;  %v12471_v35 = vcombine.low %v59_v24, %v63_v25 }
   0xa   :  { %9578 = vmatpush1.bf16.msra.mxu0 %v12453_v18  ;;  %10111 = vmatpush1.bf16.msra.mxu1 %v12455_v19  ;;  %v70_v31 = vld [vmem:[%s19698_s1 + $0x120] sm:$0xff]  ;;  %v71_v33 = vld [vmem:[%s19698_s1 + $0x128] sm:$0xff] }
   0xb   :  { %9579 = vmatprep.subr.bf16.mxu0 %v12462_v20  ;;  %10112 = vmatprep.subr.bf16.mxu1 %v12464_v21  ;;  %v12478_v36 = vcombine.high %v66_v30, %v70_v31  ;;  %v12480_v37 = vcombine.high %v67_v32, %v71_v33  ;;  %v74_v38 = vld [vmem:[%s19698_s1 + $0x140] sm:$0xff]  ;;  %v75_v40 = vld [vmem:[%s19698_s1 + $0x148] sm:$0xff]  ;;  %v12477_v42 = vcombine.low %v66_v30, %v70_v31 }
   0xc   :  { %v78_v39 = vld [vmem:[%s19698_s1 + $0x160] sm:$0xff]  ;;  %v79_v41 = vld [vmem:[%s19698_s1 + $0x168] sm:$0xff]  ;;  %v12479_v43 = vcombine.low %v67_v32, %v71_v33 }
   0xd   :  { %v12486_v44 = vcombine.high %v74_v38, %v78_v39  ;;  %v12488_v45 = vcombine.high %v75_v40, %v79_v41  ;;  %v82_v46 = vld [vmem:[%s19698_s1 + $0x180] sm:$0xff]  ;;  %v83_v48 = vld [vmem:[%s19698_s1 + $0x188] sm:$0xff]  ;;  %v12485_v50 = vcombine.low %v74_v38, %v78_v39  ;;  %v12487_v51 = vcombine.low %v75_v40, %v79_v41 }
   0xe   :  { %9580 = vmatpush1.bf16.msra.mxu0 %v12461_v26  ;;  %10113 = vmatpush1.bf16.msra.mxu1 %v12463_v27  ;;  %v86_v47 = vld [vmem:[%s19698_s1 + $0x1a0] sm:$0xff]  ;;  %v87_v49 = vld [vmem:[%s19698_s1 + $0x1a8] sm:$0xff] }
   0xf   :  { %9581 = vmatprep.subr.bf16.mxu0 %v12470_v28  ;;  %10114 = vmatprep.subr.bf16.mxu1 %v12472_v29  ;;  %v12494_v52 = vcombine.high %v82_v46, %v86_v47  ;;  %v14582_v53 = vld [vmem:[%s19699_s0] sm:$0xff]  ;;  %v12496_v54 = vcombine.high %v83_v48, %v87_v49  ;;  %v91_v58 = vld [vmem:[%s19698_s1 + $0x1c8] sm:$0xff]  ;;  %v12493_v60 = vcombine.low %v82_v46, %v86_v47 }
  0x10   :  { %v90_v55 = vld [vmem:[%s19698_s1 + $0x1c0] sm:$0xff]  ;;  %v14592_v57 = vcombine.high %v14582_v53, %v14582_v53  ;;  %v95_v59 = vld [vmem:[%s19698_s1 + $0x1e8] sm:$0xff]  ;;  %v12495_v61 = vcombine.low %v83_v48, %v87_v49 }
  0x11   :  { %v94_v56 = vld [vmem:[%s19698_s1 + $0x1e0] sm:$0xff]  ;;  %v12504_v63 = vcombine.high %v91_v58, %v95_v59  ;;  %v99_v2 = vld [vmem:[%s19698_s1 + $0x208] sm:$0xff]  ;;  %v12503_v5 = vcombine.low %v91_v58, %v95_v59 }
  0x12   :  { %9582 = vmatpush1.bf16.msra.mxu0 %v12469_v34  ;;  %10115 = vmatpush1.bf16.msra.mxu1 %v12471_v35  ;;  %v12502_v62 = vcombine.high %v90_v55, %v94_v56  ;;  %v98_v0 = vld [vmem:[%s19698_s1 + $0x200] sm:$0xff]  ;;  %v103_v3 = vld [vmem:[%s19698_s1 + $0x228] sm:$0xff]  ;;  %v12501_v4 = vcombine.low %v90_v55, %v94_v56 }
  0x13   :  { %9583 = vmatprep.subr.bf16.mxu0 %v12478_v36  ;;  %10116 = vmatprep.subr.bf16.mxu1 %v12480_v37  ;;  %v102_v1 = vld [vmem:[%s19698_s1 + $0x220] sm:$0xff]  ;;  %v12512_v7 = vcombine.high %v99_v2, %v103_v3  ;;  %v107_v10 = vld [vmem:[%s19698_s1 + $0x248] sm:$0xff]  ;;  %v12511_v13 = vcombine.low %v99_v2, %v103_v3 }
  0x14   :  { %9607 = vmatprep.mubr.bf16.mxu0 %v14592_v57  ;;  %10140 = vmatprep.mubr.bf16.mxu1 %v14592_v57  ;;  %v12510_v6 = vcombine.high %v98_v0, %v102_v1  ;;  %v106_v8 = vld [vmem:[%s19698_s1 + $0x240] sm:$0xff]  ;;  %v111_v11 = vld [vmem:[%s19698_s1 + $0x268] sm:$0xff]  ;;  %v12509_v12 = vcombine.low %v98_v0, %v102_v1 }
  0x15   :  { %v110_v9 = vld [vmem:[%s19698_s1 + $0x260] sm:$0xff]  ;;  %v12520_v15 = vcombine.high %v107_v10, %v111_v11  ;;  %v115_v18 = vld [vmem:[%s19698_s1 + $0x288] sm:$0xff]  ;;  %v12519_v21 = vcombine.low %v107_v10, %v111_v11 }
  0x16   :  { %9584 = vmatpush1.bf16.msra.mxu0 %v12477_v42  ;;  %10117 = vmatpush1.bf16.msra.mxu1 %v12479_v43  ;;  %v12518_v14 = vcombine.high %v106_v8, %v110_v9  ;;  %v114_v16 = vld [vmem:[%s19698_s1 + $0x280] sm:$0xff]  ;;  %v119_v19 = vld [vmem:[%s19698_s1 + $0x2a8] sm:$0xff]  ;;  %v12517_v20 = vcombine.low %v106_v8, %v110_v9 }
  0x17   :  { %9585 = vmatprep.subr.bf16.mxu0 %v12486_v44  ;;  %10118 = vmatprep.subr.bf16.mxu1 %v12488_v45  ;;  %v118_v17 = vld [vmem:[%s19698_s1 + $0x2a0] sm:$0xff]  ;;  %v12528_v23 = vcombine.high %v115_v18, %v119_v19  ;;  %v123_v26 = vld [vmem:[%s19698_s1 + $0x2c8] sm:$0xff]  ;;  %v12527_v29 = vcombine.low %v115_v18, %v119_v19 }
  0x18   :  { %v12526_v22 = vcombine.high %v114_v16, %v118_v17  ;;  %v122_v24 = vld [vmem:[%s19698_s1 + $0x2c0] sm:$0xff]  ;;  %v127_v27 = vld [vmem:[%s19698_s1 + $0x2e8] sm:$0xff]  ;;  %v12525_v28 = vcombine.low %v114_v16, %v118_v17 }
  0x19   :  { %v126_v25 = vld [vmem:[%s19698_s1 + $0x2e0] sm:$0xff]  ;;  %v12536_v31 = vcombine.high %v123_v26, %v127_v27  ;;  %v131_v34 = vld [vmem:[%s19698_s1 + $0x308] sm:$0xff]  ;;  %v12535_v37 = vcombine.low %v123_v26, %v127_v27 }
  0x1a   :  { %9586 = vmatpush1.bf16.msra.mxu0 %v12485_v50  ;;  %10119 = vmatpush1.bf16.msra.mxu1 %v12487_v51  ;;  %v12534_v30 = vcombine.high %v122_v24, %v126_v25  ;;  %v130_v32 = vld [vmem:[%s19698_s1 + $0x300] sm:$0xff]  ;;  %v135_v35 = vld [vmem:[%s19698_s1 + $0x328] sm:$0xff]  ;;  %v12533_v36 = vcombine.low %v122_v24, %v126_v25 }
  0x1b   :  { %9587 = vmatprep.subr.bf16.mxu0 %v12494_v52  ;;  %10120 = vmatprep.subr.bf16.mxu1 %v12496_v54  ;;  %v134_v33 = vld [vmem:[%s19698_s1 + $0x320] sm:$0xff]  ;;  %v12544_v39 = vcombine.high %v131_v34, %v135_v35  ;;  %v139_v42 = vld [vmem:[%s19698_s1 + $0x348] sm:$0xff]  ;;  %v12543_v45 = vcombine.low %v131_v34, %v135_v35 }
  0x1c   :  { %v12542_v38 = vcombine.high %v130_v32, %v134_v33  ;;  %v138_v40 = vld [vmem:[%s19698_s1 + $0x340] sm:$0xff]  ;;  %v143_v43 = vld [vmem:[%s19698_s1 + $0x368] sm:$0xff]  ;;  %v12541_v44 = vcombine.low %v130_v32, %v134_v33 }
  0x1d   :  { %v142_v41 = vld [vmem:[%s19698_s1 + $0x360] sm:$0xff]  ;;  %v12552_v47 = vcombine.high %v139_v42, %v143_v43  ;;  %v147_v50 = vld [vmem:[%s19698_s1 + $0x388] sm:$0xff]  ;;  %v12551_v54 = vcombine.low %v139_v42, %v143_v43 }
  0x1e   :  { %9588 = vmatpush1.bf16.msra.mxu0 %v12493_v60  ;;  %10121 = vmatpush1.bf16.msra.mxu1 %v12495_v61  ;;  %v12550_v46 = vcombine.high %v138_v40, %v142_v41  ;;  %v146_v48 = vld [vmem:[%s19698_s1 + $0x380] sm:$0xff]  ;;  %v151_v51 = vld [vmem:[%s19698_s1 + $0x3a8] sm:$0xff]  ;;  %v12549_v52 = vcombine.low %v138_v40, %v142_v41 }
  0x1f   :  { %9589 = vmatprep.subr.bf16.mxu0 %v12502_v62  ;;  %10122 = vmatprep.subr.bf16.mxu1 %v12504_v63  ;;  %v150_v49 = vld [vmem:[%s19698_s1 + $0x3a0] sm:$0xff]  ;;  %v12560_v56 = vcombine.high %v147_v50, %v151_v51  ;;  %v155_v60 = vld [vmem:[%s19698_s1 + $0x3c8] sm:$0xff]  ;;  %v12559_v63 = vcombine.low %v147_v50, %v151_v51 }
  0x20   :  { %v12558_v55 = vcombine.high %v146_v48, %v150_v49  ;;  %v154_v58 = vld [vmem:[%s19698_s1 + $0x3c0] sm:$0xff]  ;;  %v159_v61 = vld [vmem:[%s19698_s1 + $0x3e8] sm:$0xff]  ;;  %v12557_v62 = vcombine.low %v146_v48, %v150_v49 }
  0x21   :  { %v158_v59 = vld [vmem:[%s19698_s1 + $0x3e0] sm:$0xff]  ;;  %v12568_v1 = vcombine.high %v155_v60, %v159_v61 }
  0x22   :  { %9590 = vmatpush1.bf16.msra.mxu0 %v12501_v4  ;;  %10123 = vmatpush1.bf16.msra.mxu1 %v12503_v5  ;;  %v12566_v0 = vcombine.high %v154_v58, %v158_v59  ;;  %v162_v2 = vld [vmem:[%s19698_s1 + $0x400] sm:$0xff]  ;;  %v163_v4 = vld [vmem:[%s19698_s1 + $0x408] sm:$0xff] }
  0x23   :  { %9591 = vmatprep.subr.bf16.mxu0 %v12510_v6  ;;  %10124 = vmatprep.subr.bf16.mxu1 %v12512_v7  ;;  %v166_v3 = vld [vmem:[%s19698_s1 + $0x420] sm:$0xff]  ;;  %v167_v5 = vld [vmem:[%s19698_s1 + $0x428] sm:$0xff]  ;;  %v12565_v6 = vcombine.low %v154_v58, %v158_v59  ;;  %v12567_v7 = vcombine.low %v155_v60, %v159_v61 }
  0x24   :  { %v12574_v8 = vcombine.high %v162_v2, %v166_v3  ;;  %v12576_v9 = vcombine.high %v163_v4, %v167_v5  ;;  %v170_v10 = vld [vmem:[%s19698_s1 + $0x440] sm:$0xff]  ;;  %v12573_v16 = vcombine.low %v162_v2, %v166_v3  ;;  %v12575_v17 = vcombine.low %v163_v4, %v167_v5 }
  0x25   :  { %v174_v11 = vld [vmem:[%s19698_s1 + $0x460] sm:$0xff] }
  0x26   :  { %9592 = vmatpush1.bf16.msra.mxu0 %v12509_v12  ;;  %10125 = vmatpush1.bf16.msra.mxu1 %v12511_v13  ;;  %v14718_v12 = vcombine.low %v14582_v53, %v14582_v53  ;;  %v171_v13 = vld [vmem:[%s19698_s1 + $0x448] sm:$0xff]  ;;  %v12582_v53 = vcombine.high %v170_v10, %v174_v11  ;;  %v178_v19 = vld [vmem:[%s19698_s1 + $0x480] sm:$0xff]  ;;  %v12581_v24 = vcombine.low %v170_v10, %v174_v11 }
  0x27   :  { %9593 = vmatprep.subr.bf16.mxu0 %v12518_v14  ;;  %10126 = vmatprep.subr.bf16.mxu1 %v12520_v15  ;;  %v175_v14 = vld [vmem:[%s19698_s1 + $0x468] sm:$0xff] }
  0x28   :  { %v14729_v15 = vld [vmem:[%s19699_s0 + $0x8] sm:$0xff]  ;;  %v12584_v18 = vcombine.high %v171_v13, %v175_v14  ;;  %v12583_v25 = vcombine.low %v171_v13, %v175_v14 }
  0x2a   :  { %9594 = vmatpush1.bf16.msra.mxu0 %v12517_v20  ;;  %10127 = vmatpush1.bf16.msra.mxu1 %v12519_v21  ;;  %v182_v20 = vld [vmem:[%s19698_s1 + $0x4a0] sm:$0xff]  ;;  %v14739_v21 = vcombine.high %v14729_v15, %v14729_v15 }
  0x2b   :  { %9595 = vmatprep.subr.bf16.mxu0 %v12526_v22  ;;  %10128 = vmatprep.subr.bf16.mxu1 %v12528_v23  ;;  %v179_v22 = vld [vmem:[%s19698_s1 + $0x488] sm:$0xff]  ;;  %v12590_v26 = vcombine.high %v178_v19, %v182_v20  ;;  %v12589_v32 = vcombine.low %v178_v19, %v182_v20 }
  0x2c   :  { %v183_v23 = vld [vmem:[%s19698_s1 + $0x4a8] sm:$0xff] }
  0x2d   :  { %v12592_v27 = vcombine.high %v179_v22, %v183_v23  ;;  %v12591_v33 = vcombine.low %v179_v22, %v183_v23 }
  0x2e   :  { %9596 = vmatpush1.bf16.msra.mxu0 %v12525_v28  ;;  %10129 = vmatpush1.bf16.msra.mxu1 %v12527_v29  ;;  %v186_v28 = vld [vmem:[%s19698_s1 + $0x4c0] sm:$0xff] }
  0x2f   :  { %9597 = vmatprep.subr.bf16.mxu0 %v12534_v30  ;;  %10130 = vmatprep.subr.bf16.mxu1 %v12536_v31  ;;  %v190_v29 = vld [vmem:[%s19698_s1 + $0x4e0] sm:$0xff]  ;;  %v187_v30 = vld [vmem:[%s19698_s1 + $0x4c8] sm:$0xff] }
  0x30   :  { %v191_v31 = vld [vmem:[%s19698_s1 + $0x4e8] sm:$0xff]  ;;  %v12598_v34 = vcombine.high %v186_v28, %v190_v29  ;;  %v12597_v40 = vcombine.low %v186_v28, %v190_v29 }
  0x31   :  { %v12600_v35 = vcombine.high %v187_v30, %v191_v31  ;;  %v12599_v41 = vcombine.low %v187_v30, %v191_v31 }
  0x32   :  { %9598 = vmatpush1.bf16.msra.mxu0 %v12533_v36  ;;  %10131 = vmatpush1.bf16.msra.mxu1 %v12535_v37  ;;  %v194_v36 = vld [vmem:[%s19698_s1 + $0x500] sm:$0xff] }
  0x33   :  { %9599 = vmatprep.subr.bf16.mxu0 %v12542_v38  ;;  %10132 = vmatprep.subr.bf16.mxu1 %v12544_v39  ;;  %v198_v37 = vld [vmem:[%s19698_s1 + $0x520] sm:$0xff]  ;;  %v195_v38 = vld [vmem:[%s19698_s1 + $0x508] sm:$0xff] }
  0x34   :  { %v199_v39 = vld [vmem:[%s19698_s1 + $0x528] sm:$0xff]  ;;  %v12606_v42 = vcombine.high %v194_v36, %v198_v37  ;;  %v12605_v48 = vcombine.low %v194_v36, %v198_v37 }
  0x35   :  { %v12608_v43 = vcombine.high %v195_v38, %v199_v39  ;;  %v12607_v49 = vcombine.low %v195_v38, %v199_v39 }
  0x36   :  { %9600 = vmatpush1.bf16.msra.mxu0 %v12541_v44  ;;  %10133 = vmatpush1.bf16.msra.mxu1 %v12543_v45  ;;  %v202_v44 = vld [vmem:[%s19698_s1 + $0x540] sm:$0xff] }
  0x37   :  { %9601 = vmatprep.subr.bf16.mxu0 %v12550_v46  ;;  %10134 = vmatprep.subr.bf16.mxu1 %v12552_v47  ;;  %v206_v45 = vld [vmem:[%s19698_s1 + $0x560] sm:$0xff]  ;;  %v203_v46 = vld [vmem:[%s19698_s1 + $0x548] sm:$0xff] }
  0x38   :  { %v207_v47 = vld [vmem:[%s19698_s1 + $0x568] sm:$0xff]  ;;  %v12614_v50 = vcombine.high %v202_v44, %v206_v45  ;;  %v12613_v58 = vcombine.low %v202_v44, %v206_v45 }
  0x39   :  { %v12616_v51 = vcombine.high %v203_v46, %v207_v47  ;;  %v12615_v59 = vcombine.low %v203_v46, %v207_v47 }
  0x3a   :  { %9602 = vmatpush1.bf16.msra.mxu0 %v12549_v52  ;;  %10135 = vmatpush1.bf16.msra.mxu1 %v12551_v54  ;;  %v210_v52 = vld [vmem:[%s19698_s1 + $0x580] sm:$0xff] }
  0x3b   :  { %9603 = vmatprep.subr.bf16.mxu0 %v12558_v55  ;;  %10136 = vmatprep.subr.bf16.mxu1 %v12560_v56  ;;  %v214_v54 = vld [vmem:[%s19698_s1 + $0x5a0] sm:$0xff]  ;;  %v211_v55 = vld [vmem:[%s19698_s1 + $0x588] sm:$0xff] }
  0x3c   :  { %v215_v56 = vld [vmem:[%s19698_s1 + $0x5a8] sm:$0xff]  ;;  %v12622_v60 = vcombine.high %v210_v52, %v214_v54  ;;  %v12621_v2 = vcombine.low %v210_v52, %v214_v54 }
  0x3d   :  { %v12624_v61 = vcombine.high %v211_v55, %v215_v56  ;;  %v12623_v3 = vcombine.low %v211_v55, %v215_v56 }
  0x3e   :  { %9604 = vmatpush1.bf16.msra.mxu0 %v12557_v62  ;;  %10137 = vmatpush1.bf16.msra.mxu1 %v12559_v63  ;;  %v218_v62 = vld [vmem:[%s19698_s1 + $0x5c0] sm:$0xff] }
  0x3f   :  { %9605 = vmatprep.subr.bf16.mxu0 %v12566_v0  ;;  %10138 = vmatprep.subr.bf16.mxu1 %v12568_v1  ;;  %v222_v63 = vld [vmem:[%s19698_s1 + $0x5e0] sm:$0xff]  ;;  %v219_v0 = vld [vmem:[%s19698_s1 + $0x5c8] sm:$0xff] }
  0x40   :  { %v223_v1 = vld [vmem:[%s19698_s1 + $0x5e8] sm:$0xff]  ;;  %v12630_v4 = vcombine.high %v218_v62, %v222_v63  ;;  %v12629_v10 = vcombine.low %v218_v62, %v222_v63 }
  0x41   :  { %v12632_v5 = vcombine.high %v219_v0, %v223_v1  ;;  %v12631_v11 = vcombine.low %v219_v0, %v223_v1 }
  0x42   :  { %9606 = vmatpush1.bf16.msra.mxu0 %v12565_v6  ;;  %10139 = vmatpush1.bf16.msra.mxu1 %v12567_v7  ;;  %v226_v6 = vld [vmem:[%s19698_s1 + $0x600] sm:$0xff] }
  0x43   :  { %9616 = vmatprep.subr.bf16.mxu0 %v12574_v8  ;;  %10149 = vmatprep.subr.bf16.mxu1 %v12576_v9  ;;  %v230_v7 = vld [vmem:[%s19698_s1 + $0x620] sm:$0xff]  ;;  %v227_v8 = vld [vmem:[%s19698_s1 + $0x608] sm:$0xff] }
  0x44   :  { %v231_v9 = vld [vmem:[%s19698_s1 + $0x628] sm:$0xff]  ;;  %v12638_v13 = vcombine.high %v226_v6, %v230_v7  ;;  %v12637_v19 = vcombine.low %v226_v6, %v230_v7 }
  0x45   :  { %9608 = vmatmul.mubr.bf16.vlgmr.msra.gmra.mrb[0].mxu0 %v14718_v12  ;;  %10141 = vmatmul.mubr.bf16.vlgmr.msra.gmra.mrb[0].mxu1 %v14718_v12  ;;  %v12640_v14 = vcombine.high %v227_v8, %v231_v9  ;;  %v12639_v20 = vcombine.low %v227_v8, %v231_v9 }
  0x46   :  { %9617 = vmatpush1.bf16.msra.mxu0 %v12573_v16  ;;  %10150 = vmatpush1.bf16.msra.mxu1 %v12575_v17  ;;  %v234_v16 = vld [vmem:[%s19698_s1 + $0x640] sm:$0xff] }
  0x47   :  { %9618 = vmatprep.subr.bf16.mxu0 %v12582_v53  ;;  %10151 = vmatprep.subr.bf16.mxu1 %v12584_v18  ;;  %v238_v17 = vld [vmem:[%s19698_s1 + $0x660] sm:$0xff]  ;;  %v235_v53 = vld [vmem:[%s19698_s1 + $0x648] sm:$0xff] }
  0x48   :  { %9648 = vmatprep.mubr.bf16.mxu0 %v14739_v21  ;;  %10181 = vmatprep.mubr.bf16.mxu1 %v14739_v21  ;;  %v239_v18 = vld [vmem:[%s19698_s1 + $0x668] sm:$0xff]  ;;  %v12646_v22 = vcombine.high %v234_v16, %v238_v17  ;;  %v12645_v28 = vcombine.low %v234_v16, %v238_v17 }
  0x49   :  { %v12648_v23 = vcombine.high %v235_v53, %v239_v18  ;;  %v12647_v29 = vcombine.low %v235_v53, %v239_v18 }
  0x4a   :  { %9619 = vmatpush1.bf16.msra.mxu0 %v12581_v24  ;;  %10152 = vmatpush1.bf16.msra.mxu1 %v12583_v25  ;;  %v242_v24 = vld [vmem:[%s19698_s1 + $0x680] sm:$0xff] }
  0x4b   :  { %9620 = vmatprep.subr.bf16.mxu0 %v12590_v26  ;;  %10153 = vmatprep.subr.bf16.mxu1 %v12592_v27  ;;  %v246_v25 = vld [vmem:[%s19698_s1 + $0x6a0] sm:$0xff]  ;;  %v243_v26 = vld [vmem:[%s19698_s1 + $0x688] sm:$0xff] }
  0x4c   :  { %v247_v27 = vld [vmem:[%s19698_s1 + $0x6a8] sm:$0xff]  ;;  %v12654_v30 = vcombine.high %v242_v24, %v246_v25  ;;  %v12653_v36 = vcombine.low %v242_v24, %v246_v25  ;;  %v14938_v25 = vld [vmem:[%s19699_s0 + $0x10] sm:$0xff] }
  0x4d   :  { %v12656_v31 = vcombine.high %v243_v26, %v247_v27  ;;  %v12655_v37 = vcombine.low %v243_v26, %v247_v27  ;;  %v303_v24 = vld [vmem:[%s19698_s1 + $0x868] sm:$0xff] }
  0x4e   :  { %9621 = vmatpush1.bf16.msra.mxu0 %v12589_v32  ;;  %10154 = vmatpush1.bf16.msra.mxu1 %v12591_v33  ;;  %v250_v32 = vld [vmem:[%s19698_s1 + $0x6c0] sm:$0xff] }
  0x4f   :  { %9622 = vmatprep.subr.bf16.mxu0 %v12598_v34  ;;  %10155 = vmatprep.subr.bf16.mxu1 %v12600_v35  ;;  %v254_v33 = vld [vmem:[%s19698_s1 + $0x6e0] sm:$0xff]  ;;  %v251_v34 = vld [vmem:[%s19698_s1 + $0x6c8] sm:$0xff] }
  0x50   :  { %v255_v35 = vld [vmem:[%s19698_s1 + $0x6e8] sm:$0xff]  ;;  %v12662_v38 = vcombine.high %v250_v32, %v254_v33  ;;  %v12661_v44 = vcombine.low %v250_v32, %v254_v33 }
  0x51   :  { %v12664_v39 = vcombine.high %v251_v34, %v255_v35  ;;  %v12663_v45 = vcombine.low %v251_v34, %v255_v35  ;;  %v307_v32 = vld [vmem:[%s19698_s1 + $0x888] sm:$0xff] }
  0x52   :  { %9623 = vmatpush1.bf16.msra.mxu0 %v12597_v40  ;;  %10156 = vmatpush1.bf16.msra.mxu1 %v12599_v41  ;;  %v258_v40 = vld [vmem:[%s19698_s1 + $0x700] sm:$0xff]  ;;  %v311_v33 = vld [vmem:[%s19698_s1 + $0x8a8] sm:$0xff] }
  0x53   :  { %9624 = vmatprep.subr.bf16.mxu0 %v12606_v42  ;;  %10157 = vmatprep.subr.bf16.mxu1 %v12608_v43  ;;  %v262_v41 = vld [vmem:[%s19698_s1 + $0x720] sm:$0xff]  ;;  %v259_v42 = vld [vmem:[%s19698_s1 + $0x708] sm:$0xff] }
  0x54   :  { %v263_v43 = vld [vmem:[%s19698_s1 + $0x728] sm:$0xff]  ;;  %v12670_v46 = vcombine.high %v258_v40, %v262_v41  ;;  %v12669_v52 = vcombine.low %v258_v40, %v262_v41 }
  0x55   :  { %v12672_v47 = vcombine.high %v259_v42, %v263_v43  ;;  %v12671_v54 = vcombine.low %v259_v42, %v263_v43  ;;  %v315_v40 = vld [vmem:[%s19698_s1 + $0x8c8] sm:$0xff]  ;;  %v12719_v43 = vcombine.low %v307_v32, %v311_v33 }
  0x56   :  { %9625 = vmatpush1.bf16.msra.mxu0 %v12605_v48  ;;  %10158 = vmatpush1.bf16.msra.mxu1 %v12607_v49  ;;  %v266_v48 = vld [vmem:[%s19698_s1 + $0x740] sm:$0xff]  ;;  %v319_v41 = vld [vmem:[%s19698_s1 + $0x8e8] sm:$0xff] }
  0x57   :  { %9626 = vmatprep.subr.bf16.mxu0 %v12614_v50  ;;  %10159 = vmatprep.subr.bf16.mxu1 %v12616_v51  ;;  %v270_v49 = vld [vmem:[%s19698_s1 + $0x760] sm:$0xff]  ;;  %v267_v50 = vld [vmem:[%s19698_s1 + $0x748] sm:$0xff] }
  0x58   :  { %v271_v51 = vld [vmem:[%s19698_s1 + $0x768] sm:$0xff]  ;;  %v12678_v55 = vcombine.high %v266_v48, %v270_v49  ;;  %v12677_v62 = vcombine.low %v266_v48, %v270_v49 }
  0x59   :  { %v12680_v56 = vcombine.high %v267_v50, %v271_v51  ;;  %v12679_v63 = vcombine.low %v267_v50, %v271_v51  ;;  %v323_v48 = vld [vmem:[%s19698_s1 + $0x908] sm:$0xff]  ;;  %v12727_v51 = vcombine.low %v315_v40, %v319_v41 }
  0x5a   :  { %9627 = vmatpush1.bf16.msra.mxu0 %v12613_v58  ;;  %10160 = vmatpush1.bf16.msra.mxu1 %v12615_v59  ;;  %v274_v58 = vld [vmem:[%s19698_s1 + $0x780] sm:$0xff]  ;;  %v327_v49 = vld [vmem:[%s19698_s1 + $0x928] sm:$0xff] }
  0x5b   :  { %9628 = vmatprep.subr.bf16.mxu0 %v12622_v60  ;;  %10161 = vmatprep.subr.bf16.mxu1 %v12624_v61  ;;  %v278_v59 = vld [vmem:[%s19698_s1 + $0x7a0] sm:$0xff]  ;;  %v275_v60 = vld [vmem:[%s19698_s1 + $0x788] sm:$0xff] }
  0x5c   :  { %v279_v61 = vld [vmem:[%s19698_s1 + $0x7a8] sm:$0xff]  ;;  %v12686_v0 = vcombine.high %v274_v58, %v278_v59  ;;  %v12685_v6 = vcombine.low %v274_v58, %v278_v59 }
  0x5d   :  { %v12688_v1 = vcombine.high %v275_v60, %v279_v61  ;;  %v12687_v7 = vcombine.low %v275_v60, %v279_v61  ;;  %v331_v58 = vld [vmem:[%s19698_s1 + $0x948] sm:$0xff]  ;;  %v12735_v61 = vcombine.low %v323_v48, %v327_v49 }
  0x5e   :  { %9629 = vmatpush1.bf16.msra.mxu0 %v12621_v2  ;;  %10162 = vmatpush1.bf16.msra.mxu1 %v12623_v3  ;;  %v282_v2 = vld [vmem:[%s19698_s1 + $0x7c0] sm:$0xff]  ;;  %v335_v59 = vld [vmem:[%s19698_s1 + $0x968] sm:$0xff] }
  0x5f   :  { %9630 = vmatprep.subr.bf16.mxu0 %v12630_v4  ;;  %10163 = vmatprep.subr.bf16.mxu1 %v12632_v5  ;;  %v286_v3 = vld [vmem:[%s19698_s1 + $0x7e0] sm:$0xff]  ;;  %v283_v4 = vld [vmem:[%s19698_s1 + $0x7c8] sm:$0xff] }
  0x60   :  { %v287_v5 = vld [vmem:[%s19698_s1 + $0x7e8] sm:$0xff]  ;;  %v12694_v8 = vcombine.high %v282_v2, %v286_v3  ;;  %v12693_v16 = vcombine.low %v282_v2, %v286_v3 }
  0x61   :  { %v12696_v9 = vcombine.high %v283_v4, %v287_v5  ;;  %v12695_v17 = vcombine.low %v283_v4, %v287_v5  ;;  %v339_v2 = vld [vmem:[%s19698_s1 + $0x988] sm:$0xff]  ;;  %v12743_v5 = vcombine.low %v331_v58, %v335_v59 }
  0x62   :  { %9631 = vmatpush1.bf16.msra.mxu0 %v12629_v10  ;;  %10164 = vmatpush1.bf16.msra.mxu1 %v12631_v11  ;;  %v290_v10 = vld [vmem:[%s19698_s1 + $0x800] sm:$0xff]  ;;  %v343_v3 = vld [vmem:[%s19698_s1 + $0x9a8] sm:$0xff] }
  0x63   :  { %9632 = vmatprep.subr.bf16.mxu0 %v12638_v13  ;;  %10165 = vmatprep.subr.bf16.mxu1 %v12640_v14  ;;  %v294_v11 = vld [vmem:[%s19698_s1 + $0x820] sm:$0xff]  ;;  %v291_v13 = vld [vmem:[%s19698_s1 + $0x808] sm:$0xff] }
  0x64   :  { %v295_v14 = vld [vmem:[%s19698_s1 + $0x828] sm:$0xff]  ;;  %v12702_v53 = vcombine.high %v290_v10, %v294_v11  ;;  %v12701_v26 = vcombine.low %v290_v10, %v294_v11 }
  0x65   :  { %v12704_v18 = vcombine.high %v291_v13, %v295_v14  ;;  %v12703_v27 = vcombine.low %v291_v13, %v295_v14  ;;  %v347_v10 = vld [vmem:[%s19698_s1 + $0x9c8] sm:$0xff]  ;;  %v12751_v14 = vcombine.low %v339_v2, %v343_v3 }
  0x66   :  { %9633 = vmatpush1.bf16.msra.mxu0 %v12637_v19  ;;  %10166 = vmatpush1.bf16.msra.mxu1 %v12639_v20  ;;  %v298_v19 = vld [vmem:[%s19698_s1 + $0x840] sm:$0xff]  ;;  %v351_v11 = vld [vmem:[%s19698_s1 + $0x9e8] sm:$0xff] }
  0x67   :  { %9634 = vmatprep.subr.bf16.mxu0 %v12646_v22  ;;  %10167 = vmatprep.subr.bf16.mxu1 %v12648_v23  ;;  %v302_v20 = vld [vmem:[%s19698_s1 + $0x860] sm:$0xff]  ;;  %v14927_v22 = vcombine.low %v14729_v15, %v14729_v15  ;;  %v299_v23 = vld [vmem:[%s19698_s1 + $0x848] sm:$0xff] }
  0x68   :  { %v12710_v15 = vcombine.high %v298_v19, %v302_v20  ;;  %v12709_v34 = vcombine.low %v298_v19, %v302_v20  ;;  %v12711_v35 = vcombine.low %v299_v23, %v303_v24  ;;  %v355_v19 = vld [vmem:[%s19698_s1 + $0xa08] sm:$0xff] }
  0x69   :  { %v359_v20 = vld [vmem:[%s19698_s1 + $0xa28] sm:$0xff] }
  0x6a   :  { %9635 = vmatpush1.bf16.msra.mxu0 %v12645_v28  ;;  %10168 = vmatpush1.bf16.msra.mxu1 %v12647_v29  ;;  %v12712_v28 = vcombine.high %v299_v23, %v303_v24  ;;  %v306_v29 = vld [vmem:[%s19698_s1 + $0x880] sm:$0xff]  ;;  %v12759_v24 = vcombine.low %v347_v10, %v351_v11 }
  0x6b   :  { %9636 = vmatprep.subr.bf16.mxu0 %v12654_v30  ;;  %10169 = vmatprep.subr.bf16.mxu1 %v12656_v31  ;;  %v310_v30 = vld [vmem:[%s19698_s1 + $0x8a0] sm:$0xff]  ;;  %v14948_v31 = vcombine.high %v14938_v25, %v14938_v25 }
  0x6c   :  { %v12717_v42 = vcombine.low %v306_v29, %v310_v30 }
  0x6e   :  { %9637 = vmatpush1.bf16.msra.mxu0 %v12653_v36  ;;  %10170 = vmatpush1.bf16.msra.mxu1 %v12655_v37  ;;  %v12718_v36 = vcombine.high %v306_v29, %v310_v30  ;;  %v12720_v37 = vcombine.high %v307_v32, %v311_v33  ;;  %v363_v29 = vld [vmem:[%s19698_s1 + $0xa48] sm:$0xff]  ;;  %v12767_v33 = vcombine.low %v355_v19, %v359_v20 }
  0x6f   :  { %9638 = vmatprep.subr.bf16.mxu0 %v12662_v38  ;;  %10171 = vmatprep.subr.bf16.mxu1 %v12664_v39  ;;  %v314_v38 = vld [vmem:[%s19698_s1 + $0x8c0] sm:$0xff]  ;;  %v367_v30 = vld [vmem:[%s19698_s1 + $0xa68] sm:$0xff] }
  0x70   :  { %v318_v39 = vld [vmem:[%s19698_s1 + $0x8e0] sm:$0xff] }
  0x71   :  { %v12725_v50 = vcombine.low %v314_v38, %v318_v39 }
  0x72   :  { %9639 = vmatpush1.bf16.msra.mxu0 %v12661_v44  ;;  %10172 = vmatpush1.bf16.msra.mxu1 %v12663_v45  ;;  %v12726_v44 = vcombine.high %v314_v38, %v318_v39  ;;  %v12728_v45 = vcombine.high %v315_v40, %v319_v41  ;;  %v371_v38 = vld [vmem:[%s19698_s1 + $0xa88] sm:$0xff]  ;;  %v12775_v41 = vcombine.low %v363_v29, %v367_v30 }
  0x73   :  { %9640 = vmatprep.subr.bf16.mxu0 %v12670_v46  ;;  %10173 = vmatprep.subr.bf16.mxu1 %v12672_v47  ;;  %v322_v46 = vld [vmem:[%s19698_s1 + $0x900] sm:$0xff]  ;;  %v375_v39 = vld [vmem:[%s19698_s1 + $0xaa8] sm:$0xff] }
  0x74   :  { %v326_v47 = vld [vmem:[%s19698_s1 + $0x920] sm:$0xff] }
  0x75   :  { %v12733_v60 = vcombine.low %v322_v46, %v326_v47 }
  0x76   :  { %9641 = vmatpush1.bf16.msra.mxu0 %v12669_v52  ;;  %10174 = vmatpush1.bf16.msra.mxu1 %v12671_v54  ;;  %v12734_v52 = vcombine.high %v322_v46, %v326_v47  ;;  %v12736_v54 = vcombine.high %v323_v48, %v327_v49  ;;  %v379_v46 = vld [vmem:[%s19698_s1 + $0xac8] sm:$0xff]  ;;  %v12783_v49 = vcombine.low %v371_v38, %v375_v39 }
  0x77   :  { %9642 = vmatprep.subr.bf16.mxu0 %v12678_v55  ;;  %10175 = vmatprep.subr.bf16.mxu1 %v12680_v56  ;;  %v330_v55 = vld [vmem:[%s19698_s1 + $0x940] sm:$0xff]  ;;  %v383_v47 = vld [vmem:[%s19698_s1 + $0xae8] sm:$0xff] }
  0x78   :  { %v334_v56 = vld [vmem:[%s19698_s1 + $0x960] sm:$0xff] }
  0x79   :  { %v12741_v4 = vcombine.low %v330_v55, %v334_v56 }
  0x7a   :  { %9643 = vmatpush1.bf16.msra.mxu0 %v12677_v62  ;;  %10176 = vmatpush1.bf16.msra.mxu1 %v12679_v63  ;;  %v12742_v62 = vcombine.high %v330_v55, %v334_v56  ;;  %v12744_v63 = vcombine.high %v331_v58, %v335_v59  ;;  %v387_v55 = vld [vmem:[%s19698_s1 + $0xb08] sm:$0xff]  ;;  %v12791_v59 = vcombine.low %v379_v46, %v383_v47 }
  0x7b   :  { %9644 = vmatprep.subr.bf16.mxu0 %v12686_v0  ;;  %10177 = vmatprep.subr.bf16.mxu1 %v12688_v1  ;;  %v338_v0 = vld [vmem:[%s19698_s1 + $0x980] sm:$0xff]  ;;  %v391_v56 = vld [vmem:[%s19698_s1 + $0xb28] sm:$0xff] }
  0x7c   :  { %v342_v1 = vld [vmem:[%s19698_s1 + $0x9a0] sm:$0xff] }
  0x7d   :  { %v12749_v13 = vcombine.low %v338_v0, %v342_v1 }
  0x7e   :  { %9645 = vmatpush1.bf16.msra.mxu0 %v12685_v6  ;;  %10178 = vmatpush1.bf16.msra.mxu1 %v12687_v7  ;;  %v12750_v6 = vcombine.high %v338_v0, %v342_v1  ;;  %v12752_v7 = vcombine.high %v339_v2, %v343_v3  ;;  %v395_v0 = vld [vmem:[%s19698_s1 + $0xb48] sm:$0xff]  ;;  %v12799_v3 = vcombine.low %v387_v55, %v391_v56 }
  0x7f   :  { %9646 = vmatprep.subr.bf16.mxu0 %v12694_v8  ;;  %10179 = vmatprep.subr.bf16.mxu1 %v12696_v9  ;;  %v346_v8 = vld [vmem:[%s19698_s1 + $0x9c0] sm:$0xff]  ;;  %v399_v1 = vld [vmem:[%s19698_s1 + $0xb68] sm:$0xff] }
  0x80   :  { %v350_v9 = vld [vmem:[%s19698_s1 + $0x9e0] sm:$0xff] }
  0x81   :  { %v12757_v23 = vcombine.low %v346_v8, %v350_v9 }
  0x82   :  { %9647 = vmatpush1.bf16.msra.mxu0 %v12693_v16  ;;  %10180 = vmatpush1.bf16.msra.mxu1 %v12695_v17  ;;  %v12758_v16 = vcombine.high %v346_v8, %v350_v9  ;;  %v12760_v17 = vcombine.high %v347_v10, %v351_v11  ;;  %v403_v8 = vld [vmem:[%s19698_s1 + $0xb88] sm:$0xff]  ;;  %v12807_v11 = vcombine.low %v395_v0, %v399_v1 }
  0x83   :  { %9657 = vmatprep.subr.bf16.mxu0 %v12702_v53  ;;  %10190 = vmatprep.subr.bf16.mxu1 %v12704_v18  ;;  %v354_v53 = vld [vmem:[%s19698_s1 + $0xa00] sm:$0xff]  ;;  %v407_v9 = vld [vmem:[%s19698_s1 + $0xba8] sm:$0xff] }
  0x84   :  { %v358_v18 = vld [vmem:[%s19698_s1 + $0xa20] sm:$0xff] }
  0x85   :  { %9649 = vmatmul.mubr.bf16.vlgmr.msra.gmra.mrb[0].mxu0 %v14927_v22  ;;  %10182 = vmatmul.mubr.bf16.vlgmr.msra.gmra.mrb[0].mxu1 %v14927_v22  ;;  %v12765_v32 = vcombine.low %v354_v53, %v358_v18 }
  0x86   :  { %9658 = vmatpush1.bf16.msra.mxu0 %v12701_v26  ;;  %10191 = vmatpush1.bf16.msra.mxu1 %v12703_v27  ;;  %v12766_v26 = vcombine.high %v354_v53, %v358_v18  ;;  %v12768_v27 = vcombine.high %v355_v19, %v359_v20  ;;  %v411_v53 = vld [vmem:[%s19698_s1 + $0xbc8] sm:$0xff]  ;;  %v12815_v20 = vcombine.low %v403_v8, %v407_v9 }
  0x87   :  { %9659 = vmatprep.subr.bf16.mxu0 %v12710_v15  ;;  %10192 = vmatprep.subr.bf16.mxu1 %v12712_v28  ;;  %v362_v15 = vld [vmem:[%s19698_s1 + $0xa40] sm:$0xff]  ;;  %v415_v18 = vld [vmem:[%s19698_s1 + $0xbe8] sm:$0xff] }
  0x88   :  { %9689 = vmatprep.mubr.bf16.mxu0 %v14948_v31  ;;  %10222 = vmatprep.mubr.bf16.mxu1 %v14948_v31  ;;  %v366_v28 = vld [vmem:[%s19698_s1 + $0xa60] sm:$0xff] }
  0x89   :  { %v12773_v40 = vcombine.low %v362_v15, %v366_v28 }
  0x8a   :  { %9660 = vmatpush1.bf16.msra.mxu0 %v12709_v34  ;;  %10193 = vmatpush1.bf16.msra.mxu1 %v12711_v35  ;;  %v12774_v34 = vcombine.high %v362_v15, %v366_v28  ;;  %v12776_v35 = vcombine.high %v363_v29, %v367_v30  ;;  %v419_v15 = vld [vmem:[%s19698_s1 + $0xc08] sm:$0xff]  ;;  %v12823_v30 = vcombine.low %v411_v53, %v415_v18 }
  0x8b   :  { %9661 = vmatprep.subr.bf16.mxu0 %v12718_v36  ;;  %10194 = vmatprep.subr.bf16.mxu1 %v12720_v37  ;;  %v370_v36 = vld [vmem:[%s19698_s1 + $0xa80] sm:$0xff]  ;;  %v423_v28 = vld [vmem:[%s19698_s1 + $0xc28] sm:$0xff] }
  0x8c   :  { %v374_v37 = vld [vmem:[%s19698_s1 + $0xaa0] sm:$0xff] }
  0x8d   :  { %v12781_v48 = vcombine.low %v370_v36, %v374_v37 }
  0x8e   :  { %9662 = vmatpush1.bf16.msra.mxu0 %v12717_v42  ;;  %10195 = vmatpush1.bf16.msra.mxu1 %v12719_v43  ;;  %v12782_v42 = vcombine.high %v370_v36, %v374_v37  ;;  %v12784_v43 = vcombine.high %v371_v38, %v375_v39  ;;  %v15136_v36 = vcombine.low %v14938_v25, %v14938_v25  ;;  %v427_v37 = vld [vmem:[%s19698_s1 + $0xc48] sm:$0xff]  ;;  %v15147_v39 = vld [vmem:[%s19699_s0 + $0x18] sm:$0xff] }
  0x8f   :  { %9663 = vmatprep.subr.bf16.mxu0 %v12726_v44  ;;  %10196 = vmatprep.subr.bf16.mxu1 %v12728_v45  ;;  %v378_v44 = vld [vmem:[%s19698_s1 + $0xac0] sm:$0xff]  ;;  %v431_v38 = vld [vmem:[%s19698_s1 + $0xc68] sm:$0xff] }
  0x90   :  { %v382_v45 = vld [vmem:[%s19698_s1 + $0xae0] sm:$0xff] }
  0x91   :  { %v12789_v58 = vcombine.low %v378_v44, %v382_v45 }
  0x92   :  { %9664 = vmatpush1.bf16.msra.mxu0 %v12725_v50  ;;  %10197 = vmatpush1.bf16.msra.mxu1 %v12727_v51  ;;  %v12790_v50 = vcombine.high %v378_v44, %v382_v45  ;;  %v12792_v51 = vcombine.high %v379_v46, %v383_v47  ;;  %v438_v44 = vld [vmem:[%s19698_s1 + $0xca0] sm:$0xff]  ;;  %v15157_v45 = vcombine.high %v15147_v39, %v15147_v39  ;;  %v435_v46 = vld [vmem:[%s19698_s1 + $0xc88] sm:$0xff] }
  0x93   :  { %9665 = vmatprep.subr.bf16.mxu0 %v12734_v52  ;;  %10198 = vmatprep.subr.bf16.mxu1 %v12736_v54  ;;  %v386_v52 = vld [vmem:[%s19698_s1 + $0xb00] sm:$0xff]  ;;  %v439_v47 = vld [vmem:[%s19698_s1 + $0xca8] sm:$0xff] }
  0x94   :  { %v390_v54 = vld [vmem:[%s19698_s1 + $0xb20] sm:$0xff] }
  0x95   :  { %v12797_v2 = vcombine.low %v386_v52, %v390_v54 }
  0x96   :  { %9666 = vmatpush1.bf16.msra.mxu0 %v12733_v60  ;;  %10199 = vmatpush1.bf16.msra.mxu1 %v12735_v61  ;;  %v12798_v60 = vcombine.high %v386_v52, %v390_v54  ;;  %v12800_v61 = vcombine.high %v387_v55, %v391_v56  ;;  %v442_v52 = vld [vmem:[%s19698_s1 + $0xcc0] sm:$0xff]  ;;  %v443_v55 = vld [vmem:[%s19698_s1 + $0xcc8] sm:$0xff] }
  0x97   :  { %9667 = vmatprep.subr.bf16.mxu0 %v12742_v62  ;;  %10200 = vmatprep.subr.bf16.mxu1 %v12744_v63  ;;  %v394_v62 = vld [vmem:[%s19698_s1 + $0xb40] sm:$0xff]  ;;  %v447_v56 = vld [vmem:[%s19698_s1 + $0xce8] sm:$0xff] }
  0x98   :  { %v398_v63 = vld [vmem:[%s19698_s1 + $0xb60] sm:$0xff] }
  0x99   :  { %v12805_v10 = vcombine.low %v394_v62, %v398_v63  ;;  %v446_v54 = vld [vmem:[%s19698_s1 + $0xce0] sm:$0xff] }
  0x9a   :  { %9668 = vmatpush1.bf16.msra.mxu0 %v12741_v4  ;;  %10201 = vmatpush1.bf16.msra.mxu1 %v12743_v5  ;;  %v12806_v4 = vcombine.high %v394_v62, %v398_v63  ;;  %v12808_v5 = vcombine.high %v395_v0, %v399_v1  ;;  %v450_v62 = vld [vmem:[%s19698_s1 + $0xd00] sm:$0xff]  ;;  %v451_v0 = vld [vmem:[%s19698_s1 + $0xd08] sm:$0xff] }
  0x9b   :  { %9669 = vmatprep.subr.bf16.mxu0 %v12750_v6  ;;  %10202 = vmatprep.subr.bf16.mxu1 %v12752_v7  ;;  %v402_v6 = vld [vmem:[%s19698_s1 + $0xb80] sm:$0xff]  ;;  %v455_v1 = vld [vmem:[%s19698_s1 + $0xd28] sm:$0xff] }
  0x9c   :  { %v406_v7 = vld [vmem:[%s19698_s1 + $0xba0] sm:$0xff] }
  0x9d   :  { %v12813_v19 = vcombine.low %v402_v6, %v406_v7  ;;  %v454_v63 = vld [vmem:[%s19698_s1 + $0xd20] sm:$0xff] }
  0x9e   :  { %9670 = vmatpush1.bf16.msra.mxu0 %v12749_v13  ;;  %10203 = vmatpush1.bf16.msra.mxu1 %v12751_v14  ;;  %v12814_v13 = vcombine.high %v402_v6, %v406_v7  ;;  %v12816_v14 = vcombine.high %v403_v8, %v407_v9  ;;  %v458_v6 = vld [vmem:[%s19698_s1 + $0xd40] sm:$0xff]  ;;  %v459_v8 = vld [vmem:[%s19698_s1 + $0xd48] sm:$0xff] }
  0x9f   :  { %9671 = vmatprep.subr.bf16.mxu0 %v12758_v16  ;;  %10204 = vmatprep.subr.bf16.mxu1 %v12760_v17  ;;  %v410_v16 = vld [vmem:[%s19698_s1 + $0xbc0] sm:$0xff]  ;;  %v463_v9 = vld [vmem:[%s19698_s1 + $0xd68] sm:$0xff] }
  0xa0   :  { %v414_v17 = vld [vmem:[%s19698_s1 + $0xbe0] sm:$0xff] }
  0xa1   :  { %v12821_v29 = vcombine.low %v410_v16, %v414_v17  ;;  %v462_v7 = vld [vmem:[%s19698_s1 + $0xd60] sm:$0xff] }
  0xa2   :  { %9672 = vmatpush1.bf16.msra.mxu0 %v12757_v23  ;;  %10205 = vmatpush1.bf16.msra.mxu1 %v12759_v24  ;;  %v12822_v23 = vcombine.high %v410_v16, %v414_v17  ;;  %v12824_v24 = vcombine.high %v411_v53, %v415_v18  ;;  %v466_v16 = vld [vmem:[%s19698_s1 + $0xd80] sm:$0xff]  ;;  %v467_v53 = vld [vmem:[%s19698_s1 + $0xd88] sm:$0xff] }
  0xa3   :  { %9673 = vmatprep.subr.bf16.mxu0 %v12766_v26  ;;  %10206 = vmatprep.subr.bf16.mxu1 %v12768_v27  ;;  %v418_v26 = vld [vmem:[%s19698_s1 + $0xc00] sm:$0xff]  ;;  %v471_v18 = vld [vmem:[%s19698_s1 + $0xda8] sm:$0xff] }
  0xa4   :  { %v422_v27 = vld [vmem:[%s19698_s1 + $0xc20] sm:$0xff] }
  0xa5   :  { %v470_v17 = vld [vmem:[%s19698_s1 + $0xda0] sm:$0xff] }
  0xa6   :  { %9674 = vmatpush1.bf16.msra.mxu0 %v12765_v32  ;;  %10207 = vmatpush1.bf16.msra.mxu1 %v12767_v33  ;;  %v12830_v32 = vcombine.high %v418_v26, %v422_v27  ;;  %v12832_v33 = vcombine.high %v419_v15, %v423_v28 }
  0xa7   :  { %9675 = vmatprep.subr.bf16.mxu0 %v12774_v34  ;;  %10208 = vmatprep.subr.bf16.mxu1 %v12776_v35  ;;  %v426_v34 = vld [vmem:[%s19698_s1 + $0xc40] sm:$0xff] }
  0xa8   :  { %v430_v35 = vld [vmem:[%s19698_s1 + $0xc60] sm:$0xff] }
  0xa9   :  { %v12838_v25 = vcombine.high %v426_v34, %v430_v35 }
  0xaa   :  { %9676 = vmatpush1.bf16.msra.mxu0 %v12773_v40  ;;  %10209 = vmatpush1.bf16.msra.mxu1 %v12775_v41  ;;  %v12829_v40 = vcombine.low %v418_v26, %v422_v27  ;;  %v12831_v41 = vcombine.low %v419_v15, %v423_v28  ;;  %v474_v26 = vld [vmem:[%s19698_s1 + $0xdc0] sm:$0xff]  ;;  %v475_v15 = vld [vmem:[%s19698_s1 + $0xdc8] sm:$0xff] }
  0xab   :  { %9677 = vmatprep.subr.bf16.mxu0 %v12782_v42  ;;  %10210 = vmatprep.subr.bf16.mxu1 %v12784_v43  ;;  %v12840_v42 = vcombine.high %v427_v37, %v431_v38  ;;  %v434_v43 = vld [vmem:[%s19698_s1 + $0xc80] sm:$0xff]  ;;  %v479_v28 = vld [vmem:[%s19698_s1 + $0xde8] sm:$0xff] }
  0xac   :  { %v478_v27 = vld [vmem:[%s19698_s1 + $0xde0] sm:$0xff] }
  0xae   :  { %9678 = vmatpush1.bf16.msra.mxu0 %v12781_v48  ;;  %10211 = vmatpush1.bf16.msra.mxu1 %v12783_v49  ;;  %v12837_v48 = vcombine.low %v426_v34, %v430_v35  ;;  %v12839_v49 = vcombine.low %v427_v37, %v431_v38  ;;  %v482_v34 = vld [vmem:[%s19698_s1 + $0xe00] sm:$0xff]  ;;  %v483_v37 = vld [vmem:[%s19698_s1 + $0xe08] sm:$0xff] }
  0xaf   :  { %9679 = vmatprep.subr.bf16.mxu0 %v12790_v50  ;;  %10212 = vmatprep.subr.bf16.mxu1 %v12792_v51  ;;  %v12846_v50 = vcombine.high %v434_v43, %v438_v44  ;;  %v12848_v51 = vcombine.high %v435_v46, %v439_v47  ;;  %v486_v35 = vld [vmem:[%s19698_s1 + $0xe20] sm:$0xff]  ;;  %v487_v38 = vld [vmem:[%s19698_s1 + $0xe28] sm:$0xff] }
  0xb2   :  { %9680 = vmatpush1.bf16.msra.mxu0 %v12789_v58  ;;  %10213 = vmatpush1.bf16.msra.mxu1 %v12791_v59  ;;  %v12845_v58 = vcombine.low %v434_v43, %v438_v44  ;;  %v12847_v59 = vcombine.low %v435_v46, %v439_v47  ;;  %v490_v43 = vld [vmem:[%s19698_s1 + $0xe40] sm:$0xff]  ;;  %v491_v46 = vld [vmem:[%s19698_s1 + $0xe48] sm:$0xff] }
  0xb3   :  { %9681 = vmatprep.subr.bf16.mxu0 %v12798_v60  ;;  %10214 = vmatprep.subr.bf16.mxu1 %v12800_v61  ;;  %v12854_v60 = vcombine.high %v442_v52, %v446_v54  ;;  %v12856_v61 = vcombine.high %v443_v55, %v447_v56  ;;  %v494_v44 = vld [vmem:[%s19698_s1 + $0xe60] sm:$0xff]  ;;  %v495_v47 = vld [vmem:[%s19698_s1 + $0xe68] sm:$0xff] }
  0xb6   :  { %9682 = vmatpush1.bf16.msra.mxu0 %v12797_v2  ;;  %10215 = vmatpush1.bf16.msra.mxu1 %v12799_v3  ;;  %v12853_v2 = vcombine.low %v442_v52, %v446_v54  ;;  %v12855_v3 = vcombine.low %v443_v55, %v447_v56  ;;  %v498_v52 = vld [vmem:[%s19698_s1 + $0xe80] sm:$0xff]  ;;  %v499_v55 = vld [vmem:[%s19698_s1 + $0xe88] sm:$0xff] }
  0xb7   :  { %9683 = vmatprep.subr.bf16.mxu0 %v12806_v4  ;;  %10216 = vmatprep.subr.bf16.mxu1 %v12808_v5  ;;  %v12862_v4 = vcombine.high %v450_v62, %v454_v63  ;;  %v12864_v5 = vcombine.high %v451_v0, %v455_v1  ;;  %v502_v54 = vld [vmem:[%s19698_s1 + $0xea0] sm:$0xff]  ;;  %v503_v56 = vld [vmem:[%s19698_s1 + $0xea8] sm:$0xff] }
  0xba   :  { %9684 = vmatpush1.bf16.msra.mxu0 %v12805_v10  ;;  %10217 = vmatpush1.bf16.msra.mxu1 %v12807_v11  ;;  %v12861_v10 = vcombine.low %v450_v62, %v454_v63  ;;  %v12863_v11 = vcombine.low %v451_v0, %v455_v1  ;;  %v506_v62 = vld [vmem:[%s19698_s1 + $0xec0] sm:$0xff]  ;;  %v507_v0 = vld [vmem:[%s19698_s1 + $0xec8] sm:$0xff] }
  0xbb   :  { %9685 = vmatprep.subr.bf16.mxu0 %v12814_v13  ;;  %10218 = vmatprep.subr.bf16.mxu1 %v12816_v14  ;;  %v12870_v13 = vcombine.high %v458_v6, %v462_v7  ;;  %v12872_v14 = vcombine.high %v459_v8, %v463_v9  ;;  %v510_v63 = vld [vmem:[%s19698_s1 + $0xee0] sm:$0xff]  ;;  %v511_v1 = vld [vmem:[%s19698_s1 + $0xee8] sm:$0xff] }
  0xbe   :  { %9686 = vmatpush1.bf16.msra.mxu0 %v12813_v19  ;;  %10219 = vmatpush1.bf16.msra.mxu1 %v12815_v20  ;;  %v12869_v19 = vcombine.low %v458_v6, %v462_v7  ;;  %v12871_v20 = vcombine.low %v459_v8, %v463_v9  ;;  %v514_v6 = vld [vmem:[%s19698_s1 + $0xf00] sm:$0xff]  ;;  %v515_v8 = vld [vmem:[%s19698_s1 + $0xf08] sm:$0xff] }
  0xbf   :  { %9687 = vmatprep.subr.bf16.mxu0 %v12822_v23  ;;  %10220 = vmatprep.subr.bf16.mxu1 %v12824_v24  ;;  %v12878_v23 = vcombine.high %v466_v16, %v470_v17  ;;  %v12880_v24 = vcombine.high %v467_v53, %v471_v18  ;;  %v518_v7 = vld [vmem:[%s19698_s1 + $0xf20] sm:$0xff]  ;;  %v519_v9 = vld [vmem:[%s19698_s1 + $0xf28] sm:$0xff] }
  0xc2   :  { %9688 = vmatpush1.bf16.msra.mxu0 %v12821_v29  ;;  %10221 = vmatpush1.bf16.msra.mxu1 %v12823_v30  ;;  %v12877_v29 = vcombine.low %v466_v16, %v470_v17  ;;  %v12879_v30 = vcombine.low %v467_v53, %v471_v18  ;;  %v522_v16 = vld [vmem:[%s19698_s1 + $0xf40] sm:$0xff]  ;;  %v523_v53 = vld [vmem:[%s19698_s1 + $0xf48] sm:$0xff] }
  0xc3   :  { %9698 = vmatprep.subr.bf16.mxu0 %v12830_v32  ;;  %10231 = vmatprep.subr.bf16.mxu1 %v12832_v33  ;;  %v12886_v32 = vcombine.high %v474_v26, %v478_v27  ;;  %v12888_v33 = vcombine.high %v475_v15, %v479_v28  ;;  %v526_v17 = vld [vmem:[%s19698_s1 + $0xf60] sm:$0xff]  ;;  %v527_v18 = vld [vmem:[%s19698_s1 + $0xf68] sm:$0xff] }
  0xc5   :  { %9690 = vmatmul.mubr.bf16.vlgmr.msra.gmra.mrb[0].mxu0 %v15136_v36  ;;  %10223 = vmatmul.mubr.bf16.vlgmr.msra.gmra.mrb[0].mxu1 %v15136_v36 }
  0xc6   :  { %9699 = vmatpush1.bf16.msra.mxu0 %v12829_v40  ;;  %10232 = vmatpush1.bf16.msra.mxu1 %v12831_v41  ;;  %v12885_v40 = vcombine.low %v474_v26, %v478_v27  ;;  %v12887_v41 = vcombine.low %v475_v15, %v479_v28  ;;  %v530_v26 = vld [vmem:[%s19698_s1 + $0xf80] sm:$0xff]  ;;  %v531_v15 = vld [vmem:[%s19698_s1 + $0xf88] sm:$0xff] }
  0xc7   :  { %9700 = vmatprep.subr.bf16.mxu0 %v12838_v25  ;;  %10233 = vmatprep.subr.bf16.mxu1 %v12840_v42  ;;  %v12894_v25 = vcombine.high %v482_v34, %v486_v35  ;;  %v12896_v42 = vcombine.high %v483_v37, %v487_v38  ;;  %v534_v27 = vld [vmem:[%s19698_s1 + $0xfa0] sm:$0xff]  ;;  %v535_v28 = vld [vmem:[%s19698_s1 + $0xfa8] sm:$0xff] }
  0xc8   :  { %9730 = vmatprep.mubr.bf16.mxu0 %v15157_v45  ;;  %10263 = vmatprep.mubr.bf16.mxu1 %v15157_v45 }
  0xca   :  { %9701 = vmatpush1.bf16.msra.mxu0 %v12837_v48  ;;  %10234 = vmatpush1.bf16.msra.mxu1 %v12839_v49  ;;  %v12893_v48 = vcombine.low %v482_v34, %v486_v35  ;;  %v12895_v49 = vcombine.low %v483_v37, %v487_v38  ;;  %v538_v34 = vld [vmem:[%s19698_s1 + $0xfc0] sm:$0xff]  ;;  %v539_v37 = vld [vmem:[%s19698_s1 + $0xfc8] sm:$0xff] }
  0xcb   :  { %9702 = vmatprep.subr.bf16.mxu0 %v12846_v50  ;;  %10235 = vmatprep.subr.bf16.mxu1 %v12848_v51  ;;  %v12902_v50 = vcombine.high %v490_v43, %v494_v44  ;;  %v12904_v51 = vcombine.high %v491_v46, %v495_v47  ;;  %v542_v35 = vld [vmem:[%s19698_s1 + $0xfe0] sm:$0xff]  ;;  %v543_v38 = vld [vmem:[%s19698_s1 + $0xfe8] sm:$0xff] }
  0xce   :  { %9703 = vmatpush1.bf16.msra.mxu0 %v12845_v58  ;;  %10236 = vmatpush1.bf16.msra.mxu1 %v12847_v59  ;;  %v12901_v58 = vcombine.low %v490_v43, %v494_v44  ;;  %v12903_v59 = vcombine.low %v491_v46, %v495_v47  ;;  %v546_v43 = vld [vmem:[%s19698_s1 + $0x1000] sm:$0xff]  ;;  %v547_v46 = vld [vmem:[%s19698_s1 + $0x1008] sm:$0xff] }
  0xcf   :  { %9704 = vmatprep.subr.bf16.mxu0 %v12854_v60  ;;  %10237 = vmatprep.subr.bf16.mxu1 %v12856_v61  ;;  %v12910_v60 = vcombine.high %v498_v52, %v502_v54  ;;  %v12912_v61 = vcombine.high %v499_v55, %v503_v56  ;;  %v550_v44 = vld [vmem:[%s19698_s1 + $0x1020] sm:$0xff]  ;;  %v551_v47 = vld [vmem:[%s19698_s1 + $0x1028] sm:$0xff] }
  0xd2   :  { %9705 = vmatpush1.bf16.msra.mxu0 %v12853_v2  ;;  %10238 = vmatpush1.bf16.msra.mxu1 %v12855_v3  ;;  %v12909_v2 = vcombine.low %v498_v52, %v502_v54  ;;  %v12911_v3 = vcombine.low %v499_v55, %v503_v56  ;;  %v554_v52 = vld [vmem:[%s19698_s1 + $0x1040] sm:$0xff]  ;;  %v15345_v55 = vcombine.low %v15147_v39, %v15147_v39  ;;  %v555_v56 = vld [vmem:[%s19698_s1 + $0x1048] sm:$0xff] }
  0xd3   :  { %9706 = vmatprep.subr.bf16.mxu0 %v12862_v4  ;;  %10239 = vmatprep.subr.bf16.mxu1 %v12864_v5  ;;  %v12918_v4 = vcombine.high %v506_v62, %v510_v63  ;;  %v12920_v5 = vcombine.high %v507_v0, %v511_v1  ;;  %v558_v54 = vld [vmem:[%s19698_s1 + $0x1060] sm:$0xff] }
  0xd4   :  { %v12966_v39 = vcombine.high %v554_v52, %v558_v54 }
  0xd6   :  { %9707 = vmatpush1.bf16.msra.mxu0 %v12861_v10  ;;  %10240 = vmatpush1.bf16.msra.mxu1 %v12863_v11  ;;  %v12917_v10 = vcombine.low %v506_v62, %v510_v63  ;;  %v12919_v11 = vcombine.low %v507_v0, %v511_v1  ;;  %v562_v63 = vld [vmem:[%s19698_s1 + $0x1080] sm:$0xff] }
  0xd7   :  { %9708 = vmatprep.subr.bf16.mxu0 %v12870_v13  ;;  %10241 = vmatprep.subr.bf16.mxu1 %v12872_v14  ;;  %v12926_v13 = vcombine.high %v514_v6, %v518_v7  ;;  %v12928_v14 = vcombine.high %v515_v8, %v519_v9  ;;  %v566_v0 = vld [vmem:[%s19698_s1 + $0x10a0] sm:$0xff] }
  0xda   :  { %9709 = vmatpush1.bf16.msra.mxu0 %v12869_v19  ;;  %10242 = vmatpush1.bf16.msra.mxu1 %v12871_v20  ;;  %v12925_v19 = vcombine.low %v514_v6, %v518_v7  ;;  %v12927_v20 = vcombine.low %v515_v8, %v519_v9  ;;  %v12974_v6 = vcombine.high %v562_v63, %v566_v0  ;;  %v570_v8 = vld [vmem:[%s19698_s1 + $0x10c0] sm:$0xff] }
  0xdb   :  { %9710 = vmatprep.subr.bf16.mxu0 %v12878_v23  ;;  %10243 = vmatprep.subr.bf16.mxu1 %v12880_v24  ;;  %v12934_v23 = vcombine.high %v522_v16, %v526_v17  ;;  %v12936_v24 = vcombine.high %v523_v53, %v527_v18  ;;  %v574_v9 = vld [vmem:[%s19698_s1 + $0x10e0] sm:$0xff] }
  0xde   :  { %9711 = vmatpush1.bf16.msra.mxu0 %v12877_v29  ;;  %10244 = vmatpush1.bf16.msra.mxu1 %v12879_v30  ;;  %v12933_v29 = vcombine.low %v522_v16, %v526_v17  ;;  %v12935_v30 = vcombine.low %v523_v53, %v527_v18  ;;  %v12982_v16 = vcombine.high %v570_v8, %v574_v9  ;;  %v578_v53 = vld [vmem:[%s19698_s1 + $0x1100] sm:$0xff] }
  0xdf   :  { %9712 = vmatprep.subr.bf16.mxu0 %v12886_v32  ;;  %10245 = vmatprep.subr.bf16.mxu1 %v12888_v33  ;;  %v12942_v32 = vcombine.high %v530_v26, %v534_v27  ;;  %v12944_v33 = vcombine.high %v531_v15, %v535_v28  ;;  %v582_v18 = vld [vmem:[%s19698_s1 + $0x1120] sm:$0xff] }
  0xe2   :  { %9713 = vmatpush1.bf16.msra.mxu0 %v12885_v40  ;;  %10246 = vmatpush1.bf16.msra.mxu1 %v12887_v41  ;;  %v12941_v40 = vcombine.low %v530_v26, %v534_v27  ;;  %v12943_v41 = vcombine.low %v531_v15, %v535_v28  ;;  %v12990_v26 = vcombine.high %v578_v53, %v582_v18  ;;  %v586_v15 = vld [vmem:[%s19698_s1 + $0x1140] sm:$0xff] }
  0xe3   :  { %9714 = vmatprep.subr.bf16.mxu0 %v12894_v25  ;;  %10247 = vmatprep.subr.bf16.mxu1 %v12896_v42  ;;  %v12950_v25 = vcombine.high %v538_v34, %v542_v35  ;;  %v12952_v42 = vcombine.high %v539_v37, %v543_v38  ;;  %v590_v28 = vld [vmem:[%s19698_s1 + $0x1160] sm:$0xff] }
  0xe6   :  { %9715 = vmatpush1.bf16.msra.mxu0 %v12893_v48  ;;  %10248 = vmatpush1.bf16.msra.mxu1 %v12895_v49  ;;  %v12949_v48 = vcombine.low %v538_v34, %v542_v35  ;;  %v12951_v49 = vcombine.low %v539_v37, %v543_v38  ;;  %v12998_v34 = vcombine.high %v586_v15, %v590_v28  ;;  %v594_v37 = vld [vmem:[%s19698_s1 + $0x1180] sm:$0xff] }
  0xe7   :  { %9716 = vmatprep.subr.bf16.mxu0 %v12902_v50  ;;  %10249 = vmatprep.subr.bf16.mxu1 %v12904_v51  ;;  %v12958_v50 = vcombine.high %v546_v43, %v550_v44  ;;  %v12960_v51 = vcombine.high %v547_v46, %v551_v47  ;;  %v598_v38 = vld [vmem:[%s19698_s1 + $0x11a0] sm:$0xff] }
  0xea   :  { %9717 = vmatpush1.bf16.msra.mxu0 %v12901_v58  ;;  %10250 = vmatpush1.bf16.msra.mxu1 %v12903_v59  ;;  %v559_v58 = vld [vmem:[%s19698_s1 + $0x1068] sm:$0xff]  ;;  %v15356_v59 = vld [vmem:[%s19699_s0 + $0x20] sm:$0xff] }
  0xeb   :  { %9718 = vmatprep.subr.bf16.mxu0 %v12910_v60  ;;  %10251 = vmatprep.subr.bf16.mxu1 %v12912_v61  ;;  %v12957_v60 = vcombine.low %v546_v43, %v550_v44  ;;  %v12959_v61 = vcombine.low %v547_v46, %v551_v47  ;;  %v12968_v62 = vcombine.high %v555_v56, %v559_v58  ;;  %v602_v46 = vld [vmem:[%s19698_s1 + $0x11c0] sm:$0xff] }
  0xec   :  { %v15366_v1 = vcombine.high %v15356_v59, %v15356_v59  ;;  %v13006_v43 = vcombine.high %v594_v37, %v598_v38  ;;  %v606_v47 = vld [vmem:[%s19698_s1 + $0x11e0] sm:$0xff] }
  0xee   :  { %9719 = vmatpush1.bf16.msra.mxu0 %v12909_v2  ;;  %10252 = vmatpush1.bf16.msra.mxu1 %v12911_v3  ;;  %v563_v2 = vld [vmem:[%s19698_s1 + $0x1088] sm:$0xff] }
  0xef   :  { %9720 = vmatprep.subr.bf16.mxu0 %v12918_v4  ;;  %10253 = vmatprep.subr.bf16.mxu1 %v12920_v5  ;;  %v567_v3 = vld [vmem:[%s19698_s1 + $0x10a8] sm:$0xff]  ;;  %v12965_v4 = vcombine.low %v554_v52, %v558_v54  ;;  %v12967_v5 = vcombine.low %v555_v56, %v559_v58  ;;  %v13014_v52 = vcombine.high %v602_v46, %v606_v47  ;;  %v610_v56 = vld [vmem:[%s19698_s1 + $0x1200] sm:$0xff] }
  0xf0   :  { %v12976_v7 = vcombine.high %v563_v2, %v567_v3  ;;  %v614_v58 = vld [vmem:[%s19698_s1 + $0x1220] sm:$0xff] }
  0xf2   :  { %9721 = vmatpush1.bf16.msra.mxu0 %v12917_v10  ;;  %10254 = vmatpush1.bf16.msra.mxu1 %v12919_v11  ;;  %v571_v10 = vld [vmem:[%s19698_s1 + $0x10c8] sm:$0xff] }
  0xf3   :  { %9722 = vmatprep.subr.bf16.mxu0 %v12926_v13  ;;  %10255 = vmatprep.subr.bf16.mxu1 %v12928_v14  ;;  %v575_v11 = vld [vmem:[%s19698_s1 + $0x10e8] sm:$0xff]  ;;  %v12973_v13 = vcombine.low %v562_v63, %v566_v0  ;;  %v12975_v14 = vcombine.low %v563_v2, %v567_v3  ;;  %v13022_v63 = vcombine.high %v610_v56, %v614_v58  ;;  %v618_v2 = vld [vmem:[%s19698_s1 + $0x1240] sm:$0xff] }
  0xf4   :  { %v12984_v17 = vcombine.high %v571_v10, %v575_v11  ;;  %v622_v3 = vld [vmem:[%s19698_s1 + $0x1260] sm:$0xff] }
  0xf6   :  { %9723 = vmatpush1.bf16.msra.mxu0 %v12925_v19  ;;  %10256 = vmatpush1.bf16.msra.mxu1 %v12927_v20  ;;  %v579_v19 = vld [vmem:[%s19698_s1 + $0x1108] sm:$0xff] }
  0xf7   :  { %9724 = vmatprep.subr.bf16.mxu0 %v12934_v23  ;;  %10257 = vmatprep.subr.bf16.mxu1 %v12936_v24  ;;  %v583_v20 = vld [vmem:[%s19698_s1 + $0x1128] sm:$0xff]  ;;  %v12981_v23 = vcombine.low %v570_v8, %v574_v9  ;;  %v12983_v24 = vcombine.low %v571_v10, %v575_v11  ;;  %v13030_v8 = vcombine.high %v618_v2, %v622_v3  ;;  %v626_v10 = vld [vmem:[%s19698_s1 + $0x1280] sm:$0xff] }
  0xf8   :  { %v12992_v27 = vcombine.high %v579_v19, %v583_v20  ;;  %v630_v11 = vld [vmem:[%s19698_s1 + $0x12a0] sm:$0xff] }
  0xfa   :  { %9725 = vmatpush1.bf16.msra.mxu0 %v12933_v29  ;;  %10258 = vmatpush1.bf16.msra.mxu1 %v12935_v30  ;;  %v587_v29 = vld [vmem:[%s19698_s1 + $0x1148] sm:$0xff] }
  0xfb   :  { %9726 = vmatprep.subr.bf16.mxu0 %v12942_v32  ;;  %10259 = vmatprep.subr.bf16.mxu1 %v12944_v33  ;;  %v591_v30 = vld [vmem:[%s19698_s1 + $0x1168] sm:$0xff]  ;;  %v12989_v32 = vcombine.low %v578_v53, %v582_v18  ;;  %v12991_v33 = vcombine.low %v579_v19, %v583_v20  ;;  %v13038_v53 = vcombine.high %v626_v10, %v630_v11  ;;  %v634_v19 = vld [vmem:[%s19698_s1 + $0x12c0] sm:$0xff] }
  0xfc   :  { %v13000_v35 = vcombine.high %v587_v29, %v591_v30  ;;  %v638_v20 = vld [vmem:[%s19698_s1 + $0x12e0] sm:$0xff] }
  0xfe   :  { %9727 = vmatpush1.bf16.msra.mxu0 %v12941_v40  ;;  %10260 = vmatpush1.bf16.msra.mxu1 %v12943_v41  ;;  %v595_v40 = vld [vmem:[%s19698_s1 + $0x1188] sm:$0xff] }
  0xff   :  { %9728 = vmatprep.subr.bf16.mxu0 %v12950_v25  ;;  %10261 = vmatprep.subr.bf16.mxu1 %v12952_v42  ;;  %v599_v41 = vld [vmem:[%s19698_s1 + $0x11a8] sm:$0xff]  ;;  %v12997_v25 = vcombine.low %v586_v15, %v590_v28  ;;  %v12999_v42 = vcombine.low %v587_v29, %v591_v30  ;;  %v13046_v15 = vcombine.high %v634_v19, %v638_v20  ;;  %v642_v29 = vld [vmem:[%s19698_s1 + $0x1300] sm:$0xff] }
 0x100   :  { %v13008_v44 = vcombine.high %v595_v40, %v599_v41  ;;  %v646_v30 = vld [vmem:[%s19698_s1 + $0x1320] sm:$0xff] }
 0x102   :  { %9729 = vmatpush1.bf16.msra.mxu0 %v12949_v48  ;;  %10262 = vmatpush1.bf16.msra.mxu1 %v12951_v49  ;;  %v603_v48 = vld [vmem:[%s19698_s1 + $0x11c8] sm:$0xff] }
 0x103   :  { %9739 = vmatprep.subr.bf16.mxu0 %v12958_v50  ;;  %10272 = vmatprep.subr.bf16.mxu1 %v12960_v51  ;;  %v607_v49 = vld [vmem:[%s19698_s1 + $0x11e8] sm:$0xff]  ;;  %v13005_v50 = vcombine.low %v594_v37, %v598_v38  ;;  %v13007_v51 = vcombine.low %v595_v40, %v599_v41  ;;  %v13054_v37 = vcombine.high %v642_v29, %v646_v30  ;;  %v650_v40 = vld [vmem:[%s19698_s1 + $0x1340] sm:$0xff] }
 0x104   :  { %v13016_v54 = vcombine.high %v603_v48, %v607_v49  ;;  %v654_v41 = vld [vmem:[%s19698_s1 + $0x1360] sm:$0xff] }
 0x105   :  { %9731 = vmatmul.mubr.bf16.vlgmr.msra.gmra.mrb[0].mxu0 %v15345_v55  ;;  %10264 = vmatmul.mubr.bf16.vlgmr.msra.gmra.mrb[0].mxu1 %v15345_v55 }
 0x106   :  { %9740 = vmatpush1.bf16.msra.mxu0 %v12957_v60  ;;  %10273 = vmatpush1.bf16.msra.mxu1 %v12959_v61  ;;  %v611_v60 = vld [vmem:[%s19698_s1 + $0x1208] sm:$0xff] }
 0x107   :  { %9741 = vmatprep.subr.bf16.mxu0 %v12966_v39  ;;  %10274 = vmatprep.subr.bf16.mxu1 %v12968_v62  ;;  %v615_v61 = vld [vmem:[%s19698_s1 + $0x1228] sm:$0xff]  ;;  %v13013_v39 = vcombine.low %v602_v46, %v606_v47  ;;  %v13015_v62 = vcombine.low %v603_v48, %v607_v49  ;;  %v13062_v46 = vcombine.high %v650_v40, %v654_v41  ;;  %v658_v48 = vld [vmem:[%s19698_s1 + $0x1380] sm:$0xff] }
 0x108   :  { %9771 = vmatprep.mubr.bf16.mxu0 %v15366_v1  ;;  %10304 = vmatprep.mubr.bf16.mxu1 %v15366_v1  ;;  %v13024_v0 = vcombine.high %v611_v60, %v615_v61  ;;  %v662_v49 = vld [vmem:[%s19698_s1 + $0x13a0] sm:$0xff] }
 0x10a   :  { %9742 = vmatpush1.bf16.msra.mxu0 %v12965_v4  ;;  %10275 = vmatpush1.bf16.msra.mxu1 %v12967_v5  ;;  %v619_v4 = vld [vmem:[%s19698_s1 + $0x1248] sm:$0xff] }
 0x10b   :  { %9743 = vmatprep.subr.bf16.mxu0 %v12974_v6  ;;  %10276 = vmatprep.subr.bf16.mxu1 %v12976_v7  ;;  %v623_v5 = vld [vmem:[%s19698_s1 + $0x1268] sm:$0xff]  ;;  %v13021_v6 = vcombine.low %v610_v56, %v614_v58  ;;  %v13023_v7 = vcombine.low %v611_v60, %v615_v61  ;;  %v13070_v56 = vcombine.high %v658_v48, %v662_v49  ;;  %v666_v60 = vld [vmem:[%s19698_s1 + $0x13c0] sm:$0xff] }
 0x10c   :  { %v13032_v9 = vcombine.high %v619_v4, %v623_v5  ;;  %v670_v61 = vld [vmem:[%s19698_s1 + $0x13e0] sm:$0xff] }
 0x10e   :  { %9744 = vmatpush1.bf16.msra.mxu0 %v12973_v13  ;;  %10277 = vmatpush1.bf16.msra.mxu1 %v12975_v14  ;;  %v627_v13 = vld [vmem:[%s19698_s1 + $0x1288] sm:$0xff] }
 0x10f   :  { %9745 = vmatprep.subr.bf16.mxu0 %v12982_v16  ;;  %10278 = vmatprep.subr.bf16.mxu1 %v12984_v17  ;;  %v631_v14 = vld [vmem:[%s19698_s1 + $0x12a8] sm:$0xff]  ;;  %v13029_v16 = vcombine.low %v618_v2, %v622_v3  ;;  %v13031_v17 = vcombine.low %v619_v4, %v623_v5  ;;  %v13078_v2 = vcombine.high %v666_v60, %v670_v61  ;;  %v674_v4 = vld [vmem:[%s19698_s1 + $0x1400] sm:$0xff] }
 0x110   :  { %v13040_v18 = vcombine.high %v627_v13, %v631_v14  ;;  %v678_v5 = vld [vmem:[%s19698_s1 + $0x1420] sm:$0xff] }
 0x112   :  { %9746 = vmatpush1.bf16.msra.mxu0 %v12981_v23  ;;  %10279 = vmatpush1.bf16.msra.mxu1 %v12983_v24  ;;  %v635_v23 = vld [vmem:[%s19698_s1 + $0x12c8] sm:$0xff] }
 0x113   :  { %9747 = vmatprep.subr.bf16.mxu0 %v12990_v26  ;;  %10280 = vmatprep.subr.bf16.mxu1 %v12992_v27  ;;  %v639_v24 = vld [vmem:[%s19698_s1 + $0x12e8] sm:$0xff]  ;;  %v13037_v26 = vcombine.low %v626_v10, %v630_v11  ;;  %v13039_v27 = vcombine.low %v627_v13, %v631_v14  ;;  %v13086_v10 = vcombine.high %v674_v4, %v678_v5  ;;  %v682_v13 = vld [vmem:[%s19698_s1 + $0x1440] sm:$0xff] }
 0x114   :  { %v13048_v28 = vcombine.high %v635_v23, %v639_v24  ;;  %v686_v14 = vld [vmem:[%s19698_s1 + $0x1460] sm:$0xff] }
 0x116   :  { %9748 = vmatpush1.bf16.msra.mxu0 %v12989_v32  ;;  %10281 = vmatpush1.bf16.msra.mxu1 %v12991_v33  ;;  %v643_v32 = vld [vmem:[%s19698_s1 + $0x1308] sm:$0xff] }
 0x117   :  { %9749 = vmatprep.subr.bf16.mxu0 %v12998_v34  ;;  %10282 = vmatprep.subr.bf16.mxu1 %v13000_v35  ;;  %v647_v33 = vld [vmem:[%s19698_s1 + $0x1328] sm:$0xff]  ;;  %v13045_v34 = vcombine.low %v634_v19, %v638_v20  ;;  %v13047_v35 = vcombine.low %v635_v23, %v639_v24  ;;  %v13085_v19 = vcombine.low %v674_v4, %v678_v5  ;;  %v690_v24 = vld [vmem:[%s19698_s1 + $0x1480] sm:$0xff] }
 0x118   :  { %v13056_v38 = vcombine.high %v643_v32, %v647_v33 }
 0x11a   :  { %9750 = vmatpush1.bf16.msra.mxu0 %v12997_v25  ;;  %10283 = vmatpush1.bf16.msra.mxu1 %v12999_v42  ;;  %v651_v25 = vld [vmem:[%s19698_s1 + $0x1348] sm:$0xff] }
 0x11b   :  { %9751 = vmatprep.subr.bf16.mxu0 %v13006_v43  ;;  %10284 = vmatprep.subr.bf16.mxu1 %v13008_v44  ;;  %v655_v42 = vld [vmem:[%s19698_s1 + $0x1368] sm:$0xff]  ;;  %v13053_v43 = vcombine.low %v642_v29, %v646_v30  ;;  %v13055_v44 = vcombine.low %v643_v32, %v647_v33  ;;  %v13093_v29 = vcombine.low %v682_v13, %v686_v14 }
 0x11c   :  { %v13064_v47 = vcombine.high %v651_v25, %v655_v42 }
 0x11e   :  { %9752 = vmatpush1.bf16.msra.mxu0 %v13005_v50  ;;  %10285 = vmatpush1.bf16.msra.mxu1 %v13007_v51  ;;  %v659_v50 = vld [vmem:[%s19698_s1 + $0x1388] sm:$0xff] }
 0x11f   :  { %9753 = vmatprep.subr.bf16.mxu0 %v13014_v52  ;;  %10286 = vmatprep.subr.bf16.mxu1 %v13016_v54  ;;  %v663_v51 = vld [vmem:[%s19698_s1 + $0x13a8] sm:$0xff]  ;;  %v13061_v52 = vcombine.low %v650_v40, %v654_v41  ;;  %v13063_v54 = vcombine.low %v651_v25, %v655_v42 }
 0x120   :  { %v13072_v58 = vcombine.high %v659_v50, %v663_v51 }
 0x122   :  { %9754 = vmatpush1.bf16.msra.mxu0 %v13013_v39  ;;  %10287 = vmatpush1.bf16.msra.mxu1 %v13015_v62  ;;  %v667_v39 = vld [vmem:[%s19698_s1 + $0x13c8] sm:$0xff] }
 0x123   :  { %9755 = vmatprep.subr.bf16.mxu0 %v13022_v63  ;;  %10288 = vmatprep.subr.bf16.mxu1 %v13024_v0  ;;  %v671_v62 = vld [vmem:[%s19698_s1 + $0x13e8] sm:$0xff]  ;;  %v13069_v63 = vcombine.low %v658_v48, %v662_v49  ;;  %v13071_v0 = vcombine.low %v659_v50, %v663_v51 }
 0x124   :  { %v13080_v3 = vcombine.high %v667_v39, %v671_v62 }
 0x126   :  { %9756 = vmatpush1.bf16.msra.mxu0 %v13021_v6  ;;  %10289 = vmatpush1.bf16.msra.mxu1 %v13023_v7  ;;  %v675_v6 = vld [vmem:[%s19698_s1 + $0x1408] sm:$0xff] }
 0x127   :  { %9757 = vmatprep.subr.bf16.mxu0 %v13030_v8  ;;  %10290 = vmatprep.subr.bf16.mxu1 %v13032_v9  ;;  %v679_v7 = vld [vmem:[%s19698_s1 + $0x1428] sm:$0xff]  ;;  %v13077_v8 = vcombine.low %v666_v60, %v670_v61  ;;  %v13079_v9 = vcombine.low %v667_v39, %v671_v62 }
 0x128   :  { %v13088_v11 = vcombine.high %v675_v6, %v679_v7  ;;  %v13087_v20 = vcombine.low %v675_v6, %v679_v7 }
 0x12a   :  { %9758 = vmatpush1.bf16.msra.mxu0 %v13029_v16  ;;  %10291 = vmatpush1.bf16.msra.mxu1 %v13031_v17  ;;  %v15554_v16 = vcombine.low %v15356_v59, %v15356_v59  ;;  %v683_v17 = vld [vmem:[%s19698_s1 + $0x1448] sm:$0xff]  ;;  %v13094_v59 = vcombine.high %v682_v13, %v686_v14 }
 0x12b   :  { %9759 = vmatprep.subr.bf16.mxu0 %v13038_v53  ;;  %10292 = vmatprep.subr.bf16.mxu1 %v13040_v18  ;;  %v687_v53 = vld [vmem:[%s19698_s1 + $0x1468] sm:$0xff] }
 0x12c   :  { %v15565_v18 = vld [vmem:[%s19699_s0 + $0x28] sm:$0xff]  ;;  %v13096_v23 = vcombine.high %v683_v17, %v687_v53  ;;  %v13095_v30 = vcombine.low %v683_v17, %v687_v53 }
 0x12e   :  { %9760 = vmatpush1.bf16.msra.mxu0 %v13037_v26  ;;  %10293 = vmatpush1.bf16.msra.mxu1 %v13039_v27  ;;  %v694_v26 = vld [vmem:[%s19698_s1 + $0x14a0] sm:$0xff]  ;;  %v15575_v27 = vcombine.high %v15565_v18, %v15565_v18 }
 0x12f   :  { %9761 = vmatprep.subr.bf16.mxu0 %v13046_v15  ;;  %10294 = vmatprep.subr.bf16.mxu1 %v13048_v28  ;;  %v691_v15 = vld [vmem:[%s19698_s1 + $0x1488] sm:$0xff]  ;;  %v13102_v32 = vcombine.high %v690_v24, %v694_v26  ;;  %v13101_v40 = vcombine.low %v690_v24, %v694_v26 }
 0x130   :  { %v695_v28 = vld [vmem:[%s19698_s1 + $0x14a8] sm:$0xff] }
 0x131   :  { %v13104_v33 = vcombine.high %v691_v15, %v695_v28  ;;  %v13103_v41 = vcombine.low %v691_v15, %v695_v28 }
 0x132   :  { %9762 = vmatpush1.bf16.msra.mxu0 %v13045_v34  ;;  %10295 = vmatpush1.bf16.msra.mxu1 %v13047_v35  ;;  %v698_v34 = vld [vmem:[%s19698_s1 + $0x14c0] sm:$0xff] }
 0x133   :  { %9763 = vmatprep.subr.bf16.mxu0 %v13054_v37  ;;  %10296 = vmatprep.subr.bf16.mxu1 %v13056_v38  ;;  %v702_v35 = vld [vmem:[%s19698_s1 + $0x14e0] sm:$0xff]  ;;  %v699_v37 = vld [vmem:[%s19698_s1 + $0x14c8] sm:$0xff] }
 0x134   :  { %v703_v38 = vld [vmem:[%s19698_s1 + $0x14e8] sm:$0xff]  ;;  %v13110_v25 = vcombine.high %v698_v34, %v702_v35  ;;  %v13109_v48 = vcombine.low %v698_v34, %v702_v35 }
 0x135   :  { %v13112_v42 = vcombine.high %v699_v37, %v703_v38  ;;  %v13111_v49 = vcombine.low %v699_v37, %v703_v38 }
 0x136   :  { %9764 = vmatpush1.bf16.msra.mxu0 %v13053_v43  ;;  %10297 = vmatpush1.bf16.msra.mxu1 %v13055_v44  ;;  %v706_v43 = vld [vmem:[%s19698_s1 + $0x1500] sm:$0xff] }
 0x137   :  { %9765 = vmatprep.subr.bf16.mxu0 %v13062_v46  ;;  %10298 = vmatprep.subr.bf16.mxu1 %v13064_v47  ;;  %v710_v44 = vld [vmem:[%s19698_s1 + $0x1520] sm:$0xff]  ;;  %v707_v46 = vld [vmem:[%s19698_s1 + $0x1508] sm:$0xff] }
 0x138   :  { %v711_v47 = vld [vmem:[%s19698_s1 + $0x1528] sm:$0xff]  ;;  %v13118_v50 = vcombine.high %v706_v43, %v710_v44  ;;  %v13117_v60 = vcombine.low %v706_v43, %v710_v44 }
 0x139   :  { %v13120_v51 = vcombine.high %v707_v46, %v711_v47  ;;  %v13119_v61 = vcombine.low %v707_v46, %v711_v47 }
 0x13a   :  { %9766 = vmatpush1.bf16.msra.mxu0 %v13061_v52  ;;  %10299 = vmatpush1.bf16.msra.mxu1 %v13063_v54  ;;  %v714_v52 = vld [vmem:[%s19698_s1 + $0x1540] sm:$0xff] }
 0x13b   :  { %9767 = vmatprep.subr.bf16.mxu0 %v13070_v56  ;;  %10300 = vmatprep.subr.bf16.mxu1 %v13072_v58  ;;  %v718_v54 = vld [vmem:[%s19698_s1 + $0x1560] sm:$0xff]  ;;  %v715_v56 = vld [vmem:[%s19698_s1 + $0x1548] sm:$0xff] }
 0x13c   :  { %v719_v58 = vld [vmem:[%s19698_s1 + $0x1568] sm:$0xff]  ;;  %v13126_v39 = vcombine.high %v714_v52, %v718_v54  ;;  %v13125_v4 = vcombine.low %v714_v52, %v718_v54 }
 0x13d   :  { %v13128_v62 = vcombine.high %v715_v56, %v719_v58  ;;  %v13127_v5 = vcombine.low %v715_v56, %v719_v58 }
 0x13e   :  { %9768 = vmatpush1.bf16.msra.mxu0 %v13069_v63  ;;  %10301 = vmatpush1.bf16.msra.mxu1 %v13071_v0  ;;  %v722_v63 = vld [vmem:[%s19698_s1 + $0x1580] sm:$0xff] }
 0x13f   :  { %9769 = vmatprep.subr.bf16.mxu0 %v13078_v2  ;;  %10302 = vmatprep.subr.bf16.mxu1 %v13080_v3  ;;  %v726_v0 = vld [vmem:[%s19698_s1 + $0x15a0] sm:$0xff]  ;;  %v723_v2 = vld [vmem:[%s19698_s1 + $0x1588] sm:$0xff] }
 0x140   :  { %v727_v3 = vld [vmem:[%s19698_s1 + $0x15a8] sm:$0xff]  ;;  %v13134_v6 = vcombine.high %v722_v63, %v726_v0  ;;  %v13133_v13 = vcombine.low %v722_v63, %v726_v0 }
 0x141   :  { %v13136_v7 = vcombine.high %v723_v2, %v727_v3  ;;  %v13135_v14 = vcombine.low %v723_v2, %v727_v3 }
 0x142   :  { %9770 = vmatpush1.bf16.msra.mxu0 %v13077_v8  ;;  %10303 = vmatpush1.bf16.msra.mxu1 %v13079_v9  ;;  %v730_v8 = vld [vmem:[%s19698_s1 + $0x15c0] sm:$0xff] }
 0x143   :  { %9780 = vmatprep.subr.bf16.mxu0 %v13086_v10  ;;  %10313 = vmatprep.subr.bf16.mxu1 %v13088_v11  ;;  %v734_v9 = vld [vmem:[%s19698_s1 + $0x15e0] sm:$0xff]  ;;  %v731_v10 = vld [vmem:[%s19698_s1 + $0x15c8] sm:$0xff] }
 0x144   :  { %v735_v11 = vld [vmem:[%s19698_s1 + $0x15e8] sm:$0xff]  ;;  %v13142_v17 = vcombine.high %v730_v8, %v734_v9  ;;  %v13141_v24 = vcombine.low %v730_v8, %v734_v9 }
 0x145   :  { %9772 = vmatmul.mubr.bf16.vlgmr.msra.gmra.mrb[0].mxu0 %v15554_v16  ;;  %10305 = vmatmul.mubr.bf16.vlgmr.msra.gmra.mrb[0].mxu1 %v15554_v16  ;;  %v13144_v53 = vcombine.high %v731_v10, %v735_v11  ;;  %v13143_v26 = vcombine.low %v731_v10, %v735_v11 }
 0x146   :  { %9781 = vmatpush1.bf16.msra.mxu0 %v13085_v19  ;;  %10314 = vmatpush1.bf16.msra.mxu1 %v13087_v20  ;;  %v738_v19 = vld [vmem:[%s19698_s1 + $0x1600] sm:$0xff] }
 0x147   :  { %9782 = vmatprep.subr.bf16.mxu0 %v13094_v59  ;;  %10315 = vmatprep.subr.bf16.mxu1 %v13096_v23  ;;  %v742_v20 = vld [vmem:[%s19698_s1 + $0x1620] sm:$0xff]  ;;  %v739_v59 = vld [vmem:[%s19698_s1 + $0x1608] sm:$0xff] }
 0x148   :  { %9812 = vmatprep.mubr.bf16.mxu0 %v15575_v27  ;;  %10345 = vmatprep.mubr.bf16.mxu1 %v15575_v27  ;;  %v743_v23 = vld [vmem:[%s19698_s1 + $0x1628] sm:$0xff]  ;;  %v13150_v15 = vcombine.high %v738_v19, %v742_v20  ;;  %v13149_v34 = vcombine.low %v738_v19, %v742_v20 }
 0x149   :  { %v13152_v28 = vcombine.high %v739_v59, %v743_v23  ;;  %v13151_v35 = vcombine.low %v739_v59, %v743_v23 }
 0x14a   :  { %9783 = vmatpush1.bf16.msra.mxu0 %v13093_v29  ;;  %10316 = vmatpush1.bf16.msra.mxu1 %v13095_v30  ;;  %v746_v29 = vld [vmem:[%s19698_s1 + $0x1640] sm:$0xff] }
 0x14b   :  { %9784 = vmatprep.subr.bf16.mxu0 %v13102_v32  ;;  %10317 = vmatprep.subr.bf16.mxu1 %v13104_v33  ;;  %v750_v30 = vld [vmem:[%s19698_s1 + $0x1660] sm:$0xff]  ;;  %v747_v32 = vld [vmem:[%s19698_s1 + $0x1648] sm:$0xff] }
 0x14c   :  { %v751_v33 = vld [vmem:[%s19698_s1 + $0x1668] sm:$0xff]  ;;  %v13158_v37 = vcombine.high %v746_v29, %v750_v30  ;;  %v13157_v43 = vcombine.low %v746_v29, %v750_v30 }
 0x14d   :  { %v13160_v38 = vcombine.high %v747_v32, %v751_v33  ;;  %v13159_v44 = vcombine.low %v747_v32, %v751_v33 }
 0x14e   :  { %9785 = vmatpush1.bf16.msra.mxu0 %v13101_v40  ;;  %10318 = vmatpush1.bf16.msra.mxu1 %v13103_v41  ;;  %v754_v40 = vld [vmem:[%s19698_s1 + $0x1680] sm:$0xff] }
 0x14f   :  { %9786 = vmatprep.subr.bf16.mxu0 %v13110_v25  ;;  %10319 = vmatprep.subr.bf16.mxu1 %v13112_v42  ;;  %v758_v41 = vld [vmem:[%s19698_s1 + $0x16a0] sm:$0xff]  ;;  %v755_v25 = vld [vmem:[%s19698_s1 + $0x1688] sm:$0xff] }
 0x150   :  { %v759_v42 = vld [vmem:[%s19698_s1 + $0x16a8] sm:$0xff]  ;;  %v13166_v46 = vcombine.high %v754_v40, %v758_v41  ;;  %v13165_v52 = vcombine.low %v754_v40, %v758_v41 }
 0x151   :  { %v13168_v47 = vcombine.high %v755_v25, %v759_v42  ;;  %v13167_v54 = vcombine.low %v755_v25, %v759_v42 }
 0x152   :  { %9787 = vmatpush1.bf16.msra.mxu0 %v13109_v48  ;;  %10320 = vmatpush1.bf16.msra.mxu1 %v13111_v49  ;;  %v762_v48 = vld [vmem:[%s19698_s1 + $0x16c0] sm:$0xff] }
 0x153   :  { %9788 = vmatprep.subr.bf16.mxu0 %v13118_v50  ;;  %10321 = vmatprep.subr.bf16.mxu1 %v13120_v51  ;;  %v766_v49 = vld [vmem:[%s19698_s1 + $0x16e0] sm:$0xff]  ;;  %v763_v50 = vld [vmem:[%s19698_s1 + $0x16c8] sm:$0xff] }
 0x154   :  { %v767_v51 = vld [vmem:[%s19698_s1 + $0x16e8] sm:$0xff]  ;;  %v13174_v56 = vcombine.high %v762_v48, %v766_v49  ;;  %v13173_v63 = vcombine.low %v762_v48, %v766_v49  ;;  %v15774_v49 = vld [vmem:[%s19699_s0 + $0x30] sm:$0xff] }
 0x155   :  { %v13176_v58 = vcombine.high %v763_v50, %v767_v51  ;;  %v13175_v0 = vcombine.low %v763_v50, %v767_v51  ;;  %v815_v48 = vld [vmem:[%s19698_s1 + $0x1868] sm:$0xff] }
 0x156   :  { %9789 = vmatpush1.bf16.msra.mxu0 %v13117_v60  ;;  %10322 = vmatpush1.bf16.msra.mxu1 %v13119_v61  ;;  %v770_v60 = vld [vmem:[%s19698_s1 + $0x1700] sm:$0xff] }
 0x157   :  { %9790 = vmatprep.subr.bf16.mxu0 %v13126_v39  ;;  %10323 = vmatprep.subr.bf16.mxu1 %v13128_v62  ;;  %v774_v61 = vld [vmem:[%s19698_s1 + $0x1720] sm:$0xff]  ;;  %v771_v39 = vld [vmem:[%s19698_s1 + $0x1708] sm:$0xff] }
 0x158   :  { %v775_v62 = vld [vmem:[%s19698_s1 + $0x1728] sm:$0xff]  ;;  %v13182_v2 = vcombine.high %v770_v60, %v774_v61  ;;  %v13181_v8 = vcombine.low %v770_v60, %v774_v61 }
 0x159   :  { %v13184_v3 = vcombine.high %v771_v39, %v775_v62  ;;  %v13183_v9 = vcombine.low %v771_v39, %v775_v62  ;;  %v819_v60 = vld [vmem:[%s19698_s1 + $0x1888] sm:$0xff] }
 0x15a   :  { %9791 = vmatpush1.bf16.msra.mxu0 %v13125_v4  ;;  %10324 = vmatpush1.bf16.msra.mxu1 %v13127_v5  ;;  %v778_v4 = vld [vmem:[%s19698_s1 + $0x1740] sm:$0xff]  ;;  %v823_v61 = vld [vmem:[%s19698_s1 + $0x18a8] sm:$0xff] }
 0x15b   :  { %9792 = vmatprep.subr.bf16.mxu0 %v13134_v6  ;;  %10325 = vmatprep.subr.bf16.mxu1 %v13136_v7  ;;  %v782_v5 = vld [vmem:[%s19698_s1 + $0x1760] sm:$0xff]  ;;  %v779_v6 = vld [vmem:[%s19698_s1 + $0x1748] sm:$0xff] }
 0x15c   :  { %v783_v7 = vld [vmem:[%s19698_s1 + $0x1768] sm:$0xff]  ;;  %v13190_v10 = vcombine.high %v778_v4, %v782_v5  ;;  %v13189_v19 = vcombine.low %v778_v4, %v782_v5 }
 0x15d   :  { %v13192_v11 = vcombine.high %v779_v6, %v783_v7  ;;  %v13191_v20 = vcombine.low %v779_v6, %v783_v7  ;;  %v827_v4 = vld [vmem:[%s19698_s1 + $0x18c8] sm:$0xff]  ;;  %v13231_v7 = vcombine.low %v819_v60, %v823_v61 }
 0x15e   :  { %9793 = vmatpush1.bf16.msra.mxu0 %v13133_v13  ;;  %10326 = vmatpush1.bf16.msra.mxu1 %v13135_v14  ;;  %v786_v13 = vld [vmem:[%s19698_s1 + $0x1780] sm:$0xff]  ;;  %v831_v5 = vld [vmem:[%s19698_s1 + $0x18e8] sm:$0xff] }
 0x15f   :  { %9794 = vmatprep.subr.bf16.mxu0 %v13142_v17  ;;  %10327 = vmatprep.subr.bf16.mxu1 %v13144_v53  ;;  %v790_v14 = vld [vmem:[%s19698_s1 + $0x17a0] sm:$0xff]  ;;  %v787_v17 = vld [vmem:[%s19698_s1 + $0x1788] sm:$0xff] }
 0x160   :  { %v791_v53 = vld [vmem:[%s19698_s1 + $0x17a8] sm:$0xff]  ;;  %v13198_v59 = vcombine.high %v786_v13, %v790_v14  ;;  %v13197_v29 = vcombine.low %v786_v13, %v790_v14 }
 0x161   :  { %v13200_v23 = vcombine.high %v787_v17, %v791_v53  ;;  %v13199_v30 = vcombine.low %v787_v17, %v791_v53  ;;  %v835_v13 = vld [vmem:[%s19698_s1 + $0x1908] sm:$0xff]  ;;  %v13239_v53 = vcombine.low %v827_v4, %v831_v5 }
 0x162   :  { %9795 = vmatpush1.bf16.msra.mxu0 %v13141_v24  ;;  %10328 = vmatpush1.bf16.msra.mxu1 %v13143_v26  ;;  %v794_v24 = vld [vmem:[%s19698_s1 + $0x17c0] sm:$0xff]  ;;  %v839_v14 = vld [vmem:[%s19698_s1 + $0x1928] sm:$0xff] }
 0x163   :  { %9796 = vmatprep.subr.bf16.mxu0 %v13150_v15  ;;  %10329 = vmatprep.subr.bf16.mxu1 %v13152_v28  ;;  %v798_v26 = vld [vmem:[%s19698_s1 + $0x17e0] sm:$0xff]  ;;  %v795_v15 = vld [vmem:[%s19698_s1 + $0x17c8] sm:$0xff] }
 0x164   :  { %v799_v28 = vld [vmem:[%s19698_s1 + $0x17e8] sm:$0xff]  ;;  %v13206_v32 = vcombine.high %v794_v24, %v798_v26  ;;  %v13205_v40 = vcombine.low %v794_v24, %v798_v26 }
 0x165   :  { %v13208_v33 = vcombine.high %v795_v15, %v799_v28  ;;  %v13207_v41 = vcombine.low %v795_v15, %v799_v28  ;;  %v843_v24 = vld [vmem:[%s19698_s1 + $0x1948] sm:$0xff]  ;;  %v13247_v28 = vcombine.low %v835_v13, %v839_v14 }
 0x166   :  { %9797 = vmatpush1.bf16.msra.mxu0 %v13149_v34  ;;  %10330 = vmatpush1.bf16.msra.mxu1 %v13151_v35  ;;  %v802_v34 = vld [vmem:[%s19698_s1 + $0x1800] sm:$0xff]  ;;  %v847_v26 = vld [vmem:[%s19698_s1 + $0x1968] sm:$0xff] }
 0x167   :  { %9798 = vmatprep.subr.bf16.mxu0 %v13158_v37  ;;  %10331 = vmatprep.subr.bf16.mxu1 %v13160_v38  ;;  %v806_v35 = vld [vmem:[%s19698_s1 + $0x1820] sm:$0xff]  ;;  %v803_v37 = vld [vmem:[%s19698_s1 + $0x1808] sm:$0xff] }
 0x168   :  { %v807_v38 = vld [vmem:[%s19698_s1 + $0x1828] sm:$0xff]  ;;  %v13214_v25 = vcombine.high %v802_v34, %v806_v35  ;;  %v13213_v50 = vcombine.low %v802_v34, %v806_v35 }
 0x169   :  { %v13216_v42 = vcombine.high %v803_v37, %v807_v38  ;;  %v13215_v51 = vcombine.low %v803_v37, %v807_v38  ;;  %v851_v34 = vld [vmem:[%s19698_s1 + $0x1988] sm:$0xff]  ;;  %v13255_v38 = vcombine.low %v843_v24, %v847_v26 }
 0x16a   :  { %9799 = vmatpush1.bf16.msra.mxu0 %v13157_v43  ;;  %10332 = vmatpush1.bf16.msra.mxu1 %v13159_v44  ;;  %v810_v43 = vld [vmem:[%s19698_s1 + $0x1840] sm:$0xff]  ;;  %v855_v35 = vld [vmem:[%s19698_s1 + $0x19a8] sm:$0xff] }
 0x16b   :  { %9800 = vmatprep.subr.bf16.mxu0 %v13166_v46  ;;  %10333 = vmatprep.subr.bf16.mxu1 %v13168_v47  ;;  %v814_v44 = vld [vmem:[%s19698_s1 + $0x1860] sm:$0xff]  ;;  %v15763_v46 = vcombine.low %v15565_v18, %v15565_v18  ;;  %v811_v47 = vld [vmem:[%s19698_s1 + $0x1848] sm:$0xff] }
 0x16c   :  { %v13222_v18 = vcombine.high %v810_v43, %v814_v44  ;;  %v13221_v39 = vcombine.low %v810_v43, %v814_v44  ;;  %v13223_v62 = vcombine.low %v811_v47, %v815_v48  ;;  %v859_v43 = vld [vmem:[%s19698_s1 + $0x19c8] sm:$0xff] }
 0x16d   :  { %v863_v44 = vld [vmem:[%s19698_s1 + $0x19e8] sm:$0xff] }
 0x16e   :  { %9801 = vmatpush1.bf16.msra.mxu0 %v13165_v52  ;;  %10334 = vmatpush1.bf16.msra.mxu1 %v13167_v54  ;;  %v13224_v52 = vcombine.high %v811_v47, %v815_v48  ;;  %v818_v54 = vld [vmem:[%s19698_s1 + $0x1880] sm:$0xff]  ;;  %v13263_v48 = vcombine.low %v851_v34, %v855_v35 }
 0x16f   :  { %9802 = vmatprep.subr.bf16.mxu0 %v13174_v56  ;;  %10335 = vmatprep.subr.bf16.mxu1 %v13176_v58  ;;  %v822_v56 = vld [vmem:[%s19698_s1 + $0x18a0] sm:$0xff]  ;;  %v15784_v58 = vcombine.high %v15774_v49, %v15774_v49 }
 0x170   :  { %v13229_v6 = vcombine.low %v818_v54, %v822_v56 }
 0x172   :  { %9803 = vmatpush1.bf16.msra.mxu0 %v13173_v63  ;;  %10336 = vmatpush1.bf16.msra.mxu1 %v13175_v0  ;;  %v13230_v63 = vcombine.high %v818_v54, %v822_v56  ;;  %v13232_v0 = vcombine.high %v819_v60, %v823_v61  ;;  %v867_v54 = vld [vmem:[%s19698_s1 + $0x1a08] sm:$0xff]  ;;  %v13271_v61 = vcombine.low %v859_v43, %v863_v44 }
 0x173   :  { %9804 = vmatprep.subr.bf16.mxu0 %v13182_v2  ;;  %10337 = vmatprep.subr.bf16.mxu1 %v13184_v3  ;;  %v826_v2 = vld [vmem:[%s19698_s1 + $0x18c0] sm:$0xff]  ;;  %v871_v56 = vld [vmem:[%s19698_s1 + $0x1a28] sm:$0xff] }
 0x174   :  { %v830_v3 = vld [vmem:[%s19698_s1 + $0x18e0] sm:$0xff] }
 0x175   :  { %v13237_v17 = vcombine.low %v826_v2, %v830_v3 }
 0x176   :  { %9805 = vmatpush1.bf16.msra.mxu0 %v13181_v8  ;;  %10338 = vmatpush1.bf16.msra.mxu1 %v13183_v9  ;;  %v13238_v8 = vcombine.high %v826_v2, %v830_v3  ;;  %v13240_v9 = vcombine.high %v827_v4, %v831_v5  ;;  %v875_v2 = vld [vmem:[%s19698_s1 + $0x1a48] sm:$0xff]  ;;  %v13279_v5 = vcombine.low %v867_v54, %v871_v56 }
 0x177   :  { %9806 = vmatprep.subr.bf16.mxu0 %v13190_v10  ;;  %10339 = vmatprep.subr.bf16.mxu1 %v13192_v11  ;;  %v834_v10 = vld [vmem:[%s19698_s1 + $0x1900] sm:$0xff]  ;;  %v879_v3 = vld [vmem:[%s19698_s1 + $0x1a68] sm:$0xff] }
 0x178   :  { %v838_v11 = vld [vmem:[%s19698_s1 + $0x1920] sm:$0xff] }
 0x179   :  { %v13245_v15 = vcombine.low %v834_v10, %v838_v11 }
 0x17a   :  { %9807 = vmatpush1.bf16.msra.mxu0 %v13189_v19  ;;  %10340 = vmatpush1.bf16.msra.mxu1 %v13191_v20  ;;  %v13246_v19 = vcombine.high %v834_v10, %v838_v11  ;;  %v13248_v20 = vcombine.high %v835_v13, %v839_v14  ;;  %v883_v10 = vld [vmem:[%s19698_s1 + $0x1a88] sm:$0xff]  ;;  %v13287_v14 = vcombine.low %v875_v2, %v879_v3 }
 0x17b   :  { %9808 = vmatprep.subr.bf16.mxu0 %v13198_v59  ;;  %10341 = vmatprep.subr.bf16.mxu1 %v13200_v23  ;;  %v842_v59 = vld [vmem:[%s19698_s1 + $0x1940] sm:$0xff]  ;;  %v887_v11 = vld [vmem:[%s19698_s1 + $0x1aa8] sm:$0xff] }
 0x17c   :  { %v846_v23 = vld [vmem:[%s19698_s1 + $0x1960] sm:$0xff] }
 0x17d   :  { %v13253_v37 = vcombine.low %v842_v59, %v846_v23 }
 0x17e   :  { %9809 = vmatpush1.bf16.msra.mxu0 %v13197_v29  ;;  %10342 = vmatpush1.bf16.msra.mxu1 %v13199_v30  ;;  %v13254_v29 = vcombine.high %v842_v59, %v846_v23  ;;  %v13256_v30 = vcombine.high %v843_v24, %v847_v26  ;;  %v891_v59 = vld [vmem:[%s19698_s1 + $0x1ac8] sm:$0xff]  ;;  %v13295_v26 = vcombine.low %v883_v10, %v887_v11 }
 0x17f   :  { %9810 = vmatprep.subr.bf16.mxu0 %v13206_v32  ;;  %10343 = vmatprep.subr.bf16.mxu1 %v13208_v33  ;;  %v850_v32 = vld [vmem:[%s19698_s1 + $0x1980] sm:$0xff]  ;;  %v895_v23 = vld [vmem:[%s19698_s1 + $0x1ae8] sm:$0xff] }
 0x180   :  { %v854_v33 = vld [vmem:[%s19698_s1 + $0x19a0] sm:$0xff] }
 0x181   :  { %v13261_v47 = vcombine.low %v850_v32, %v854_v33 }
 0x182   :  { %9811 = vmatpush1.bf16.msra.mxu0 %v13205_v40  ;;  %10344 = vmatpush1.bf16.msra.mxu1 %v13207_v41  ;;  %v13262_v40 = vcombine.high %v850_v32, %v854_v33  ;;  %v13264_v41 = vcombine.high %v851_v34, %v855_v35  ;;  %v899_v32 = vld [vmem:[%s19698_s1 + $0x1b08] sm:$0xff]  ;;  %v13303_v35 = vcombine.low %v891_v59, %v895_v23 }
 0x183   :  { %9821 = vmatprep.subr.bf16.mxu0 %v13214_v25  ;;  %10354 = vmatprep.subr.bf16.mxu1 %v13216_v42  ;;  %v858_v25 = vld [vmem:[%s19698_s1 + $0x19c0] sm:$0xff]  ;;  %v903_v33 = vld [vmem:[%s19698_s1 + $0x1b28] sm:$0xff] }
 0x184   :  { %v862_v42 = vld [vmem:[%s19698_s1 + $0x19e0] sm:$0xff] }
 0x185   :  { %9813 = vmatmul.mubr.bf16.vlgmr.msra.gmra.mrb[0].mxu0 %v15763_v46  ;;  %10346 = vmatmul.mubr.bf16.vlgmr.msra.gmra.mrb[0].mxu1 %v15763_v46  ;;  %v13269_v60 = vcombine.low %v858_v25, %v862_v42 }
 0x186   :  { %9822 = vmatpush1.bf16.msra.mxu0 %v13213_v50  ;;  %10355 = vmatpush1.bf16.msra.mxu1 %v13215_v51  ;;  %v13270_v50 = vcombine.high %v858_v25, %v862_v42  ;;  %v13272_v51 = vcombine.high %v859_v43, %v863_v44  ;;  %v907_v25 = vld [vmem:[%s19698_s1 + $0x1b48] sm:$0xff]  ;;  %v13311_v44 = vcombine.low %v899_v32, %v903_v33 }
 0x187   :  { %9823 = vmatprep.subr.bf16.mxu0 %v13222_v18  ;;  %10356 = vmatprep.subr.bf16.mxu1 %v13224_v52  ;;  %v866_v18 = vld [vmem:[%s19698_s1 + $0x1a00] sm:$0xff]  ;;  %v911_v42 = vld [vmem:[%s19698_s1 + $0x1b68] sm:$0xff] }
 0x188   :  { %9853 = vmatprep.mubr.bf16.mxu0 %v15784_v58  ;;  %10386 = vmatprep.mubr.bf16.mxu1 %v15784_v58  ;;  %v870_v52 = vld [vmem:[%s19698_s1 + $0x1a20] sm:$0xff] }
 0x189   :  { %v13277_v4 = vcombine.low %v866_v18, %v870_v52 }
 0x18a   :  { %9824 = vmatpush1.bf16.msra.mxu0 %v13221_v39  ;;  %10357 = vmatpush1.bf16.msra.mxu1 %v13223_v62  ;;  %v13278_v39 = vcombine.high %v866_v18, %v870_v52  ;;  %v13280_v62 = vcombine.high %v867_v54, %v871_v56  ;;  %v915_v18 = vld [vmem:[%s19698_s1 + $0x1b88] sm:$0xff]  ;;  %v13319_v56 = vcombine.low %v907_v25, %v911_v42 }
 0x18b   :  { %9825 = vmatprep.subr.bf16.mxu0 %v13230_v63  ;;  %10358 = vmatprep.subr.bf16.mxu1 %v13232_v0  ;;  %v874_v63 = vld [vmem:[%s19698_s1 + $0x1a40] sm:$0xff]  ;;  %v919_v52 = vld [vmem:[%s19698_s1 + $0x1ba8] sm:$0xff] }
 0x18c   :  { %v878_v0 = vld [vmem:[%s19698_s1 + $0x1a60] sm:$0xff] }
 0x18d   :  { %v13285_v13 = vcombine.low %v874_v63, %v878_v0 }
 0x18e   :  { %9826 = vmatpush1.bf16.msra.mxu0 %v13229_v6  ;;  %10359 = vmatpush1.bf16.msra.mxu1 %v13231_v7  ;;  %v13286_v6 = vcombine.high %v874_v63, %v878_v0  ;;  %v13288_v7 = vcombine.high %v875_v2, %v879_v3  ;;  %v923_v63 = vld [vmem:[%s19698_s1 + $0x1bc8] sm:$0xff]  ;;  %v13327_v3 = vcombine.low %v915_v18, %v919_v52 }
 0x18f   :  { %9827 = vmatprep.subr.bf16.mxu0 %v13238_v8  ;;  %10360 = vmatprep.subr.bf16.mxu1 %v13240_v9  ;;  %v882_v8 = vld [vmem:[%s19698_s1 + $0x1a80] sm:$0xff]  ;;  %v927_v0 = vld [vmem:[%s19698_s1 + $0x1be8] sm:$0xff] }
 0x190   :  { %v886_v9 = vld [vmem:[%s19698_s1 + $0x1aa0] sm:$0xff] }
 0x191   :  { %v13293_v24 = vcombine.low %v882_v8, %v886_v9 }
 0x192   :  { %9828 = vmatpush1.bf16.msra.mxu0 %v13237_v17  ;;  %10361 = vmatpush1.bf16.msra.mxu1 %v13239_v53  ;;  %v13294_v17 = vcombine.high %v882_v8, %v886_v9  ;;  %v13296_v53 = vcombine.high %v883_v10, %v887_v11  ;;  %v931_v8 = vld [vmem:[%s19698_s1 + $0x1c08] sm:$0xff]  ;;  %v13335_v11 = vcombine.low %v923_v63, %v927_v0 }
 0x193   :  { %9829 = vmatprep.subr.bf16.mxu0 %v13246_v19  ;;  %10362 = vmatprep.subr.bf16.mxu1 %v13248_v20  ;;  %v890_v19 = vld [vmem:[%s19698_s1 + $0x1ac0] sm:$0xff]  ;;  %v935_v9 = vld [vmem:[%s19698_s1 + $0x1c28] sm:$0xff] }
 0x194   :  { %v894_v20 = vld [vmem:[%s19698_s1 + $0x1ae0] sm:$0xff] }
 0x195   :  { %v13301_v34 = vcombine.low %v890_v19, %v894_v20 }
 0x196   :  { %9830 = vmatpush1.bf16.msra.mxu0 %v13245_v15  ;;  %10363 = vmatpush1.bf16.msra.mxu1 %v13247_v28  ;;  %v13302_v15 = vcombine.high %v890_v19, %v894_v20  ;;  %v13304_v28 = vcombine.high %v891_v59, %v895_v23  ;;  %v15972_v19 = vcombine.low %v15774_v49, %v15774_v49  ;;  %v939_v20 = vld [vmem:[%s19698_s1 + $0x1c48] sm:$0xff]  ;;  %v15983_v23 = vld [vmem:[%s19699_s0 + $0x38] sm:$0xff] }
 0x197   :  { %9831 = vmatprep.subr.bf16.mxu0 %v13254_v29  ;;  %10364 = vmatprep.subr.bf16.mxu1 %v13256_v30  ;;  %v898_v29 = vld [vmem:[%s19698_s1 + $0x1b00] sm:$0xff]  ;;  %v943_v59 = vld [vmem:[%s19698_s1 + $0x1c68] sm:$0xff] }
 0x198   :  { %v902_v30 = vld [vmem:[%s19698_s1 + $0x1b20] sm:$0xff] }
 0x199   :  { %v13309_v43 = vcombine.low %v898_v29, %v902_v30 }
 0x19a   :  { %9832 = vmatpush1.bf16.msra.mxu0 %v13253_v37  ;;  %10365 = vmatpush1.bf16.msra.mxu1 %v13255_v38  ;;  %v13310_v37 = vcombine.high %v898_v29, %v902_v30  ;;  %v13312_v38 = vcombine.high %v899_v32, %v903_v33  ;;  %v950_v29 = vld [vmem:[%s19698_s1 + $0x1ca0] sm:$0xff]  ;;  %v15993_v30 = vcombine.high %v15983_v23, %v15983_v23  ;;  %v947_v32 = vld [vmem:[%s19698_s1 + $0x1c88] sm:$0xff] }
 0x19b   :  { %9833 = vmatprep.subr.bf16.mxu0 %v13262_v40  ;;  %10366 = vmatprep.subr.bf16.mxu1 %v13264_v41  ;;  %v906_v40 = vld [vmem:[%s19698_s1 + $0x1b40] sm:$0xff]  ;;  %v951_v33 = vld [vmem:[%s19698_s1 + $0x1ca8] sm:$0xff] }
 0x19c   :  { %v910_v41 = vld [vmem:[%s19698_s1 + $0x1b60] sm:$0xff] }
 0x19d   :  { %v13317_v54 = vcombine.low %v906_v40, %v910_v41 }
 0x19e   :  { %9834 = vmatpush1.bf16.msra.mxu0 %v13261_v47  ;;  %10367 = vmatpush1.bf16.msra.mxu1 %v13263_v48  ;;  %v13318_v47 = vcombine.high %v906_v40, %v910_v41  ;;  %v13320_v48 = vcombine.high %v907_v25, %v911_v42  ;;  %v954_v40 = vld [vmem:[%s19698_s1 + $0x1cc0] sm:$0xff]  ;;  %v955_v25 = vld [vmem:[%s19698_s1 + $0x1cc8] sm:$0xff] }
 0x19f   :  { %9835 = vmatprep.subr.bf16.mxu0 %v13270_v50  ;;  %10368 = vmatprep.subr.bf16.mxu1 %v13272_v51  ;;  %v914_v50 = vld [vmem:[%s19698_s1 + $0x1b80] sm:$0xff]  ;;  %v959_v42 = vld [vmem:[%s19698_s1 + $0x1ce8] sm:$0xff] }
 0x1a0   :  { %v918_v51 = vld [vmem:[%s19698_s1 + $0x1ba0] sm:$0xff] }
 0x1a1   :  { %v13325_v2 = vcombine.low %v914_v50, %v918_v51  ;;  %v958_v41 = vld [vmem:[%s19698_s1 + $0x1ce0] sm:$0xff] }
 0x1a2   :  { %9836 = vmatpush1.bf16.msra.mxu0 %v13269_v60  ;;  %10369 = vmatpush1.bf16.msra.mxu1 %v13271_v61  ;;  %v13326_v60 = vcombine.high %v914_v50, %v918_v51  ;;  %v13328_v61 = vcombine.high %v915_v18, %v919_v52  ;;  %v962_v50 = vld [vmem:[%s19698_s1 + $0x1d00] sm:$0xff]  ;;  %v963_v18 = vld [vmem:[%s19698_s1 + $0x1d08] sm:$0xff] }
 0x1a3   :  { %9837 = vmatprep.subr.bf16.mxu0 %v13278_v39  ;;  %10370 = vmatprep.subr.bf16.mxu1 %v13280_v62  ;;  %v922_v39 = vld [vmem:[%s19698_s1 + $0x1bc0] sm:$0xff]  ;;  %v967_v52 = vld [vmem:[%s19698_s1 + $0x1d28] sm:$0xff] }
 0x1a4   :  { %v926_v62 = vld [vmem:[%s19698_s1 + $0x1be0] sm:$0xff] }
 0x1a5   :  { %v13333_v10 = vcombine.low %v922_v39, %v926_v62  ;;  %v966_v51 = vld [vmem:[%s19698_s1 + $0x1d20] sm:$0xff] }
 0x1a6   :  { %9838 = vmatpush1.bf16.msra.mxu0 %v13277_v4  ;;  %10371 = vmatpush1.bf16.msra.mxu1 %v13279_v5  ;;  %v13334_v4 = vcombine.high %v922_v39, %v926_v62  ;;  %v13336_v5 = vcombine.high %v923_v63, %v927_v0  ;;  %v970_v39 = vld [vmem:[%s19698_s1 + $0x1d40] sm:$0xff]  ;;  %v971_v63 = vld [vmem:[%s19698_s1 + $0x1d48] sm:$0xff] }
 0x1a7   :  { %9839 = vmatprep.subr.bf16.mxu0 %v13286_v6  ;;  %10372 = vmatprep.subr.bf16.mxu1 %v13288_v7  ;;  %v930_v6 = vld [vmem:[%s19698_s1 + $0x1c00] sm:$0xff]  ;;  %v975_v0 = vld [vmem:[%s19698_s1 + $0x1d68] sm:$0xff] }
 0x1a8   :  { %v934_v7 = vld [vmem:[%s19698_s1 + $0x1c20] sm:$0xff] }
 0x1a9   :  { %v974_v62 = vld [vmem:[%s19698_s1 + $0x1d60] sm:$0xff] }
 0x1aa   :  { %9840 = vmatpush1.bf16.msra.mxu0 %v13285_v13  ;;  %10373 = vmatpush1.bf16.msra.mxu1 %v13287_v14  ;;  %v13342_v13 = vcombine.high %v930_v6, %v934_v7  ;;  %v13344_v14 = vcombine.high %v931_v8, %v935_v9 }
 0x1ab   :  { %9841 = vmatprep.subr.bf16.mxu0 %v13294_v17  ;;  %10374 = vmatprep.subr.bf16.mxu1 %v13296_v53  ;;  %v938_v17 = vld [vmem:[%s19698_s1 + $0x1c40] sm:$0xff] }
 0x1ac   :  { %v942_v53 = vld [vmem:[%s19698_s1 + $0x1c60] sm:$0xff] }
 0x1ad   :  { %v13350_v49 = vcombine.high %v938_v17, %v942_v53 }
 0x1ae   :  { %9842 = vmatpush1.bf16.msra.mxu0 %v13293_v24  ;;  %10375 = vmatpush1.bf16.msra.mxu1 %v13295_v26  ;;  %v13341_v24 = vcombine.low %v930_v6, %v934_v7  ;;  %v13343_v26 = vcombine.low %v931_v8, %v935_v9  ;;  %v978_v6 = vld [vmem:[%s19698_s1 + $0x1d80] sm:$0xff]  ;;  %v979_v8 = vld [vmem:[%s19698_s1 + $0x1d88] sm:$0xff] }
 0x1af   :  { %9843 = vmatprep.subr.bf16.mxu0 %v13302_v15  ;;  %10376 = vmatprep.subr.bf16.mxu1 %v13304_v28  ;;  %v13352_v15 = vcombine.high %v939_v20, %v943_v59  ;;  %v946_v28 = vld [vmem:[%s19698_s1 + $0x1c80] sm:$0xff]  ;;  %v983_v9 = vld [vmem:[%s19698_s1 + $0x1da8] sm:$0xff] }
 0x1b0   :  { %v982_v7 = vld [vmem:[%s19698_s1 + $0x1da0] sm:$0xff] }
 0x1b2   :  { %9844 = vmatpush1.bf16.msra.mxu0 %v13301_v34  ;;  %10377 = vmatpush1.bf16.msra.mxu1 %v13303_v35  ;;  %v13349_v34 = vcombine.low %v938_v17, %v942_v53  ;;  %v13351_v35 = vcombine.low %v939_v20, %v943_v59  ;;  %v986_v17 = vld [vmem:[%s19698_s1 + $0x1dc0] sm:$0xff]  ;;  %v987_v20 = vld [vmem:[%s19698_s1 + $0x1dc8] sm:$0xff] }
 0x1b3   :  { %9845 = vmatprep.subr.bf16.mxu0 %v13310_v37  ;;  %10378 = vmatprep.subr.bf16.mxu1 %v13312_v38  ;;  %v13358_v37 = vcombine.high %v946_v28, %v950_v29  ;;  %v13360_v38 = vcombine.high %v947_v32, %v951_v33  ;;  %v990_v53 = vld [vmem:[%s19698_s1 + $0x1de0] sm:$0xff]  ;;  %v991_v59 = vld [vmem:[%s19698_s1 + $0x1de8] sm:$0xff] }
 0x1b6   :  { %9846 = vmatpush1.bf16.msra.mxu0 %v13309_v43  ;;  %10379 = vmatpush1.bf16.msra.mxu1 %v13311_v44  ;;  %v13357_v43 = vcombine.low %v946_v28, %v950_v29  ;;  %v13359_v44 = vcombine.low %v947_v32, %v951_v33  ;;  %v994_v28 = vld [vmem:[%s19698_s1 + $0x1e00] sm:$0xff]  ;;  %v995_v32 = vld [vmem:[%s19698_s1 + $0x1e08] sm:$0xff] }
 0x1b7   :  { %9847 = vmatprep.subr.bf16.mxu0 %v13318_v47  ;;  %10380 = vmatprep.subr.bf16.mxu1 %v13320_v48  ;;  %v13366_v47 = vcombine.high %v954_v40, %v958_v41  ;;  %v13368_v48 = vcombine.high %v955_v25, %v959_v42  ;;  %v998_v29 = vld [vmem:[%s19698_s1 + $0x1e20] sm:$0xff]  ;;  %v999_v33 = vld [vmem:[%s19698_s1 + $0x1e28] sm:$0xff] }
 0x1ba   :  { %9848 = vmatpush1.bf16.msra.mxu0 %v13317_v54  ;;  %10381 = vmatpush1.bf16.msra.mxu1 %v13319_v56  ;;  %v13365_v54 = vcombine.low %v954_v40, %v958_v41  ;;  %v13367_v56 = vcombine.low %v955_v25, %v959_v42  ;;  %v1002_v40 = vld [vmem:[%s19698_s1 + $0x1e40] sm:$0xff]  ;;  %v1003_v25 = vld [vmem:[%s19698_s1 + $0x1e48] sm:$0xff] }
 0x1bb   :  { %9849 = vmatprep.subr.bf16.mxu0 %v13326_v60  ;;  %10382 = vmatprep.subr.bf16.mxu1 %v13328_v61  ;;  %v13374_v60 = vcombine.high %v962_v50, %v966_v51  ;;  %v13376_v61 = vcombine.high %v963_v18, %v967_v52  ;;  %v1006_v41 = vld [vmem:[%s19698_s1 + $0x1e60] sm:$0xff]  ;;  %v1007_v42 = vld [vmem:[%s19698_s1 + $0x1e68] sm:$0xff] }
 0x1be   :  { %9850 = vmatpush1.bf16.msra.mxu0 %v13325_v2  ;;  %10383 = vmatpush1.bf16.msra.mxu1 %v13327_v3  ;;  %v13373_v2 = vcombine.low %v962_v50, %v966_v51  ;;  %v13375_v3 = vcombine.low %v963_v18, %v967_v52  ;;  %v1010_v50 = vld [vmem:[%s19698_s1 + $0x1e80] sm:$0xff]  ;;  %v1011_v18 = vld [vmem:[%s19698_s1 + $0x1e88] sm:$0xff] }
 0x1bf   :  { %9851 = vmatprep.subr.bf16.mxu0 %v13334_v4  ;;  %10384 = vmatprep.subr.bf16.mxu1 %v13336_v5  ;;  %v13382_v4 = vcombine.high %v970_v39, %v974_v62  ;;  %v13384_v5 = vcombine.high %v971_v63, %v975_v0  ;;  %v1014_v51 = vld [vmem:[%s19698_s1 + $0x1ea0] sm:$0xff]  ;;  %v1015_v52 = vld [vmem:[%s19698_s1 + $0x1ea8] sm:$0xff] }
 0x1c2   :  { %9852 = vmatpush1.bf16.msra.mxu0 %v13333_v10  ;;  %10385 = vmatpush1.bf16.msra.mxu1 %v13335_v11  ;;  %v13381_v10 = vcombine.low %v970_v39, %v974_v62  ;;  %v13383_v11 = vcombine.low %v971_v63, %v975_v0  ;;  %v1018_v39 = vld [vmem:[%s19698_s1 + $0x1ec0] sm:$0xff]  ;;  %v1019_v63 = vld [vmem:[%s19698_s1 + $0x1ec8] sm:$0xff] }
 0x1c3   :  { %9862 = vmatprep.subr.bf16.mxu0 %v13342_v13  ;;  %10395 = vmatprep.subr.bf16.mxu1 %v13344_v14  ;;  %v13390_v13 = vcombine.high %v978_v6, %v982_v7  ;;  %v13392_v14 = vcombine.high %v979_v8, %v983_v9  ;;  %v1022_v62 = vld [vmem:[%s19698_s1 + $0x1ee0] sm:$0xff]  ;;  %v1023_v0 = vld [vmem:[%s19698_s1 + $0x1ee8] sm:$0xff] }
 0x1c5   :  { %9854 = vmatmul.mubr.bf16.vlgmr.msra.gmra.mrb[0].mxu0 %v15972_v19  ;;  %10387 = vmatmul.mubr.bf16.vlgmr.msra.gmra.mrb[0].mxu1 %v15972_v19 }
 0x1c6   :  { %9863 = vmatpush1.bf16.msra.mxu0 %v13341_v24  ;;  %10396 = vmatpush1.bf16.msra.mxu1 %v13343_v26  ;;  %v13389_v24 = vcombine.low %v978_v6, %v982_v7  ;;  %v13391_v26 = vcombine.low %v979_v8, %v983_v9  ;;  %v1026_v6 = vld [vmem:[%s19698_s1 + $0x1f00] sm:$0xff]  ;;  %v1027_v8 = vld [vmem:[%s19698_s1 + $0x1f08] sm:$0xff] }
 0x1c7   :  { %9864 = vmatprep.subr.bf16.mxu0 %v13350_v49  ;;  %10397 = vmatprep.subr.bf16.mxu1 %v13352_v15  ;;  %v13398_v49 = vcombine.high %v986_v17, %v990_v53  ;;  %v13400_v15 = vcombine.high %v987_v20, %v991_v59  ;;  %v1030_v7 = vld [vmem:[%s19698_s1 + $0x1f20] sm:$0xff]  ;;  %v1031_v9 = vld [vmem:[%s19698_s1 + $0x1f28] sm:$0xff] }
 0x1c8   :  { %9894 = vmatprep.mubr.bf16.mxu0 %v15993_v30  ;;  %10427 = vmatprep.mubr.bf16.mxu1 %v15993_v30 }
 0x1ca   :  { %9865 = vmatpush1.bf16.msra.mxu0 %v13349_v34  ;;  %10398 = vmatpush1.bf16.msra.mxu1 %v13351_v35  ;;  %v13397_v34 = vcombine.low %v986_v17, %v990_v53  ;;  %v13399_v35 = vcombine.low %v987_v20, %v991_v59  ;;  %v1034_v17 = vld [vmem:[%s19698_s1 + $0x1f40] sm:$0xff]  ;;  %v1035_v20 = vld [vmem:[%s19698_s1 + $0x1f48] sm:$0xff] }
 0x1cb   :  { %9866 = vmatprep.subr.bf16.mxu0 %v13358_v37  ;;  %10399 = vmatprep.subr.bf16.mxu1 %v13360_v38  ;;  %v13406_v37 = vcombine.high %v994_v28, %v998_v29  ;;  %v13408_v38 = vcombine.high %v995_v32, %v999_v33  ;;  %v1038_v53 = vld [vmem:[%s19698_s1 + $0x1f60] sm:$0xff]  ;;  %v1039_v59 = vld [vmem:[%s19698_s1 + $0x1f68] sm:$0xff] }
 0x1ce   :  { %9867 = vmatpush1.bf16.msra.mxu0 %v13357_v43  ;;  %10400 = vmatpush1.bf16.msra.mxu1 %v13359_v44  ;;  %v13405_v43 = vcombine.low %v994_v28, %v998_v29  ;;  %v13407_v44 = vcombine.low %v995_v32, %v999_v33  ;;  %v1042_v28 = vld [vmem:[%s19698_s1 + $0x1f80] sm:$0xff]  ;;  %v1043_v32 = vld [vmem:[%s19698_s1 + $0x1f88] sm:$0xff] }
 0x1cf   :  { %9868 = vmatprep.subr.bf16.mxu0 %v13366_v47  ;;  %10401 = vmatprep.subr.bf16.mxu1 %v13368_v48  ;;  %v13414_v47 = vcombine.high %v1002_v40, %v1006_v41  ;;  %v13416_v48 = vcombine.high %v1003_v25, %v1007_v42  ;;  %v1046_v29 = vld [vmem:[%s19698_s1 + $0x1fa0] sm:$0xff]  ;;  %v1047_v33 = vld [vmem:[%s19698_s1 + $0x1fa8] sm:$0xff] }
 0x1d2   :  { %9869 = vmatpush1.bf16.msra.mxu0 %v13365_v54  ;;  %10402 = vmatpush1.bf16.msra.mxu1 %v13367_v56  ;;  %v13413_v54 = vcombine.low %v1002_v40, %v1006_v41  ;;  %v13415_v56 = vcombine.low %v1003_v25, %v1007_v42  ;;  %v1050_v40 = vld [vmem:[%s19698_s1 + $0x1fc0] sm:$0xff]  ;;  %v1051_v25 = vld [vmem:[%s19698_s1 + $0x1fc8] sm:$0xff] }
 0x1d3   :  { %9870 = vmatprep.subr.bf16.mxu0 %v13374_v60  ;;  %10403 = vmatprep.subr.bf16.mxu1 %v13376_v61  ;;  %v13422_v60 = vcombine.high %v1010_v50, %v1014_v51  ;;  %v13424_v61 = vcombine.high %v1011_v18, %v1015_v52  ;;  %v1054_v41 = vld [vmem:[%s19698_s1 + $0x1fe0] sm:$0xff]  ;;  %v1055_v42 = vld [vmem:[%s19698_s1 + $0x1fe8] sm:$0xff] }
 0x1d6   :  { %9871 = vmatpush1.bf16.msra.mxu0 %v13373_v2  ;;  %10404 = vmatpush1.bf16.msra.mxu1 %v13375_v3  ;;  %v13421_v2 = vcombine.low %v1010_v50, %v1014_v51  ;;  %v13423_v3 = vcombine.low %v1011_v18, %v1015_v52  ;;  %v1058_v50 = vld [vmem:[%s19698_s1 + $0x2000] sm:$0xff]  ;;  %v1059_v18 = vld [vmem:[%s19698_s1 + $0x2008] sm:$0xff] }
 0x1d7   :  { %9872 = vmatprep.subr.bf16.mxu0 %v13382_v4  ;;  %10405 = vmatprep.subr.bf16.mxu1 %v13384_v5  ;;  %v13430_v4 = vcombine.high %v1018_v39, %v1022_v62  ;;  %v13432_v5 = vcombine.high %v1019_v63, %v1023_v0  ;;  %v1062_v51 = vld [vmem:[%s19698_s1 + $0x2020] sm:$0xff]  ;;  %v1063_v52 = vld [vmem:[%s19698_s1 + $0x2028] sm:$0xff] }
 0x1da   :  { %9873 = vmatpush1.bf16.msra.mxu0 %v13381_v10  ;;  %10406 = vmatpush1.bf16.msra.mxu1 %v13383_v11  ;;  %v13429_v10 = vcombine.low %v1018_v39, %v1022_v62  ;;  %v13431_v11 = vcombine.low %v1019_v63, %v1023_v0  ;;  %v1066_v39 = vld [vmem:[%s19698_s1 + $0x2040] sm:$0xff]  ;;  %v16181_v63 = vcombine.low %v15983_v23, %v15983_v23  ;;  %v1067_v0 = vld [vmem:[%s19698_s1 + $0x2048] sm:$0xff] }
 0x1db   :  { %9874 = vmatprep.subr.bf16.mxu0 %v13390_v13  ;;  %10407 = vmatprep.subr.bf16.mxu1 %v13392_v14  ;;  %v13438_v13 = vcombine.high %v1026_v6, %v1030_v7  ;;  %v13440_v14 = vcombine.high %v1027_v8, %v1031_v9  ;;  %v1070_v62 = vld [vmem:[%s19698_s1 + $0x2060] sm:$0xff] }
 0x1dc   :  { %v13478_v23 = vcombine.high %v1066_v39, %v1070_v62 }
 0x1de   :  { %9875 = vmatpush1.bf16.msra.mxu0 %v13389_v24  ;;  %10408 = vmatpush1.bf16.msra.mxu1 %v13391_v26  ;;  %v13437_v24 = vcombine.low %v1026_v6, %v1030_v7  ;;  %v13439_v26 = vcombine.low %v1027_v8, %v1031_v9  ;;  %v1074_v7 = vld [vmem:[%s19698_s1 + $0x2080] sm:$0xff] }
 0x1df   :  { %9876 = vmatprep.subr.bf16.mxu0 %v13398_v49  ;;  %10409 = vmatprep.subr.bf16.mxu1 %v13400_v15  ;;  %v13446_v49 = vcombine.high %v1034_v17, %v1038_v53  ;;  %v13448_v15 = vcombine.high %v1035_v20, %v1039_v59  ;;  %v1078_v8 = vld [vmem:[%s19698_s1 + $0x20a0] sm:$0xff] }
 0x1e2   :  { %9877 = vmatpush1.bf16.msra.mxu0 %v13397_v34  ;;  %10410 = vmatpush1.bf16.msra.mxu1 %v13399_v35  ;;  %v13445_v34 = vcombine.low %v1034_v17, %v1038_v53  ;;  %v13447_v35 = vcombine.low %v1035_v20, %v1039_v59  ;;  %v13486_v17 = vcombine.high %v1074_v7, %v1078_v8  ;;  %v1082_v20 = vld [vmem:[%s19698_s1 + $0x20c0] sm:$0xff] }
 0x1e3   :  { %9878 = vmatprep.subr.bf16.mxu0 %v13406_v37  ;;  %10411 = vmatprep.subr.bf16.mxu1 %v13408_v38  ;;  %v13454_v37 = vcombine.high %v1042_v28, %v1046_v29  ;;  %v13456_v38 = vcombine.high %v1043_v32, %v1047_v33  ;;  %v1086_v59 = vld [vmem:[%s19698_s1 + $0x20e0] sm:$0xff] }
 0x1e6   :  { %9879 = vmatpush1.bf16.msra.mxu0 %v13405_v43  ;;  %10412 = vmatpush1.bf16.msra.mxu1 %v13407_v44  ;;  %v13453_v43 = vcombine.low %v1042_v28, %v1046_v29  ;;  %v13455_v44 = vcombine.low %v1043_v32, %v1047_v33  ;;  %v13494_v28 = vcombine.high %v1082_v20, %v1086_v59  ;;  %v1090_v32 = vld [vmem:[%s19698_s1 + $0x2100] sm:$0xff] }
 0x1e7   :  { %9880 = vmatprep.subr.bf16.mxu0 %v13414_v47  ;;  %10413 = vmatprep.subr.bf16.mxu1 %v13416_v48  ;;  %v13462_v47 = vcombine.high %v1050_v40, %v1054_v41  ;;  %v13464_v48 = vcombine.high %v1051_v25, %v1055_v42  ;;  %v1094_v33 = vld [vmem:[%s19698_s1 + $0x2120] sm:$0xff] }
 0x1ea   :  { %9881 = vmatpush1.bf16.msra.mxu0 %v13413_v54  ;;  %10414 = vmatpush1.bf16.msra.mxu1 %v13415_v56  ;;  %v13461_v54 = vcombine.low %v1050_v40, %v1054_v41  ;;  %v13463_v56 = vcombine.low %v1051_v25, %v1055_v42  ;;  %v13502_v40 = vcombine.high %v1090_v32, %v1094_v33  ;;  %v1098_v25 = vld [vmem:[%s19698_s1 + $0x2140] sm:$0xff] }
 0x1eb   :  { %9882 = vmatprep.subr.bf16.mxu0 %v13422_v60  ;;  %10415 = vmatprep.subr.bf16.mxu1 %v13424_v61  ;;  %v13470_v60 = vcombine.high %v1058_v50, %v1062_v51  ;;  %v13472_v61 = vcombine.high %v1059_v18, %v1063_v52  ;;  %v1102_v42 = vld [vmem:[%s19698_s1 + $0x2160] sm:$0xff] }
 0x1ee   :  { %9883 = vmatpush1.bf16.msra.mxu0 %v13421_v2  ;;  %10416 = vmatpush1.bf16.msra.mxu1 %v13423_v3  ;;  %v1071_v2 = vld [vmem:[%s19698_s1 + $0x2068] sm:$0xff]  ;;  %v16192_v3 = vld [vmem:[%s19699_s0 + $0x40] sm:$0xff] }
 0x1ef   :  { %9884 = vmatprep.subr.bf16.mxu0 %v13430_v4  ;;  %10417 = vmatprep.subr.bf16.mxu1 %v13432_v5  ;;  %v13469_v4 = vcombine.low %v1058_v50, %v1062_v51  ;;  %v13471_v5 = vcombine.low %v1059_v18, %v1063_v52  ;;  %v13480_v6 = vcombine.high %v1067_v0, %v1071_v2  ;;  %v1106_v18 = vld [vmem:[%s19698_s1 + $0x2180] sm:$0xff] }
 0x1f0   :  { %v16202_v9 = vcombine.high %v16192_v3, %v16192_v3  ;;  %v13510_v50 = vcombine.high %v1098_v25, %v1102_v42  ;;  %v1110_v52 = vld [vmem:[%s19698_s1 + $0x21a0] sm:$0xff] }
 0x1f2   :  { %9885 = vmatpush1.bf16.msra.mxu0 %v13429_v10  ;;  %10418 = vmatpush1.bf16.msra.mxu1 %v13431_v11  ;;  %v1075_v10 = vld [vmem:[%s19698_s1 + $0x2088] sm:$0xff] }
 0x1f3   :  { %9886 = vmatprep.subr.bf16.mxu0 %v13438_v13  ;;  %10419 = vmatprep.subr.bf16.mxu1 %v13440_v14  ;;  %v1079_v11 = vld [vmem:[%s19698_s1 + $0x20a8] sm:$0xff]  ;;  %v13477_v13 = vcombine.low %v1066_v39, %v1070_v62  ;;  %v13479_v14 = vcombine.low %v1067_v0, %v1071_v2  ;;  %v13518_v39 = vcombine.high %v1106_v18, %v1110_v52  ;;  %v1114_v0 = vld [vmem:[%s19698_s1 + $0x21c0] sm:$0xff] }
 0x1f4   :  { %v13488_v53 = vcombine.high %v1075_v10, %v1079_v11  ;;  %v1118_v2 = vld [vmem:[%s19698_s1 + $0x21e0] sm:$0xff] }
 0x1f6   :  { %9887 = vmatpush1.bf16.msra.mxu0 %v13437_v24  ;;  %10420 = vmatpush1.bf16.msra.mxu1 %v13439_v26  ;;  %v1083_v24 = vld [vmem:[%s19698_s1 + $0x20c8] sm:$0xff] }
 0x1f7   :  { %9888 = vmatprep.subr.bf16.mxu0 %v13446_v49  ;;  %10421 = vmatprep.subr.bf16.mxu1 %v13448_v15  ;;  %v1087_v26 = vld [vmem:[%s19698_s1 + $0x20e8] sm:$0xff]  ;;  %v13485_v49 = vcombine.low %v1074_v7, %v1078_v8  ;;  %v13487_v15 = vcombine.low %v1075_v10, %v1079_v11  ;;  %v13526_v7 = vcombine.high %v1114_v0, %v1118_v2  ;;  %v1122_v10 = vld [vmem:[%s19698_s1 + $0x2200] sm:$0xff] }
 0x1f8   :  { %v13496_v29 = vcombine.high %v1083_v24, %v1087_v26  ;;  %v1126_v11 = vld [vmem:[%s19698_s1 + $0x2220] sm:$0xff] }
 0x1fa   :  { %9889 = vmatpush1.bf16.msra.mxu0 %v13445_v34  ;;  %10422 = vmatpush1.bf16.msra.mxu1 %v13447_v35  ;;  %v1091_v34 = vld [vmem:[%s19698_s1 + $0x2108] sm:$0xff] }
 0x1fb   :  { %9890 = vmatprep.subr.bf16.mxu0 %v13454_v37  ;;  %10423 = vmatprep.subr.bf16.mxu1 %v13456_v38  ;;  %v1095_v35 = vld [vmem:[%s19698_s1 + $0x2128] sm:$0xff]  ;;  %v13493_v37 = vcombine.low %v1082_v20, %v1086_v59  ;;  %v13495_v38 = vcombine.low %v1083_v24, %v1087_v26  ;;  %v13534_v20 = vcombine.high %v1122_v10, %v1126_v11  ;;  %v1130_v24 = vld [vmem:[%s19698_s1 + $0x2240] sm:$0xff] }
 0x1fc   :  { %v13504_v41 = vcombine.high %v1091_v34, %v1095_v35  ;;  %v1134_v26 = vld [vmem:[%s19698_s1 + $0x2260] sm:$0xff] }
 0x1fe   :  { %9891 = vmatpush1.bf16.msra.mxu0 %v13453_v43  ;;  %10424 = vmatpush1.bf16.msra.mxu1 %v13455_v44  ;;  %v1099_v43 = vld [vmem:[%s19698_s1 + $0x2148] sm:$0xff] }
 0x1ff   :  { %9892 = vmatprep.subr.bf16.mxu0 %v13462_v47  ;;  %10425 = vmatprep.subr.bf16.mxu1 %v13464_v48  ;;  %v1103_v44 = vld [vmem:[%s19698_s1 + $0x2168] sm:$0xff]  ;;  %v13501_v47 = vcombine.low %v1090_v32, %v1094_v33  ;;  %v13503_v48 = vcombine.low %v1091_v34, %v1095_v35  ;;  %v13542_v32 = vcombine.high %v1130_v24, %v1134_v26  ;;  %v1138_v34 = vld [vmem:[%s19698_s1 + $0x2280] sm:$0xff] }
 0x200   :  { %v13512_v51 = vcombine.high %v1099_v43, %v1103_v44  ;;  %v1142_v35 = vld [vmem:[%s19698_s1 + $0x22a0] sm:$0xff] }
 0x202   :  { %9893 = vmatpush1.bf16.msra.mxu0 %v13461_v54  ;;  %10426 = vmatpush1.bf16.msra.mxu1 %v13463_v56  ;;  %v1107_v54 = vld [vmem:[%s19698_s1 + $0x2188] sm:$0xff] }
 0x203   :  { %9903 = vmatprep.subr.bf16.mxu0 %v13470_v60  ;;  %10436 = vmatprep.subr.bf16.mxu1 %v13472_v61  ;;  %v1111_v56 = vld [vmem:[%s19698_s1 + $0x21a8] sm:$0xff]  ;;  %v13509_v60 = vcombine.low %v1098_v25, %v1102_v42  ;;  %v13511_v61 = vcombine.low %v1099_v43, %v1103_v44  ;;  %v13550_v25 = vcombine.high %v1138_v34, %v1142_v35  ;;  %v1146_v43 = vld [vmem:[%s19698_s1 + $0x22c0] sm:$0xff] }
 0x204   :  { %v13520_v62 = vcombine.high %v1107_v54, %v1111_v56  ;;  %v1150_v44 = vld [vmem:[%s19698_s1 + $0x22e0] sm:$0xff] }
 0x205   :  { %9895 = vmatmul.mubr.bf16.vlgmr.msra.gmra.mrb[0].mxu0 %v16181_v63  ;;  %10428 = vmatmul.mubr.bf16.vlgmr.msra.gmra.mrb[0].mxu1 %v16181_v63 }
 0x206   :  { %9904 = vmatpush1.bf16.msra.mxu0 %v13469_v4  ;;  %10437 = vmatpush1.bf16.msra.mxu1 %v13471_v5  ;;  %v1115_v4 = vld [vmem:[%s19698_s1 + $0x21c8] sm:$0xff] }
 0x207   :  { %9905 = vmatprep.subr.bf16.mxu0 %v13478_v23  ;;  %10438 = vmatprep.subr.bf16.mxu1 %v13480_v6  ;;  %v1119_v5 = vld [vmem:[%s19698_s1 + $0x21e8] sm:$0xff]  ;;  %v13517_v23 = vcombine.low %v1106_v18, %v1110_v52  ;;  %v13519_v6 = vcombine.low %v1107_v54, %v1111_v56  ;;  %v13558_v18 = vcombine.high %v1146_v43, %v1150_v44  ;;  %v1154_v54 = vld [vmem:[%s19698_s1 + $0x2300] sm:$0xff] }
 0x208   :  { %9935 = vmatprep.mubr.bf16.mxu0 %v16202_v9  ;;  %10468 = vmatprep.mubr.bf16.mxu1 %v16202_v9  ;;  %v13528_v8 = vcombine.high %v1115_v4, %v1119_v5  ;;  %v1158_v56 = vld [vmem:[%s19698_s1 + $0x2320] sm:$0xff] }
 0x20a   :  { %9906 = vmatpush1.bf16.msra.mxu0 %v13477_v13  ;;  %10439 = vmatpush1.bf16.msra.mxu1 %v13479_v14  ;;  %v1123_v13 = vld [vmem:[%s19698_s1 + $0x2208] sm:$0xff] }
 0x20b   :  { %9907 = vmatprep.subr.bf16.mxu0 %v13486_v17  ;;  %10440 = vmatprep.subr.bf16.mxu1 %v13488_v53  ;;  %v1127_v14 = vld [vmem:[%s19698_s1 + $0x2228] sm:$0xff]  ;;  %v13525_v17 = vcombine.low %v1114_v0, %v1118_v2  ;;  %v13527_v53 = vcombine.low %v1115_v4, %v1119_v5  ;;  %v13566_v0 = vcombine.high %v1154_v54, %v1158_v56  ;;  %v1162_v4 = vld [vmem:[%s19698_s1 + $0x2340] sm:$0xff] }
 0x20c   :  { %v13536_v59 = vcombine.high %v1123_v13, %v1127_v14  ;;  %v1166_v5 = vld [vmem:[%s19698_s1 + $0x2360] sm:$0xff] }
 0x20e   :  { %9908 = vmatpush1.bf16.msra.mxu0 %v13485_v49  ;;  %10441 = vmatpush1.bf16.msra.mxu1 %v13487_v15  ;;  %v1131_v49 = vld [vmem:[%s19698_s1 + $0x2248] sm:$0xff] }
 0x20f   :  { %9909 = vmatprep.subr.bf16.mxu0 %v13494_v28  ;;  %10442 = vmatprep.subr.bf16.mxu1 %v13496_v29  ;;  %v1135_v15 = vld [vmem:[%s19698_s1 + $0x2268] sm:$0xff]  ;;  %v13533_v28 = vcombine.low %v1122_v10, %v1126_v11  ;;  %v13535_v29 = vcombine.low %v1123_v13, %v1127_v14  ;;  %v13574_v10 = vcombine.high %v1162_v4, %v1166_v5  ;;  %v1170_v13 = vld [vmem:[%s19698_s1 + $0x2380] sm:$0xff] }
 0x210   :  { %v13544_v33 = vcombine.high %v1131_v49, %v1135_v15  ;;  %v1174_v14 = vld [vmem:[%s19698_s1 + $0x23a0] sm:$0xff] }
 0x212   :  { %9910 = vmatpush1.bf16.msra.mxu0 %v13493_v37  ;;  %10443 = vmatpush1.bf16.msra.mxu1 %v13495_v38  ;;  %v1139_v37 = vld [vmem:[%s19698_s1 + $0x2288] sm:$0xff] }
 0x213   :  { %9911 = vmatprep.subr.bf16.mxu0 %v13502_v40  ;;  %10444 = vmatprep.subr.bf16.mxu1 %v13504_v41  ;;  %v1143_v38 = vld [vmem:[%s19698_s1 + $0x22a8] sm:$0xff]  ;;  %v13541_v40 = vcombine.low %v1130_v24, %v1134_v26  ;;  %v13543_v41 = vcombine.low %v1131_v49, %v1135_v15  ;;  %v13582_v24 = vcombine.high %v1170_v13, %v1174_v14  ;;  %v1178_v49 = vld [vmem:[%s19698_s1 + $0x23c0] sm:$0xff] }
 0x214   :  { %v13552_v42 = vcombine.high %v1139_v37, %v1143_v38  ;;  %v1182_v15 = vld [vmem:[%s19698_s1 + $0x23e0] sm:$0xff] }
 0x216   :  { %9912 = vmatpush1.bf16.msra.mxu0 %v13501_v47  ;;  %10445 = vmatpush1.bf16.msra.mxu1 %v13503_v48  ;;  %v1147_v47 = vld [vmem:[%s19698_s1 + $0x22c8] sm:$0xff] }
 0x217   :  { %9913 = vmatprep.subr.bf16.mxu0 %v13510_v50  ;;  %10446 = vmatprep.subr.bf16.mxu1 %v13512_v51  ;;  %v1151_v48 = vld [vmem:[%s19698_s1 + $0x22e8] sm:$0xff]  ;;  %v13549_v50 = vcombine.low %v1138_v34, %v1142_v35  ;;  %v13551_v51 = vcombine.low %v1139_v37, %v1143_v38  ;;  %v13590_v34 = vcombine.high %v1178_v49, %v1182_v15  ;;  %v1186_v37 = vld [vmem:[%s19698_s1 + $0x2400] sm:$0xff] }
 0x218   :  { %v13560_v52 = vcombine.high %v1147_v47, %v1151_v48  ;;  %v1190_v38 = vld [vmem:[%s19698_s1 + $0x2420] sm:$0xff] }
 0x21a   :  { %9914 = vmatpush1.bf16.msra.mxu0 %v13509_v60  ;;  %10447 = vmatpush1.bf16.msra.mxu1 %v13511_v61  ;;  %v1155_v60 = vld [vmem:[%s19698_s1 + $0x2308] sm:$0xff] }
 0x21b   :  { %9915 = vmatprep.subr.bf16.mxu0 %v13518_v39  ;;  %10448 = vmatprep.subr.bf16.mxu1 %v13520_v62  ;;  %v1159_v61 = vld [vmem:[%s19698_s1 + $0x2328] sm:$0xff]  ;;  %v13557_v39 = vcombine.low %v1146_v43, %v1150_v44  ;;  %v13559_v62 = vcombine.low %v1147_v47, %v1151_v48  ;;  %v13598_v43 = vcombine.high %v1186_v37, %v1190_v38  ;;  %v1194_v47 = vld [vmem:[%s19698_s1 + $0x2440] sm:$0xff] }
 0x21c   :  { %v13568_v2 = vcombine.high %v1155_v60, %v1159_v61  ;;  %v1198_v48 = vld [vmem:[%s19698_s1 + $0x2460] sm:$0xff] }
 0x21e   :  { %9916 = vmatpush1.bf16.msra.mxu0 %v13517_v23  ;;  %10449 = vmatpush1.bf16.msra.mxu1 %v13519_v6  ;;  %v1163_v23 = vld [vmem:[%s19698_s1 + $0x2348] sm:$0xff] }
 0x21f   :  { %9917 = vmatprep.subr.bf16.mxu0 %v13526_v7  ;;  %10450 = vmatprep.subr.bf16.mxu1 %v13528_v8  ;;  %v1167_v6 = vld [vmem:[%s19698_s1 + $0x2368] sm:$0xff]  ;;  %v13565_v7 = vcombine.low %v1154_v54, %v1158_v56  ;;  %v13567_v8 = vcombine.low %v1155_v60, %v1159_v61  ;;  %v13597_v54 = vcombine.low %v1186_v37, %v1190_v38  ;;  %v1202_v61 = vld [vmem:[%s19698_s1 + $0x2480] sm:$0xff] }
 0x220   :  { %v13576_v11 = vcombine.high %v1163_v23, %v1167_v6 }
 0x222   :  { %9918 = vmatpush1.bf16.msra.mxu0 %v13525_v17  ;;  %10451 = vmatpush1.bf16.msra.mxu1 %v13527_v53  ;;  %v1171_v17 = vld [vmem:[%s19698_s1 + $0x2388] sm:$0xff] }
 0x223   :  { %9919 = vmatprep.subr.bf16.mxu0 %v13534_v20  ;;  %10452 = vmatprep.subr.bf16.mxu1 %v13536_v59  ;;  %v1175_v53 = vld [vmem:[%s19698_s1 + $0x23a8] sm:$0xff]  ;;  %v13573_v20 = vcombine.low %v1162_v4, %v1166_v5  ;;  %v13575_v59 = vcombine.low %v1163_v23, %v1167_v6  ;;  %v13605_v4 = vcombine.low %v1194_v47, %v1198_v48 }
 0x224   :  { %v13584_v26 = vcombine.high %v1171_v17, %v1175_v53 }
 0x226   :  { %9920 = vmatpush1.bf16.msra.mxu0 %v13533_v28  ;;  %10453 = vmatpush1.bf16.msra.mxu1 %v13535_v29  ;;  %v1179_v28 = vld [vmem:[%s19698_s1 + $0x23c8] sm:$0xff] }
 0x227   :  { %9921 = vmatprep.subr.bf16.mxu0 %v13542_v32  ;;  %10454 = vmatprep.subr.bf16.mxu1 %v13544_v33  ;;  %v1183_v29 = vld [vmem:[%s19698_s1 + $0x23e8] sm:$0xff]  ;;  %v13581_v32 = vcombine.low %v1170_v13, %v1174_v14  ;;  %v13583_v33 = vcombine.low %v1171_v17, %v1175_v53 }
 0x228   :  { %v13592_v35 = vcombine.high %v1179_v28, %v1183_v29 }
 0x22a   :  { %9922 = vmatpush1.bf16.msra.mxu0 %v13541_v40  ;;  %10455 = vmatpush1.bf16.msra.mxu1 %v13543_v41  ;;  %v1187_v40 = vld [vmem:[%s19698_s1 + $0x2408] sm:$0xff] }
 0x22b   :  { %9923 = vmatprep.subr.bf16.mxu0 %v13550_v25  ;;  %10456 = vmatprep.subr.bf16.mxu1 %v13552_v42  ;;  %v1191_v41 = vld [vmem:[%s19698_s1 + $0x2428] sm:$0xff]  ;;  %v13589_v25 = vcombine.low %v1178_v49, %v1182_v15  ;;  %v13591_v42 = vcombine.low %v1179_v28, %v1183_v29 }
 0x22c   :  { %v13600_v44 = vcombine.high %v1187_v40, %v1191_v41  ;;  %v13599_v56 = vcombine.low %v1187_v40, %v1191_v41 }
 0x22e   :  { %9924 = vmatpush1.bf16.msra.mxu0 %v13549_v50  ;;  %10457 = vmatpush1.bf16.msra.mxu1 %v13551_v51  ;;  %v16390_v50 = vcombine.low %v16192_v3, %v16192_v3  ;;  %v1195_v51 = vld [vmem:[%s19698_s1 + $0x2448] sm:$0xff]  ;;  %v13606_v3 = vcombine.high %v1194_v47, %v1198_v48 }
 0x22f   :  { %9925 = vmatprep.subr.bf16.mxu0 %v13558_v18  ;;  %10458 = vmatprep.subr.bf16.mxu1 %v13560_v52  ;;  %v1199_v18 = vld [vmem:[%s19698_s1 + $0x2468] sm:$0xff] }
 0x230   :  { %v16401_v52 = vld [vmem:[%s19699_s0 + $0x48] sm:$0xff]  ;;  %v13608_v60 = vcombine.high %v1195_v51, %v1199_v18  ;;  %v13607_v5 = vcombine.low %v1195_v51, %v1199_v18 }
 0x232   :  { %9926 = vmatpush1.bf16.msra.mxu0 %v13557_v39  ;;  %10459 = vmatpush1.bf16.msra.mxu1 %v13559_v62  ;;  %v1206_v39 = vld [vmem:[%s19698_s1 + $0x24a0] sm:$0xff]  ;;  %v16411_v62 = vcombine.high %v16401_v52, %v16401_v52 }
 0x233   :  { %9927 = vmatprep.subr.bf16.mxu0 %v13566_v0  ;;  %10460 = vmatprep.subr.bf16.mxu1 %v13568_v2  ;;  %v1203_v0 = vld [vmem:[%s19698_s1 + $0x2488] sm:$0xff]  ;;  %v13614_v23 = vcombine.high %v1202_v61, %v1206_v39  ;;  %v13613_v13 = vcombine.low %v1202_v61, %v1206_v39 }
 0x234   :  { %v1207_v2 = vld [vmem:[%s19698_s1 + $0x24a8] sm:$0xff] }
 0x235   :  { %v13616_v6 = vcombine.high %v1203_v0, %v1207_v2  ;;  %v13615_v14 = vcombine.low %v1203_v0, %v1207_v2 }
 0x236   :  { %9928 = vmatpush1.bf16.msra.mxu0 %v13565_v7  ;;  %10461 = vmatpush1.bf16.msra.mxu1 %v13567_v8  ;;  %v1210_v7 = vld [vmem:[%s19698_s1 + $0x24c0] sm:$0xff] }
 0x237   :  { %9929 = vmatprep.subr.bf16.mxu0 %v13574_v10  ;;  %10462 = vmatprep.subr.bf16.mxu1 %v13576_v11  ;;  %v1214_v8 = vld [vmem:[%s19698_s1 + $0x24e0] sm:$0xff]  ;;  %v1211_v10 = vld [vmem:[%s19698_s1 + $0x24c8] sm:$0xff] }
 0x238   :  { %v1215_v11 = vld [vmem:[%s19698_s1 + $0x24e8] sm:$0xff]  ;;  %v13622_v17 = vcombine.high %v1210_v7, %v1214_v8  ;;  %v13621_v49 = vcombine.low %v1210_v7, %v1214_v8 }
 0x239   :  { %v13624_v53 = vcombine.high %v1211_v10, %v1215_v11  ;;  %v13623_v15 = vcombine.low %v1211_v10, %v1215_v11 }
 0x23a   :  { %9930 = vmatpush1.bf16.msra.mxu0 %v13573_v20  ;;  %10463 = vmatpush1.bf16.msra.mxu1 %v13575_v59  ;;  %v1218_v20 = vld [vmem:[%s19698_s1 + $0x2500] sm:$0xff] }
 0x23b   :  { %9931 = vmatprep.subr.bf16.mxu0 %v13582_v24  ;;  %10464 = vmatprep.subr.bf16.mxu1 %v13584_v26  ;;  %v1222_v59 = vld [vmem:[%s19698_s1 + $0x2520] sm:$0xff]  ;;  %v1219_v24 = vld [vmem:[%s19698_s1 + $0x2508] sm:$0xff] }
 0x23c   :  { %v1223_v26 = vld [vmem:[%s19698_s1 + $0x2528] sm:$0xff]  ;;  %v13630_v28 = vcombine.high %v1218_v20, %v1222_v59  ;;  %v13629_v37 = vcombine.low %v1218_v20, %v1222_v59 }
 0x23d   :  { %v13632_v29 = vcombine.high %v1219_v24, %v1223_v26  ;;  %v13631_v38 = vcombine.low %v1219_v24, %v1223_v26 }
 0x23e   :  { %9932 = vmatpush1.bf16.msra.mxu0 %v13581_v32  ;;  %10465 = vmatpush1.bf16.msra.mxu1 %v13583_v33  ;;  %v1226_v32 = vld [vmem:[%s19698_s1 + $0x2540] sm:$0xff] }
 0x23f   :  { %9933 = vmatprep.subr.bf16.mxu0 %v13590_v34  ;;  %10466 = vmatprep.subr.bf16.mxu1 %v13592_v35  ;;  %v1230_v33 = vld [vmem:[%s19698_s1 + $0x2560] sm:$0xff]  ;;  %v1227_v34 = vld [vmem:[%s19698_s1 + $0x2548] sm:$0xff] }
 0x240   :  { %v1231_v35 = vld [vmem:[%s19698_s1 + $0x2568] sm:$0xff]  ;;  %v13638_v40 = vcombine.high %v1226_v32, %v1230_v33  ;;  %v13637_v47 = vcombine.low %v1226_v32, %v1230_v33 }
 0x241   :  { %v13640_v41 = vcombine.high %v1227_v34, %v1231_v35  ;;  %v13639_v48 = vcombine.low %v1227_v34, %v1231_v35 }
 0x242   :  { %9934 = vmatpush1.bf16.msra.mxu0 %v13589_v25  ;;  %10467 = vmatpush1.bf16.msra.mxu1 %v13591_v42  ;;  %v1234_v25 = vld [vmem:[%s19698_s1 + $0x2580] sm:$0xff] }
 0x243   :  { %9944 = vmatprep.subr.bf16.mxu0 %v13598_v43  ;;  %10477 = vmatprep.subr.bf16.mxu1 %v13600_v44  ;;  %v1238_v42 = vld [vmem:[%s19698_s1 + $0x25a0] sm:$0xff]  ;;  %v1235_v43 = vld [vmem:[%s19698_s1 + $0x2588] sm:$0xff] }
 0x244   :  { %v1239_v44 = vld [vmem:[%s19698_s1 + $0x25a8] sm:$0xff]  ;;  %v13646_v51 = vcombine.high %v1234_v25, %v1238_v42  ;;  %v13645_v61 = vcombine.low %v1234_v25, %v1238_v42 }
 0x245   :  { %9936 = vmatmul.mubr.bf16.vlgmr.msra.gmra.mrb[0].mxu0 %v16390_v50  ;;  %10469 = vmatmul.mubr.bf16.vlgmr.msra.gmra.mrb[0].mxu1 %v16390_v50  ;;  %v13648_v18 = vcombine.high %v1235_v43, %v1239_v44  ;;  %v13647_v39 = vcombine.low %v1235_v43, %v1239_v44 }
 0x246   :  { %9945 = vmatpush1.bf16.msra.mxu0 %v13597_v54  ;;  %10478 = vmatpush1.bf16.msra.mxu1 %v13599_v56  ;;  %v1242_v54 = vld [vmem:[%s19698_s1 + $0x25c0] sm:$0xff] }
 0x247   :  { %9946 = vmatprep.subr.bf16.mxu0 %v13606_v3  ;;  %10479 = vmatprep.subr.bf16.mxu1 %v13608_v60  ;;  %v1246_v56 = vld [vmem:[%s19698_s1 + $0x25e0] sm:$0xff]  ;;  %v1243_v3 = vld [vmem:[%s19698_s1 + $0x25c8] sm:$0xff] }
 0x248   :  { %9976 = vmatprep.mubr.bf16.mxu0 %v16411_v62  ;;  %10509 = vmatprep.mubr.bf16.mxu1 %v16411_v62  ;;  %v1247_v60 = vld [vmem:[%s19698_s1 + $0x25e8] sm:$0xff]  ;;  %v13654_v0 = vcombine.high %v1242_v54, %v1246_v56  ;;  %v13653_v7 = vcombine.low %v1242_v54, %v1246_v56 }
 0x249   :  { %v13656_v2 = vcombine.high %v1243_v3, %v1247_v60  ;;  %v13655_v8 = vcombine.low %v1243_v3, %v1247_v60 }
 0x24a   :  { %9947 = vmatpush1.bf16.msra.mxu0 %v13605_v4  ;;  %10480 = vmatpush1.bf16.msra.mxu1 %v13607_v5  ;;  %v1250_v4 = vld [vmem:[%s19698_s1 + $0x2600] sm:$0xff] }
 0x24b   :  { %9948 = vmatprep.subr.bf16.mxu0 %v13614_v23  ;;  %10481 = vmatprep.subr.bf16.mxu1 %v13616_v6  ;;  %v1254_v5 = vld [vmem:[%s19698_s1 + $0x2620] sm:$0xff]  ;;  %v1251_v23 = vld [vmem:[%s19698_s1 + $0x2608] sm:$0xff] }
 0x24c   :  { %v1255_v6 = vld [vmem:[%s19698_s1 + $0x2628] sm:$0xff]  ;;  %v13662_v10 = vcombine.high %v1250_v4, %v1254_v5  ;;  %v13661_v20 = vcombine.low %v1250_v4, %v1254_v5 }
 0x24d   :  { %v13664_v11 = vcombine.high %v1251_v23, %v1255_v6  ;;  %v13663_v59 = vcombine.low %v1251_v23, %v1255_v6 }
 0x24e   :  { %9949 = vmatpush1.bf16.msra.mxu0 %v13613_v13  ;;  %10482 = vmatpush1.bf16.msra.mxu1 %v13615_v14  ;;  %v1258_v13 = vld [vmem:[%s19698_s1 + $0x2640] sm:$0xff] }
 0x24f   :  { %9950 = vmatprep.subr.bf16.mxu0 %v13622_v17  ;;  %10483 = vmatprep.subr.bf16.mxu1 %v13624_v53  ;;  %v1262_v14 = vld [vmem:[%s19698_s1 + $0x2660] sm:$0xff]  ;;  %v1259_v17 = vld [vmem:[%s19698_s1 + $0x2648] sm:$0xff] }
 0x250   :  { %v1263_v53 = vld [vmem:[%s19698_s1 + $0x2668] sm:$0xff]  ;;  %v13670_v24 = vcombine.high %v1258_v13, %v1262_v14  ;;  %v13669_v32 = vcombine.low %v1258_v13, %v1262_v14 }
 0x251   :  { %v13672_v26 = vcombine.high %v1259_v17, %v1263_v53  ;;  %v13671_v33 = vcombine.low %v1259_v17, %v1263_v53 }
 0x252   :  { %9951 = vmatpush1.bf16.msra.mxu0 %v13621_v49  ;;  %10484 = vmatpush1.bf16.msra.mxu1 %v13623_v15  ;;  %v1266_v49 = vld [vmem:[%s19698_s1 + $0x2680] sm:$0xff] }
 0x253   :  { %9952 = vmatprep.subr.bf16.mxu0 %v13630_v28  ;;  %10485 = vmatprep.subr.bf16.mxu1 %v13632_v29  ;;  %v1270_v15 = vld [vmem:[%s19698_s1 + $0x26a0] sm:$0xff]  ;;  %v1267_v28 = vld [vmem:[%s19698_s1 + $0x2688] sm:$0xff] }
 0x254   :  { %v1271_v29 = vld [vmem:[%s19698_s1 + $0x26a8] sm:$0xff]  ;;  %v13678_v34 = vcombine.high %v1266_v49, %v1270_v15  ;;  %v13677_v25 = vcombine.low %v1266_v49, %v1270_v15 }
 0x255   :  { %v13680_v35 = vcombine.high %v1267_v28, %v1271_v29  ;;  %v13679_v42 = vcombine.low %v1267_v28, %v1271_v29 }
 0x256   :  { %9953 = vmatpush1.bf16.msra.mxu0 %v13629_v37  ;;  %10486 = vmatpush1.bf16.msra.mxu1 %v13631_v38  ;;  %v1274_v37 = vld [vmem:[%s19698_s1 + $0x26c0] sm:$0xff] }
 0x257   :  { %9954 = vmatprep.subr.bf16.mxu0 %v13638_v40  ;;  %10487 = vmatprep.subr.bf16.mxu1 %v13640_v41  ;;  %v1278_v38 = vld [vmem:[%s19698_s1 + $0x26e0] sm:$0xff]  ;;  %v1275_v40 = vld [vmem:[%s19698_s1 + $0x26c8] sm:$0xff] }
 0x258   :  { %v1279_v41 = vld [vmem:[%s19698_s1 + $0x26e8] sm:$0xff]  ;;  %v13686_v43 = vcombine.high %v1274_v37, %v1278_v38  ;;  %v13685_v54 = vcombine.low %v1274_v37, %v1278_v38 }
 0x259   :  { %v13688_v44 = vcombine.high %v1275_v40, %v1279_v41  ;;  %v13687_v56 = vcombine.low %v1275_v40, %v1279_v41 }
 0x25a   :  { %9955 = vmatpush1.bf16.msra.mxu0 %v13637_v47  ;;  %10488 = vmatpush1.bf16.msra.mxu1 %v13639_v48  ;;  %v1282_v47 = vld [vmem:[%s19698_s1 + $0x2700] sm:$0xff] }
 0x25b   :  { %9956 = vmatprep.subr.bf16.mxu0 %v13646_v51  ;;  %10489 = vmatprep.subr.bf16.mxu1 %v13648_v18  ;;  %v1286_v48 = vld [vmem:[%s19698_s1 + $0x2720] sm:$0xff]  ;;  %v1283_v51 = vld [vmem:[%s19698_s1 + $0x2708] sm:$0xff] }
 0x25c   :  { %v1287_v18 = vld [vmem:[%s19698_s1 + $0x2728] sm:$0xff]  ;;  %v13694_v3 = vcombine.high %v1282_v47, %v1286_v48  ;;  %v13693_v4 = vcombine.low %v1282_v47, %v1286_v48  ;;  %v16610_v48 = vld [vmem:[%s19699_s0 + $0x50] sm:$0xff] }
 0x25d   :  { %v13696_v60 = vcombine.high %v1283_v51, %v1287_v18  ;;  %v13695_v5 = vcombine.low %v1283_v51, %v1287_v18  ;;  %v1327_v47 = vld [vmem:[%s19698_s1 + $0x2868] sm:$0xff] }
 0x25e   :  { %9957 = vmatpush1.bf16.msra.mxu0 %v13645_v61  ;;  %10490 = vmatpush1.bf16.msra.mxu1 %v13647_v39  ;;  %v1290_v61 = vld [vmem:[%s19698_s1 + $0x2740] sm:$0xff] }
 0x25f   :  { %9958 = vmatprep.subr.bf16.mxu0 %v13654_v0  ;;  %10491 = vmatprep.subr.bf16.mxu1 %v13656_v2  ;;  %v1294_v39 = vld [vmem:[%s19698_s1 + $0x2760] sm:$0xff]  ;;  %v1291_v0 = vld [vmem:[%s19698_s1 + $0x2748] sm:$0xff] }
 0x260   :  { %v1295_v2 = vld [vmem:[%s19698_s1 + $0x2768] sm:$0xff]  ;;  %v13702_v23 = vcombine.high %v1290_v61, %v1294_v39  ;;  %v13701_v13 = vcombine.low %v1290_v61, %v1294_v39 }
 0x261   :  { %v13704_v6 = vcombine.high %v1291_v0, %v1295_v2  ;;  %v13703_v14 = vcombine.low %v1291_v0, %v1295_v2  ;;  %v1331_v61 = vld [vmem:[%s19698_s1 + $0x2888] sm:$0xff] }
 0x262   :  { %9959 = vmatpush1.bf16.msra.mxu0 %v13653_v7  ;;  %10492 = vmatpush1.bf16.msra.mxu1 %v13655_v8  ;;  %v1298_v7 = vld [vmem:[%s19698_s1 + $0x2780] sm:$0xff]  ;;  %v1335_v39 = vld [vmem:[%s19698_s1 + $0x28a8] sm:$0xff] }
 0x263   :  { %9960 = vmatprep.subr.bf16.mxu0 %v13662_v10  ;;  %10493 = vmatprep.subr.bf16.mxu1 %v13664_v11  ;;  %v1302_v8 = vld [vmem:[%s19698_s1 + $0x27a0] sm:$0xff]  ;;  %v1299_v10 = vld [vmem:[%s19698_s1 + $0x2788] sm:$0xff] }
 0x264   :  { %v1303_v11 = vld [vmem:[%s19698_s1 + $0x27a8] sm:$0xff]  ;;  %v13710_v17 = vcombine.high %v1298_v7, %v1302_v8  ;;  %v13709_v49 = vcombine.low %v1298_v7, %v1302_v8 }
 0x265   :  { %v13712_v53 = vcombine.high %v1299_v10, %v1303_v11  ;;  %v13711_v15 = vcombine.low %v1299_v10, %v1303_v11  ;;  %v1339_v7 = vld [vmem:[%s19698_s1 + $0x28c8] sm:$0xff]  ;;  %v13743_v11 = vcombine.low %v1331_v61, %v1335_v39 }
 0x266   :  { %9961 = vmatpush1.bf16.msra.mxu0 %v13661_v20  ;;  %10494 = vmatpush1.bf16.msra.mxu1 %v13663_v59  ;;  %v1306_v20 = vld [vmem:[%s19698_s1 + $0x27c0] sm:$0xff]  ;;  %v1343_v8 = vld [vmem:[%s19698_s1 + $0x28e8] sm:$0xff] }
 0x267   :  { %9962 = vmatprep.subr.bf16.mxu0 %v13670_v24  ;;  %10495 = vmatprep.subr.bf16.mxu1 %v13672_v26  ;;  %v1310_v59 = vld [vmem:[%s19698_s1 + $0x27e0] sm:$0xff]  ;;  %v1307_v24 = vld [vmem:[%s19698_s1 + $0x27c8] sm:$0xff] }
 0x268   :  { %v1311_v26 = vld [vmem:[%s19698_s1 + $0x27e8] sm:$0xff]  ;;  %v13718_v28 = vcombine.high %v1306_v20, %v1310_v59  ;;  %v13717_v37 = vcombine.low %v1306_v20, %v1310_v59 }
 0x269   :  { %v13720_v29 = vcombine.high %v1307_v24, %v1311_v26  ;;  %v13719_v38 = vcombine.low %v1307_v24, %v1311_v26  ;;  %v1347_v20 = vld [vmem:[%s19698_s1 + $0x2908] sm:$0xff]  ;;  %v13751_v26 = vcombine.low %v1339_v7, %v1343_v8 }
 0x26a   :  { %9963 = vmatpush1.bf16.msra.mxu0 %v13669_v32  ;;  %10496 = vmatpush1.bf16.msra.mxu1 %v13671_v33  ;;  %v1314_v32 = vld [vmem:[%s19698_s1 + $0x2800] sm:$0xff]  ;;  %v1351_v59 = vld [vmem:[%s19698_s1 + $0x2928] sm:$0xff] }
 0x26b   :  { %9964 = vmatprep.subr.bf16.mxu0 %v13678_v34  ;;  %10497 = vmatprep.subr.bf16.mxu1 %v13680_v35  ;;  %v1318_v33 = vld [vmem:[%s19698_s1 + $0x2820] sm:$0xff]  ;;  %v1315_v34 = vld [vmem:[%s19698_s1 + $0x2808] sm:$0xff] }
 0x26c   :  { %v1319_v35 = vld [vmem:[%s19698_s1 + $0x2828] sm:$0xff]  ;;  %v13726_v40 = vcombine.high %v1314_v32, %v1318_v33  ;;  %v13725_v51 = vcombine.low %v1314_v32, %v1318_v33 }
 0x26d   :  { %v13728_v41 = vcombine.high %v1315_v34, %v1319_v35  ;;  %v13727_v18 = vcombine.low %v1315_v34, %v1319_v35  ;;  %v1355_v32 = vld [vmem:[%s19698_s1 + $0x2948] sm:$0xff]  ;;  %v13759_v35 = vcombine.low %v1347_v20, %v1351_v59 }
 0x26e   :  { %9965 = vmatpush1.bf16.msra.mxu0 %v13677_v25  ;;  %10498 = vmatpush1.bf16.msra.mxu1 %v13679_v42  ;;  %v1322_v25 = vld [vmem:[%s19698_s1 + $0x2840] sm:$0xff]  ;;  %v1359_v33 = vld [vmem:[%s19698_s1 + $0x2968] sm:$0xff] }
 0x26f   :  { %9966 = vmatprep.subr.bf16.mxu0 %v13686_v43  ;;  %10499 = vmatprep.subr.bf16.mxu1 %v13688_v44  ;;  %v1326_v42 = vld [vmem:[%s19698_s1 + $0x2860] sm:$0xff]  ;;  %v16599_v43 = vcombine.low %v16401_v52, %v16401_v52  ;;  %v1323_v44 = vld [vmem:[%s19698_s1 + $0x2848] sm:$0xff] }
 0x270   :  { %v13734_v52 = vcombine.high %v1322_v25, %v1326_v42  ;;  %v13733_v0 = vcombine.low %v1322_v25, %v1326_v42  ;;  %v13735_v2 = vcombine.low %v1323_v44, %v1327_v47  ;;  %v1363_v25 = vld [vmem:[%s19698_s1 + $0x2988] sm:$0xff] }
 0x271   :  { %v1367_v42 = vld [vmem:[%s19698_s1 + $0x29a8] sm:$0xff] }
 0x272   :  { %9967 = vmatpush1.bf16.msra.mxu0 %v13685_v54  ;;  %10500 = vmatpush1.bf16.msra.mxu1 %v13687_v56  ;;  %v13736_v54 = vcombine.high %v1323_v44, %v1327_v47  ;;  %v1330_v56 = vld [vmem:[%s19698_s1 + $0x2880] sm:$0xff]  ;;  %v13767_v47 = vcombine.low %v1355_v32, %v1359_v33 }
 0x273   :  { %9968 = vmatprep.subr.bf16.mxu0 %v13694_v3  ;;  %10501 = vmatprep.subr.bf16.mxu1 %v13696_v60  ;;  %v1334_v3 = vld [vmem:[%s19698_s1 + $0x28a0] sm:$0xff]  ;;  %v16620_v60 = vcombine.high %v16610_v48, %v16610_v48 }
 0x274   :  { %v13741_v10 = vcombine.low %v1330_v56, %v1334_v3 }
 0x276   :  { %9969 = vmatpush1.bf16.msra.mxu0 %v13693_v4  ;;  %10502 = vmatpush1.bf16.msra.mxu1 %v13695_v5  ;;  %v13742_v4 = vcombine.high %v1330_v56, %v1334_v3  ;;  %v13744_v5 = vcombine.high %v1331_v61, %v1335_v39  ;;  %v1371_v56 = vld [vmem:[%s19698_s1 + $0x29c8] sm:$0xff]  ;;  %v13775_v39 = vcombine.low %v1363_v25, %v1367_v42 }
 0x277   :  { %9970 = vmatprep.subr.bf16.mxu0 %v13702_v23  ;;  %10503 = vmatprep.subr.bf16.mxu1 %v13704_v6  ;;  %v1338_v23 = vld [vmem:[%s19698_s1 + $0x28c0] sm:$0xff]  ;;  %v1375_v3 = vld [vmem:[%s19698_s1 + $0x29e8] sm:$0xff] }
 0x278   :  { %v1342_v6 = vld [vmem:[%s19698_s1 + $0x28e0] sm:$0xff] }
 0x279   :  { %v13749_v24 = vcombine.low %v1338_v23, %v1342_v6 }
 0x27a   :  { %9971 = vmatpush1.bf16.msra.mxu0 %v13701_v13  ;;  %10504 = vmatpush1.bf16.msra.mxu1 %v13703_v14  ;;  %v13750_v13 = vcombine.high %v1338_v23, %v1342_v6  ;;  %v13752_v14 = vcombine.high %v1339_v7, %v1343_v8  ;;  %v1379_v23 = vld [vmem:[%s19698_s1 + $0x2a08] sm:$0xff]  ;;  %v13783_v8 = vcombine.low %v1371_v56, %v1375_v3 }
 0x27b   :  { %9972 = vmatprep.subr.bf16.mxu0 %v13710_v17  ;;  %10505 = vmatprep.subr.bf16.mxu1 %v13712_v53  ;;  %v1346_v17 = vld [vmem:[%s19698_s1 + $0x2900] sm:$0xff]  ;;  %v1383_v6 = vld [vmem:[%s19698_s1 + $0x2a28] sm:$0xff] }
 0x27c   :  { %v1350_v53 = vld [vmem:[%s19698_s1 + $0x2920] sm:$0xff] }
 0x27d   :  { %v13757_v34 = vcombine.low %v1346_v17, %v1350_v53 }
 0x27e   :  { %9973 = vmatpush1.bf16.msra.mxu0 %v13709_v49  ;;  %10506 = vmatpush1.bf16.msra.mxu1 %v13711_v15  ;;  %v13758_v49 = vcombine.high %v1346_v17, %v1350_v53  ;;  %v13760_v15 = vcombine.high %v1347_v20, %v1351_v59  ;;  %v1387_v17 = vld [vmem:[%s19698_s1 + $0x2a48] sm:$0xff]  ;;  %v13791_v59 = vcombine.low %v1379_v23, %v1383_v6 }
 0x27f   :  { %9974 = vmatprep.subr.bf16.mxu0 %v13718_v28  ;;  %10507 = vmatprep.subr.bf16.mxu1 %v13720_v29  ;;  %v1354_v28 = vld [vmem:[%s19698_s1 + $0x2940] sm:$0xff]  ;;  %v1391_v53 = vld [vmem:[%s19698_s1 + $0x2a68] sm:$0xff] }
 0x280   :  { %v1358_v29 = vld [vmem:[%s19698_s1 + $0x2960] sm:$0xff] }
 0x281   :  { %v13765_v44 = vcombine.low %v1354_v28, %v1358_v29 }
 0x282   :  { %9975 = vmatpush1.bf16.msra.mxu0 %v13717_v37  ;;  %10508 = vmatpush1.bf16.msra.mxu1 %v13719_v38  ;;  %v13766_v37 = vcombine.high %v1354_v28, %v1358_v29  ;;  %v13768_v38 = vcombine.high %v1355_v32, %v1359_v33  ;;  %v1395_v28 = vld [vmem:[%s19698_s1 + $0x2a88] sm:$0xff]  ;;  %v13799_v33 = vcombine.low %v1387_v17, %v1391_v53 }
 0x283   :  { %9985 = vmatprep.subr.bf16.mxu0 %v13726_v40  ;;  %10518 = vmatprep.subr.bf16.mxu1 %v13728_v41  ;;  %v1362_v40 = vld [vmem:[%s19698_s1 + $0x2980] sm:$0xff]  ;;  %v1399_v29 = vld [vmem:[%s19698_s1 + $0x2aa8] sm:$0xff] }
 0x284   :  { %v1366_v41 = vld [vmem:[%s19698_s1 + $0x29a0] sm:$0xff] }
 0x285   :  { %9977 = vmatmul.mubr.bf16.vlgmr.msra.gmra.mrb[0].mxu0 %v16599_v43  ;;  %10510 = vmatmul.mubr.bf16.vlgmr.msra.gmra.mrb[0].mxu1 %v16599_v43  ;;  %v13773_v61 = vcombine.low %v1362_v40, %v1366_v41 }
 0x286   :  { %9986 = vmatpush1.bf16.msra.mxu0 %v13725_v51  ;;  %10519 = vmatpush1.bf16.msra.mxu1 %v13727_v18  ;;  %v13774_v51 = vcombine.high %v1362_v40, %v1366_v41  ;;  %v13776_v18 = vcombine.high %v1363_v25, %v1367_v42  ;;  %v1403_v40 = vld [vmem:[%s19698_s1 + $0x2ac8] sm:$0xff]  ;;  %v13807_v42 = vcombine.low %v1395_v28, %v1399_v29 }
 0x287   :  { %9987 = vmatprep.subr.bf16.mxu0 %v13734_v52  ;;  %10520 = vmatprep.subr.bf16.mxu1 %v13736_v54  ;;  %v1370_v52 = vld [vmem:[%s19698_s1 + $0x29c0] sm:$0xff]  ;;  %v1407_v41 = vld [vmem:[%s19698_s1 + $0x2ae8] sm:$0xff] }
 0x288   :  { %10017 = vmatprep.mubr.bf16.mxu0 %v16620_v60  ;;  %10550 = vmatprep.mubr.bf16.mxu1 %v16620_v60  ;;  %v1374_v54 = vld [vmem:[%s19698_s1 + $0x29e0] sm:$0xff] }
 0x289   :  { %v13781_v7 = vcombine.low %v1370_v52, %v1374_v54 }
 0x28a   :  { %9988 = vmatpush1.bf16.msra.mxu0 %v13733_v0  ;;  %10521 = vmatpush1.bf16.msra.mxu1 %v13735_v2  ;;  %v13782_v0 = vcombine.high %v1370_v52, %v1374_v54  ;;  %v13784_v2 = vcombine.high %v1371_v56, %v1375_v3  ;;  %v1411_v52 = vld [vmem:[%s19698_s1 + $0x2b08] sm:$0xff]  ;;  %v13815_v3 = vcombine.low %v1403_v40, %v1407_v41 }
 0x28b   :  { %9989 = vmatprep.subr.bf16.mxu0 %v13742_v4  ;;  %10522 = vmatprep.subr.bf16.mxu1 %v13744_v5  ;;  %v1378_v4 = vld [vmem:[%s19698_s1 + $0x2a00] sm:$0xff]  ;;  %v1415_v54 = vld [vmem:[%s19698_s1 + $0x2b28] sm:$0xff] }
 0x28c   :  { %v1382_v5 = vld [vmem:[%s19698_s1 + $0x2a20] sm:$0xff] }
 0x28d   :  { %v13789_v20 = vcombine.low %v1378_v4, %v1382_v5 }
 0x28e   :  { %9990 = vmatpush1.bf16.msra.mxu0 %v13741_v10  ;;  %10523 = vmatpush1.bf16.msra.mxu1 %v13743_v11  ;;  %v13790_v10 = vcombine.high %v1378_v4, %v1382_v5  ;;  %v13792_v11 = vcombine.high %v1379_v23, %v1383_v6  ;;  %v1419_v4 = vld [vmem:[%s19698_s1 + $0x2b48] sm:$0xff]  ;;  %v13823_v6 = vcombine.low %v1411_v52, %v1415_v54 }
 0x28f   :  { %9991 = vmatprep.subr.bf16.mxu0 %v13750_v13  ;;  %10524 = vmatprep.subr.bf16.mxu1 %v13752_v14  ;;  %v1386_v13 = vld [vmem:[%s19698_s1 + $0x2a40] sm:$0xff]  ;;  %v1423_v5 = vld [vmem:[%s19698_s1 + $0x2b68] sm:$0xff] }
 0x290   :  { %v1390_v14 = vld [vmem:[%s19698_s1 + $0x2a60] sm:$0xff] }
 0x291   :  { %v13797_v32 = vcombine.low %v1386_v13, %v1390_v14 }
 0x292   :  { %9992 = vmatpush1.bf16.msra.mxu0 %v13749_v24  ;;  %10525 = vmatpush1.bf16.msra.mxu1 %v13751_v26  ;;  %v13798_v24 = vcombine.high %v1386_v13, %v1390_v14  ;;  %v13800_v26 = vcombine.high %v1387_v17, %v1391_v53  ;;  %v1427_v13 = vld [vmem:[%s19698_s1 + $0x2b88] sm:$0xff]  ;;  %v13831_v53 = vcombine.low %v1419_v4, %v1423_v5 }
 0x293   :  { %9993 = vmatprep.subr.bf16.mxu0 %v13758_v49  ;;  %10526 = vmatprep.subr.bf16.mxu1 %v13760_v15  ;;  %v1394_v49 = vld [vmem:[%s19698_s1 + $0x2a80] sm:$0xff]  ;;  %v1431_v14 = vld [vmem:[%s19698_s1 + $0x2ba8] sm:$0xff] }
 0x294   :  { %v1398_v15 = vld [vmem:[%s19698_s1 + $0x2aa0] sm:$0xff] }
 0x295   :  { %v13805_v25 = vcombine.low %v1394_v49, %v1398_v15 }
 0x296   :  { %9994 = vmatpush1.bf16.msra.mxu0 %v13757_v34  ;;  %10527 = vmatpush1.bf16.msra.mxu1 %v13759_v35  ;;  %v13806_v34 = vcombine.high %v1394_v49, %v1398_v15  ;;  %v13808_v35 = vcombine.high %v1395_v28, %v1399_v29  ;;  %v1435_v49 = vld [vmem:[%s19698_s1 + $0x2bc8] sm:$0xff]  ;;  %v13839_v29 = vcombine.low %v1427_v13, %v1431_v14 }
 0x297   :  { %9995 = vmatprep.subr.bf16.mxu0 %v13766_v37  ;;  %10528 = vmatprep.subr.bf16.mxu1 %v13768_v38  ;;  %v1402_v37 = vld [vmem:[%s19698_s1 + $0x2ac0] sm:$0xff]  ;;  %v1439_v15 = vld [vmem:[%s19698_s1 + $0x2be8] sm:$0xff] }
 0x298   :  { %v1406_v38 = vld [vmem:[%s19698_s1 + $0x2ae0] sm:$0xff] }
 0x299   :  { %v13813_v56 = vcombine.low %v1402_v37, %v1406_v38 }
 0x29a   :  { %9996 = vmatpush1.bf16.msra.mxu0 %v13765_v44  ;;  %10529 = vmatpush1.bf16.msra.mxu1 %v13767_v47  ;;  %v13814_v44 = vcombine.high %v1402_v37, %v1406_v38  ;;  %v13816_v47 = vcombine.high %v1403_v40, %v1407_v41  ;;  %v1443_v37 = vld [vmem:[%s19698_s1 + $0x2c08] sm:$0xff]  ;;  %v13847_v41 = vcombine.low %v1435_v49, %v1439_v15 }
 0x29b   :  { %9997 = vmatprep.subr.bf16.mxu0 %v13774_v51  ;;  %10530 = vmatprep.subr.bf16.mxu1 %v13776_v18  ;;  %v1410_v51 = vld [vmem:[%s19698_s1 + $0x2b00] sm:$0xff]  ;;  %v1447_v38 = vld [vmem:[%s19698_s1 + $0x2c28] sm:$0xff] }
 0x29c   :  { %v1414_v18 = vld [vmem:[%s19698_s1 + $0x2b20] sm:$0xff] }
 0x29d   :  { %v13821_v23 = vcombine.low %v1410_v51, %v1414_v18 }
 0x29e   :  { %9998 = vmatpush1.bf16.msra.mxu0 %v13773_v61  ;;  %10531 = vmatpush1.bf16.msra.mxu1 %v13775_v39  ;;  %v13822_v61 = vcombine.high %v1410_v51, %v1414_v18  ;;  %v13824_v39 = vcombine.high %v1411_v52, %v1415_v54  ;;  %v16808_v51 = vcombine.low %v16610_v48, %v16610_v48  ;;  %v1451_v18 = vld [vmem:[%s19698_s1 + $0x2c48] sm:$0xff]  ;;  %v16819_v54 = vld [vmem:[%s19699_s0 + $0x58] sm:$0xff] }
 0x29f   :  { %9999 = vmatprep.subr.bf16.mxu0 %v13782_v0  ;;  %10532 = vmatprep.subr.bf16.mxu1 %v13784_v2  ;;  %v1418_v0 = vld [vmem:[%s19698_s1 + $0x2b40] sm:$0xff]  ;;  %v1455_v52 = vld [vmem:[%s19698_s1 + $0x2c68] sm:$0xff] }
 0x2a0   :  { %v1422_v2 = vld [vmem:[%s19698_s1 + $0x2b60] sm:$0xff] }
 0x2a1   :  { %v13829_v17 = vcombine.low %v1418_v0, %v1422_v2 }
 0x2a2   :  { %10000 = vmatpush1.bf16.msra.mxu0 %v13781_v7  ;;  %10533 = vmatpush1.bf16.msra.mxu1 %v13783_v8  ;;  %v13830_v7 = vcombine.high %v1418_v0, %v1422_v2  ;;  %v13832_v8 = vcombine.high %v1419_v4, %v1423_v5  ;;  %v1462_v0 = vld [vmem:[%s19698_s1 + $0x2ca0] sm:$0xff]  ;;  %v16829_v2 = vcombine.high %v16819_v54, %v16819_v54  ;;  %v1459_v4 = vld [vmem:[%s19698_s1 + $0x2c88] sm:$0xff] }
 0x2a3   :  { %10001 = vmatprep.subr.bf16.mxu0 %v13790_v10  ;;  %10534 = vmatprep.subr.bf16.mxu1 %v13792_v11  ;;  %v1426_v10 = vld [vmem:[%s19698_s1 + $0x2b80] sm:$0xff]  ;;  %v1463_v5 = vld [vmem:[%s19698_s1 + $0x2ca8] sm:$0xff] }
 0x2a4   :  { %v1430_v11 = vld [vmem:[%s19698_s1 + $0x2ba0] sm:$0xff] }
 0x2a5   :  { %v13837_v28 = vcombine.low %v1426_v10, %v1430_v11 }
 0x2a6   :  { %10002 = vmatpush1.bf16.msra.mxu0 %v13789_v20  ;;  %10535 = vmatpush1.bf16.msra.mxu1 %v13791_v59  ;;  %v13838_v20 = vcombine.high %v1426_v10, %v1430_v11  ;;  %v13840_v59 = vcombine.high %v1427_v13, %v1431_v14  ;;  %v1466_v10 = vld [vmem:[%s19698_s1 + $0x2cc0] sm:$0xff]  ;;  %v1467_v13 = vld [vmem:[%s19698_s1 + $0x2cc8] sm:$0xff] }
 0x2a7   :  { %10003 = vmatprep.subr.bf16.mxu0 %v13798_v24  ;;  %10536 = vmatprep.subr.bf16.mxu1 %v13800_v26  ;;  %v1434_v24 = vld [vmem:[%s19698_s1 + $0x2bc0] sm:$0xff]  ;;  %v1471_v14 = vld [vmem:[%s19698_s1 + $0x2ce8] sm:$0xff] }
 0x2a8   :  { %v1438_v26 = vld [vmem:[%s19698_s1 + $0x2be0] sm:$0xff] }
 0x2a9   :  { %v13845_v40 = vcombine.low %v1434_v24, %v1438_v26  ;;  %v1470_v11 = vld [vmem:[%s19698_s1 + $0x2ce0] sm:$0xff] }
 0x2aa   :  { %10004 = vmatpush1.bf16.msra.mxu0 %v13797_v32  ;;  %10537 = vmatpush1.bf16.msra.mxu1 %v13799_v33  ;;  %v13846_v32 = vcombine.high %v1434_v24, %v1438_v26  ;;  %v13848_v33 = vcombine.high %v1435_v49, %v1439_v15  ;;  %v1474_v24 = vld [vmem:[%s19698_s1 + $0x2d00] sm:$0xff]  ;;  %v1475_v49 = vld [vmem:[%s19698_s1 + $0x2d08] sm:$0xff] }
 0x2ab   :  { %10005 = vmatprep.subr.bf16.mxu0 %v13806_v34  ;;  %10538 = vmatprep.subr.bf16.mxu1 %v13808_v35  ;;  %v1442_v34 = vld [vmem:[%s19698_s1 + $0x2c00] sm:$0xff]  ;;  %v1479_v15 = vld [vmem:[%s19698_s1 + $0x2d28] sm:$0xff] }
 0x2ac   :  { %v1446_v35 = vld [vmem:[%s19698_s1 + $0x2c20] sm:$0xff] }
 0x2ad   :  { %v1478_v26 = vld [vmem:[%s19698_s1 + $0x2d20] sm:$0xff] }
 0x2ae   :  { %10006 = vmatpush1.bf16.msra.mxu0 %v13805_v25  ;;  %10539 = vmatpush1.bf16.msra.mxu1 %v13807_v42  ;;  %v13854_v25 = vcombine.high %v1442_v34, %v1446_v35  ;;  %v13856_v42 = vcombine.high %v1443_v37, %v1447_v38 }
 0x2af   :  { %10007 = vmatprep.subr.bf16.mxu0 %v13814_v44  ;;  %10540 = vmatprep.subr.bf16.mxu1 %v13816_v47  ;;  %v1450_v44 = vld [vmem:[%s19698_s1 + $0x2c40] sm:$0xff] }
 0x2b0   :  { %v1454_v47 = vld [vmem:[%s19698_s1 + $0x2c60] sm:$0xff] }
 0x2b1   :  { %v13862_v48 = vcombine.high %v1450_v44, %v1454_v47 }
 0x2b2   :  { %10008 = vmatpush1.bf16.msra.mxu0 %v13813_v56  ;;  %10541 = vmatpush1.bf16.msra.mxu1 %v13815_v3  ;;  %v13853_v56 = vcombine.low %v1442_v34, %v1446_v35  ;;  %v13855_v3 = vcombine.low %v1443_v37, %v1447_v38  ;;  %v1482_v34 = vld [vmem:[%s19698_s1 + $0x2d40] sm:$0xff]  ;;  %v1483_v37 = vld [vmem:[%s19698_s1 + $0x2d48] sm:$0xff] }
 0x2b3   :  { %10009 = vmatprep.subr.bf16.mxu0 %v13822_v61  ;;  %10542 = vmatprep.subr.bf16.mxu1 %v13824_v39  ;;  %v13864_v61 = vcombine.high %v1451_v18, %v1455_v52  ;;  %v1458_v39 = vld [vmem:[%s19698_s1 + $0x2c80] sm:$0xff]  ;;  %v1487_v38 = vld [vmem:[%s19698_s1 + $0x2d68] sm:$0xff] }
 0x2b4   :  { %v1486_v35 = vld [vmem:[%s19698_s1 + $0x2d60] sm:$0xff] }
 0x2b6   :  { %10010 = vmatpush1.bf16.msra.mxu0 %v13821_v23  ;;  %10543 = vmatpush1.bf16.msra.mxu1 %v13823_v6  ;;  %v13861_v23 = vcombine.low %v1450_v44, %v1454_v47  ;;  %v13863_v6 = vcombine.low %v1451_v18, %v1455_v52  ;;  %v1490_v44 = vld [vmem:[%s19698_s1 + $0x2d80] sm:$0xff]  ;;  %v1491_v18 = vld [vmem:[%s19698_s1 + $0x2d88] sm:$0xff] }
 0x2b7   :  { %10011 = vmatprep.subr.bf16.mxu0 %v13830_v7  ;;  %10544 = vmatprep.subr.bf16.mxu1 %v13832_v8  ;;  %v13870_v7 = vcombine.high %v1458_v39, %v1462_v0  ;;  %v13872_v8 = vcombine.high %v1459_v4, %v1463_v5  ;;  %v1494_v47 = vld [vmem:[%s19698_s1 + $0x2da0] sm:$0xff]  ;;  %v1495_v52 = vld [vmem:[%s19698_s1 + $0x2da8] sm:$0xff] }
 0x2ba   :  { %10012 = vmatpush1.bf16.msra.mxu0 %v13829_v17  ;;  %10545 = vmatpush1.bf16.msra.mxu1 %v13831_v53  ;;  %v13869_v17 = vcombine.low %v1458_v39, %v1462_v0  ;;  %v13871_v53 = vcombine.low %v1459_v4, %v1463_v5  ;;  %v1498_v39 = vld [vmem:[%s19698_s1 + $0x2dc0] sm:$0xff]  ;;  %v1499_v4 = vld [vmem:[%s19698_s1 + $0x2dc8] sm:$0xff] }
 0x2bb   :  { %10013 = vmatprep.subr.bf16.mxu0 %v13838_v20  ;;  %10546 = vmatprep.subr.bf16.mxu1 %v13840_v59  ;;  %v13878_v20 = vcombine.high %v1466_v10, %v1470_v11  ;;  %v13880_v59 = vcombine.high %v1467_v13, %v1471_v14  ;;  %v1502_v0 = vld [vmem:[%s19698_s1 + $0x2de0] sm:$0xff]  ;;  %v1503_v5 = vld [vmem:[%s19698_s1 + $0x2de8] sm:$0xff] }
 0x2be   :  { %10014 = vmatpush1.bf16.msra.mxu0 %v13837_v28  ;;  %10547 = vmatpush1.bf16.msra.mxu1 %v13839_v29  ;;  %v13877_v28 = vcombine.low %v1466_v10, %v1470_v11  ;;  %v13879_v29 = vcombine.low %v1467_v13, %v1471_v14  ;;  %v1506_v10 = vld [vmem:[%s19698_s1 + $0x2e00] sm:$0xff]  ;;  %v1507_v13 = vld [vmem:[%s19698_s1 + $0x2e08] sm:$0xff] }
 0x2bf   :  { %10015 = vmatprep.subr.bf16.mxu0 %v13846_v32  ;;  %10548 = vmatprep.subr.bf16.mxu1 %v13848_v33  ;;  %v13886_v32 = vcombine.high %v1474_v24, %v1478_v26  ;;  %v13888_v33 = vcombine.high %v1475_v49, %v1479_v15  ;;  %v1510_v11 = vld [vmem:[%s19698_s1 + $0x2e20] sm:$0xff]  ;;  %v1511_v14 = vld [vmem:[%s19698_s1 + $0x2e28] sm:$0xff] }
 0x2c2   :  { %10016 = vmatpush1.bf16.msra.mxu0 %v13845_v40  ;;  %10549 = vmatpush1.bf16.msra.mxu1 %v13847_v41  ;;  %v13885_v40 = vcombine.low %v1474_v24, %v1478_v26  ;;  %v13887_v41 = vcombine.low %v1475_v49, %v1479_v15  ;;  %v1514_v24 = vld [vmem:[%s19698_s1 + $0x2e40] sm:$0xff]  ;;  %v1515_v49 = vld [vmem:[%s19698_s1 + $0x2e48] sm:$0xff] }
 0x2c3   :  { %10026 = vmatprep.subr.bf16.mxu0 %v13854_v25  ;;  %10559 = vmatprep.subr.bf16.mxu1 %v13856_v42  ;;  %v13894_v25 = vcombine.high %v1482_v34, %v1486_v35  ;;  %v13896_v42 = vcombine.high %v1483_v37, %v1487_v38  ;;  %v1518_v26 = vld [vmem:[%s19698_s1 + $0x2e60] sm:$0xff]  ;;  %v1519_v15 = vld [vmem:[%s19698_s1 + $0x2e68] sm:$0xff] }
 0x2c5   :  { %10018 = vmatmul.mubr.bf16.vlgmr.msra.gmra.mrb[0].mxu0 %v16808_v51  ;;  %10551 = vmatmul.mubr.bf16.vlgmr.msra.gmra.mrb[0].mxu1 %v16808_v51 }
 0x2c6   :  { %10027 = vmatpush1.bf16.msra.mxu0 %v13853_v56  ;;  %10560 = vmatpush1.bf16.msra.mxu1 %v13855_v3  ;;  %v13893_v56 = vcombine.low %v1482_v34, %v1486_v35  ;;  %v13895_v3 = vcombine.low %v1483_v37, %v1487_v38  ;;  %v1522_v34 = vld [vmem:[%s19698_s1 + $0x2e80] sm:$0xff]  ;;  %v1523_v37 = vld [vmem:[%s19698_s1 + $0x2e88] sm:$0xff] }
 0x2c7   :  { %10028 = vmatprep.subr.bf16.mxu0 %v13862_v48  ;;  %10561 = vmatprep.subr.bf16.mxu1 %v13864_v61  ;;  %v13902_v48 = vcombine.high %v1490_v44, %v1494_v47  ;;  %v13904_v61 = vcombine.high %v1491_v18, %v1495_v52  ;;  %v1526_v35 = vld [vmem:[%s19698_s1 + $0x2ea0] sm:$0xff]  ;;  %v1527_v38 = vld [vmem:[%s19698_s1 + $0x2ea8] sm:$0xff] }
 0x2c8   :  { %10058 = vmatprep.mubr.bf16.mxu0 %v16829_v2  ;;  %10591 = vmatprep.mubr.bf16.mxu1 %v16829_v2 }
 0x2ca   :  { %10029 = vmatpush1.bf16.msra.mxu0 %v13861_v23  ;;  %10562 = vmatpush1.bf16.msra.mxu1 %v13863_v6  ;;  %v13901_v23 = vcombine.low %v1490_v44, %v1494_v47  ;;  %v13903_v6 = vcombine.low %v1491_v18, %v1495_v52  ;;  %v1530_v44 = vld [vmem:[%s19698_s1 + $0x2ec0] sm:$0xff]  ;;  %v1531_v18 = vld [vmem:[%s19698_s1 + $0x2ec8] sm:$0xff] }
 0x2cb   :  { %10030 = vmatprep.subr.bf16.mxu0 %v13870_v7  ;;  %10563 = vmatprep.subr.bf16.mxu1 %v13872_v8  ;;  %v13910_v7 = vcombine.high %v1498_v39, %v1502_v0  ;;  %v13912_v8 = vcombine.high %v1499_v4, %v1503_v5  ;;  %v1534_v47 = vld [vmem:[%s19698_s1 + $0x2ee0] sm:$0xff]  ;;  %v1535_v52 = vld [vmem:[%s19698_s1 + $0x2ee8] sm:$0xff] }
 0x2ce   :  { %10031 = vmatpush1.bf16.msra.mxu0 %v13869_v17  ;;  %10564 = vmatpush1.bf16.msra.mxu1 %v13871_v53  ;;  %v13909_v17 = vcombine.low %v1498_v39, %v1502_v0  ;;  %v13911_v53 = vcombine.low %v1499_v4, %v1503_v5  ;;  %v1538_v39 = vld [vmem:[%s19698_s1 + $0x2f00] sm:$0xff]  ;;  %v1539_v4 = vld [vmem:[%s19698_s1 + $0x2f08] sm:$0xff] }
 0x2cf   :  { %10032 = vmatprep.subr.bf16.mxu0 %v13878_v20  ;;  %10565 = vmatprep.subr.bf16.mxu1 %v13880_v59  ;;  %v13918_v20 = vcombine.high %v1506_v10, %v1510_v11  ;;  %v13920_v59 = vcombine.high %v1507_v13, %v1511_v14  ;;  %v1542_v0 = vld [vmem:[%s19698_s1 + $0x2f20] sm:$0xff]  ;;  %v1543_v5 = vld [vmem:[%s19698_s1 + $0x2f28] sm:$0xff] }
 0x2d2   :  { %10033 = vmatpush1.bf16.msra.mxu0 %v13877_v28  ;;  %10566 = vmatpush1.bf16.msra.mxu1 %v13879_v29  ;;  %v13917_v28 = vcombine.low %v1506_v10, %v1510_v11  ;;  %v13919_v29 = vcombine.low %v1507_v13, %v1511_v14  ;;  %v1546_v10 = vld [vmem:[%s19698_s1 + $0x2f40] sm:$0xff]  ;;  %v1547_v13 = vld [vmem:[%s19698_s1 + $0x2f48] sm:$0xff] }
 0x2d3   :  { %10034 = vmatprep.subr.bf16.mxu0 %v13886_v32  ;;  %10567 = vmatprep.subr.bf16.mxu1 %v13888_v33  ;;  %v13926_v32 = vcombine.high %v1514_v24, %v1518_v26  ;;  %v13928_v33 = vcombine.high %v1515_v49, %v1519_v15  ;;  %v1550_v11 = vld [vmem:[%s19698_s1 + $0x2f60] sm:$0xff]  ;;  %v1551_v14 = vld [vmem:[%s19698_s1 + $0x2f68] sm:$0xff] }
 0x2d6   :  { %10035 = vmatpush1.bf16.msra.mxu0 %v13885_v40  ;;  %10568 = vmatpush1.bf16.msra.mxu1 %v13887_v41  ;;  %v13925_v40 = vcombine.low %v1514_v24, %v1518_v26  ;;  %v13927_v41 = vcombine.low %v1515_v49, %v1519_v15  ;;  %v1554_v24 = vld [vmem:[%s19698_s1 + $0x2f80] sm:$0xff]  ;;  %v1555_v49 = vld [vmem:[%s19698_s1 + $0x2f88] sm:$0xff] }
 0x2d7   :  { %10036 = vmatprep.subr.bf16.mxu0 %v13894_v25  ;;  %10569 = vmatprep.subr.bf16.mxu1 %v13896_v42  ;;  %v13934_v25 = vcombine.high %v1522_v34, %v1526_v35  ;;  %v13936_v42 = vcombine.high %v1523_v37, %v1527_v38  ;;  %v1558_v26 = vld [vmem:[%s19698_s1 + $0x2fa0] sm:$0xff]  ;;  %v1559_v15 = vld [vmem:[%s19698_s1 + $0x2fa8] sm:$0xff] }
 0x2da   :  { %10037 = vmatpush1.bf16.msra.mxu0 %v13893_v56  ;;  %10570 = vmatpush1.bf16.msra.mxu1 %v13895_v3  ;;  %v13933_v56 = vcombine.low %v1522_v34, %v1526_v35  ;;  %v13935_v3 = vcombine.low %v1523_v37, %v1527_v38  ;;  %v1562_v34 = vld [vmem:[%s19698_s1 + $0x2fc0] sm:$0xff]  ;;  %v1563_v37 = vld [vmem:[%s19698_s1 + $0x2fc8] sm:$0xff] }
 0x2db   :  { %10038 = vmatprep.subr.bf16.mxu0 %v13902_v48  ;;  %10571 = vmatprep.subr.bf16.mxu1 %v13904_v61  ;;  %v13942_v48 = vcombine.high %v1530_v44, %v1534_v47  ;;  %v13944_v61 = vcombine.high %v1531_v18, %v1535_v52  ;;  %v1566_v35 = vld [vmem:[%s19698_s1 + $0x2fe0] sm:$0xff]  ;;  %v1567_v38 = vld [vmem:[%s19698_s1 + $0x2fe8] sm:$0xff] }
 0x2de   :  { %10039 = vmatpush1.bf16.msra.mxu0 %v13901_v23  ;;  %10572 = vmatpush1.bf16.msra.mxu1 %v13903_v6  ;;  %v13941_v23 = vcombine.low %v1530_v44, %v1534_v47  ;;  %v13943_v6 = vcombine.low %v1531_v18, %v1535_v52  ;;  %v1570_v44 = vld [vmem:[%s19698_s1 + $0x3000] sm:$0xff]  ;;  %v1571_v18 = vld [vmem:[%s19698_s1 + $0x3008] sm:$0xff] }
 0x2df   :  { %10040 = vmatprep.subr.bf16.mxu0 %v13910_v7  ;;  %10573 = vmatprep.subr.bf16.mxu1 %v13912_v8  ;;  %v13950_v7 = vcombine.high %v1538_v39, %v1542_v0  ;;  %v13952_v8 = vcombine.high %v1539_v4, %v1543_v5  ;;  %v1574_v47 = vld [vmem:[%s19698_s1 + $0x3020] sm:$0xff]  ;;  %v1575_v52 = vld [vmem:[%s19698_s1 + $0x3028] sm:$0xff] }
 0x2e2   :  { %10041 = vmatpush1.bf16.msra.mxu0 %v13909_v17  ;;  %10574 = vmatpush1.bf16.msra.mxu1 %v13911_v53  ;;  %v13949_v17 = vcombine.low %v1538_v39, %v1542_v0  ;;  %v13951_v53 = vcombine.low %v1539_v4, %v1543_v5  ;;  %v1578_v39 = vld [vmem:[%s19698_s1 + $0x3040] sm:$0xff]  ;;  %v17017_v4 = vcombine.low %v16819_v54, %v16819_v54  ;;  %v1579_v5 = vld [vmem:[%s19698_s1 + $0x3048] sm:$0xff] }
 0x2e3   :  { %10042 = vmatprep.subr.bf16.mxu0 %v13918_v20  ;;  %10575 = vmatprep.subr.bf16.mxu1 %v13920_v59  ;;  %v13958_v20 = vcombine.high %v1546_v10, %v1550_v11  ;;  %v13960_v59 = vcombine.high %v1547_v13, %v1551_v14  ;;  %v1582_v0 = vld [vmem:[%s19698_s1 + $0x3060] sm:$0xff] }
 0x2e4   :  { %v1586_v54 = vld [vmem:[%s19698_s1 + $0x3080] sm:$0xff] }
 0x2e6   :  { %10043 = vmatpush1.bf16.msra.mxu0 %v13917_v28  ;;  %10576 = vmatpush1.bf16.msra.mxu1 %v13919_v29  ;;  %v13957_v28 = vcombine.low %v1546_v10, %v1550_v11  ;;  %v13959_v29 = vcombine.low %v1547_v13, %v1551_v14  ;;  %v1590_v11 = vld [vmem:[%s19698_s1 + $0x30a0] sm:$0xff]  ;;  %v1587_v13 = vld [vmem:[%s19698_s1 + $0x3088] sm:$0xff] }
 0x2e7   :  { %10044 = vmatprep.subr.bf16.mxu0 %v13926_v32  ;;  %10577 = vmatprep.subr.bf16.mxu1 %v13928_v33  ;;  %v13966_v32 = vcombine.high %v1554_v24, %v1558_v26  ;;  %v13968_v33 = vcombine.high %v1555_v49, %v1559_v15  ;;  %v1591_v14 = vld [vmem:[%s19698_s1 + $0x30a8] sm:$0xff] }
 0x2ea   :  { %10045 = vmatpush1.bf16.msra.mxu0 %v13925_v40  ;;  %10578 = vmatpush1.bf16.msra.mxu1 %v13927_v41  ;;  %v13965_v40 = vcombine.low %v1554_v24, %v1558_v26  ;;  %v13967_v41 = vcombine.low %v1555_v49, %v1559_v15  ;;  %v1594_v24 = vld [vmem:[%s19698_s1 + $0x30c0] sm:$0xff]  ;;  %v14463_v49 = vmov 0   ;;  %v1595_v15 = vld [vmem:[%s19698_s1 + $0x30c8] sm:$0xff] }
 0x2eb   :  { %10046 = vmatprep.subr.bf16.mxu0 %v13934_v25  ;;  %10579 = vmatprep.subr.bf16.mxu1 %v13936_v42  ;;  %v13974_v25 = vcombine.high %v1562_v34, %v1566_v35  ;;  %v13976_v42 = vcombine.high %v1563_v37, %v1567_v38  ;;  %v1598_v26 = vld [vmem:[%s19698_s1 + $0x30e0] sm:$0xff] }
 0x2ee   :  { %10047 = vmatpush1.bf16.msra.mxu0 %v13933_v56  ;;  %10580 = vmatpush1.bf16.msra.mxu1 %v13935_v3  ;;  %v13973_v56 = vcombine.low %v1562_v34, %v1566_v35  ;;  %v13975_v3 = vcombine.low %v1563_v37, %v1567_v38  ;;  %v36_v35 = vld [vmem:[%s19698_s1 + $0x10] sm:$0xff]  ;;  %v37_v38 = vld [vmem:[%s19698_s1 + $0x18] sm:$0xff] }
 0x2ef   :  { %10048 = vmatprep.subr.bf16.mxu0 %v13942_v48  ;;  %10581 = vmatprep.subr.bf16.mxu1 %v13944_v61  ;;  %v13982_v48 = vcombine.high %v1570_v44, %v1574_v47  ;;  %v13984_v61 = vcombine.high %v1571_v18, %v1575_v52  ;;  %v40_v37 = vld [vmem:[%s19698_s1 + $0x30] sm:$0xff] }
 0x2f2   :  { %10049 = vmatpush1.bf16.msra.mxu0 %v13941_v23  ;;  %10582 = vmatpush1.bf16.msra.mxu1 %v13943_v6  ;;  %v1583_v23 = vld [vmem:[%s19698_s1 + $0x3068] sm:$0xff]  ;;  %v13981_v6 = vcombine.low %v1570_v44, %v1574_v47  ;;  %v44_v47 = vld [vmem:[%s19698_s1 + $0x50] sm:$0xff] }
 0x2f3   :  { %10050 = vmatprep.subr.bf16.mxu0 %v13950_v7  ;;  %10583 = vmatprep.subr.bf16.mxu1 %v13952_v8  ;;  %v13983_v7 = vcombine.low %v1571_v18, %v1575_v52  ;;  %v13990_v8 = vcombine.high %v1578_v39, %v1582_v0  ;;  %v13992_v10 = vcombine.high %v1579_v5, %v1583_v23  ;;  %v48_v18 = vld [vmem:[%s19698_s1 + $0x70] sm:$0xff]  ;;  %v14397_v52 = vld [vmem:[%s19699_s0 + $0x60] ss:$0 sps:$4 sm:$0xff]  }
 0x2f6   :  { %10051 = vmatpush1.bf16.msra.mxu0 %v13949_v17  ;;  %10584 = vmatpush1.bf16.msra.mxu1 %v13951_v53  ;;  %v13989_v17 = vcombine.low %v1578_v39, %v1582_v0  ;;  %v13991_v53 = vcombine.low %v1579_v5, %v1583_v23  ;;  %v12458_v39 = vcombine.high %v44_v47, %v48_v18  ;;  %v52_v5 = vld [vmem:[%s19698_s1 + $0x90] sm:$0xff] }
 0x2f7   :  { %10052 = vmatprep.subr.bf16.mxu0 %v13958_v20  ;;  %10585 = vmatprep.subr.bf16.mxu1 %v13960_v59  ;;  %v13998_v20 = vcombine.high %v1586_v54, %v1590_v11  ;;  %v14000_v59 = vcombine.high %v1587_v13, %v1591_v14  ;;  %v56_v23 = vld [vmem:[%s19698_s1 + $0xb0] sm:$0xff] }
 0x2fa   :  { %10053 = vmatpush1.bf16.msra.mxu0 %v13957_v28  ;;  %10586 = vmatpush1.bf16.msra.mxu1 %v13959_v29  ;;  %v1599_v28 = vld [vmem:[%s19698_s1 + $0x30e8] sm:$0xff]  ;;  %v13997_v29 = vcombine.low %v1586_v54, %v1590_v11  ;;  %v12466_v54 = vcombine.high %v52_v5, %v56_v23 }
 0x2fb   :  { %10054 = vmatprep.subr.bf16.mxu0 %v13966_v32  ;;  %10587 = vmatprep.subr.bf16.mxu1 %v13968_v33  ;;  %v13999_v32 = vcombine.low %v1587_v13, %v1591_v14  ;;  %v14006_v33 = vcombine.high %v1594_v24, %v1598_v26  ;;  %v14008_v34 = vcombine.high %v1595_v15, %v1599_v28  ;;  %v60_v13 = vld [vmem:[%s19698_s1 + $0xd0] sm:$0xff] }
 0x2fc   :  { %v64_v14 = vld [vmem:[%s19698_s1 + $0xf0] sm:$0xff] }
 0x2fe   :  { %10055 = vmatpush1.bf16.msra.mxu0 %v13965_v40  ;;  %10588 = vmatpush1.bf16.msra.mxu1 %v13967_v41  ;;  %v41_v40 = vld [vmem:[%s19698_s1 + $0x38] sm:$0xff]  ;;  %v14005_v41 = vcombine.low %v1594_v24, %v1598_v26  ;;  %v12474_v24 = vcombine.high %v60_v13, %v64_v14 }
 0x2ff   :  { %10056 = vmatprep.subr.bf16.mxu0 %v13974_v25  ;;  %10589 = vmatprep.subr.bf16.mxu1 %v13976_v42  ;;  %v14007_v25 = vcombine.low %v1595_v15, %v1599_v28  ;;  %v12450_v42 = vcombine.high %v36_v35, %v40_v37  ;;  %v12452_v44 = vcombine.high %v37_v38, %v41_v40  ;;  %v68_v15 = vld [vmem:[%s19698_s1 + $0x110] sm:$0xff] }
 0x300   :  { %v72_v28 = vld [vmem:[%s19698_s1 + $0x130] sm:$0xff] }
 0x302   :  { %10057 = vmatpush1.bf16.msra.mxu0 %v13973_v56  ;;  %10590 = vmatpush1.bf16.msra.mxu1 %v13975_v3  ;;  %v45_v56 = vld [vmem:[%s19698_s1 + $0x58] sm:$0xff] }
 0x303   :  { %10067 = vmatprep.subr.bf16.mxu0 %v13982_v48  ;;  %10600 = vmatprep.subr.bf16.mxu1 %v13984_v61  ;;  %v49_v3 = vld [vmem:[%s19698_s1 + $0x78] sm:$0xff]  ;;  %v12449_v48 = vcombine.low %v36_v35, %v40_v37  ;;  %v12451_v61 = vcombine.low %v37_v38, %v41_v40  ;;  %v76_v37 = vld [vmem:[%s19698_s1 + $0x150] sm:$0xff] }
 0x304   :  { %v12460_v0 = vcombine.high %v45_v56, %v49_v3  ;;  %v80_v38 = vld [vmem:[%s19698_s1 + $0x170] sm:$0xff]  ;;  %v77_v40 = vld [vmem:[%s19698_s1 + $0x158] sm:$0xff] }
 0x305   :  { %10059 = vmatmul.mubr.bf16.vlgmr.msra.gmra.mrb[0].mxu0 %v17017_v4  ;;  %10592 = vmatmul.mubr.bf16.vlgmr.msra.gmra.mrb[0].mxu1 %v17017_v4 }
 0x306   :  { %10068 = vmatpush1.bf16.msra.mxu0 %v13981_v6  ;;  %10601 = vmatpush1.bf16.msra.mxu1 %v13983_v7  ;;  %v53_v6 = vld [vmem:[%s19698_s1 + $0x98] sm:$0xff] }
 0x307   :  { %10069 = vmatprep.subr.bf16.mxu0 %v13990_v8  ;;  %10602 = vmatprep.subr.bf16.mxu1 %v13992_v10  ;;  %v57_v7 = vld [vmem:[%s19698_s1 + $0xb8] sm:$0xff]  ;;  %v12457_v8 = vcombine.low %v44_v47, %v48_v18  ;;  %v12459_v10 = vcombine.low %v45_v56, %v49_v3  ;;  %v84_v18 = vld [vmem:[%s19698_s1 + $0x190] sm:$0xff] }
 0x308   :  { %10099 = vmatprep.mubr.bf16.mxu0 %v14463_v49  ;;  %10632 = vmatprep.mubr.bf16.mxu1 %v14463_v49  ;;  %v12468_v11 = vcombine.high %v53_v6, %v57_v7  ;;  %v85_v56 = vld [vmem:[%s19698_s1 + $0x198] sm:$0xff] }
 0x309   :  { %v89_v3 = vld [vmem:[%s19698_s1 + $0x1b8] sm:$0xff] }
 0x30a   :  { %10070 = vmatpush1.bf16.msra.mxu0 %v13989_v17  ;;  %10603 = vmatpush1.bf16.msra.mxu1 %v13991_v53  ;;  %v61_v17 = vld [vmem:[%s19698_s1 + $0xd8] sm:$0xff] }
 0x30b   :  { %10071 = vmatprep.subr.bf16.mxu0 %v13998_v20  ;;  %10604 = vmatprep.subr.bf16.mxu1 %v14000_v59  ;;  %v65_v53 = vld [vmem:[%s19698_s1 + $0xf8] sm:$0xff]  ;;  %v12465_v20 = vcombine.low %v52_v5, %v56_v23  ;;  %v12467_v59 = vcombine.low %v53_v6, %v57_v7  ;;  %v92_v5 = vld [vmem:[%s19698_s1 + $0x1d0] sm:$0xff] }
 0x30c   :  { %v12476_v26 = vcombine.high %v61_v17, %v65_v53  ;;  %v96_v23 = vld [vmem:[%s19698_s1 + $0x1f0] sm:$0xff]  ;;  %v93_v6 = vld [vmem:[%s19698_s1 + $0x1d8] sm:$0xff] }
 0x30d   :  { %v97_v7 = vld [vmem:[%s19698_s1 + $0x1f8] sm:$0xff] }
 0x30e   :  { %10072 = vmatpush1.bf16.msra.mxu0 %v13997_v29  ;;  %10605 = vmatpush1.bf16.msra.mxu1 %v13999_v32  ;;  %v73_v29 = vld [vmem:[%s19698_s1 + $0x138] sm:$0xff]  ;;  %v12473_v32 = vcombine.low %v60_v13, %v64_v14  ;;  %v100_v13 = vld [vmem:[%s19698_s1 + $0x210] sm:$0xff] }
 0x30f   :  { %10073 = vmatprep.subr.bf16.mxu0 %v14006_v33  ;;  %10606 = vmatprep.subr.bf16.mxu1 %v14008_v34  ;;  %v12475_v33 = vcombine.low %v61_v17, %v65_v53  ;;  %v12482_v34 = vcombine.high %v68_v15, %v72_v28  ;;  %v104_v14 = vld [vmem:[%s19698_s1 + $0x230] sm:$0xff]  ;;  %v101_v17 = vld [vmem:[%s19698_s1 + $0x218] sm:$0xff] }
 0x310   :  { %v105_v53 = vld [vmem:[%s19698_s1 + $0x238] sm:$0xff] }
 0x312   :  { %10074 = vmatpush1.bf16.msra.mxu0 %v14005_v41  ;;  %10607 = vmatpush1.bf16.msra.mxu1 %v14007_v25  ;;  %v81_v41 = vld [vmem:[%s19698_s1 + $0x178] sm:$0xff]  ;;  %v12481_v25 = vcombine.low %v68_v15, %v72_v28  ;;  %v108_v15 = vld [vmem:[%s19698_s1 + $0x250] sm:$0xff] }
 0x313   :  { %10641 = vmatprep.subr.bf16.mxu0 %v12450_v42  ;;  %11174 = vmatprep.subr.bf16.mxu1 %v12452_v44  ;;  %v12490_v44 = vcombine.high %v76_v37, %v80_v38  ;;  %v12492_v47 = vcombine.high %v77_v40, %v81_v41  ;;  %v112_v28 = vld [vmem:[%s19698_s1 + $0x270] sm:$0xff] }
 0x315   :  { %14013 = vmatmul.mubr.msk.bf16.vlgmr.msra.gmra.mrb[0].mxu0 %vm9571_vm0, %v14397_v52  ;;  %14014 = vmatmul.mubr.msk.bf16.vlgmr.msra.gmra.mrb[0].mxu1 %vm9571_vm0, %v14397_v52  ;;  %v88_v52 = vld [vmem:[%s19698_s1 + $0x1b0] sm:$0xff] }
 0x316   :  { %10642 = vmatpush1.bf16.msra.mxu0 %v12449_v48  ;;  %11175 = vmatpush1.bf16.msra.mxu1 %v12451_v61  ;;  %v12489_v48 = vcombine.low %v76_v37, %v80_v38  ;;  %v12491_v61 = vcombine.low %v77_v40, %v81_v41  ;;  %v116_v37 = vld [vmem:[%s19698_s1 + $0x290] sm:$0xff]  ;;  %v117_v40 = vld [vmem:[%s19698_s1 + $0x298] sm:$0xff] }
 0x317   :  { %10643 = vmatprep.subr.bf16.mxu0 %v12458_v39  ;;  %11176 = vmatprep.subr.bf16.mxu1 %v12460_v0  ;;  %v12498_v39 = vcombine.high %v84_v18, %v88_v52  ;;  %v12500_v0 = vcombine.high %v85_v56, %v89_v3  ;;  %v120_v38 = vld [vmem:[%s19698_s1 + $0x2b0] sm:$0xff]  ;;  %v121_v41 = vld [vmem:[%s19698_s1 + $0x2b8] sm:$0xff] }
 0x318   :  { %10673 = vmatprep.mubr.bf16.mxu0 %v14592_v57  ;;  %11206 = vmatprep.mubr.bf16.mxu1 %v14592_v57  ;;  %v69_v57 = vld [vmem:[%s19698_s1 + $0x118] sm:$0xff] }
 0x319   :  { %v12484_v35 = vcombine.high %v69_v57, %v73_v29  ;;  %v12483_v42 = vcombine.low %v69_v57, %v73_v29  ;;  %v109_v57 = vld [vmem:[%s19698_s1 + $0x258] sm:$0xff] }
 0x31a   :  { %10644 = vmatpush1.bf16.msra.mxu0 %v12457_v8  ;;  %11177 = vmatpush1.bf16.msra.mxu1 %v12459_v10  ;;  %v12497_v8 = vcombine.low %v84_v18, %v88_v52  ;;  %v12499_v10 = vcombine.low %v85_v56, %v89_v3  ;;  %v113_v29 = vld [vmem:[%s19698_s1 + $0x278] sm:$0xff]  ;;  %v124_v18 = vld [vmem:[%s19698_s1 + $0x2d0] sm:$0xff] }
 0x31b   :  { %10645 = vmatprep.subr.bf16.mxu0 %v12466_v54  ;;  %11178 = vmatprep.subr.bf16.mxu1 %v12468_v11  ;;  %v12506_v54 = vcombine.high %v92_v5, %v96_v23  ;;  %v12508_v11 = vcombine.high %v93_v6, %v97_v7  ;;  %v128_v52 = vld [vmem:[%s19698_s1 + $0x2f0] sm:$0xff]  ;;  %v125_v56 = vld [vmem:[%s19698_s1 + $0x2d8] sm:$0xff] }
 0x31c   :  { %v129_v3 = vld [vmem:[%s19698_s1 + $0x2f8] sm:$0xff] }
 0x31e   :  { %10646 = vmatpush1.bf16.msra.mxu0 %v12465_v20  ;;  %11179 = vmatpush1.bf16.msra.mxu1 %v12467_v59  ;;  %v12505_v20 = vcombine.low %v92_v5, %v96_v23  ;;  %v12507_v59 = vcombine.low %v93_v6, %v97_v7  ;;  %v132_v5 = vld [vmem:[%s19698_s1 + $0x310] sm:$0xff]  ;;  %v133_v6 = vld [vmem:[%s19698_s1 + $0x318] sm:$0xff] }
 0x31f   :  { %10647 = vmatprep.subr.bf16.mxu0 %v12474_v24  ;;  %11180 = vmatprep.subr.bf16.mxu1 %v12476_v26  ;;  %v12514_v24 = vcombine.high %v100_v13, %v104_v14  ;;  %v12516_v26 = vcombine.high %v101_v17, %v105_v53  ;;  %v136_v23 = vld [vmem:[%s19698_s1 + $0x330] sm:$0xff]  ;;  %v137_v7 = vld [vmem:[%s19698_s1 + $0x338] sm:$0xff] }
 0x322   :  { %10648 = vmatpush1.bf16.msra.mxu0 %v12473_v32  ;;  %11181 = vmatpush1.bf16.msra.mxu1 %v12475_v33  ;;  %v12513_v32 = vcombine.low %v100_v13, %v104_v14  ;;  %v12515_v33 = vcombine.low %v101_v17, %v105_v53  ;;  %v140_v13 = vld [vmem:[%s19698_s1 + $0x350] sm:$0xff]  ;;  %v141_v17 = vld [vmem:[%s19698_s1 + $0x358] sm:$0xff] }
 0x323   :  { %10649 = vmatprep.subr.bf16.mxu0 %v12482_v34  ;;  %11182 = vmatprep.subr.bf16.mxu1 %v12484_v35  ;;  %v12522_v34 = vcombine.high %v108_v15, %v112_v28  ;;  %v12524_v35 = vcombine.high %v109_v57, %v113_v29  ;;  %v144_v14 = vld [vmem:[%s19698_s1 + $0x370] sm:$0xff]  ;;  %v145_v53 = vld [vmem:[%s19698_s1 + $0x378] sm:$0xff] }
 0x326   :  { %10650 = vmatpush1.bf16.msra.mxu0 %v12481_v25  ;;  %11183 = vmatpush1.bf16.msra.mxu1 %v12483_v42  ;;  %v12521_v25 = vcombine.low %v108_v15, %v112_v28  ;;  %v12523_v42 = vcombine.low %v109_v57, %v113_v29  ;;  %v148_v15 = vld [vmem:[%s19698_s1 + $0x390] sm:$0xff]  ;;  %v149_v57 = vld [vmem:[%s19698_s1 + $0x398] sm:$0xff] }
 0x327   :  { %10651 = vmatprep.subr.bf16.mxu0 %v12490_v44  ;;  %11184 = vmatprep.subr.bf16.mxu1 %v12492_v47  ;;  %v12530_v44 = vcombine.high %v116_v37, %v120_v38  ;;  %v12532_v47 = vcombine.high %v117_v40, %v121_v41  ;;  %v152_v28 = vld [vmem:[%s19698_s1 + $0x3b0] sm:$0xff]  ;;  %v153_v29 = vld [vmem:[%s19698_s1 + $0x3b8] sm:$0xff] }
 0x32a   :  { %10652 = vmatpush1.bf16.msra.mxu0 %v12489_v48  ;;  %11185 = vmatpush1.bf16.msra.mxu1 %v12491_v61  ;;  %v12529_v48 = vcombine.low %v116_v37, %v120_v38  ;;  %v12531_v61 = vcombine.low %v117_v40, %v121_v41  ;;  %v156_v37 = vld [vmem:[%s19698_s1 + $0x3d0] sm:$0xff]  ;;  %v157_v40 = vld [vmem:[%s19698_s1 + $0x3d8] sm:$0xff] }
 0x32b   :  { %10653 = vmatprep.subr.bf16.mxu0 %v12498_v39  ;;  %11186 = vmatprep.subr.bf16.mxu1 %v12500_v0  ;;  %v12538_v39 = vcombine.high %v124_v18, %v128_v52  ;;  %v12540_v0 = vcombine.high %v125_v56, %v129_v3  ;;  %v160_v38 = vld [vmem:[%s19698_s1 + $0x3f0] sm:$0xff]  ;;  %v161_v41 = vld [vmem:[%s19698_s1 + $0x3f8] sm:$0xff] }
 0x32e   :  { %10654 = vmatpush1.bf16.msra.mxu0 %v12497_v8  ;;  %11187 = vmatpush1.bf16.msra.mxu1 %v12499_v10  ;;  %v12537_v8 = vcombine.low %v124_v18, %v128_v52  ;;  %v12539_v10 = vcombine.low %v125_v56, %v129_v3  ;;  %v164_v18 = vld [vmem:[%s19698_s1 + $0x410] sm:$0xff]  ;;  %v165_v56 = vld [vmem:[%s19698_s1 + $0x418] sm:$0xff] }
 0x32f   :  { %10655 = vmatprep.subr.bf16.mxu0 %v12506_v54  ;;  %11188 = vmatprep.subr.bf16.mxu1 %v12508_v11  ;;  %v12546_v54 = vcombine.high %v132_v5, %v136_v23  ;;  %v12548_v11 = vcombine.high %v133_v6, %v137_v7  ;;  %v168_v52 = vld [vmem:[%s19698_s1 + $0x430] sm:$0xff]  ;;  %v169_v3 = vld [vmem:[%s19698_s1 + $0x438] sm:$0xff] }
 0x332   :  { %10656 = vmatpush1.bf16.msra.mxu0 %v12505_v20  ;;  %11189 = vmatpush1.bf16.msra.mxu1 %v12507_v59  ;;  %v12545_v20 = vcombine.low %v132_v5, %v136_v23  ;;  %v12547_v59 = vcombine.low %v133_v6, %v137_v7  ;;  %v172_v5 = vld [vmem:[%s19698_s1 + $0x450] sm:$0xff]  ;;  %v173_v6 = vld [vmem:[%s19698_s1 + $0x458] sm:$0xff] }
 0x333   :  { %10657 = vmatprep.subr.bf16.mxu0 %v12514_v24  ;;  %11190 = vmatprep.subr.bf16.mxu1 %v12516_v26  ;;  %v12554_v24 = vcombine.high %v140_v13, %v144_v14  ;;  %v12556_v26 = vcombine.high %v141_v17, %v145_v53  ;;  %v176_v23 = vld [vmem:[%s19698_s1 + $0x470] sm:$0xff]  ;;  %v177_v7 = vld [vmem:[%s19698_s1 + $0x478] sm:$0xff] }
 0x336   :  { %10658 = vmatpush1.bf16.msra.mxu0 %v12513_v32  ;;  %11191 = vmatpush1.bf16.msra.mxu1 %v12515_v33  ;;  %v12553_v32 = vcombine.low %v140_v13, %v144_v14  ;;  %v12555_v33 = vcombine.low %v141_v17, %v145_v53  ;;  %v180_v13 = vld [vmem:[%s19698_s1 + $0x490] sm:$0xff]  ;;  %v181_v17 = vld [vmem:[%s19698_s1 + $0x498] sm:$0xff] }
 0x337   :  { %10659 = vmatprep.subr.bf16.mxu0 %v12522_v34  ;;  %11192 = vmatprep.subr.bf16.mxu1 %v12524_v35  ;;  %v12562_v34 = vcombine.high %v148_v15, %v152_v28  ;;  %v12564_v35 = vcombine.high %v149_v57, %v153_v29  ;;  %v184_v14 = vld [vmem:[%s19698_s1 + $0x4b0] sm:$0xff]  ;;  %v185_v53 = vld [vmem:[%s19698_s1 + $0x4b8] sm:$0xff] }
 0x33a   :  { %10660 = vmatpush1.bf16.msra.mxu0 %v12521_v25  ;;  %11193 = vmatpush1.bf16.msra.mxu1 %v12523_v42  ;;  %v12561_v25 = vcombine.low %v148_v15, %v152_v28  ;;  %v12563_v42 = vcombine.low %v149_v57, %v153_v29  ;;  %v188_v15 = vld [vmem:[%s19698_s1 + $0x4d0] sm:$0xff]  ;;  %v193_v57 = vld [vmem:[%s19698_s1 + $0x4f8] sm:$0xff]  ;;  %v12593_v29 = vcombine.low %v180_v13, %v184_v14 }
 0x33b   :  { %10661 = vmatprep.subr.bf16.mxu0 %v12530_v44  ;;  %11194 = vmatprep.subr.bf16.mxu1 %v12532_v47  ;;  %v12570_v44 = vcombine.high %v156_v37, %v160_v38  ;;  %v12572_v47 = vcombine.high %v157_v40, %v161_v41  ;;  %v192_v28 = vld [vmem:[%s19698_s1 + $0x4f0] sm:$0xff] }
 0x33e   :  { %10662 = vmatpush1.bf16.msra.mxu0 %v12529_v48  ;;  %11195 = vmatpush1.bf16.msra.mxu1 %v12531_v61  ;;  %v12569_v48 = vcombine.low %v156_v37, %v160_v38  ;;  %v12571_v61 = vcombine.low %v157_v40, %v161_v41  ;;  %v200_v37 = vld [vmem:[%s19698_s1 + $0x530] sm:$0xff]  ;;  %v201_v38 = vld [vmem:[%s19698_s1 + $0x538] sm:$0xff]  ;;  %v12601_v40 = vcombine.low %v188_v15, %v192_v28 }
 0x33f   :  { %10663 = vmatprep.subr.bf16.mxu0 %v12538_v39  ;;  %11196 = vmatprep.subr.bf16.mxu1 %v12540_v0  ;;  %v12578_v39 = vcombine.high %v164_v18, %v168_v52  ;;  %v12580_v0 = vcombine.high %v165_v56, %v169_v3 }
 0x342   :  { %10664 = vmatpush1.bf16.msra.mxu0 %v12537_v8  ;;  %11197 = vmatpush1.bf16.msra.mxu1 %v12539_v10  ;;  %v12577_v8 = vcombine.low %v164_v18, %v168_v52  ;;  %v12579_v10 = vcombine.low %v165_v56, %v169_v3  ;;  %v205_v18 = vld [vmem:[%s19698_s1 + $0x558] sm:$0xff] }
 0x343   :  { %10665 = vmatprep.subr.bf16.mxu0 %v12546_v54  ;;  %11198 = vmatprep.subr.bf16.mxu1 %v12548_v11  ;;  %v12586_v54 = vcombine.high %v172_v5, %v176_v23  ;;  %v12588_v11 = vcombine.high %v173_v6, %v177_v7  ;;  %v209_v52 = vld [vmem:[%s19698_s1 + $0x578] sm:$0xff] }
 0x346   :  { %10666 = vmatpush1.bf16.msra.mxu0 %v12545_v20  ;;  %11199 = vmatpush1.bf16.msra.mxu1 %v12547_v59  ;;  %v12585_v20 = vcombine.low %v172_v5, %v176_v23  ;;  %v12587_v59 = vcombine.low %v173_v6, %v177_v7  ;;  %v213_v5 = vld [vmem:[%s19698_s1 + $0x598] sm:$0xff]  ;;  %v12619_v7 = vcombine.low %v205_v18, %v209_v52 }
 0x347   :  { %10667 = vmatprep.subr.bf16.mxu0 %v12554_v24  ;;  %11200 = vmatprep.subr.bf16.mxu1 %v12556_v26  ;;  %v12594_v24 = vcombine.high %v180_v13, %v184_v14  ;;  %v12596_v26 = vcombine.high %v181_v17, %v185_v53  ;;  %v217_v23 = vld [vmem:[%s19698_s1 + $0x5b8] sm:$0xff] }
 0x348   :  { %v221_v13 = vld [vmem:[%s19698_s1 + $0x5d8] sm:$0xff] }
 0x349   :  { %v225_v14 = vld [vmem:[%s19698_s1 + $0x5f8] sm:$0xff] }
 0x34a   :  { %10668 = vmatpush1.bf16.msra.mxu0 %v12553_v32  ;;  %11201 = vmatpush1.bf16.msra.mxu1 %v12555_v33  ;;  %v12595_v32 = vcombine.low %v181_v17, %v185_v53  ;;  %v12602_v33 = vcombine.high %v188_v15, %v192_v28  ;;  %v12627_v53 = vcombine.low %v213_v5, %v217_v23  ;;  %v229_v15 = vld [vmem:[%s19698_s1 + $0x618] sm:$0xff] }
 0x34b   :  { %10669 = vmatprep.subr.bf16.mxu0 %v12562_v34  ;;  %11202 = vmatprep.subr.bf16.mxu1 %v12564_v35  ;;  %v196_v35 = vld [vmem:[%s19698_s1 + $0x510] sm:$0xff]  ;;  %v233_v28 = vld [vmem:[%s19698_s1 + $0x638] sm:$0xff] }
 0x34c   :  { %v12609_v56 = vcombine.low %v196_v35, %v200_v37 }
 0x34e   :  { %10670 = vmatpush1.bf16.msra.mxu0 %v12561_v25  ;;  %11203 = vmatpush1.bf16.msra.mxu1 %v12563_v42  ;;  %v12610_v25 = vcombine.high %v196_v35, %v200_v37  ;;  %v237_v35 = vld [vmem:[%s19698_s1 + $0x658] sm:$0xff] }
 0x34f   :  { %10671 = vmatprep.subr.bf16.mxu0 %v12570_v44  ;;  %11204 = vmatprep.subr.bf16.mxu1 %v12572_v47  ;;  %v204_v44 = vld [vmem:[%s19698_s1 + $0x550] sm:$0xff]  ;;  %v241_v37 = vld [vmem:[%s19698_s1 + $0x678] sm:$0xff] }
 0x350   :  { %v208_v47 = vld [vmem:[%s19698_s1 + $0x570] sm:$0xff] }
 0x351   :  { %v12617_v6 = vcombine.low %v204_v44, %v208_v47 }
 0x352   :  { %10672 = vmatpush1.bf16.msra.mxu0 %v12569_v48  ;;  %11205 = vmatpush1.bf16.msra.mxu1 %v12571_v61  ;;  %v12618_v48 = vcombine.high %v204_v44, %v208_v47  ;;  %v12620_v61 = vcombine.high %v205_v18, %v209_v52  ;;  %v245_v44 = vld [vmem:[%s19698_s1 + $0x698] sm:$0xff]  ;;  %v12651_v52 = vcombine.low %v237_v35, %v241_v37 }
 0x353   :  { %10682 = vmatprep.subr.bf16.mxu0 %v12578_v39  ;;  %11215 = vmatprep.subr.bf16.mxu1 %v12580_v0  ;;  %v212_v39 = vld [vmem:[%s19698_s1 + $0x590] sm:$0xff]  ;;  %v249_v47 = vld [vmem:[%s19698_s1 + $0x6b8] sm:$0xff] }
 0x354   :  { %v216_v0 = vld [vmem:[%s19698_s1 + $0x5b0] sm:$0xff] }
 0x355   :  { %10674 = vmatmul.mubr.bf16.vlgmr.msra.gmra.mrb[4].mxu0 %v14718_v12  ;;  %11207 = vmatmul.mubr.bf16.vlgmr.msra.gmra.mrb[4].mxu1 %v14718_v12  ;;  %v189_v12 = vld [vmem:[%s19698_s1 + $0x4d8] sm:$0xff]  ;;  %v12625_v17 = vcombine.low %v212_v39, %v216_v0 }
 0x356   :  { %10683 = vmatpush1.bf16.msra.mxu0 %v12577_v8  ;;  %11216 = vmatpush1.bf16.msra.mxu1 %v12579_v10  ;;  %v12604_v34 = vcombine.high %v189_v12, %v193_v57  ;;  %v12603_v41 = vcombine.low %v189_v12, %v193_v57  ;;  %v12626_v8 = vcombine.high %v212_v39, %v216_v0  ;;  %v253_v39 = vld [vmem:[%s19698_s1 + $0x6d8] sm:$0xff] }
 0x357   :  { %10684 = vmatprep.subr.bf16.mxu0 %v12586_v54  ;;  %11217 = vmatprep.subr.bf16.mxu1 %v12588_v11  ;;  %v12628_v10 = vcombine.high %v213_v5, %v217_v23  ;;  %v220_v54 = vld [vmem:[%s19698_s1 + $0x5d0] sm:$0xff]  ;;  %v12635_v57 = vcombine.low %v221_v13, %v225_v14  ;;  %v257_v0 = vld [vmem:[%s19698_s1 + $0x6f8] sm:$0xff]  ;;  %v12659_v23 = vcombine.low %v245_v44, %v249_v47 }
 0x358   :  { %10714 = vmatprep.mubr.bf16.mxu0 %v14739_v21  ;;  %11247 = vmatprep.mubr.bf16.mxu1 %v14739_v21  ;;  %v197_v21 = vld [vmem:[%s19698_s1 + $0x518] sm:$0xff]  ;;  %v224_v11 = vld [vmem:[%s19698_s1 + $0x5f0] sm:$0xff] }
 0x359   :  { %v12612_v42 = vcombine.high %v197_v21, %v201_v38  ;;  %v12611_v3 = vcombine.low %v197_v21, %v201_v38  ;;  %v12633_v12 = vcombine.low %v220_v54, %v224_v11  ;;  %v12643_v38 = vcombine.low %v229_v15, %v233_v28 }
 0x35a   :  { %10685 = vmatpush1.bf16.msra.mxu0 %v12585_v20  ;;  %11218 = vmatpush1.bf16.msra.mxu1 %v12587_v59  ;;  %v12634_v20 = vcombine.high %v220_v54, %v224_v11  ;;  %v12636_v59 = vcombine.high %v221_v13, %v225_v14  ;;  %v261_v54 = vld [vmem:[%s19698_s1 + $0x718] sm:$0xff]  ;;  %v12667_v14 = vcombine.low %v253_v39, %v257_v0 }
 0x35b   :  { %10686 = vmatprep.subr.bf16.mxu0 %v12594_v24  ;;  %11219 = vmatprep.subr.bf16.mxu1 %v12596_v26  ;;  %v228_v24 = vld [vmem:[%s19698_s1 + $0x610] sm:$0xff]  ;;  %v265_v11 = vld [vmem:[%s19698_s1 + $0x738] sm:$0xff] }
 0x35c   :  { %v232_v26 = vld [vmem:[%s19698_s1 + $0x630] sm:$0xff] }
 0x35d   :  { %v12641_v21 = vcombine.low %v228_v24, %v232_v26 }
 0x35e   :  { %10687 = vmatpush1.bf16.msra.mxu0 %v12593_v29  ;;  %11220 = vmatpush1.bf16.msra.mxu1 %v12595_v32  ;;  %v12642_v29 = vcombine.high %v228_v24, %v232_v26  ;;  %v12644_v32 = vcombine.high %v229_v15, %v233_v28  ;;  %v269_v24 = vld [vmem:[%s19698_s1 + $0x758] sm:$0xff]  ;;  %v12675_v28 = vcombine.low %v261_v54, %v265_v11 }
 0x35f   :  { %10688 = vmatprep.subr.bf16.mxu0 %v12602_v33  ;;  %11221 = vmatprep.subr.bf16.mxu1 %v12604_v34  ;;  %v236_v33 = vld [vmem:[%s19698_s1 + $0x650] sm:$0xff]  ;;  %v273_v26 = vld [vmem:[%s19698_s1 + $0x778] sm:$0xff] }
 0x360   :  { %v240_v34 = vld [vmem:[%s19698_s1 + $0x670] sm:$0xff] }
 0x361   :  { %v12649_v18 = vcombine.low %v236_v33, %v240_v34 }
 0x362   :  { %10689 = vmatpush1.bf16.msra.mxu0 %v12601_v40  ;;  %11222 = vmatpush1.bf16.msra.mxu1 %v12603_v41  ;;  %v12650_v40 = vcombine.high %v236_v33, %v240_v34  ;;  %v12652_v41 = vcombine.high %v237_v35, %v241_v37  ;;  %v277_v33 = vld [vmem:[%s19698_s1 + $0x798] sm:$0xff]  ;;  %v12683_v37 = vcombine.low %v269_v24, %v273_v26 }
 0x363   :  { %10690 = vmatprep.subr.bf16.mxu0 %v12610_v25  ;;  %11223 = vmatprep.subr.bf16.mxu1 %v12612_v42  ;;  %v244_v25 = vld [vmem:[%s19698_s1 + $0x690] sm:$0xff]  ;;  %v281_v34 = vld [vmem:[%s19698_s1 + $0x7b8] sm:$0xff] }
 0x364   :  { %v248_v42 = vld [vmem:[%s19698_s1 + $0x6b0] sm:$0xff] }
 0x365   :  { %v12657_v5 = vcombine.low %v244_v25, %v248_v42 }
 0x366   :  { %10691 = vmatpush1.bf16.msra.mxu0 %v12609_v56  ;;  %11224 = vmatpush1.bf16.msra.mxu1 %v12611_v3  ;;  %v12658_v56 = vcombine.high %v244_v25, %v248_v42  ;;  %v12660_v3 = vcombine.high %v245_v44, %v249_v47  ;;  %v285_v25 = vld [vmem:[%s19698_s1 + $0x7d8] sm:$0xff]  ;;  %v12691_v47 = vcombine.low %v277_v33, %v281_v34 }
 0x367   :  { %10692 = vmatprep.subr.bf16.mxu0 %v12618_v48  ;;  %11225 = vmatprep.subr.bf16.mxu1 %v12620_v61  ;;  %v252_v48 = vld [vmem:[%s19698_s1 + $0x6d0] sm:$0xff]  ;;  %v289_v42 = vld [vmem:[%s19698_s1 + $0x7f8] sm:$0xff] }
 0x368   :  { %v256_v61 = vld [vmem:[%s19698_s1 + $0x6f0] sm:$0xff] }
 0x369   :  { %v12665_v13 = vcombine.low %v252_v48, %v256_v61 }
 0x36a   :  { %10693 = vmatpush1.bf16.msra.mxu0 %v12617_v6  ;;  %11226 = vmatpush1.bf16.msra.mxu1 %v12619_v7  ;;  %v12666_v6 = vcombine.high %v252_v48, %v256_v61  ;;  %v12668_v7 = vcombine.high %v253_v39, %v257_v0  ;;  %v293_v48 = vld [vmem:[%s19698_s1 + $0x818] sm:$0xff]  ;;  %v12699_v0 = vcombine.low %v285_v25, %v289_v42 }
 0x36b   :  { %10694 = vmatprep.subr.bf16.mxu0 %v12626_v8  ;;  %11227 = vmatprep.subr.bf16.mxu1 %v12628_v10  ;;  %v260_v8 = vld [vmem:[%s19698_s1 + $0x710] sm:$0xff]  ;;  %v297_v61 = vld [vmem:[%s19698_s1 + $0x838] sm:$0xff] }
 0x36c   :  { %v264_v10 = vld [vmem:[%s19698_s1 + $0x730] sm:$0xff] }
 0x36d   :  { %v12673_v15 = vcombine.low %v260_v8, %v264_v10 }
 0x36e   :  { %10695 = vmatpush1.bf16.msra.mxu0 %v12625_v17  ;;  %11228 = vmatpush1.bf16.msra.mxu1 %v12627_v53  ;;  %v12674_v17 = vcombine.high %v260_v8, %v264_v10  ;;  %v12676_v53 = vcombine.high %v261_v54, %v265_v11  ;;  %v301_v8 = vld [vmem:[%s19698_s1 + $0x858] sm:$0xff]  ;;  %v12707_v11 = vcombine.low %v293_v48, %v297_v61 }
 0x36f   :  { %10696 = vmatprep.subr.bf16.mxu0 %v12634_v20  ;;  %11229 = vmatprep.subr.bf16.mxu1 %v12636_v59  ;;  %v268_v20 = vld [vmem:[%s19698_s1 + $0x750] sm:$0xff]  ;;  %v305_v10 = vld [vmem:[%s19698_s1 + $0x878] sm:$0xff] }
 0x370   :  { %v272_v59 = vld [vmem:[%s19698_s1 + $0x770] sm:$0xff] }
 0x371   :  { %v12681_v35 = vcombine.low %v268_v20, %v272_v59 }
 0x372   :  { %10697 = vmatpush1.bf16.msra.mxu0 %v12633_v12  ;;  %11230 = vmatpush1.bf16.msra.mxu1 %v12635_v57  ;;  %v12682_v12 = vcombine.high %v268_v20, %v272_v59  ;;  %v12684_v57 = vcombine.high %v269_v24, %v273_v26  ;;  %v309_v20 = vld [vmem:[%s19698_s1 + $0x898] sm:$0xff]  ;;  %v12715_v26 = vcombine.low %v301_v8, %v305_v10 }
 0x373   :  { %10698 = vmatprep.subr.bf16.mxu0 %v12642_v29  ;;  %11231 = vmatprep.subr.bf16.mxu1 %v12644_v32  ;;  %v276_v29 = vld [vmem:[%s19698_s1 + $0x790] sm:$0xff]  ;;  %v313_v59 = vld [vmem:[%s19698_s1 + $0x8b8] sm:$0xff] }
 0x374   :  { %v280_v32 = vld [vmem:[%s19698_s1 + $0x7b0] sm:$0xff] }
 0x375   :  { %v12689_v44 = vcombine.low %v276_v29, %v280_v32 }
 0x376   :  { %10699 = vmatpush1.bf16.msra.mxu0 %v12641_v21  ;;  %11232 = vmatpush1.bf16.msra.mxu1 %v12643_v38  ;;  %v12690_v21 = vcombine.high %v276_v29, %v280_v32  ;;  %v12692_v38 = vcombine.high %v277_v33, %v281_v34  ;;  %v321_v29 = vld [vmem:[%s19698_s1 + $0x8f8] sm:$0xff]  ;;  %v12723_v33 = vcombine.low %v309_v20, %v313_v59 }
 0x377   :  { %10700 = vmatprep.subr.bf16.mxu0 %v12650_v40  ;;  %11233 = vmatprep.subr.bf16.mxu1 %v12652_v41  ;;  %v284_v40 = vld [vmem:[%s19698_s1 + $0x7d0] sm:$0xff] }
 0x378   :  { %v288_v41 = vld [vmem:[%s19698_s1 + $0x7f0] sm:$0xff] }
 0x379   :  { %v12697_v39 = vcombine.low %v284_v40, %v288_v41 }
 0x37a   :  { %10701 = vmatpush1.bf16.msra.mxu0 %v12649_v18  ;;  %11234 = vmatpush1.bf16.msra.mxu1 %v12651_v52  ;;  %v12698_v18 = vcombine.high %v284_v40, %v288_v41  ;;  %v12700_v52 = vcombine.high %v285_v25, %v289_v42 }
 0x37b   :  { %10702 = vmatprep.subr.bf16.mxu0 %v12658_v56  ;;  %11235 = vmatprep.subr.bf16.mxu1 %v12660_v3  ;;  %v292_v56 = vld [vmem:[%s19698_s1 + $0x810] sm:$0xff] }
 0x37c   :  { %v296_v3 = vld [vmem:[%s19698_s1 + $0x830] sm:$0xff] }
 0x37d   :  { %v12705_v54 = vcombine.low %v292_v56, %v296_v3 }
 0x37e   :  { %10703 = vmatpush1.bf16.msra.mxu0 %v12657_v5  ;;  %11236 = vmatpush1.bf16.msra.mxu1 %v12659_v23  ;;  %v12706_v5 = vcombine.high %v292_v56, %v296_v3  ;;  %v12708_v23 = vcombine.high %v293_v48, %v297_v61 }
 0x37f   :  { %10704 = vmatprep.subr.bf16.mxu0 %v12666_v6  ;;  %11237 = vmatprep.subr.bf16.mxu1 %v12668_v7  ;;  %v300_v6 = vld [vmem:[%s19698_s1 + $0x850] sm:$0xff] }
 0x380   :  { %v304_v7 = vld [vmem:[%s19698_s1 + $0x870] sm:$0xff] }
 0x381   :  { %v12713_v24 = vcombine.low %v300_v6, %v304_v7 }
 0x382   :  { %10705 = vmatpush1.bf16.msra.mxu0 %v12665_v13  ;;  %11238 = vmatpush1.bf16.msra.mxu1 %v12667_v14  ;;  %v12714_v13 = vcombine.high %v300_v6, %v304_v7  ;;  %v12716_v14 = vcombine.high %v301_v8, %v305_v10 }
 0x383   :  { %10706 = vmatprep.subr.bf16.mxu0 %v12674_v17  ;;  %11239 = vmatprep.subr.bf16.mxu1 %v12676_v53  ;;  %v308_v17 = vld [vmem:[%s19698_s1 + $0x890] sm:$0xff] }
 0x384   :  { %v312_v53 = vld [vmem:[%s19698_s1 + $0x8b0] sm:$0xff] }
 0x385   :  { %v12721_v32 = vcombine.low %v308_v17, %v312_v53 }
 0x386   :  { %10707 = vmatpush1.bf16.msra.mxu0 %v12673_v15  ;;  %11240 = vmatpush1.bf16.msra.mxu1 %v12675_v28  ;;  %v12722_v15 = vcombine.high %v308_v17, %v312_v53  ;;  %v12724_v28 = vcombine.high %v309_v20, %v313_v59 }
 0x387   :  { %10708 = vmatprep.subr.bf16.mxu0 %v12682_v12  ;;  %11241 = vmatprep.subr.bf16.mxu1 %v12684_v57  ;;  %v316_v12 = vld [vmem:[%s19698_s1 + $0x8d0] sm:$0xff] }
 0x388   :  { %v320_v57 = vld [vmem:[%s19698_s1 + $0x8f0] sm:$0xff] }
 0x389   :  { %v12730_v34 = vcombine.high %v316_v12, %v320_v57  ;;  %v12729_v40 = vcombine.low %v316_v12, %v320_v57 }
 0x38a   :  { %10709 = vmatpush1.bf16.msra.mxu0 %v12681_v35  ;;  %11242 = vmatpush1.bf16.msra.mxu1 %v12683_v37  ;;  %v324_v37 = vld [vmem:[%s19698_s1 + $0x910] sm:$0xff] }
 0x38b   :  { %10710 = vmatprep.subr.bf16.mxu0 %v12690_v21  ;;  %11243 = vmatprep.subr.bf16.mxu1 %v12692_v38  ;;  %v328_v21 = vld [vmem:[%s19698_s1 + $0x930] sm:$0xff]  ;;  %v329_v38 = vld [vmem:[%s19698_s1 + $0x938] sm:$0xff] }
 0x38c   :  { %v12738_v25 = vcombine.high %v324_v37, %v328_v21  ;;  %v12737_v56 = vcombine.low %v324_v37, %v328_v21 }
 0x38e   :  { %10711 = vmatpush1.bf16.msra.mxu0 %v12689_v44  ;;  %11244 = vmatpush1.bf16.msra.mxu1 %v12691_v47  ;;  %v332_v44 = vld [vmem:[%s19698_s1 + $0x950] sm:$0xff] }
 0x38f   :  { %10712 = vmatprep.subr.bf16.mxu0 %v12698_v18  ;;  %11245 = vmatprep.subr.bf16.mxu1 %v12700_v52  ;;  %v336_v47 = vld [vmem:[%s19698_s1 + $0x970] sm:$0xff]  ;;  %v333_v18 = vld [vmem:[%s19698_s1 + $0x958] sm:$0xff] }
 0x390   :  { %v337_v52 = vld [vmem:[%s19698_s1 + $0x978] sm:$0xff]  ;;  %v12746_v48 = vcombine.high %v332_v44, %v336_v47  ;;  %v12745_v6 = vcombine.low %v332_v44, %v336_v47 }
 0x391   :  { %v12748_v61 = vcombine.high %v333_v18, %v337_v52  ;;  %v12747_v7 = vcombine.low %v333_v18, %v337_v52 }
 0x392   :  { %10713 = vmatpush1.bf16.msra.mxu0 %v12697_v39  ;;  %11246 = vmatpush1.bf16.msra.mxu1 %v12699_v0  ;;  %v340_v39 = vld [vmem:[%s19698_s1 + $0x990] sm:$0xff] }
 0x393   :  { %10723 = vmatprep.subr.bf16.mxu0 %v12706_v5  ;;  %11256 = vmatprep.subr.bf16.mxu1 %v12708_v23  ;;  %v344_v0 = vld [vmem:[%s19698_s1 + $0x9b0] sm:$0xff]  ;;  %v341_v5 = vld [vmem:[%s19698_s1 + $0x998] sm:$0xff] }
 0x394   :  { %v345_v23 = vld [vmem:[%s19698_s1 + $0x9b8] sm:$0xff]  ;;  %v12754_v8 = vcombine.high %v340_v39, %v344_v0  ;;  %v12753_v17 = vcombine.low %v340_v39, %v344_v0 }
 0x395   :  { %10715 = vmatmul.mubr.bf16.vlgmr.msra.gmra.mrb[4].mxu0 %v14927_v22  ;;  %11248 = vmatmul.mubr.bf16.vlgmr.msra.gmra.mrb[4].mxu1 %v14927_v22  ;;  %v317_v22 = vld [vmem:[%s19698_s1 + $0x8d8] sm:$0xff]  ;;  %v12756_v10 = vcombine.high %v341_v5, %v345_v23  ;;  %v12755_v53 = vcombine.low %v341_v5, %v345_v23 }
 0x396   :  { %10724 = vmatpush1.bf16.msra.mxu0 %v12705_v54  ;;  %11257 = vmatpush1.bf16.msra.mxu1 %v12707_v11  ;;  %v12732_v35 = vcombine.high %v317_v22, %v321_v29  ;;  %v12731_v41 = vcombine.low %v317_v22, %v321_v29  ;;  %v348_v54 = vld [vmem:[%s19698_s1 + $0x9d0] sm:$0xff] }
 0x397   :  { %10725 = vmatprep.subr.bf16.mxu0 %v12714_v13  ;;  %11258 = vmatprep.subr.bf16.mxu1 %v12716_v14  ;;  %v352_v11 = vld [vmem:[%s19698_s1 + $0x9f0] sm:$0xff]  ;;  %v349_v13 = vld [vmem:[%s19698_s1 + $0x9d8] sm:$0xff] }
 0x398   :  { %10755 = vmatprep.mubr.bf16.mxu0 %v14948_v31  ;;  %11288 = vmatprep.mubr.bf16.mxu1 %v14948_v31  ;;  %v325_v31 = vld [vmem:[%s19698_s1 + $0x918] sm:$0xff]  ;;  %v12762_v20 = vcombine.high %v348_v54, %v352_v11  ;;  %v12761_v12 = vcombine.low %v348_v54, %v352_v11 }
 0x399   :  { %v12740_v42 = vcombine.high %v325_v31, %v329_v38  ;;  %v12739_v3 = vcombine.low %v325_v31, %v329_v38  ;;  %v353_v14 = vld [vmem:[%s19698_s1 + $0x9f8] sm:$0xff] }
 0x39a   :  { %10726 = vmatpush1.bf16.msra.mxu0 %v12713_v24  ;;  %11259 = vmatpush1.bf16.msra.mxu1 %v12715_v26  ;;  %v12764_v59 = vcombine.high %v349_v13, %v353_v14  ;;  %v356_v24 = vld [vmem:[%s19698_s1 + $0xa10] sm:$0xff]  ;;  %v12763_v57 = vcombine.low %v349_v13, %v353_v14 }
 0x39b   :  { %10727 = vmatprep.subr.bf16.mxu0 %v12722_v15  ;;  %11260 = vmatprep.subr.bf16.mxu1 %v12724_v28  ;;  %v360_v26 = vld [vmem:[%s19698_s1 + $0xa30] sm:$0xff]  ;;  %v357_v15 = vld [vmem:[%s19698_s1 + $0xa18] sm:$0xff] }
 0x39c   :  { %v361_v28 = vld [vmem:[%s19698_s1 + $0xa38] sm:$0xff]  ;;  %v12770_v22 = vcombine.high %v356_v24, %v360_v26  ;;  %v12769_v37 = vcombine.low %v356_v24, %v360_v26 }
 0x39d   :  { %v12772_v29 = vcombine.high %v357_v15, %v361_v28  ;;  %v12771_v21 = vcombine.low %v357_v15, %v361_v28 }
 0x39e   :  { %10728 = vmatpush1.bf16.msra.mxu0 %v12721_v32  ;;  %11261 = vmatpush1.bf16.msra.mxu1 %v12723_v33  ;;  %v364_v32 = vld [vmem:[%s19698_s1 + $0xa50] sm:$0xff] }
 0x39f   :  { %10729 = vmatprep.subr.bf16.mxu0 %v12730_v34  ;;  %11262 = vmatprep.subr.bf16.mxu1 %v12732_v35  ;;  %v368_v33 = vld [vmem:[%s19698_s1 + $0xa70] sm:$0xff]  ;;  %v365_v34 = vld [vmem:[%s19698_s1 + $0xa58] sm:$0xff] }
 0x3a0   :  { %v369_v35 = vld [vmem:[%s19698_s1 + $0xa78] sm:$0xff]  ;;  %v12778_v31 = vcombine.high %v364_v32, %v368_v33  ;;  %v12777_v44 = vcombine.low %v364_v32, %v368_v33 }
 0x3a1   :  { %v12780_v38 = vcombine.high %v365_v34, %v369_v35  ;;  %v12779_v47 = vcombine.low %v365_v34, %v369_v35 }
 0x3a2   :  { %10730 = vmatpush1.bf16.msra.mxu0 %v12729_v40  ;;  %11263 = vmatpush1.bf16.msra.mxu1 %v12731_v41  ;;  %v372_v40 = vld [vmem:[%s19698_s1 + $0xa90] sm:$0xff] }
 0x3a3   :  { %10731 = vmatprep.subr.bf16.mxu0 %v12738_v25  ;;  %11264 = vmatprep.subr.bf16.mxu1 %v12740_v42  ;;  %v376_v41 = vld [vmem:[%s19698_s1 + $0xab0] sm:$0xff]  ;;  %v373_v25 = vld [vmem:[%s19698_s1 + $0xa98] sm:$0xff] }
 0x3a4   :  { %v377_v42 = vld [vmem:[%s19698_s1 + $0xab8] sm:$0xff]  ;;  %v12786_v18 = vcombine.high %v372_v40, %v376_v41  ;;  %v12785_v39 = vcombine.low %v372_v40, %v376_v41 }
 0x3a5   :  { %v12788_v52 = vcombine.high %v373_v25, %v377_v42  ;;  %v12787_v0 = vcombine.low %v373_v25, %v377_v42 }
 0x3a6   :  { %10732 = vmatpush1.bf16.msra.mxu0 %v12737_v56  ;;  %11265 = vmatpush1.bf16.msra.mxu1 %v12739_v3  ;;  %v380_v56 = vld [vmem:[%s19698_s1 + $0xad0] sm:$0xff] }
 0x3a7   :  { %10733 = vmatprep.subr.bf16.mxu0 %v12746_v48  ;;  %11266 = vmatprep.subr.bf16.mxu1 %v12748_v61  ;;  %v384_v3 = vld [vmem:[%s19698_s1 + $0xaf0] sm:$0xff]  ;;  %v381_v48 = vld [vmem:[%s19698_s1 + $0xad8] sm:$0xff] }
 0x3a8   :  { %v385_v61 = vld [vmem:[%s19698_s1 + $0xaf8] sm:$0xff]  ;;  %v12794_v5 = vcombine.high %v380_v56, %v384_v3  ;;  %v12793_v54 = vcombine.low %v380_v56, %v384_v3 }
 0x3a9   :  { %v12796_v23 = vcombine.high %v381_v48, %v385_v61  ;;  %v12795_v11 = vcombine.low %v381_v48, %v385_v61 }
 0x3aa   :  { %10734 = vmatpush1.bf16.msra.mxu0 %v12745_v6  ;;  %11267 = vmatpush1.bf16.msra.mxu1 %v12747_v7  ;;  %v388_v6 = vld [vmem:[%s19698_s1 + $0xb10] sm:$0xff] }
 0x3ab   :  { %10735 = vmatprep.subr.bf16.mxu0 %v12754_v8  ;;  %11268 = vmatprep.subr.bf16.mxu1 %v12756_v10  ;;  %v392_v7 = vld [vmem:[%s19698_s1 + $0xb30] sm:$0xff]  ;;  %v389_v8 = vld [vmem:[%s19698_s1 + $0xb18] sm:$0xff] }
 0x3ac   :  { %v393_v10 = vld [vmem:[%s19698_s1 + $0xb38] sm:$0xff]  ;;  %v12802_v13 = vcombine.high %v388_v6, %v392_v7  ;;  %v12801_v24 = vcombine.low %v388_v6, %v392_v7 }
 0x3ad   :  { %v12804_v14 = vcombine.high %v389_v8, %v393_v10  ;;  %v12803_v26 = vcombine.low %v389_v8, %v393_v10 }
 0x3ae   :  { %10736 = vmatpush1.bf16.msra.mxu0 %v12753_v17  ;;  %11269 = vmatpush1.bf16.msra.mxu1 %v12755_v53  ;;  %v396_v17 = vld [vmem:[%s19698_s1 + $0xb50] sm:$0xff] }
 0x3af   :  { %10737 = vmatprep.subr.bf16.mxu0 %v12762_v20  ;;  %11270 = vmatprep.subr.bf16.mxu1 %v12764_v59  ;;  %v400_v53 = vld [vmem:[%s19698_s1 + $0xb70] sm:$0xff]  ;;  %v397_v20 = vld [vmem:[%s19698_s1 + $0xb58] sm:$0xff] }
 0x3b0   :  { %v401_v59 = vld [vmem:[%s19698_s1 + $0xb78] sm:$0xff]  ;;  %v12810_v15 = vcombine.high %v396_v17, %v400_v53  ;;  %v12809_v32 = vcombine.low %v396_v17, %v400_v53 }
 0x3b1   :  { %v12812_v28 = vcombine.high %v397_v20, %v401_v59  ;;  %v12811_v33 = vcombine.low %v397_v20, %v401_v59 }
 0x3b2   :  { %10738 = vmatpush1.bf16.msra.mxu0 %v12761_v12  ;;  %11271 = vmatpush1.bf16.msra.mxu1 %v12763_v57  ;;  %v404_v12 = vld [vmem:[%s19698_s1 + $0xb90] sm:$0xff] }
 0x3b3   :  { %10739 = vmatprep.subr.bf16.mxu0 %v12770_v22  ;;  %11272 = vmatprep.subr.bf16.mxu1 %v12772_v29  ;;  %v408_v57 = vld [vmem:[%s19698_s1 + $0xbb0] sm:$0xff]  ;;  %v405_v22 = vld [vmem:[%s19698_s1 + $0xb98] sm:$0xff] }
 0x3b4   :  { %v409_v29 = vld [vmem:[%s19698_s1 + $0xbb8] sm:$0xff]  ;;  %v12818_v34 = vcombine.high %v404_v12, %v408_v57  ;;  %v12817_v40 = vcombine.low %v404_v12, %v408_v57 }
 0x3b5   :  { %v12820_v35 = vcombine.high %v405_v22, %v409_v29  ;;  %v12819_v41 = vcombine.low %v405_v22, %v409_v29  ;;  %v452_v29 = vld [vmem:[%s19698_s1 + $0xd10] sm:$0xff] }
 0x3b6   :  { %10740 = vmatpush1.bf16.msra.mxu0 %v12769_v37  ;;  %11273 = vmatpush1.bf16.msra.mxu1 %v12771_v21  ;;  %v412_v37 = vld [vmem:[%s19698_s1 + $0xbd0] sm:$0xff] }
 0x3b7   :  { %10741 = vmatprep.subr.bf16.mxu0 %v12778_v31  ;;  %11274 = vmatprep.subr.bf16.mxu1 %v12780_v38  ;;  %v416_v21 = vld [vmem:[%s19698_s1 + $0xbf0] sm:$0xff]  ;;  %v413_v31 = vld [vmem:[%s19698_s1 + $0xbd8] sm:$0xff] }
 0x3b8   :  { %v417_v38 = vld [vmem:[%s19698_s1 + $0xbf8] sm:$0xff]  ;;  %v12826_v25 = vcombine.high %v412_v37, %v416_v21  ;;  %v12825_v56 = vcombine.low %v412_v37, %v416_v21 }
 0x3b9   :  { %v12828_v42 = vcombine.high %v413_v31, %v417_v38  ;;  %v12827_v3 = vcombine.low %v413_v31, %v417_v38  ;;  %v460_v31 = vld [vmem:[%s19698_s1 + $0xd50] sm:$0xff] }
 0x3ba   :  { %10742 = vmatpush1.bf16.msra.mxu0 %v12777_v44  ;;  %11275 = vmatpush1.bf16.msra.mxu1 %v12779_v47  ;;  %v420_v44 = vld [vmem:[%s19698_s1 + $0xc10] sm:$0xff] }
 0x3bb   :  { %10743 = vmatprep.subr.bf16.mxu0 %v12786_v18  ;;  %11276 = vmatprep.subr.bf16.mxu1 %v12788_v52  ;;  %v424_v47 = vld [vmem:[%s19698_s1 + $0xc30] sm:$0xff]  ;;  %v421_v18 = vld [vmem:[%s19698_s1 + $0xc18] sm:$0xff] }
 0x3bc   :  { %v425_v52 = vld [vmem:[%s19698_s1 + $0xc38] sm:$0xff]  ;;  %v12834_v48 = vcombine.high %v420_v44, %v424_v47  ;;  %v12833_v6 = vcombine.low %v420_v44, %v424_v47  ;;  %v464_v38 = vld [vmem:[%s19698_s1 + $0xd70] sm:$0xff] }
 0x3bd   :  { %v12836_v61 = vcombine.high %v421_v18, %v425_v52  ;;  %v12835_v7 = vcombine.low %v421_v18, %v425_v52  ;;  %v12874_v44 = vcombine.high %v460_v31, %v464_v38  ;;  %v468_v18 = vld [vmem:[%s19698_s1 + $0xd90] sm:$0xff] }
 0x3be   :  { %10744 = vmatpush1.bf16.msra.mxu0 %v12785_v39  ;;  %11277 = vmatpush1.bf16.msra.mxu1 %v12787_v0  ;;  %v428_v39 = vld [vmem:[%s19698_s1 + $0xc50] sm:$0xff] }
 0x3bf   :  { %10745 = vmatprep.subr.bf16.mxu0 %v12794_v5  ;;  %11278 = vmatprep.subr.bf16.mxu1 %v12796_v23  ;;  %v432_v0 = vld [vmem:[%s19698_s1 + $0xc70] sm:$0xff]  ;;  %v429_v5 = vld [vmem:[%s19698_s1 + $0xc58] sm:$0xff] }
 0x3c0   :  { %v433_v23 = vld [vmem:[%s19698_s1 + $0xc78] sm:$0xff]  ;;  %v12842_v8 = vcombine.high %v428_v39, %v432_v0  ;;  %v12841_v17 = vcombine.low %v428_v39, %v432_v0  ;;  %v472_v52 = vld [vmem:[%s19698_s1 + $0xdb0] sm:$0xff] }
 0x3c1   :  { %v12844_v10 = vcombine.high %v429_v5, %v433_v23  ;;  %v12843_v53 = vcombine.low %v429_v5, %v433_v23  ;;  %v12882_v39 = vcombine.high %v468_v18, %v472_v52  ;;  %v476_v23 = vld [vmem:[%s19698_s1 + $0xdd0] sm:$0xff] }
 0x3c2   :  { %10746 = vmatpush1.bf16.msra.mxu0 %v12793_v54  ;;  %11279 = vmatpush1.bf16.msra.mxu1 %v12795_v11  ;;  %v436_v54 = vld [vmem:[%s19698_s1 + $0xc90] sm:$0xff] }
 0x3c3   :  { %10747 = vmatprep.subr.bf16.mxu0 %v12802_v13  ;;  %11280 = vmatprep.subr.bf16.mxu1 %v12804_v14  ;;  %v440_v11 = vld [vmem:[%s19698_s1 + $0xcb0] sm:$0xff]  ;;  %v437_v13 = vld [vmem:[%s19698_s1 + $0xc98] sm:$0xff] }
 0x3c4   :  { %v441_v14 = vld [vmem:[%s19698_s1 + $0xcb8] sm:$0xff]  ;;  %v12850_v20 = vcombine.high %v436_v54, %v440_v11 }
 0x3c5   :  { %v12852_v59 = vcombine.high %v437_v13, %v441_v14  ;;  %v12851_v12 = vcombine.low %v437_v13, %v441_v14  ;;  %v12881_v14 = vcombine.low %v468_v18, %v472_v52 }
 0x3c6   :  { %10748 = vmatpush1.bf16.msra.mxu0 %v12801_v24  ;;  %11281 = vmatpush1.bf16.msra.mxu1 %v12803_v26  ;;  %v444_v24 = vld [vmem:[%s19698_s1 + $0xcd0] sm:$0xff] }
 0x3c7   :  { %10749 = vmatprep.subr.bf16.mxu0 %v12810_v15  ;;  %11282 = vmatprep.subr.bf16.mxu1 %v12812_v28  ;;  %v448_v26 = vld [vmem:[%s19698_s1 + $0xcf0] sm:$0xff]  ;;  %v449_v15 = vld [vmem:[%s19698_s1 + $0xcf8] sm:$0xff]  ;;  %v12849_v28 = vcombine.low %v436_v54, %v440_v11 }
 0x3c8   :  { %v12858_v57 = vcombine.high %v444_v24, %v448_v26  ;;  %v481_v54 = vld [vmem:[%s19698_s1 + $0xdf8] sm:$0xff] }
 0x3ca   :  { %10750 = vmatpush1.bf16.msra.mxu0 %v12809_v32  ;;  %11283 = vmatpush1.bf16.msra.mxu1 %v12811_v33  ;;  %v456_v32 = vld [vmem:[%s19698_s1 + $0xd30] sm:$0xff]  ;;  %v457_v33 = vld [vmem:[%s19698_s1 + $0xd38] sm:$0xff] }
 0x3cb   :  { %10751 = vmatprep.subr.bf16.mxu0 %v12818_v34  ;;  %11284 = vmatprep.subr.bf16.mxu1 %v12820_v35  ;;  %v12857_v34 = vcombine.low %v444_v24, %v448_v26  ;;  %v12866_v37 = vcombine.high %v452_v29, %v456_v32 }
 0x3ce   :  { %10752 = vmatpush1.bf16.msra.mxu0 %v12817_v40  ;;  %11285 = vmatpush1.bf16.msra.mxu1 %v12819_v41  ;;  %v461_v40 = vld [vmem:[%s19698_s1 + $0xd58] sm:$0xff] }
 0x3cf   :  { %10753 = vmatprep.subr.bf16.mxu0 %v12826_v25  ;;  %11286 = vmatprep.subr.bf16.mxu1 %v12828_v42  ;;  %v465_v41 = vld [vmem:[%s19698_s1 + $0xd78] sm:$0xff]  ;;  %v12865_v25 = vcombine.low %v452_v29, %v456_v32 }
 0x3d0   :  { %v12876_v47 = vcombine.high %v461_v40, %v465_v41 }
 0x3d2   :  { %10754 = vmatpush1.bf16.msra.mxu0 %v12825_v56  ;;  %11287 = vmatpush1.bf16.msra.mxu1 %v12827_v3  ;;  %v469_v56 = vld [vmem:[%s19698_s1 + $0xd98] sm:$0xff] }
 0x3d3   :  { %10764 = vmatprep.subr.bf16.mxu0 %v12834_v48  ;;  %11297 = vmatprep.subr.bf16.mxu1 %v12836_v61  ;;  %v473_v3 = vld [vmem:[%s19698_s1 + $0xdb8] sm:$0xff]  ;;  %v12873_v48 = vcombine.low %v460_v31, %v464_v38  ;;  %v12875_v61 = vcombine.low %v461_v40, %v465_v41  ;;  %v500_v40 = vld [vmem:[%s19698_s1 + $0xe90] sm:$0xff] }
 0x3d4   :  { %v12884_v5 = vcombine.high %v469_v56, %v473_v3  ;;  %v504_v41 = vld [vmem:[%s19698_s1 + $0xeb0] sm:$0xff] }
 0x3d5   :  { %10756 = vmatmul.mubr.bf16.vlgmr.msra.gmra.mrb[4].mxu0 %v15136_v36  ;;  %11289 = vmatmul.mubr.bf16.vlgmr.msra.gmra.mrb[4].mxu1 %v15136_v36  ;;  %v445_v36 = vld [vmem:[%s19698_s1 + $0xcd8] sm:$0xff]  ;;  %v12914_v18 = vcombine.high %v500_v40, %v504_v41 }
 0x3d6   :  { %10765 = vmatpush1.bf16.msra.mxu0 %v12833_v6  ;;  %11298 = vmatpush1.bf16.msra.mxu1 %v12835_v7  ;;  %v12860_v22 = vcombine.high %v445_v36, %v449_v15  ;;  %v12859_v35 = vcombine.low %v445_v36, %v449_v15  ;;  %v480_v6 = vld [vmem:[%s19698_s1 + $0xdf0] sm:$0xff] }
 0x3d7   :  { %10766 = vmatprep.subr.bf16.mxu0 %v12842_v8  ;;  %11299 = vmatprep.subr.bf16.mxu1 %v12844_v10  ;;  %v477_v10 = vld [vmem:[%s19698_s1 + $0xdd8] sm:$0xff]  ;;  %v484_v36 = vld [vmem:[%s19698_s1 + $0xe10] sm:$0xff] }
 0x3d8   :  { %10796 = vmatprep.mubr.bf16.mxu0 %v15157_v45  ;;  %11329 = vmatprep.mubr.bf16.mxu1 %v15157_v45  ;;  %v453_v45 = vld [vmem:[%s19698_s1 + $0xd18] sm:$0xff]  ;;  %v12892_v26 = vcombine.high %v477_v10, %v481_v54  ;;  %v488_v15 = vld [vmem:[%s19698_s1 + $0xe30] sm:$0xff] }
 0x3d9   :  { %v12868_v21 = vcombine.high %v453_v45, %v457_v33  ;;  %v12867_v42 = vcombine.low %v453_v45, %v457_v33  ;;  %v12898_v29 = vcombine.high %v484_v36, %v488_v15  ;;  %v492_v45 = vld [vmem:[%s19698_s1 + $0xe50] sm:$0xff] }
 0x3da   :  { %10767 = vmatpush1.bf16.msra.mxu0 %v12841_v17  ;;  %11300 = vmatpush1.bf16.msra.mxu1 %v12843_v53  ;;  %v496_v33 = vld [vmem:[%s19698_s1 + $0xe70] sm:$0xff] }
 0x3db   :  { %10768 = vmatprep.subr.bf16.mxu0 %v12850_v20  ;;  %11301 = vmatprep.subr.bf16.mxu1 %v12852_v59  ;;  %v12883_v20 = vcombine.low %v469_v56, %v473_v3  ;;  %v12890_v59 = vcombine.high %v476_v23, %v480_v6  ;;  %v12906_v31 = vcombine.high %v492_v45, %v496_v33  ;;  %v508_v56 = vld [vmem:[%s19698_s1 + $0xed0] sm:$0xff] }
 0x3dc   :  { %v512_v3 = vld [vmem:[%s19698_s1 + $0xef0] sm:$0xff] }
 0x3de   :  { %10769 = vmatpush1.bf16.msra.mxu0 %v12849_v28  ;;  %11302 = vmatpush1.bf16.msra.mxu1 %v12851_v12  ;;  %v485_v28 = vld [vmem:[%s19698_s1 + $0xe18] sm:$0xff] }
 0x3df   :  { %10770 = vmatprep.subr.bf16.mxu0 %v12858_v57  ;;  %11303 = vmatprep.subr.bf16.mxu1 %v12860_v22  ;;  %v489_v12 = vld [vmem:[%s19698_s1 + $0xe38] sm:$0xff]  ;;  %v12889_v57 = vcombine.low %v476_v23, %v480_v6  ;;  %v12891_v22 = vcombine.low %v477_v10, %v481_v54  ;;  %v12922_v23 = vcombine.high %v508_v56, %v512_v3  ;;  %v516_v10 = vld [vmem:[%s19698_s1 + $0xf10] sm:$0xff] }
 0x3e0   :  { %v12900_v32 = vcombine.high %v485_v28, %v489_v12  ;;  %v520_v54 = vld [vmem:[%s19698_s1 + $0xf30] sm:$0xff] }
 0x3e2   :  { %10771 = vmatpush1.bf16.msra.mxu0 %v12857_v34  ;;  %11304 = vmatpush1.bf16.msra.mxu1 %v12859_v35  ;;  %v493_v34 = vld [vmem:[%s19698_s1 + $0xe58] sm:$0xff] }
 0x3e3   :  { %10772 = vmatprep.subr.bf16.mxu0 %v12866_v37  ;;  %11305 = vmatprep.subr.bf16.mxu1 %v12868_v21  ;;  %v497_v35 = vld [vmem:[%s19698_s1 + $0xe78] sm:$0xff]  ;;  %v12897_v37 = vcombine.low %v484_v36, %v488_v15  ;;  %v12899_v21 = vcombine.low %v485_v28, %v489_v12  ;;  %v12929_v28 = vcombine.low %v516_v10, %v520_v54 }
 0x3e4   :  { %v12908_v38 = vcombine.high %v493_v34, %v497_v35  ;;  %v525_v36 = vld [vmem:[%s19698_s1 + $0xf58] sm:$0xff] }
 0x3e5   :  { %v529_v15 = vld [vmem:[%s19698_s1 + $0xf78] sm:$0xff] }
 0x3e6   :  { %10773 = vmatpush1.bf16.msra.mxu0 %v12865_v25  ;;  %11306 = vmatpush1.bf16.msra.mxu1 %v12867_v42  ;;  %v501_v25 = vld [vmem:[%s19698_s1 + $0xe98] sm:$0xff] }
 0x3e7   :  { %10774 = vmatprep.subr.bf16.mxu0 %v12874_v44  ;;  %11307 = vmatprep.subr.bf16.mxu1 %v12876_v47  ;;  %v505_v42 = vld [vmem:[%s19698_s1 + $0xeb8] sm:$0xff]  ;;  %v12905_v44 = vcombine.low %v492_v45, %v496_v33  ;;  %v12907_v47 = vcombine.low %v493_v34, %v497_v35  ;;  %v12939_v35 = vcombine.low %v525_v36, %v529_v15 }
 0x3e8   :  { %v17732_v0 = vpop.f32.mrb[0].mxu0  ;;  %v17740_v7 = vpop.f32.mrb[0].mxu1  ;;  %v12916_v52 = vcombine.high %v501_v25, %v505_v42  ;;  %v533_v45 = vld [vmem:[%s19698_s1 + $0xf98] sm:$0xff] }
 0x3e9   :  { %v17742_v8 = vpop.f32.mrb[1].mxu0  ;;  %v17750_v11 = vpop.f32.mrb[1].mxu1  ;;  %v537_v33 = vld [vmem:[%s19698_s1 + $0xfb8] sm:$0xff] }
 0x3ea   :  { %v10105_v13 = vpop.f32.mrb[2].mxu0  ;;  %10775 = vmatpush1.bf16.msra.mxu0 %v12873_v48  ;;  %v10638_v17 = vpop.f32.mrb[2].mxu1  ;;  %11308 = vmatpush1.bf16.msra.mxu1 %v12875_v61  ;;  %v509_v48 = vld [vmem:[%s19698_s1 + $0xed8] sm:$0xff] }
 0x3eb   :  { %v10106_v53 = vpop.f32.mrb[3].mxu0  ;;  %10776 = vmatprep.subr.bf16.mxu0 %v12882_v39  ;;  %v10639_v24 = vpop.f32.mrb[3].mxu1  ;;  %11309 = vmatprep.subr.bf16.mxu1 %v12884_v5  ;;  %v513_v61 = vld [vmem:[%s19698_s1 + $0xef8] sm:$0xff]  ;;  %v12913_v39 = vcombine.low %v500_v40, %v504_v41  ;;  %v12915_v5 = vcombine.low %v501_v25, %v505_v42  ;;  %v12921_v17 = vcombine.low %v508_v56, %v512_v3 }
 0x3ec   :  { %v12924_v6 = vcombine.high %v509_v48, %v513_v61  ;;  %v517_v13 = vld [vmem:[%s19698_s1 + $0xf18] sm:$0xff]  ;;  %v12923_v53 = vcombine.low %v509_v48, %v513_v61  ;;  %v524_v24 = vld [vmem:[%s19698_s1 + $0xf50] sm:$0xff]  ;;  %v12947_v42 = vcombine.low %v533_v45, %v537_v33 }
 0x3ed   :  { %v541_v40 = vld [vmem:[%s19698_s1 + $0xfd8] sm:$0xff] }
 0x3ee   :  { %10777 = vmatpush1.bf16.msra.mxu0 %v12881_v14  ;;  %11310 = vmatpush1.bf16.msra.mxu1 %v12883_v20  ;;  %v521_v14 = vld [vmem:[%s19698_s1 + $0xf38] sm:$0xff]  ;;  %v12930_v20 = vcombine.high %v516_v10, %v520_v54 }
 0x3ef   :  { %10778 = vmatprep.subr.bf16.mxu0 %v12890_v59  ;;  %11311 = vmatprep.subr.bf16.mxu1 %v12892_v26  ;;  %v12932_v59 = vcombine.high %v517_v13, %v521_v14  ;;  %v528_v26 = vld [vmem:[%s19698_s1 + $0xf70] sm:$0xff]  ;;  %v12931_v12 = vcombine.low %v517_v13, %v521_v14  ;;  %v545_v41 = vld [vmem:[%s19698_s1 + $0xff8] sm:$0xff] }
 0x3f0   :  { %v12937_v34 = vcombine.low %v524_v24, %v528_v26  ;;  %v549_v56 = vld [vmem:[%s19698_s1 + $0x1018] sm:$0xff]  ;;  %v12955_v61 = vcombine.low %v541_v40, %v545_v41 }
 0x3f1   :  { %v553_v3 = vld [vmem:[%s19698_s1 + $0x1038] sm:$0xff] }
 0x3f2   :  { %10779 = vmatpush1.bf16.msra.mxu0 %v12889_v57  ;;  %11312 = vmatpush1.bf16.msra.mxu1 %v12891_v22  ;;  %v12938_v57 = vcombine.high %v524_v24, %v528_v26  ;;  %v12940_v22 = vcombine.high %v525_v36, %v529_v15  ;;  %v557_v10 = vld [vmem:[%s19698_s1 + $0x1058] sm:$0xff]  ;;  %v12963_v14 = vcombine.low %v549_v56, %v553_v3 }
 0x3f3   :  { %10780 = vmatprep.subr.bf16.mxu0 %v12898_v29  ;;  %11313 = vmatprep.subr.bf16.mxu1 %v12900_v32  ;;  %v532_v29 = vld [vmem:[%s19698_s1 + $0xf90] sm:$0xff]  ;;  %v561_v54 = vld [vmem:[%s19698_s1 + $0x1078] sm:$0xff] }
 0x3f4   :  { %v536_v32 = vld [vmem:[%s19698_s1 + $0xfb0] sm:$0xff]  ;;  %v565_v24 = vld [vmem:[%s19698_s1 + $0x1098] sm:$0xff]  ;;  %v12971_v15 = vcombine.low %v557_v10, %v561_v54 }
 0x3f5   :  { %v12945_v25 = vcombine.low %v532_v29, %v536_v32  ;;  %v569_v26 = vld [vmem:[%s19698_s1 + $0x10b8] sm:$0xff] }
 0x3f6   :  { %10781 = vmatpush1.bf16.msra.mxu0 %v12897_v37  ;;  %11314 = vmatpush1.bf16.msra.mxu1 %v12899_v21  ;;  %v12946_v37 = vcombine.high %v532_v29, %v536_v32  ;;  %v12948_v21 = vcombine.high %v533_v45, %v537_v33  ;;  %v577_v29 = vld [vmem:[%s19698_s1 + $0x10f8] sm:$0xff]  ;;  %v12979_v45 = vcombine.low %v565_v24, %v569_v26 }
 0x3f7   :  { %10782 = vmatprep.subr.bf16.mxu0 %v12906_v31  ;;  %11315 = vmatprep.subr.bf16.mxu1 %v12908_v38  ;;  %v540_v31 = vld [vmem:[%s19698_s1 + $0xfd0] sm:$0xff] }
 0x3f8   :  { %v544_v38 = vld [vmem:[%s19698_s1 + $0xff0] sm:$0xff] }
 0x3f9   :  { %v12953_v48 = vcombine.low %v540_v31, %v544_v38 }
 0x3fa   :  { %10783 = vmatpush1.bf16.msra.mxu0 %v12905_v44  ;;  %11316 = vmatpush1.bf16.msra.mxu1 %v12907_v47  ;;  %v12954_v44 = vcombine.high %v540_v31, %v544_v38  ;;  %v12956_v47 = vcombine.high %v541_v40, %v545_v41 }
 0x3fb   :  { %10784 = vmatprep.subr.bf16.mxu0 %v12914_v18  ;;  %11317 = vmatprep.subr.bf16.mxu1 %v12916_v52  ;;  %v548_v18 = vld [vmem:[%s19698_s1 + $0x1010] sm:$0xff] }
 0x3fc   :  { %v552_v52 = vld [vmem:[%s19698_s1 + $0x1030] sm:$0xff] }
 0x3fd   :  { %v12961_v13 = vcombine.low %v548_v18, %v552_v52 }
 0x3fe   :  { %10785 = vmatpush1.bf16.msra.mxu0 %v12913_v39  ;;  %11318 = vmatpush1.bf16.msra.mxu1 %v12915_v5  ;;  %v12962_v39 = vcombine.high %v548_v18, %v552_v52  ;;  %v12964_v5 = vcombine.high %v549_v56, %v553_v3 }
 0x3ff   :  { %10786 = vmatprep.subr.bf16.mxu0 %v12922_v23  ;;  %11319 = vmatprep.subr.bf16.mxu1 %v12924_v6  ;;  %v556_v23 = vld [vmem:[%s19698_s1 + $0x1050] sm:$0xff] }
 0x400   :  { %v560_v6 = vld [vmem:[%s19698_s1 + $0x1070] sm:$0xff] }
 0x401   :  { %v12969_v36 = vcombine.low %v556_v23, %v560_v6 }
 0x402   :  { %10787 = vmatpush1.bf16.msra.mxu0 %v12921_v17  ;;  %11320 = vmatpush1.bf16.msra.mxu1 %v12923_v53  ;;  %v12970_v17 = vcombine.high %v556_v23, %v560_v6  ;;  %v12972_v53 = vcombine.high %v557_v10, %v561_v54 }
 0x403   :  { %10788 = vmatprep.subr.bf16.mxu0 %v12930_v20  ;;  %11321 = vmatprep.subr.bf16.mxu1 %v12932_v59  ;;  %v564_v20 = vld [vmem:[%s19698_s1 + $0x1090] sm:$0xff] }
 0x404   :  { %v568_v59 = vld [vmem:[%s19698_s1 + $0x10b0] sm:$0xff] }
 0x405   :  { %v12977_v32 = vcombine.low %v564_v20, %v568_v59 }
 0x406   :  { %10789 = vmatpush1.bf16.msra.mxu0 %v12929_v28  ;;  %11322 = vmatpush1.bf16.msra.mxu1 %v12931_v12  ;;  %v12978_v28 = vcombine.high %v564_v20, %v568_v59  ;;  %v12980_v12 = vcombine.high %v565_v24, %v569_v26 }
 0x407   :  { %10790 = vmatprep.subr.bf16.mxu0 %v12938_v57  ;;  %11323 = vmatprep.subr.bf16.mxu1 %v12940_v22  ;;  %v572_v57 = vld [vmem:[%s19698_s1 + $0x10d0] sm:$0xff] }
 0x408   :  { %v576_v22 = vld [vmem:[%s19698_s1 + $0x10f0] sm:$0xff] }
 0x409   :  { %v12986_v33 = vcombine.high %v572_v57, %v576_v22  ;;  %v12985_v31 = vcombine.low %v572_v57, %v576_v22 }
 0x40a   :  { %10791 = vmatpush1.bf16.msra.mxu0 %v12937_v34  ;;  %11324 = vmatpush1.bf16.msra.mxu1 %v12939_v35  ;;  %v580_v35 = vld [vmem:[%s19698_s1 + $0x1110] sm:$0xff] }
 0x40b   :  { %10792 = vmatprep.subr.bf16.mxu0 %v12946_v37  ;;  %11325 = vmatprep.subr.bf16.mxu1 %v12948_v21  ;;  %v584_v37 = vld [vmem:[%s19698_s1 + $0x1130] sm:$0xff]  ;;  %v585_v21 = vld [vmem:[%s19698_s1 + $0x1138] sm:$0xff] }
 0x40c   :  { %v12994_v40 = vcombine.high %v580_v35, %v584_v37  ;;  %v12993_v18 = vcombine.low %v580_v35, %v584_v37 }
 0x40e   :  { %10793 = vmatpush1.bf16.msra.mxu0 %v12945_v25  ;;  %11326 = vmatpush1.bf16.msra.mxu1 %v12947_v42  ;;  %v588_v25 = vld [vmem:[%s19698_s1 + $0x1150] sm:$0xff] }
 0x40f   :  { %10794 = vmatprep.subr.bf16.mxu0 %v12954_v44  ;;  %11327 = vmatprep.subr.bf16.mxu1 %v12956_v47  ;;  %v592_v42 = vld [vmem:[%s19698_s1 + $0x1170] sm:$0xff]  ;;  %v589_v44 = vld [vmem:[%s19698_s1 + $0x1158] sm:$0xff] }
 0x410   :  { %v593_v47 = vld [vmem:[%s19698_s1 + $0x1178] sm:$0xff]  ;;  %v13002_v56 = vcombine.high %v588_v25, %v592_v42  ;;  %v13001_v23 = vcombine.low %v588_v25, %v592_v42 }
 0x411   :  { %v13004_v3 = vcombine.high %v589_v44, %v593_v47  ;;  %v13003_v6 = vcombine.low %v589_v44, %v593_v47 }
 0x412   :  { %10795 = vmatpush1.bf16.msra.mxu0 %v12953_v48  ;;  %11328 = vmatpush1.bf16.msra.mxu1 %v12955_v61  ;;  %v596_v48 = vld [vmem:[%s19698_s1 + $0x1190] sm:$0xff] }
 0x413   :  { %10805 = vmatprep.subr.bf16.mxu0 %v12962_v39  ;;  %11338 = vmatprep.subr.bf16.mxu1 %v12964_v5  ;;  %v600_v61 = vld [vmem:[%s19698_s1 + $0x11b0] sm:$0xff]  ;;  %v597_v39 = vld [vmem:[%s19698_s1 + $0x1198] sm:$0xff] }
 0x414   :  { %v601_v5 = vld [vmem:[%s19698_s1 + $0x11b8] sm:$0xff]  ;;  %v13010_v10 = vcombine.high %v596_v48, %v600_v61  ;;  %v13009_v20 = vcombine.low %v596_v48, %v600_v61 }
 0x415   :  { %10797 = vmatmul.mubr.bf16.vlgmr.msra.gmra.mrb[4].mxu0 %v15345_v55  ;;  %11330 = vmatmul.mubr.bf16.vlgmr.msra.gmra.mrb[4].mxu1 %v15345_v55  ;;  %v573_v55 = vld [vmem:[%s19698_s1 + $0x10d8] sm:$0xff]  ;;  %v13012_v54 = vcombine.high %v597_v39, %v601_v5  ;;  %v13011_v59 = vcombine.low %v597_v39, %v601_v5 }
 0x416   :  { %10806 = vmatpush1.bf16.msra.mxu0 %v12961_v13  ;;  %11339 = vmatpush1.bf16.msra.mxu1 %v12963_v14  ;;  %v12988_v34 = vcombine.high %v573_v55, %v577_v29  ;;  %v12987_v38 = vcombine.low %v573_v55, %v577_v29  ;;  %v604_v13 = vld [vmem:[%s19698_s1 + $0x11d0] sm:$0xff] }
 0x417   :  { %10807 = vmatprep.subr.bf16.mxu0 %v12970_v17  ;;  %11340 = vmatprep.subr.bf16.mxu1 %v12972_v53  ;;  %v608_v14 = vld [vmem:[%s19698_s1 + $0x11f0] sm:$0xff]  ;;  %v605_v17 = vld [vmem:[%s19698_s1 + $0x11d8] sm:$0xff] }
 0x418   :  { %10837 = vmatprep.mubr.bf16.mxu0 %v15366_v1  ;;  %11370 = vmatprep.mubr.bf16.mxu1 %v15366_v1  ;;  %v581_v1 = vld [vmem:[%s19698_s1 + $0x1118] sm:$0xff]  ;;  %v13018_v24 = vcombine.high %v604_v13, %v608_v14  ;;  %v13017_v57 = vcombine.low %v604_v13, %v608_v14 }
 0x419   :  { %v12996_v41 = vcombine.high %v581_v1, %v585_v21  ;;  %v12995_v52 = vcombine.low %v581_v1, %v585_v21  ;;  %v609_v53 = vld [vmem:[%s19698_s1 + $0x11f8] sm:$0xff] }
 0x41a   :  { %10808 = vmatpush1.bf16.msra.mxu0 %v12969_v36  ;;  %11341 = vmatpush1.bf16.msra.mxu1 %v12971_v15  ;;  %v13020_v26 = vcombine.high %v605_v17, %v609_v53  ;;  %v612_v36 = vld [vmem:[%s19698_s1 + $0x1210] sm:$0xff]  ;;  %v13019_v22 = vcombine.low %v605_v17, %v609_v53 }
 0x41b   :  { %10809 = vmatprep.subr.bf16.mxu0 %v12978_v28  ;;  %11342 = vmatprep.subr.bf16.mxu1 %v12980_v12  ;;  %v616_v15 = vld [vmem:[%s19698_s1 + $0x1230] sm:$0xff]  ;;  %v613_v28 = vld [vmem:[%s19698_s1 + $0x1218] sm:$0xff] }
 0x41c   :  { %v617_v12 = vld [vmem:[%s19698_s1 + $0x1238] sm:$0xff]  ;;  %v13026_v55 = vcombine.high %v612_v36, %v616_v15  ;;  %v13025_v35 = vcombine.low %v612_v36, %v616_v15 }
 0x41d   :  { %v13028_v29 = vcombine.high %v613_v28, %v617_v12  ;;  %v13027_v37 = vcombine.low %v613_v28, %v617_v12 }
 0x41e   :  { %10810 = vmatpush1.bf16.msra.mxu0 %v12977_v32  ;;  %11343 = vmatpush1.bf16.msra.mxu1 %v12979_v45  ;;  %v620_v32 = vld [vmem:[%s19698_s1 + $0x1250] sm:$0xff] }
 0x41f   :  { %10811 = vmatprep.subr.bf16.mxu0 %v12986_v33  ;;  %11344 = vmatprep.subr.bf16.mxu1 %v12988_v34  ;;  %v624_v45 = vld [vmem:[%s19698_s1 + $0x1270] sm:$0xff]  ;;  %v621_v33 = vld [vmem:[%s19698_s1 + $0x1258] sm:$0xff] }
 0x420   :  { %v625_v34 = vld [vmem:[%s19698_s1 + $0x1278] sm:$0xff]  ;;  %v13034_v1 = vcombine.high %v620_v32, %v624_v45  ;;  %v13033_v25 = vcombine.low %v620_v32, %v624_v45 }
 0x421   :  { %v13036_v21 = vcombine.high %v621_v33, %v625_v34  ;;  %v13035_v42 = vcombine.low %v621_v33, %v625_v34 }
 0x422   :  { %10812 = vmatpush1.bf16.msra.mxu0 %v12985_v31  ;;  %11345 = vmatpush1.bf16.msra.mxu1 %v12987_v38  ;;  %v628_v31 = vld [vmem:[%s19698_s1 + $0x1290] sm:$0xff] }
 0x423   :  { %10813 = vmatprep.subr.bf16.mxu0 %v12994_v40  ;;  %11346 = vmatprep.subr.bf16.mxu1 %v12996_v41  ;;  %v632_v38 = vld [vmem:[%s19698_s1 + $0x12b0] sm:$0xff]  ;;  %v629_v40 = vld [vmem:[%s19698_s1 + $0x1298] sm:$0xff] }
 0x424   :  { %v633_v41 = vld [vmem:[%s19698_s1 + $0x12b8] sm:$0xff]  ;;  %v13042_v44 = vcombine.high %v628_v31, %v632_v38  ;;  %v13041_v48 = vcombine.low %v628_v31, %v632_v38 }
 0x425   :  { %v13044_v47 = vcombine.high %v629_v40, %v633_v41  ;;  %v13043_v61 = vcombine.low %v629_v40, %v633_v41 }
 0x426   :  { %10814 = vmatpush1.bf16.msra.mxu0 %v12993_v18  ;;  %11347 = vmatpush1.bf16.msra.mxu1 %v12995_v52  ;;  %v636_v18 = vld [vmem:[%s19698_s1 + $0x12d0] sm:$0xff] }
 0x427   :  { %10815 = vmatprep.subr.bf16.mxu0 %v13002_v56  ;;  %11348 = vmatprep.subr.bf16.mxu1 %v13004_v3  ;;  %v640_v52 = vld [vmem:[%s19698_s1 + $0x12f0] sm:$0xff]  ;;  %v637_v56 = vld [vmem:[%s19698_s1 + $0x12d8] sm:$0xff] }
 0x428   :  { %v641_v3 = vld [vmem:[%s19698_s1 + $0x12f8] sm:$0xff]  ;;  %v13050_v39 = vcombine.high %v636_v18, %v640_v52  ;;  %v13049_v13 = vcombine.low %v636_v18, %v640_v52 }
 0x429   :  { %v13052_v5 = vcombine.high %v637_v56, %v641_v3  ;;  %v13051_v14 = vcombine.low %v637_v56, %v641_v3 }
 0x42a   :  { %10816 = vmatpush1.bf16.msra.mxu0 %v13001_v23  ;;  %11349 = vmatpush1.bf16.msra.mxu1 %v13003_v6  ;;  %v644_v23 = vld [vmem:[%s19698_s1 + $0x1310] sm:$0xff] }
 0x42b   :  { %10817 = vmatprep.subr.bf16.mxu0 %v13010_v10  ;;  %11350 = vmatprep.subr.bf16.mxu1 %v13012_v54  ;;  %v648_v6 = vld [vmem:[%s19698_s1 + $0x1330] sm:$0xff]  ;;  %v645_v10 = vld [vmem:[%s19698_s1 + $0x1318] sm:$0xff] }
 0x42c   :  { %v649_v54 = vld [vmem:[%s19698_s1 + $0x1338] sm:$0xff]  ;;  %v13058_v17 = vcombine.high %v644_v23, %v648_v6  ;;  %v13057_v36 = vcombine.low %v644_v23, %v648_v6 }
 0x42d   :  { %v13060_v53 = vcombine.high %v645_v10, %v649_v54  ;;  %v13059_v15 = vcombine.low %v645_v10, %v649_v54 }
 0x42e   :  { %10818 = vmatpush1.bf16.msra.mxu0 %v13009_v20  ;;  %11351 = vmatpush1.bf16.msra.mxu1 %v13011_v59  ;;  %v652_v20 = vld [vmem:[%s19698_s1 + $0x1350] sm:$0xff] }
 0x42f   :  { %10819 = vmatprep.subr.bf16.mxu0 %v13018_v24  ;;  %11352 = vmatprep.subr.bf16.mxu1 %v13020_v26  ;;  %v656_v59 = vld [vmem:[%s19698_s1 + $0x1370] sm:$0xff]  ;;  %v653_v24 = vld [vmem:[%s19698_s1 + $0x1358] sm:$0xff] }
 0x430   :  { %v657_v26 = vld [vmem:[%s19698_s1 + $0x1378] sm:$0xff]  ;;  %v13066_v28 = vcombine.high %v652_v20, %v656_v59  ;;  %v13065_v32 = vcombine.low %v652_v20, %v656_v59 }
 0x431   :  { %v13068_v12 = vcombine.high %v653_v24, %v657_v26  ;;  %v13067_v45 = vcombine.low %v653_v24, %v657_v26 }
 0x432   :  { %10820 = vmatpush1.bf16.msra.mxu0 %v13017_v57  ;;  %11353 = vmatpush1.bf16.msra.mxu1 %v13019_v22  ;;  %v660_v57 = vld [vmem:[%s19698_s1 + $0x1390] sm:$0xff] }
 0x433   :  { %10821 = vmatprep.subr.bf16.mxu0 %v13026_v55  ;;  %11354 = vmatprep.subr.bf16.mxu1 %v13028_v29  ;;  %v664_v22 = vld [vmem:[%s19698_s1 + $0x13b0] sm:$0xff]  ;;  %v661_v55 = vld [vmem:[%s19698_s1 + $0x1398] sm:$0xff] }
 0x434   :  { %v665_v29 = vld [vmem:[%s19698_s1 + $0x13b8] sm:$0xff]  ;;  %v13074_v33 = vcombine.high %v660_v57, %v664_v22  ;;  %v13073_v31 = vcombine.low %v660_v57, %v664_v22 }
 0x435   :  { %v13076_v34 = vcombine.high %v661_v55, %v665_v29  ;;  %v13075_v38 = vcombine.low %v661_v55, %v665_v29  ;;  %v708_v29 = vld [vmem:[%s19698_s1 + $0x1510] sm:$0xff] }
 0x436   :  { %10822 = vmatpush1.bf16.msra.mxu0 %v13025_v35  ;;  %11355 = vmatpush1.bf16.msra.mxu1 %v13027_v37  ;;  %v668_v35 = vld [vmem:[%s19698_s1 + $0x13d0] sm:$0xff] }
 0x437   :  { %10823 = vmatprep.subr.bf16.mxu0 %v13034_v1  ;;  %11356 = vmatprep.subr.bf16.mxu1 %v13036_v21  ;;  %v672_v37 = vld [vmem:[%s19698_s1 + $0x13f0] sm:$0xff]  ;;  %v669_v1 = vld [vmem:[%s19698_s1 + $0x13d8] sm:$0xff] }
 0x438   :  { %v673_v21 = vld [vmem:[%s19698_s1 + $0x13f8] sm:$0xff]  ;;  %v13082_v40 = vcombine.high %v668_v35, %v672_v37  ;;  %v13081_v18 = vcombine.low %v668_v35, %v672_v37 }
 0x439   :  { %v13084_v41 = vcombine.high %v669_v1, %v673_v21  ;;  %v13083_v52 = vcombine.low %v669_v1, %v673_v21  ;;  %v716_v1 = vld [vmem:[%s19698_s1 + $0x1550] sm:$0xff] }
 0x43a   :  { %10824 = vmatpush1.bf16.msra.mxu0 %v13033_v25  ;;  %11357 = vmatpush1.bf16.msra.mxu1 %v13035_v42  ;;  %v676_v25 = vld [vmem:[%s19698_s1 + $0x1410] sm:$0xff] }
 0x43b   :  { %10825 = vmatprep.subr.bf16.mxu0 %v13042_v44  ;;  %11358 = vmatprep.subr.bf16.mxu1 %v13044_v47  ;;  %v680_v42 = vld [vmem:[%s19698_s1 + $0x1430] sm:$0xff]  ;;  %v677_v44 = vld [vmem:[%s19698_s1 + $0x1418] sm:$0xff] }
 0x43c   :  { %v681_v47 = vld [vmem:[%s19698_s1 + $0x1438] sm:$0xff]  ;;  %v13090_v56 = vcombine.high %v676_v25, %v680_v42  ;;  %v13089_v23 = vcombine.low %v676_v25, %v680_v42  ;;  %v720_v21 = vld [vmem:[%s19698_s1 + $0x1570] sm:$0xff] }
 0x43d   :  { %v13092_v3 = vcombine.high %v677_v44, %v681_v47  ;;  %v13091_v6 = vcombine.low %v677_v44, %v681_v47  ;;  %v13130_v25 = vcombine.high %v716_v1, %v720_v21  ;;  %v724_v44 = vld [vmem:[%s19698_s1 + $0x1590] sm:$0xff] }
 0x43e   :  { %10826 = vmatpush1.bf16.msra.mxu0 %v13041_v48  ;;  %11359 = vmatpush1.bf16.msra.mxu1 %v13043_v61  ;;  %v684_v48 = vld [vmem:[%s19698_s1 + $0x1450] sm:$0xff] }
 0x43f   :  { %10827 = vmatprep.subr.bf16.mxu0 %v13050_v39  ;;  %11360 = vmatprep.subr.bf16.mxu1 %v13052_v5  ;;  %v688_v61 = vld [vmem:[%s19698_s1 + $0x1470] sm:$0xff]  ;;  %v685_v39 = vld [vmem:[%s19698_s1 + $0x1458] sm:$0xff] }
 0x440   :  { %v689_v5 = vld [vmem:[%s19698_s1 + $0x1478] sm:$0xff]  ;;  %v13098_v10 = vcombine.high %v684_v48, %v688_v61  ;;  %v13097_v20 = vcombine.low %v684_v48, %v688_v61  ;;  %v728_v47 = vld [vmem:[%s19698_s1 + $0x15b0] sm:$0xff] }
 0x441   :  { %v13100_v54 = vcombine.high %v685_v39, %v689_v5  ;;  %v13099_v59 = vcombine.low %v685_v39, %v689_v5  ;;  %v13138_v48 = vcombine.high %v724_v44, %v728_v47  ;;  %v732_v39 = vld [vmem:[%s19698_s1 + $0x15d0] sm:$0xff] }
 0x442   :  { %10828 = vmatpush1.bf16.msra.mxu0 %v13049_v13  ;;  %11361 = vmatpush1.bf16.msra.mxu1 %v13051_v14  ;;  %v692_v13 = vld [vmem:[%s19698_s1 + $0x1490] sm:$0xff] }
 0x443   :  { %10829 = vmatprep.subr.bf16.mxu0 %v13058_v17  ;;  %11362 = vmatprep.subr.bf16.mxu1 %v13060_v53  ;;  %v696_v14 = vld [vmem:[%s19698_s1 + $0x14b0] sm:$0xff]  ;;  %v693_v17 = vld [vmem:[%s19698_s1 + $0x1498] sm:$0xff] }
 0x444   :  { %v697_v53 = vld [vmem:[%s19698_s1 + $0x14b8] sm:$0xff]  ;;  %v13106_v24 = vcombine.high %v692_v13, %v696_v14  ;;  %v736_v5 = vld [vmem:[%s19698_s1 + $0x15f0] sm:$0xff] }
 0x445   :  { %v13108_v26 = vcombine.high %v693_v17, %v697_v53  ;;  %v13107_v57 = vcombine.low %v693_v17, %v697_v53  ;;  %v740_v17 = vld [vmem:[%s19698_s1 + $0x1610] sm:$0xff] }
 0x446   :  { %10830 = vmatpush1.bf16.msra.mxu0 %v13057_v36  ;;  %11363 = vmatpush1.bf16.msra.mxu1 %v13059_v15  ;;  %v700_v36 = vld [vmem:[%s19698_s1 + $0x14d0] sm:$0xff] }
 0x447   :  { %10831 = vmatprep.subr.bf16.mxu0 %v13066_v28  ;;  %11364 = vmatprep.subr.bf16.mxu1 %v13068_v12  ;;  %v704_v15 = vld [vmem:[%s19698_s1 + $0x14f0] sm:$0xff]  ;;  %v705_v28 = vld [vmem:[%s19698_s1 + $0x14f8] sm:$0xff]  ;;  %v13105_v12 = vcombine.low %v692_v13, %v696_v14  ;;  %v13146_v13 = vcombine.high %v732_v39, %v736_v5 }
 0x448   :  { %v13114_v22 = vcombine.high %v700_v36, %v704_v15  ;;  %v744_v53 = vld [vmem:[%s19698_s1 + $0x1630] sm:$0xff] }
 0x44a   :  { %10832 = vmatpush1.bf16.msra.mxu0 %v13065_v32  ;;  %11365 = vmatpush1.bf16.msra.mxu1 %v13067_v45  ;;  %v712_v32 = vld [vmem:[%s19698_s1 + $0x1530] sm:$0xff]  ;;  %v713_v45 = vld [vmem:[%s19698_s1 + $0x1538] sm:$0xff] }
 0x44b   :  { %10833 = vmatprep.subr.bf16.mxu0 %v13074_v33  ;;  %11366 = vmatprep.subr.bf16.mxu1 %v13076_v34  ;;  %v13113_v33 = vcombine.low %v700_v36, %v704_v15  ;;  %v13122_v35 = vcombine.high %v708_v29, %v712_v32  ;;  %v13154_v36 = vcombine.high %v740_v17, %v744_v53 }
 0x44e   :  { %10834 = vmatpush1.bf16.msra.mxu0 %v13073_v31  ;;  %11367 = vmatpush1.bf16.msra.mxu1 %v13075_v38  ;;  %v717_v31 = vld [vmem:[%s19698_s1 + $0x1558] sm:$0xff] }
 0x44f   :  { %10835 = vmatprep.subr.bf16.mxu0 %v13082_v40  ;;  %11368 = vmatprep.subr.bf16.mxu1 %v13084_v41  ;;  %v721_v38 = vld [vmem:[%s19698_s1 + $0x1578] sm:$0xff]  ;;  %v13121_v40 = vcombine.low %v708_v29, %v712_v32 }
 0x450   :  { %v13132_v42 = vcombine.high %v717_v31, %v721_v38 }
 0x452   :  { %10836 = vmatpush1.bf16.msra.mxu0 %v13081_v18  ;;  %11369 = vmatpush1.bf16.msra.mxu1 %v13083_v52  ;;  %v725_v18 = vld [vmem:[%s19698_s1 + $0x1598] sm:$0xff] }
 0x453   :  { %10846 = vmatprep.subr.bf16.mxu0 %v13090_v56  ;;  %11379 = vmatprep.subr.bf16.mxu1 %v13092_v3  ;;  %v729_v52 = vld [vmem:[%s19698_s1 + $0x15b8] sm:$0xff]  ;;  %v13129_v56 = vcombine.low %v716_v1, %v720_v21  ;;  %v13131_v3 = vcombine.low %v717_v31, %v721_v38  ;;  %v764_v31 = vld [vmem:[%s19698_s1 + $0x16d0] sm:$0xff] }
 0x454   :  { %v13140_v61 = vcombine.high %v725_v18, %v729_v52  ;;  %v768_v38 = vld [vmem:[%s19698_s1 + $0x16f0] sm:$0xff] }
 0x455   :  { %10838 = vmatmul.mubr.bf16.vlgmr.msra.gmra.mrb[4].mxu0 %v15554_v16  ;;  %11371 = vmatmul.mubr.bf16.vlgmr.msra.gmra.mrb[4].mxu1 %v15554_v16  ;;  %v701_v16 = vld [vmem:[%s19698_s1 + $0x14d8] sm:$0xff] }
 0x456   :  { %10847 = vmatpush1.bf16.msra.mxu0 %v13089_v23  ;;  %11380 = vmatpush1.bf16.msra.mxu1 %v13091_v6  ;;  %v13116_v55 = vcombine.high %v701_v16, %v705_v28  ;;  %v13115_v34 = vcombine.low %v701_v16, %v705_v28  ;;  %v733_v23 = vld [vmem:[%s19698_s1 + $0x15d8] sm:$0xff]  ;;  %v748_v16 = vld [vmem:[%s19698_s1 + $0x1650] sm:$0xff] }
 0x457   :  { %10848 = vmatprep.subr.bf16.mxu0 %v13098_v10  ;;  %11381 = vmatprep.subr.bf16.mxu1 %v13100_v54  ;;  %v737_v6 = vld [vmem:[%s19698_s1 + $0x15f8] sm:$0xff]  ;;  %v13137_v10 = vcombine.low %v724_v44, %v728_v47  ;;  %v13139_v54 = vcombine.low %v725_v18, %v729_v52  ;;  %v752_v28 = vld [vmem:[%s19698_s1 + $0x1670] sm:$0xff]  ;;  %v13178_v44 = vcombine.high %v764_v31, %v768_v38 }
 0x458   :  { %10878 = vmatprep.mubr.bf16.mxu0 %v15575_v27  ;;  %11411 = vmatprep.mubr.bf16.mxu1 %v15575_v27  ;;  %v709_v27 = vld [vmem:[%s19698_s1 + $0x1518] sm:$0xff]  ;;  %v13148_v14 = vcombine.high %v733_v23, %v737_v6  ;;  %v13162_v29 = vcombine.high %v748_v16, %v752_v28  ;;  %v772_v18 = vld [vmem:[%s19698_s1 + $0x1710] sm:$0xff] }
 0x459   :  { %v13124_v37 = vcombine.high %v709_v27, %v713_v45  ;;  %v13123_v41 = vcombine.low %v709_v27, %v713_v45  ;;  %v756_v27 = vld [vmem:[%s19698_s1 + $0x1690] sm:$0xff] }
 0x45a   :  { %10849 = vmatpush1.bf16.msra.mxu0 %v13097_v20  ;;  %11382 = vmatpush1.bf16.msra.mxu1 %v13099_v59  ;;  %v741_v20 = vld [vmem:[%s19698_s1 + $0x1618] sm:$0xff]  ;;  %v760_v45 = vld [vmem:[%s19698_s1 + $0x16b0] sm:$0xff] }
 0x45b   :  { %10850 = vmatprep.subr.bf16.mxu0 %v13106_v24  ;;  %11383 = vmatprep.subr.bf16.mxu1 %v13108_v26  ;;  %v745_v59 = vld [vmem:[%s19698_s1 + $0x1638] sm:$0xff]  ;;  %v13145_v24 = vcombine.low %v732_v39, %v736_v5  ;;  %v13147_v26 = vcombine.low %v733_v23, %v737_v6  ;;  %v13170_v1 = vcombine.high %v756_v27, %v760_v45  ;;  %v776_v52 = vld [vmem:[%s19698_s1 + $0x1730] sm:$0xff] }
 0x45c   :  { %v13156_v15 = vcombine.high %v741_v20, %v745_v59  ;;  %v13186_v39 = vcombine.high %v772_v18, %v776_v52  ;;  %v780_v23 = vld [vmem:[%s19698_s1 + $0x1750] sm:$0xff] }
 0x45d   :  { %v784_v6 = vld [vmem:[%s19698_s1 + $0x1770] sm:$0xff] }
 0x45e   :  { %10851 = vmatpush1.bf16.msra.mxu0 %v13105_v12  ;;  %11384 = vmatpush1.bf16.msra.mxu1 %v13107_v57  ;;  %v749_v12 = vld [vmem:[%s19698_s1 + $0x1658] sm:$0xff] }
 0x45f   :  { %10852 = vmatprep.subr.bf16.mxu0 %v13114_v22  ;;  %11385 = vmatprep.subr.bf16.mxu1 %v13116_v55  ;;  %v753_v57 = vld [vmem:[%s19698_s1 + $0x1678] sm:$0xff]  ;;  %v13153_v22 = vcombine.low %v740_v17, %v744_v53  ;;  %v13155_v55 = vcombine.low %v741_v20, %v745_v59  ;;  %v13194_v17 = vcombine.high %v780_v23, %v784_v6  ;;  %v788_v20 = vld [vmem:[%s19698_s1 + $0x1790] sm:$0xff] }
 0x460   :  { %v13164_v32 = vcombine.high %v749_v12, %v753_v57  ;;  %v792_v59 = vld [vmem:[%s19698_s1 + $0x17b0] sm:$0xff] }
 0x462   :  { %10853 = vmatpush1.bf16.msra.mxu0 %v13113_v33  ;;  %11386 = vmatpush1.bf16.msra.mxu1 %v13115_v34  ;;  %v757_v33 = vld [vmem:[%s19698_s1 + $0x1698] sm:$0xff] }
 0x463   :  { %10854 = vmatprep.subr.bf16.mxu0 %v13122_v35  ;;  %11387 = vmatprep.subr.bf16.mxu1 %v13124_v37  ;;  %v761_v34 = vld [vmem:[%s19698_s1 + $0x16b8] sm:$0xff]  ;;  %v13161_v35 = vcombine.low %v748_v16, %v752_v28  ;;  %v13163_v37 = vcombine.low %v749_v12, %v753_v57  ;;  %v13202_v16 = vcombine.high %v788_v20, %v792_v59  ;;  %v796_v12 = vld [vmem:[%s19698_s1 + $0x17d0] sm:$0xff] }
 0x464   :  { %v13172_v21 = vcombine.high %v757_v33, %v761_v34  ;;  %v800_v57 = vld [vmem:[%s19698_s1 + $0x17f0] sm:$0xff] }
 0x466   :  { %10855 = vmatpush1.bf16.msra.mxu0 %v13121_v40  ;;  %11388 = vmatpush1.bf16.msra.mxu1 %v13123_v41  ;;  %v765_v40 = vld [vmem:[%s19698_s1 + $0x16d8] sm:$0xff] }
 0x467   :  { %10856 = vmatprep.subr.bf16.mxu0 %v13130_v25  ;;  %11389 = vmatprep.subr.bf16.mxu1 %v13132_v42  ;;  %v769_v41 = vld [vmem:[%s19698_s1 + $0x16f8] sm:$0xff]  ;;  %v13169_v25 = vcombine.low %v756_v27, %v760_v45  ;;  %v13171_v42 = vcombine.low %v757_v33, %v761_v34  ;;  %v13210_v27 = vcombine.high %v796_v12, %v800_v57  ;;  %v804_v33 = vld [vmem:[%s19698_s1 + $0x1810] sm:$0xff] }
 0x468   :  { %v13180_v47 = vcombine.high %v765_v40, %v769_v41  ;;  %v808_v34 = vld [vmem:[%s19698_s1 + $0x1830] sm:$0xff] }
 0x46a   :  { %10857 = vmatpush1.bf16.msra.mxu0 %v13129_v56  ;;  %11390 = vmatpush1.bf16.msra.mxu1 %v13131_v3  ;;  %v773_v56 = vld [vmem:[%s19698_s1 + $0x1718] sm:$0xff] }
 0x46b   :  { %10858 = vmatprep.subr.bf16.mxu0 %v13138_v48  ;;  %11391 = vmatprep.subr.bf16.mxu1 %v13140_v61  ;;  %v777_v3 = vld [vmem:[%s19698_s1 + $0x1738] sm:$0xff]  ;;  %v13177_v48 = vcombine.low %v764_v31, %v768_v38  ;;  %v13179_v61 = vcombine.low %v765_v40, %v769_v41  ;;  %v13218_v31 = vcombine.high %v804_v33, %v808_v34  ;;  %v812_v40 = vld [vmem:[%s19698_s1 + $0x1850] sm:$0xff] }
 0x46c   :  { %v13188_v5 = vcombine.high %v773_v56, %v777_v3  ;;  %v816_v41 = vld [vmem:[%s19698_s1 + $0x1870] sm:$0xff] }
 0x46e   :  { %10859 = vmatpush1.bf16.msra.mxu0 %v13137_v10  ;;  %11392 = vmatpush1.bf16.msra.mxu1 %v13139_v54  ;;  %v781_v10 = vld [vmem:[%s19698_s1 + $0x1758] sm:$0xff] }
 0x46f   :  { %10860 = vmatprep.subr.bf16.mxu0 %v13146_v13  ;;  %11393 = vmatprep.subr.bf16.mxu1 %v13148_v14  ;;  %v785_v54 = vld [vmem:[%s19698_s1 + $0x1778] sm:$0xff]  ;;  %v13185_v13 = vcombine.low %v772_v18, %v776_v52  ;;  %v13187_v14 = vcombine.low %v773_v56, %v777_v3  ;;  %v13226_v18 = vcombine.high %v812_v40, %v816_v41  ;;  %v820_v56 = vld [vmem:[%s19698_s1 + $0x1890] sm:$0xff] }
 0x470   :  { %v13196_v53 = vcombine.high %v781_v10, %v785_v54  ;;  %v824_v3 = vld [vmem:[%s19698_s1 + $0x18b0] sm:$0xff] }
 0x472   :  { %10861 = vmatpush1.bf16.msra.mxu0 %v13145_v24  ;;  %11394 = vmatpush1.bf16.msra.mxu1 %v13147_v26  ;;  %v789_v24 = vld [vmem:[%s19698_s1 + $0x1798] sm:$0xff] }
 0x473   :  { %10862 = vmatprep.subr.bf16.mxu0 %v13154_v36  ;;  %11395 = vmatprep.subr.bf16.mxu1 %v13156_v15  ;;  %v793_v26 = vld [vmem:[%s19698_s1 + $0x17b8] sm:$0xff]  ;;  %v13193_v36 = vcombine.low %v780_v23, %v784_v6  ;;  %v13195_v15 = vcombine.low %v781_v10, %v785_v54  ;;  %v13234_v23 = vcombine.high %v820_v56, %v824_v3  ;;  %v828_v10 = vld [vmem:[%s19698_s1 + $0x18d0] sm:$0xff] }
 0x474   :  { %v13204_v28 = vcombine.high %v789_v24, %v793_v26  ;;  %v832_v54 = vld [vmem:[%s19698_s1 + $0x18f0] sm:$0xff] }
 0x476   :  { %10863 = vmatpush1.bf16.msra.mxu0 %v13153_v22  ;;  %11396 = vmatpush1.bf16.msra.mxu1 %v13155_v55  ;;  %v797_v22 = vld [vmem:[%s19698_s1 + $0x17d8] sm:$0xff] }
 0x477   :  { %10864 = vmatprep.subr.bf16.mxu0 %v13162_v29  ;;  %11397 = vmatprep.subr.bf16.mxu1 %v13164_v32  ;;  %v801_v55 = vld [vmem:[%s19698_s1 + $0x17f8] sm:$0xff]  ;;  %v13201_v29 = vcombine.low %v788_v20, %v792_v59  ;;  %v13203_v32 = vcombine.low %v789_v24, %v793_v26  ;;  %v836_v59 = vld [vmem:[%s19698_s1 + $0x1910] sm:$0xff] }
 0x478   :  { %v13212_v45 = vcombine.high %v797_v22, %v801_v55  ;;  %v840_v24 = vld [vmem:[%s19698_s1 + $0x1930] sm:$0xff]  ;;  %v841_v26 = vld [vmem:[%s19698_s1 + $0x1938] sm:$0xff] }
 0x47a   :  { %10865 = vmatpush1.bf16.msra.mxu0 %v13161_v35  ;;  %11398 = vmatpush1.bf16.msra.mxu1 %v13163_v37  ;;  %v805_v35 = vld [vmem:[%s19698_s1 + $0x1818] sm:$0xff] }
 0x47b   :  { %10866 = vmatprep.subr.bf16.mxu0 %v13170_v1  ;;  %11399 = vmatprep.subr.bf16.mxu1 %v13172_v21  ;;  %v809_v37 = vld [vmem:[%s19698_s1 + $0x1838] sm:$0xff]  ;;  %v13209_v1 = vcombine.low %v796_v12, %v800_v57  ;;  %v13211_v21 = vcombine.low %v797_v22, %v801_v55  ;;  %v844_v12 = vld [vmem:[%s19698_s1 + $0x1950] sm:$0xff] }
 0x47c   :  { %v13220_v38 = vcombine.high %v805_v35, %v809_v37  ;;  %v848_v57 = vld [vmem:[%s19698_s1 + $0x1970] sm:$0xff]  ;;  %v845_v22 = vld [vmem:[%s19698_s1 + $0x1958] sm:$0xff] }
 0x47d   :  { %v849_v55 = vld [vmem:[%s19698_s1 + $0x1978] sm:$0xff] }
 0x47e   :  { %10867 = vmatpush1.bf16.msra.mxu0 %v13169_v25  ;;  %11400 = vmatpush1.bf16.msra.mxu1 %v13171_v42  ;;  %v813_v25 = vld [vmem:[%s19698_s1 + $0x1858] sm:$0xff] }
 0x47f   :  { %10868 = vmatprep.subr.bf16.mxu0 %v13178_v44  ;;  %11401 = vmatprep.subr.bf16.mxu1 %v13180_v47  ;;  %v817_v42 = vld [vmem:[%s19698_s1 + $0x1878] sm:$0xff]  ;;  %v13217_v44 = vcombine.low %v804_v33, %v808_v34  ;;  %v13219_v47 = vcombine.low %v805_v35, %v809_v37  ;;  %v852_v33 = vld [vmem:[%s19698_s1 + $0x1990] sm:$0xff] }
 0x480   :  { %v13228_v52 = vcombine.high %v813_v25, %v817_v42  ;;  %v856_v34 = vld [vmem:[%s19698_s1 + $0x19b0] sm:$0xff]  ;;  %v853_v35 = vld [vmem:[%s19698_s1 + $0x1998] sm:$0xff] }
 0x481   :  { %v857_v37 = vld [vmem:[%s19698_s1 + $0x19b8] sm:$0xff] }
 0x482   :  { %10869 = vmatpush1.bf16.msra.mxu0 %v13177_v48  ;;  %11402 = vmatpush1.bf16.msra.mxu1 %v13179_v61  ;;  %v821_v48 = vld [vmem:[%s19698_s1 + $0x1898] sm:$0xff] }
 0x483   :  { %10870 = vmatprep.subr.bf16.mxu0 %v13186_v39  ;;  %11403 = vmatprep.subr.bf16.mxu1 %v13188_v5  ;;  %v825_v61 = vld [vmem:[%s19698_s1 + $0x18b8] sm:$0xff]  ;;  %v13225_v39 = vcombine.low %v812_v40, %v816_v41  ;;  %v13227_v5 = vcombine.low %v813_v25, %v817_v42  ;;  %v860_v40 = vld [vmem:[%s19698_s1 + $0x19d0] sm:$0xff] }
 0x484   :  { %v13236_v6 = vcombine.high %v821_v48, %v825_v61  ;;  %v864_v41 = vld [vmem:[%s19698_s1 + $0x19f0] sm:$0xff]  ;;  %v861_v25 = vld [vmem:[%s19698_s1 + $0x19d8] sm:$0xff] }
 0x485   :  { %v865_v42 = vld [vmem:[%s19698_s1 + $0x19f8] sm:$0xff] }
 0x486   :  { %10871 = vmatpush1.bf16.msra.mxu0 %v13185_v13  ;;  %11404 = vmatpush1.bf16.msra.mxu1 %v13187_v14  ;;  %v833_v13 = vld [vmem:[%s19698_s1 + $0x18f8] sm:$0xff]  ;;  %v13233_v14 = vcombine.low %v820_v56, %v824_v3  ;;  %v868_v56 = vld [vmem:[%s19698_s1 + $0x1a10] sm:$0xff] }
 0x487   :  { %10872 = vmatprep.subr.bf16.mxu0 %v13194_v17  ;;  %11405 = vmatprep.subr.bf16.mxu1 %v13196_v53  ;;  %v13235_v17 = vcombine.low %v821_v48, %v825_v61  ;;  %v13242_v53 = vcombine.high %v828_v10, %v832_v54  ;;  %v872_v3 = vld [vmem:[%s19698_s1 + $0x1a30] sm:$0xff]  ;;  %v869_v48 = vld [vmem:[%s19698_s1 + $0x1a18] sm:$0xff] }
 0x488   :  { %v873_v61 = vld [vmem:[%s19698_s1 + $0x1a38] sm:$0xff] }
 0x48a   :  { %10873 = vmatpush1.bf16.msra.mxu0 %v13193_v36  ;;  %11406 = vmatpush1.bf16.msra.mxu1 %v13195_v15  ;;  %v13241_v36 = vcombine.low %v828_v10, %v832_v54  ;;  %v876_v10 = vld [vmem:[%s19698_s1 + $0x1a50] sm:$0xff] }
 0x48b   :  { %10874 = vmatprep.subr.bf16.mxu0 %v13202_v16  ;;  %11407 = vmatprep.subr.bf16.mxu1 %v13204_v28  ;;  %v13250_v16 = vcombine.high %v836_v59, %v840_v24  ;;  %v880_v54 = vld [vmem:[%s19698_s1 + $0x1a70] sm:$0xff] }
 0x48e   :  { %10875 = vmatpush1.bf16.msra.mxu0 %v13201_v29  ;;  %11408 = vmatpush1.bf16.msra.mxu1 %v13203_v32  ;;  %v13249_v29 = vcombine.low %v836_v59, %v840_v24  ;;  %v884_v59 = vld [vmem:[%s19698_s1 + $0x1a90] sm:$0xff] }
 0x48f   :  { %10876 = vmatprep.subr.bf16.mxu0 %v13210_v27  ;;  %11409 = vmatprep.subr.bf16.mxu1 %v13212_v45  ;;  %v13258_v27 = vcombine.high %v844_v12, %v848_v57  ;;  %v13260_v45 = vcombine.high %v845_v22, %v849_v55  ;;  %v888_v24 = vld [vmem:[%s19698_s1 + $0x1ab0] sm:$0xff] }
 0x492   :  { %10877 = vmatpush1.bf16.msra.mxu0 %v13209_v1  ;;  %11410 = vmatpush1.bf16.msra.mxu1 %v13211_v21  ;;  %v13257_v1 = vcombine.low %v844_v12, %v848_v57  ;;  %v13259_v21 = vcombine.low %v845_v22, %v849_v55  ;;  %v892_v12 = vld [vmem:[%s19698_s1 + $0x1ad0] sm:$0xff]  ;;  %v893_v22 = vld [vmem:[%s19698_s1 + $0x1ad8] sm:$0xff] }
 0x493   :  { %10887 = vmatprep.subr.bf16.mxu0 %v13218_v31  ;;  %11420 = vmatprep.subr.bf16.mxu1 %v13220_v38  ;;  %v13266_v31 = vcombine.high %v852_v33, %v856_v34  ;;  %v13268_v38 = vcombine.high %v853_v35, %v857_v37  ;;  %v896_v57 = vld [vmem:[%s19698_s1 + $0x1af0] sm:$0xff]  ;;  %v897_v55 = vld [vmem:[%s19698_s1 + $0x1af8] sm:$0xff] }
 0x495   :  { %10879 = vmatmul.mubr.bf16.vlgmr.msra.gmra.mrb[4].mxu0 %v15763_v46  ;;  %11412 = vmatmul.mubr.bf16.vlgmr.msra.gmra.mrb[4].mxu1 %v15763_v46  ;;  %v829_v46 = vld [vmem:[%s19698_s1 + $0x18d8] sm:$0xff] }
 0x496   :  { %10888 = vmatpush1.bf16.msra.mxu0 %v13217_v44  ;;  %11421 = vmatpush1.bf16.msra.mxu1 %v13219_v47  ;;  %v13244_v20 = vcombine.high %v829_v46, %v833_v13  ;;  %v13243_v15 = vcombine.low %v829_v46, %v833_v13  ;;  %v13265_v44 = vcombine.low %v852_v33, %v856_v34  ;;  %v877_v46 = vld [vmem:[%s19698_s1 + $0x1a58] sm:$0xff]  ;;  %v900_v33 = vld [vmem:[%s19698_s1 + $0x1b10] sm:$0xff] }
 0x497   :  { %10889 = vmatprep.subr.bf16.mxu0 %v13226_v18  ;;  %11422 = vmatprep.subr.bf16.mxu1 %v13228_v52  ;;  %v13267_v47 = vcombine.low %v853_v35, %v857_v37  ;;  %v13274_v18 = vcombine.high %v860_v40, %v864_v41  ;;  %v13276_v52 = vcombine.high %v861_v25, %v865_v42  ;;  %v881_v13 = vld [vmem:[%s19698_s1 + $0x1a78] sm:$0xff]  ;;  %v904_v34 = vld [vmem:[%s19698_s1 + $0x1b30] sm:$0xff] }
 0x498   :  { %10919 = vmatprep.mubr.bf16.mxu0 %v15784_v58  ;;  %11452 = vmatprep.mubr.bf16.mxu1 %v15784_v58  ;;  %v837_v58 = vld [vmem:[%s19698_s1 + $0x1918] sm:$0xff] }
 0x499   :  { %v13252_v28 = vcombine.high %v837_v58, %v841_v26  ;;  %v13251_v32 = vcombine.low %v837_v58, %v841_v26  ;;  %v885_v58 = vld [vmem:[%s19698_s1 + $0x1a98] sm:$0xff] }
 0x49a   :  { %10890 = vmatpush1.bf16.msra.mxu0 %v13225_v39  ;;  %11423 = vmatpush1.bf16.msra.mxu1 %v13227_v5  ;;  %v13273_v39 = vcombine.low %v860_v40, %v864_v41  ;;  %v13275_v5 = vcombine.low %v861_v25, %v865_v42  ;;  %v889_v26 = vld [vmem:[%s19698_s1 + $0x1ab8] sm:$0xff]  ;;  %v908_v40 = vld [vmem:[%s19698_s1 + $0x1b50] sm:$0xff] }
 0x49b   :  { %10891 = vmatprep.subr.bf16.mxu0 %v13234_v23  ;;  %11424 = vmatprep.subr.bf16.mxu1 %v13236_v6  ;;  %v13282_v23 = vcombine.high %v868_v56, %v872_v3  ;;  %v13284_v6 = vcombine.high %v869_v48, %v873_v61  ;;  %v901_v35 = vld [vmem:[%s19698_s1 + $0x1b18] sm:$0xff]  ;;  %v912_v41 = vld [vmem:[%s19698_s1 + $0x1b70] sm:$0xff] }
 0x49c   :  { %v905_v37 = vld [vmem:[%s19698_s1 + $0x1b38] sm:$0xff] }
 0x49d   :  { %v909_v25 = vld [vmem:[%s19698_s1 + $0x1b58] sm:$0xff] }
 0x49e   :  { %10892 = vmatpush1.bf16.msra.mxu0 %v13233_v14  ;;  %11425 = vmatpush1.bf16.msra.mxu1 %v13235_v17  ;;  %v13281_v14 = vcombine.low %v868_v56, %v872_v3  ;;  %v13283_v17 = vcombine.low %v869_v48, %v873_v61  ;;  %v913_v42 = vld [vmem:[%s19698_s1 + $0x1b78] sm:$0xff]  ;;  %v916_v56 = vld [vmem:[%s19698_s1 + $0x1b90] sm:$0xff] }
 0x49f   :  { %10893 = vmatprep.subr.bf16.mxu0 %v13242_v53  ;;  %11426 = vmatprep.subr.bf16.mxu1 %v13244_v20  ;;  %v13290_v53 = vcombine.high %v876_v10, %v880_v54  ;;  %v13292_v20 = vcombine.high %v877_v46, %v881_v13  ;;  %v920_v3 = vld [vmem:[%s19698_s1 + $0x1bb0] sm:$0xff]  ;;  %v917_v48 = vld [vmem:[%s19698_s1 + $0x1b98] sm:$0xff] }
 0x4a0   :  { %v921_v61 = vld [vmem:[%s19698_s1 + $0x1bb8] sm:$0xff] }
 0x4a2   :  { %10894 = vmatpush1.bf16.msra.mxu0 %v13241_v36  ;;  %11427 = vmatpush1.bf16.msra.mxu1 %v13243_v15  ;;  %v13289_v36 = vcombine.low %v876_v10, %v880_v54  ;;  %v13291_v15 = vcombine.low %v877_v46, %v881_v13  ;;  %v924_v10 = vld [vmem:[%s19698_s1 + $0x1bd0] sm:$0xff]  ;;  %v925_v46 = vld [vmem:[%s19698_s1 + $0x1bd8] sm:$0xff] }
 0x4a3   :  { %10895 = vmatprep.subr.bf16.mxu0 %v13250_v16  ;;  %11428 = vmatprep.subr.bf16.mxu1 %v13252_v28  ;;  %v13298_v16 = vcombine.high %v884_v59, %v888_v24  ;;  %v13300_v28 = vcombine.high %v885_v58, %v889_v26  ;;  %v928_v54 = vld [vmem:[%s19698_s1 + $0x1bf0] sm:$0xff]  ;;  %v929_v13 = vld [vmem:[%s19698_s1 + $0x1bf8] sm:$0xff] }
 0x4a6   :  { %10896 = vmatpush1.bf16.msra.mxu0 %v13249_v29  ;;  %11429 = vmatpush1.bf16.msra.mxu1 %v13251_v32  ;;  %v13297_v29 = vcombine.low %v884_v59, %v888_v24  ;;  %v13299_v32 = vcombine.low %v885_v58, %v889_v26  ;;  %v932_v59 = vld [vmem:[%s19698_s1 + $0x1c10] sm:$0xff]  ;;  %v933_v58 = vld [vmem:[%s19698_s1 + $0x1c18] sm:$0xff] }
 0x4a7   :  { %10897 = vmatprep.subr.bf16.mxu0 %v13258_v27  ;;  %11430 = vmatprep.subr.bf16.mxu1 %v13260_v45  ;;  %v13306_v27 = vcombine.high %v892_v12, %v896_v57  ;;  %v13308_v45 = vcombine.high %v893_v22, %v897_v55  ;;  %v936_v24 = vld [vmem:[%s19698_s1 + $0x1c30] sm:$0xff]  ;;  %v937_v26 = vld [vmem:[%s19698_s1 + $0x1c38] sm:$0xff] }
 0x4aa   :  { %10898 = vmatpush1.bf16.msra.mxu0 %v13257_v1  ;;  %11431 = vmatpush1.bf16.msra.mxu1 %v13259_v21  ;;  %v13305_v1 = vcombine.low %v892_v12, %v896_v57  ;;  %v13307_v21 = vcombine.low %v893_v22, %v897_v55  ;;  %v940_v12 = vld [vmem:[%s19698_s1 + $0x1c50] sm:$0xff]  ;;  %v941_v22 = vld [vmem:[%s19698_s1 + $0x1c58] sm:$0xff] }
 0x4ab   :  { %10899 = vmatprep.subr.bf16.mxu0 %v13266_v31  ;;  %11432 = vmatprep.subr.bf16.mxu1 %v13268_v38  ;;  %v13314_v31 = vcombine.high %v900_v33, %v904_v34  ;;  %v13316_v38 = vcombine.high %v901_v35, %v905_v37  ;;  %v944_v57 = vld [vmem:[%s19698_s1 + $0x1c70] sm:$0xff]  ;;  %v945_v55 = vld [vmem:[%s19698_s1 + $0x1c78] sm:$0xff] }
 0x4ae   :  { %10900 = vmatpush1.bf16.msra.mxu0 %v13265_v44  ;;  %11433 = vmatpush1.bf16.msra.mxu1 %v13267_v47  ;;  %v13313_v44 = vcombine.low %v900_v33, %v904_v34  ;;  %v13315_v47 = vcombine.low %v901_v35, %v905_v37  ;;  %v948_v33 = vld [vmem:[%s19698_s1 + $0x1c90] sm:$0xff]  ;;  %v949_v35 = vld [vmem:[%s19698_s1 + $0x1c98] sm:$0xff] }
 0x4af   :  { %10901 = vmatprep.subr.bf16.mxu0 %v13274_v18  ;;  %11434 = vmatprep.subr.bf16.mxu1 %v13276_v52  ;;  %v13322_v18 = vcombine.high %v908_v40, %v912_v41  ;;  %v13324_v52 = vcombine.high %v909_v25, %v913_v42  ;;  %v952_v34 = vld [vmem:[%s19698_s1 + $0x1cb0] sm:$0xff]  ;;  %v953_v37 = vld [vmem:[%s19698_s1 + $0x1cb8] sm:$0xff] }
 0x4b2   :  { %10902 = vmatpush1.bf16.msra.mxu0 %v13273_v39  ;;  %11435 = vmatpush1.bf16.msra.mxu1 %v13275_v5  ;;  %v13321_v39 = vcombine.low %v908_v40, %v912_v41  ;;  %v13323_v5 = vcombine.low %v909_v25, %v913_v42  ;;  %v956_v40 = vld [vmem:[%s19698_s1 + $0x1cd0] sm:$0xff]  ;;  %v961_v25 = vld [vmem:[%s19698_s1 + $0x1cf8] sm:$0xff]  ;;  %v13361_v42 = vcombine.low %v948_v33, %v952_v34 }
 0x4b3   :  { %10903 = vmatprep.subr.bf16.mxu0 %v13282_v23  ;;  %11436 = vmatprep.subr.bf16.mxu1 %v13284_v6  ;;  %v13330_v23 = vcombine.high %v916_v56, %v920_v3  ;;  %v13332_v6 = vcombine.high %v917_v48, %v921_v61  ;;  %v960_v41 = vld [vmem:[%s19698_s1 + $0x1cf0] sm:$0xff] }
 0x4b6   :  { %10904 = vmatpush1.bf16.msra.mxu0 %v13281_v14  ;;  %11437 = vmatpush1.bf16.msra.mxu1 %v13283_v17  ;;  %v13329_v14 = vcombine.low %v916_v56, %v920_v3  ;;  %v13331_v17 = vcombine.low %v917_v48, %v921_v61  ;;  %v968_v56 = vld [vmem:[%s19698_s1 + $0x1d30] sm:$0xff]  ;;  %v969_v3 = vld [vmem:[%s19698_s1 + $0x1d38] sm:$0xff]  ;;  %v13369_v48 = vcombine.low %v956_v40, %v960_v41 }
 0x4b7   :  { %10905 = vmatprep.subr.bf16.mxu0 %v13290_v53  ;;  %11438 = vmatprep.subr.bf16.mxu1 %v13292_v20  ;;  %v13338_v53 = vcombine.high %v924_v10, %v928_v54  ;;  %v13340_v20 = vcombine.high %v925_v46, %v929_v13 }
 0x4ba   :  { %10906 = vmatpush1.bf16.msra.mxu0 %v13289_v36  ;;  %11439 = vmatpush1.bf16.msra.mxu1 %v13291_v15  ;;  %v13337_v36 = vcombine.low %v924_v10, %v928_v54  ;;  %v13339_v15 = vcombine.low %v925_v46, %v929_v13  ;;  %v973_v10 = vld [vmem:[%s19698_s1 + $0x1d58] sm:$0xff] }
 0x4bb   :  { %10907 = vmatprep.subr.bf16.mxu0 %v13298_v16  ;;  %11440 = vmatprep.subr.bf16.mxu1 %v13300_v28  ;;  %v13346_v16 = vcombine.high %v932_v59, %v936_v24  ;;  %v13348_v28 = vcombine.high %v933_v58, %v937_v26  ;;  %v977_v54 = vld [vmem:[%s19698_s1 + $0x1d78] sm:$0xff] }
 0x4be   :  { %10908 = vmatpush1.bf16.msra.mxu0 %v13297_v29  ;;  %11441 = vmatpush1.bf16.msra.mxu1 %v13299_v32  ;;  %v13345_v29 = vcombine.low %v932_v59, %v936_v24  ;;  %v13347_v32 = vcombine.low %v933_v58, %v937_v26  ;;  %v981_v59 = vld [vmem:[%s19698_s1 + $0x1d98] sm:$0xff]  ;;  %v13387_v26 = vcombine.low %v973_v10, %v977_v54 }
 0x4bf   :  { %10909 = vmatprep.subr.bf16.mxu0 %v13306_v27  ;;  %11442 = vmatprep.subr.bf16.mxu1 %v13308_v45  ;;  %v13354_v27 = vcombine.high %v940_v12, %v944_v57  ;;  %v13356_v45 = vcombine.high %v941_v22, %v945_v55  ;;  %v985_v24 = vld [vmem:[%s19698_s1 + $0x1db8] sm:$0xff] }
 0x4c2   :  { %10910 = vmatpush1.bf16.msra.mxu0 %v13305_v1  ;;  %11443 = vmatpush1.bf16.msra.mxu1 %v13307_v21  ;;  %v13353_v1 = vcombine.low %v940_v12, %v944_v57  ;;  %v13355_v21 = vcombine.low %v941_v22, %v945_v55  ;;  %v989_v12 = vld [vmem:[%s19698_s1 + $0x1dd8] sm:$0xff]  ;;  %v13395_v55 = vcombine.low %v981_v59, %v985_v24 }
 0x4c3   :  { %10911 = vmatprep.subr.bf16.mxu0 %v13314_v31  ;;  %11444 = vmatprep.subr.bf16.mxu1 %v13316_v38  ;;  %v13362_v31 = vcombine.high %v948_v33, %v952_v34  ;;  %v13364_v38 = vcombine.high %v949_v35, %v953_v37  ;;  %v993_v57 = vld [vmem:[%s19698_s1 + $0x1df8] sm:$0xff] }
 0x4c4   :  { %v997_v33 = vld [vmem:[%s19698_s1 + $0x1e18] sm:$0xff] }
 0x4c5   :  { %v1001_v34 = vld [vmem:[%s19698_s1 + $0x1e38] sm:$0xff] }
 0x4c6   :  { %10912 = vmatpush1.bf16.msra.mxu0 %v13313_v44  ;;  %11445 = vmatpush1.bf16.msra.mxu1 %v13315_v47  ;;  %v13363_v44 = vcombine.low %v949_v35, %v953_v37  ;;  %v13370_v47 = vcombine.high %v956_v40, %v960_v41  ;;  %v13403_v37 = vcombine.low %v989_v12, %v993_v57  ;;  %v1005_v40 = vld [vmem:[%s19698_s1 + $0x1e58] sm:$0xff] }
 0x4c7   :  { %10913 = vmatprep.subr.bf16.mxu0 %v13322_v18  ;;  %11446 = vmatprep.subr.bf16.mxu1 %v13324_v52  ;;  %v964_v52 = vld [vmem:[%s19698_s1 + $0x1d10] sm:$0xff]  ;;  %v1009_v41 = vld [vmem:[%s19698_s1 + $0x1e78] sm:$0xff] }
 0x4c8   :  { %v13377_v46 = vcombine.low %v964_v52, %v968_v56 }
 0x4ca   :  { %10914 = vmatpush1.bf16.msra.mxu0 %v13321_v39  ;;  %11447 = vmatpush1.bf16.msra.mxu1 %v13323_v5  ;;  %v13378_v39 = vcombine.high %v964_v52, %v968_v56  ;;  %v1013_v52 = vld [vmem:[%s19698_s1 + $0x1e98] sm:$0xff] }
 0x4cb   :  { %10915 = vmatprep.subr.bf16.mxu0 %v13330_v23  ;;  %11448 = vmatprep.subr.bf16.mxu1 %v13332_v6  ;;  %v972_v23 = vld [vmem:[%s19698_s1 + $0x1d50] sm:$0xff]  ;;  %v1017_v56 = vld [vmem:[%s19698_s1 + $0x1eb8] sm:$0xff] }
 0x4cc   :  { %v976_v6 = vld [vmem:[%s19698_s1 + $0x1d70] sm:$0xff] }
 0x4cd   :  { %v13385_v58 = vcombine.low %v972_v23, %v976_v6 }
 0x4ce   :  { %10916 = vmatpush1.bf16.msra.mxu0 %v13329_v14  ;;  %11449 = vmatpush1.bf16.msra.mxu1 %v13331_v17  ;;  %v13386_v14 = vcombine.high %v972_v23, %v976_v6  ;;  %v13388_v17 = vcombine.high %v973_v10, %v977_v54  ;;  %v1021_v23 = vld [vmem:[%s19698_s1 + $0x1ed8] sm:$0xff]  ;;  %v13427_v54 = vcombine.low %v1013_v52, %v1017_v56 }
 0x4cf   :  { %10917 = vmatprep.subr.bf16.mxu0 %v13338_v53  ;;  %11450 = vmatprep.subr.bf16.mxu1 %v13340_v20  ;;  %v980_v53 = vld [vmem:[%s19698_s1 + $0x1d90] sm:$0xff]  ;;  %v1025_v6 = vld [vmem:[%s19698_s1 + $0x1ef8] sm:$0xff] }
 0x4d0   :  { %v984_v20 = vld [vmem:[%s19698_s1 + $0x1db0] sm:$0xff] }
 0x4d1   :  { %v13393_v22 = vcombine.low %v980_v53, %v984_v20 }
 0x4d2   :  { %10918 = vmatpush1.bf16.msra.mxu0 %v13337_v36  ;;  %11451 = vmatpush1.bf16.msra.mxu1 %v13339_v15  ;;  %v13394_v36 = vcombine.high %v980_v53, %v984_v20  ;;  %v13396_v15 = vcombine.high %v981_v59, %v985_v24  ;;  %v1029_v53 = vld [vmem:[%s19698_s1 + $0x1f18] sm:$0xff]  ;;  %v13435_v24 = vcombine.low %v1021_v23, %v1025_v6 }
 0x4d3   :  { %10928 = vmatprep.subr.bf16.mxu0 %v13346_v16  ;;  %11461 = vmatprep.subr.bf16.mxu1 %v13348_v28  ;;  %v988_v16 = vld [vmem:[%s19698_s1 + $0x1dd0] sm:$0xff]  ;;  %v1033_v20 = vld [vmem:[%s19698_s1 + $0x1f38] sm:$0xff] }
 0x4d4   :  { %v992_v28 = vld [vmem:[%s19698_s1 + $0x1df0] sm:$0xff] }
 0x4d5   :  { %10920 = vmatmul.mubr.bf16.vlgmr.msra.gmra.mrb[4].mxu0 %v15972_v19  ;;  %11453 = vmatmul.mubr.bf16.vlgmr.msra.gmra.mrb[4].mxu1 %v15972_v19  ;;  %v957_v19 = vld [vmem:[%s19698_s1 + $0x1cd8] sm:$0xff]  ;;  %v13401_v35 = vcombine.low %v988_v16, %v992_v28 }
 0x4d6   :  { %10929 = vmatpush1.bf16.msra.mxu0 %v13345_v29  ;;  %11462 = vmatpush1.bf16.msra.mxu1 %v13347_v32  ;;  %v13372_v18 = vcombine.high %v957_v19, %v961_v25  ;;  %v13371_v61 = vcombine.low %v957_v19, %v961_v25  ;;  %v13402_v29 = vcombine.high %v988_v16, %v992_v28  ;;  %v1037_v16 = vld [vmem:[%s19698_s1 + $0x1f58] sm:$0xff] }
 0x4d7   :  { %10930 = vmatprep.subr.bf16.mxu0 %v13354_v27  ;;  %11463 = vmatprep.subr.bf16.mxu1 %v13356_v45  ;;  %v13404_v32 = vcombine.high %v989_v12, %v993_v57  ;;  %v996_v27 = vld [vmem:[%s19698_s1 + $0x1e10] sm:$0xff]  ;;  %v13411_v25 = vcombine.low %v997_v33, %v1001_v34  ;;  %v1041_v28 = vld [vmem:[%s19698_s1 + $0x1f78] sm:$0xff]  ;;  %v13443_v57 = vcombine.low %v1029_v53, %v1033_v20 }
 0x4d8   :  { %10960 = vmatprep.mubr.bf16.mxu0 %v15993_v30  ;;  %11493 = vmatprep.mubr.bf16.mxu1 %v15993_v30  ;;  %v965_v30 = vld [vmem:[%s19698_s1 + $0x1d18] sm:$0xff]  ;;  %v1000_v45 = vld [vmem:[%s19698_s1 + $0x1e30] sm:$0xff] }
 0x4d9   :  { %v13380_v5 = vcombine.high %v965_v30, %v969_v3  ;;  %v13379_v13 = vcombine.low %v965_v30, %v969_v3  ;;  %v13409_v19 = vcombine.low %v996_v27, %v1000_v45  ;;  %v13419_v3 = vcombine.low %v1005_v40, %v1009_v41 }
 0x4da   :  { %10931 = vmatpush1.bf16.msra.mxu0 %v13353_v1  ;;  %11464 = vmatpush1.bf16.msra.mxu1 %v13355_v21  ;;  %v13410_v1 = vcombine.high %v996_v27, %v1000_v45  ;;  %v13412_v21 = vcombine.high %v997_v33, %v1001_v34  ;;  %v1045_v27 = vld [vmem:[%s19698_s1 + $0x1f98] sm:$0xff]  ;;  %v13451_v34 = vcombine.low %v1037_v16, %v1041_v28 }
 0x4db   :  { %10932 = vmatprep.subr.bf16.mxu0 %v13362_v31  ;;  %11465 = vmatprep.subr.bf16.mxu1 %v13364_v38  ;;  %v1004_v31 = vld [vmem:[%s19698_s1 + $0x1e50] sm:$0xff]  ;;  %v1049_v45 = vld [vmem:[%s19698_s1 + $0x1fb8] sm:$0xff] }
 0x4dc   :  { %v1008_v38 = vld [vmem:[%s19698_s1 + $0x1e70] sm:$0xff] }
 0x4dd   :  { %v13417_v30 = vcombine.low %v1004_v31, %v1008_v38 }
 0x4de   :  { %10933 = vmatpush1.bf16.msra.mxu0 %v13361_v42  ;;  %11466 = vmatpush1.bf16.msra.mxu1 %v13363_v44  ;;  %v13418_v42 = vcombine.high %v1004_v31, %v1008_v38  ;;  %v13420_v44 = vcombine.high %v1005_v40, %v1009_v41  ;;  %v1053_v31 = vld [vmem:[%s19698_s1 + $0x1fd8] sm:$0xff]  ;;  %v13459_v41 = vcombine.low %v1045_v27, %v1049_v45 }
 0x4df   :  { %10934 = vmatprep.subr.bf16.mxu0 %v13370_v47  ;;  %11467 = vmatprep.subr.bf16.mxu1 %v13372_v18  ;;  %v1012_v47 = vld [vmem:[%s19698_s1 + $0x1e90] sm:$0xff]  ;;  %v1057_v38 = vld [vmem:[%s19698_s1 + $0x1ff8] sm:$0xff] }
 0x4e0   :  { %v1016_v18 = vld [vmem:[%s19698_s1 + $0x1eb0] sm:$0xff] }
 0x4e1   :  { %v13425_v10 = vcombine.low %v1012_v47, %v1016_v18 }
 0x4e2   :  { %10935 = vmatpush1.bf16.msra.mxu0 %v13369_v48  ;;  %11468 = vmatpush1.bf16.msra.mxu1 %v13371_v61  ;;  %v13426_v48 = vcombine.high %v1012_v47, %v1016_v18  ;;  %v13428_v61 = vcombine.high %v1013_v52, %v1017_v56  ;;  %v1061_v47 = vld [vmem:[%s19698_s1 + $0x2018] sm:$0xff]  ;;  %v13467_v56 = vcombine.low %v1053_v31, %v1057_v38 }
 0x4e3   :  { %10936 = vmatprep.subr.bf16.mxu0 %v13378_v39  ;;  %11469 = vmatprep.subr.bf16.mxu1 %v13380_v5  ;;  %v1020_v39 = vld [vmem:[%s19698_s1 + $0x1ed0] sm:$0xff]  ;;  %v1065_v18 = vld [vmem:[%s19698_s1 + $0x2038] sm:$0xff] }
 0x4e4   :  { %v1024_v5 = vld [vmem:[%s19698_s1 + $0x1ef0] sm:$0xff] }
 0x4e5   :  { %v13433_v59 = vcombine.low %v1020_v39, %v1024_v5 }
 0x4e6   :  { %10937 = vmatpush1.bf16.msra.mxu0 %v13377_v46  ;;  %11470 = vmatpush1.bf16.msra.mxu1 %v13379_v13  ;;  %v13434_v46 = vcombine.high %v1020_v39, %v1024_v5  ;;  %v13436_v13 = vcombine.high %v1021_v23, %v1025_v6  ;;  %v1069_v39 = vld [vmem:[%s19698_s1 + $0x2058] sm:$0xff]  ;;  %v13475_v6 = vcombine.low %v1061_v47, %v1065_v18 }
 0x4e7   :  { %10938 = vmatprep.subr.bf16.mxu0 %v13386_v14  ;;  %11471 = vmatprep.subr.bf16.mxu1 %v13388_v17  ;;  %v1028_v14 = vld [vmem:[%s19698_s1 + $0x1f10] sm:$0xff]  ;;  %v1073_v5 = vld [vmem:[%s19698_s1 + $0x2078] sm:$0xff] }
 0x4e8   :  { %v1032_v17 = vld [vmem:[%s19698_s1 + $0x1f30] sm:$0xff] }
 0x4e9   :  { %v13441_v12 = vcombine.low %v1028_v14, %v1032_v17 }
 0x4ea   :  { %10939 = vmatpush1.bf16.msra.mxu0 %v13385_v58  ;;  %11472 = vmatpush1.bf16.msra.mxu1 %v13387_v26  ;;  %v13442_v58 = vcombine.high %v1028_v14, %v1032_v17  ;;  %v13444_v26 = vcombine.high %v1029_v53, %v1033_v20  ;;  %v1077_v14 = vld [vmem:[%s19698_s1 + $0x2098] sm:$0xff]  ;;  %v13483_v20 = vcombine.low %v1069_v39, %v1073_v5 }
 0x4eb   :  { %10940 = vmatprep.subr.bf16.mxu0 %v13394_v36  ;;  %11473 = vmatprep.subr.bf16.mxu1 %v13396_v15  ;;  %v1036_v36 = vld [vmem:[%s19698_s1 + $0x1f50] sm:$0xff]  ;;  %v1081_v17 = vld [vmem:[%s19698_s1 + $0x20b8] sm:$0xff] }
 0x4ec   :  { %v1040_v15 = vld [vmem:[%s19698_s1 + $0x1f70] sm:$0xff] }
 0x4ed   :  { %v13449_v33 = vcombine.low %v1036_v36, %v1040_v15 }
 0x4ee   :  { %10941 = vmatpush1.bf16.msra.mxu0 %v13393_v22  ;;  %11474 = vmatpush1.bf16.msra.mxu1 %v13395_v55  ;;  %v13450_v22 = vcombine.high %v1036_v36, %v1040_v15  ;;  %v13452_v55 = vcombine.high %v1037_v16, %v1041_v28  ;;  %v1089_v36 = vld [vmem:[%s19698_s1 + $0x20f8] sm:$0xff]  ;;  %v13491_v16 = vcombine.low %v1077_v14, %v1081_v17 }
 0x4ef   :  { %10942 = vmatprep.subr.bf16.mxu0 %v13402_v29  ;;  %11475 = vmatprep.subr.bf16.mxu1 %v13404_v32  ;;  %v1044_v29 = vld [vmem:[%s19698_s1 + $0x1f90] sm:$0xff] }
 0x4f0   :  { %v1048_v32 = vld [vmem:[%s19698_s1 + $0x1fb0] sm:$0xff] }
 0x4f1   :  { %v13457_v40 = vcombine.low %v1044_v29, %v1048_v32 }
 0x4f2   :  { %10943 = vmatpush1.bf16.msra.mxu0 %v13401_v35  ;;  %11476 = vmatpush1.bf16.msra.mxu1 %v13403_v37  ;;  %v13458_v35 = vcombine.high %v1044_v29, %v1048_v32  ;;  %v13460_v37 = vcombine.high %v1045_v27, %v1049_v45 }
 0x4f3   :  { %10944 = vmatprep.subr.bf16.mxu0 %v13410_v1  ;;  %11477 = vmatprep.subr.bf16.mxu1 %v13412_v21  ;;  %v1052_v1 = vld [vmem:[%s19698_s1 + $0x1fd0] sm:$0xff] }
 0x4f4   :  { %v1056_v21 = vld [vmem:[%s19698_s1 + $0x1ff0] sm:$0xff] }
 0x4f5   :  { %v13465_v52 = vcombine.low %v1052_v1, %v1056_v21 }
 0x4f6   :  { %10945 = vmatpush1.bf16.msra.mxu0 %v13409_v19  ;;  %11478 = vmatpush1.bf16.msra.mxu1 %v13411_v25  ;;  %v13466_v19 = vcombine.high %v1052_v1, %v1056_v21  ;;  %v13468_v25 = vcombine.high %v1053_v31, %v1057_v38 }
 0x4f7   :  { %10946 = vmatprep.subr.bf16.mxu0 %v13418_v42  ;;  %11479 = vmatprep.subr.bf16.mxu1 %v13420_v44  ;;  %v1060_v42 = vld [vmem:[%s19698_s1 + $0x2010] sm:$0xff] }
 0x4f8   :  { %v1064_v44 = vld [vmem:[%s19698_s1 + $0x2030] sm:$0xff] }
 0x4f9   :  { %v13473_v23 = vcombine.low %v1060_v42, %v1064_v44 }
 0x4fa   :  { %10947 = vmatpush1.bf16.msra.mxu0 %v13417_v30  ;;  %11480 = vmatpush1.bf16.msra.mxu1 %v13419_v3  ;;  %v13474_v30 = vcombine.high %v1060_v42, %v1064_v44  ;;  %v13476_v3 = vcombine.high %v1061_v47, %v1065_v18 }
 0x4fb   :  { %10948 = vmatprep.subr.bf16.mxu0 %v13426_v48  ;;  %11481 = vmatprep.subr.bf16.mxu1 %v13428_v61  ;;  %v1068_v48 = vld [vmem:[%s19698_s1 + $0x2050] sm:$0xff] }
 0x4fc   :  { %v1072_v61 = vld [vmem:[%s19698_s1 + $0x2070] sm:$0xff] }
 0x4fd   :  { %v13481_v53 = vcombine.low %v1068_v48, %v1072_v61 }
 0x4fe   :  { %10949 = vmatpush1.bf16.msra.mxu0 %v13425_v10  ;;  %11482 = vmatpush1.bf16.msra.mxu1 %v13427_v54  ;;  %v13482_v10 = vcombine.high %v1068_v48, %v1072_v61  ;;  %v13484_v54 = vcombine.high %v1069_v39, %v1073_v5 }
 0x4ff   :  { %10950 = vmatprep.subr.bf16.mxu0 %v13434_v46  ;;  %11483 = vmatprep.subr.bf16.mxu1 %v13436_v13  ;;  %v1076_v46 = vld [vmem:[%s19698_s1 + $0x2090] sm:$0xff] }
 0x500   :  { %v1080_v13 = vld [vmem:[%s19698_s1 + $0x20b0] sm:$0xff] }
 0x501   :  { %v13489_v15 = vcombine.low %v1076_v46, %v1080_v13 }
 0x502   :  { %10951 = vmatpush1.bf16.msra.mxu0 %v13433_v59  ;;  %11484 = vmatpush1.bf16.msra.mxu1 %v13435_v24  ;;  %v13490_v59 = vcombine.high %v1076_v46, %v1080_v13  ;;  %v13492_v24 = vcombine.high %v1077_v14, %v1081_v17 }
 0x503   :  { %10952 = vmatprep.subr.bf16.mxu0 %v13442_v58  ;;  %11485 = vmatprep.subr.bf16.mxu1 %v13444_v26  ;;  %v1084_v58 = vld [vmem:[%s19698_s1 + $0x20d0] sm:$0xff] }
 0x504   :  { %v1088_v26 = vld [vmem:[%s19698_s1 + $0x20f0] sm:$0xff] }
 0x505   :  { %v13498_v28 = vcombine.high %v1084_v58, %v1088_v26  ;;  %v13497_v29 = vcombine.low %v1084_v58, %v1088_v26 }
 0x506   :  { %10953 = vmatpush1.bf16.msra.mxu0 %v13441_v12  ;;  %11486 = vmatpush1.bf16.msra.mxu1 %v13443_v57  ;;  %v1092_v57 = vld [vmem:[%s19698_s1 + $0x2110] sm:$0xff] }
 0x507   :  { %10954 = vmatprep.subr.bf16.mxu0 %v13450_v22  ;;  %11487 = vmatprep.subr.bf16.mxu1 %v13452_v55  ;;  %v1096_v22 = vld [vmem:[%s19698_s1 + $0x2130] sm:$0xff]  ;;  %v1097_v55 = vld [vmem:[%s19698_s1 + $0x2138] sm:$0xff] }
 0x508   :  { %v13506_v27 = vcombine.high %v1092_v57, %v1096_v22  ;;  %v13505_v1 = vcombine.low %v1092_v57, %v1096_v22 }
 0x50a   :  { %10955 = vmatpush1.bf16.msra.mxu0 %v13449_v33  ;;  %11488 = vmatpush1.bf16.msra.mxu1 %v13451_v34  ;;  %v1100_v33 = vld [vmem:[%s19698_s1 + $0x2150] sm:$0xff] }
 0x50b   :  { %10956 = vmatprep.subr.bf16.mxu0 %v13458_v35  ;;  %11489 = vmatprep.subr.bf16.mxu1 %v13460_v37  ;;  %v1104_v34 = vld [vmem:[%s19698_s1 + $0x2170] sm:$0xff]  ;;  %v1101_v35 = vld [vmem:[%s19698_s1 + $0x2158] sm:$0xff] }
 0x50c   :  { %v1105_v37 = vld [vmem:[%s19698_s1 + $0x2178] sm:$0xff]  ;;  %v13514_v31 = vcombine.high %v1100_v33, %v1104_v34  ;;  %v13513_v42 = vcombine.low %v1100_v33, %v1104_v34 }
 0x50d   :  { %v13516_v38 = vcombine.high %v1101_v35, %v1105_v37  ;;  %v13515_v44 = vcombine.low %v1101_v35, %v1105_v37 }
 0x50e   :  { %10957 = vmatpush1.bf16.msra.mxu0 %v13457_v40  ;;  %11490 = vmatpush1.bf16.msra.mxu1 %v13459_v41  ;;  %v1108_v40 = vld [vmem:[%s19698_s1 + $0x2190] sm:$0xff] }
 0x50f   :  { %10958 = vmatprep.subr.bf16.mxu0 %v13466_v19  ;;  %11491 = vmatprep.subr.bf16.mxu1 %v13468_v25  ;;  %v1112_v41 = vld [vmem:[%s19698_s1 + $0x21b0] sm:$0xff]  ;;  %v1109_v19 = vld [vmem:[%s19698_s1 + $0x2198] sm:$0xff] }
 0x510   :  { %v1113_v25 = vld [vmem:[%s19698_s1 + $0x21b8] sm:$0xff]  ;;  %v13522_v47 = vcombine.high %v1108_v40, %v1112_v41  ;;  %v13521_v48 = vcombine.low %v1108_v40, %v1112_v41 }
 0x511   :  { %v13524_v18 = vcombine.high %v1109_v19, %v1113_v25  ;;  %v13523_v61 = vcombine.low %v1109_v19, %v1113_v25 }
 0x512   :  { %10959 = vmatpush1.bf16.msra.mxu0 %v13465_v52  ;;  %11492 = vmatpush1.bf16.msra.mxu1 %v13467_v56  ;;  %v1116_v52 = vld [vmem:[%s19698_s1 + $0x21d0] sm:$0xff] }
 0x513   :  { %10969 = vmatprep.subr.bf16.mxu0 %v13474_v30  ;;  %11502 = vmatprep.subr.bf16.mxu1 %v13476_v3  ;;  %v1120_v56 = vld [vmem:[%s19698_s1 + $0x21f0] sm:$0xff]  ;;  %v1117_v30 = vld [vmem:[%s19698_s1 + $0x21d8] sm:$0xff] }
 0x514   :  { %v1121_v3 = vld [vmem:[%s19698_s1 + $0x21f8] sm:$0xff]  ;;  %v13530_v39 = vcombine.high %v1116_v52, %v1120_v56  ;;  %v13529_v46 = vcombine.low %v1116_v52, %v1120_v56 }
 0x515   :  { %10961 = vmatmul.mubr.bf16.vlgmr.msra.gmra.mrb[4].mxu0 %v16181_v63  ;;  %11494 = vmatmul.mubr.bf16.vlgmr.msra.gmra.mrb[4].mxu1 %v16181_v63  ;;  %v1085_v63 = vld [vmem:[%s19698_s1 + $0x20d8] sm:$0xff]  ;;  %v13532_v5 = vcombine.high %v1117_v30, %v1121_v3  ;;  %v13531_v13 = vcombine.low %v1117_v30, %v1121_v3 }
 0x516   :  { %10970 = vmatpush1.bf16.msra.mxu0 %v13473_v23  ;;  %11503 = vmatpush1.bf16.msra.mxu1 %v13475_v6  ;;  %v13500_v12 = vcombine.high %v1085_v63, %v1089_v36  ;;  %v13499_v32 = vcombine.low %v1085_v63, %v1089_v36  ;;  %v1124_v23 = vld [vmem:[%s19698_s1 + $0x2210] sm:$0xff] }
 0x517   :  { %10971 = vmatprep.subr.bf16.mxu0 %v13482_v10  ;;  %11504 = vmatprep.subr.bf16.mxu1 %v13484_v54  ;;  %v1128_v6 = vld [vmem:[%s19698_s1 + $0x2230] sm:$0xff]  ;;  %v1125_v10 = vld [vmem:[%s19698_s1 + $0x2218] sm:$0xff] }
 0x518   :  { %11001 = vmatprep.mubr.bf16.mxu0 %v16202_v9  ;;  %11534 = vmatprep.mubr.bf16.mxu1 %v16202_v9  ;;  %v1093_v9 = vld [vmem:[%s19698_s1 + $0x2118] sm:$0xff]  ;;  %v13538_v14 = vcombine.high %v1124_v23, %v1128_v6  ;;  %v13537_v58 = vcombine.low %v1124_v23, %v1128_v6 }
 0x519   :  { %v13508_v45 = vcombine.high %v1093_v9, %v1097_v55  ;;  %v13507_v21 = vcombine.low %v1093_v9, %v1097_v55  ;;  %v1129_v54 = vld [vmem:[%s19698_s1 + $0x2238] sm:$0xff] }
 0x51a   :  { %10972 = vmatpush1.bf16.msra.mxu0 %v13481_v53  ;;  %11505 = vmatpush1.bf16.msra.mxu1 %v13483_v20  ;;  %v13540_v17 = vcombine.high %v1125_v10, %v1129_v54  ;;  %v1132_v53 = vld [vmem:[%s19698_s1 + $0x2250] sm:$0xff]  ;;  %v13539_v26 = vcombine.low %v1125_v10, %v1129_v54 }
 0x51b   :  { %10973 = vmatprep.subr.bf16.mxu0 %v13490_v59  ;;  %11506 = vmatprep.subr.bf16.mxu1 %v13492_v24  ;;  %v1136_v20 = vld [vmem:[%s19698_s1 + $0x2270] sm:$0xff]  ;;  %v1133_v59 = vld [vmem:[%s19698_s1 + $0x2258] sm:$0xff] }
 0x51c   :  { %v1137_v24 = vld [vmem:[%s19698_s1 + $0x2278] sm:$0xff]  ;;  %v13546_v63 = vcombine.high %v1132_v53, %v1136_v20  ;;  %v13545_v57 = vcombine.low %v1132_v53, %v1136_v20 }
 0x51d   :  { %v13548_v36 = vcombine.high %v1133_v59, %v1137_v24  ;;  %v13547_v22 = vcombine.low %v1133_v59, %v1137_v24 }
 0x51e   :  { %10974 = vmatpush1.bf16.msra.mxu0 %v13489_v15  ;;  %11507 = vmatpush1.bf16.msra.mxu1 %v13491_v16  ;;  %v1140_v15 = vld [vmem:[%s19698_s1 + $0x2290] sm:$0xff] }
 0x51f   :  { %10975 = vmatprep.subr.bf16.mxu0 %v13498_v28  ;;  %11508 = vmatprep.subr.bf16.mxu1 %v13500_v12  ;;  %v1144_v16 = vld [vmem:[%s19698_s1 + $0x22b0] sm:$0xff]  ;;  %v1141_v28 = vld [vmem:[%s19698_s1 + $0x2298] sm:$0xff] }
 0x520   :  { %v1145_v12 = vld [vmem:[%s19698_s1 + $0x22b8] sm:$0xff]  ;;  %v13554_v9 = vcombine.high %v1140_v15, %v1144_v16  ;;  %v13553_v33 = vcombine.low %v1140_v15, %v1144_v16 }
 0x521   :  { %v13556_v55 = vcombine.high %v1141_v28, %v1145_v12  ;;  %v13555_v34 = vcombine.low %v1141_v28, %v1145_v12 }
 0x522   :  { %10976 = vmatpush1.bf16.msra.mxu0 %v13497_v29  ;;  %11509 = vmatpush1.bf16.msra.mxu1 %v13499_v32  ;;  %v1148_v29 = vld [vmem:[%s19698_s1 + $0x22d0] sm:$0xff] }
 0x523   :  { %10977 = vmatprep.subr.bf16.mxu0 %v13506_v27  ;;  %11510 = vmatprep.subr.bf16.mxu1 %v13508_v45  ;;  %v1152_v32 = vld [vmem:[%s19698_s1 + $0x22f0] sm:$0xff]  ;;  %v1149_v27 = vld [vmem:[%s19698_s1 + $0x22d8] sm:$0xff] }
 0x524   :  { %v1153_v45 = vld [vmem:[%s19698_s1 + $0x22f8] sm:$0xff]  ;;  %v13562_v35 = vcombine.high %v1148_v29, %v1152_v32  ;;  %v13561_v40 = vcombine.low %v1148_v29, %v1152_v32 }
 0x525   :  { %v13564_v37 = vcombine.high %v1149_v27, %v1153_v45  ;;  %v13563_v41 = vcombine.low %v1149_v27, %v1153_v45 }
 0x526   :  { %10978 = vmatpush1.bf16.msra.mxu0 %v13505_v1  ;;  %11511 = vmatpush1.bf16.msra.mxu1 %v13507_v21  ;;  %v1156_v1 = vld [vmem:[%s19698_s1 + $0x2310] sm:$0xff] }
 0x527   :  { %10979 = vmatprep.subr.bf16.mxu0 %v13514_v31  ;;  %11512 = vmatprep.subr.bf16.mxu1 %v13516_v38  ;;  %v1160_v21 = vld [vmem:[%s19698_s1 + $0x2330] sm:$0xff]  ;;  %v1157_v31 = vld [vmem:[%s19698_s1 + $0x2318] sm:$0xff] }
 0x528   :  { %v1161_v38 = vld [vmem:[%s19698_s1 + $0x2338] sm:$0xff]  ;;  %v13570_v19 = vcombine.high %v1156_v1, %v1160_v21  ;;  %v13569_v52 = vcombine.low %v1156_v1, %v1160_v21 }
 0x529   :  { %v13572_v25 = vcombine.high %v1157_v31, %v1161_v38  ;;  %v13571_v56 = vcombine.low %v1157_v31, %v1161_v38 }
 0x52a   :  { %10980 = vmatpush1.bf16.msra.mxu0 %v13513_v42  ;;  %11513 = vmatpush1.bf16.msra.mxu1 %v13515_v44  ;;  %v1164_v42 = vld [vmem:[%s19698_s1 + $0x2350] sm:$0xff] }
 0x52b   :  { %10981 = vmatprep.subr.bf16.mxu0 %v13522_v47  ;;  %11514 = vmatprep.subr.bf16.mxu1 %v13524_v18  ;;  %v1168_v44 = vld [vmem:[%s19698_s1 + $0x2370] sm:$0xff]  ;;  %v1165_v47 = vld [vmem:[%s19698_s1 + $0x2358] sm:$0xff] }
 0x52c   :  { %v1169_v18 = vld [vmem:[%s19698_s1 + $0x2378] sm:$0xff]  ;;  %v13578_v30 = vcombine.high %v1164_v42, %v1168_v44  ;;  %v13577_v23 = vcombine.low %v1164_v42, %v1168_v44 }
 0x52d   :  { %v13580_v3 = vcombine.high %v1165_v47, %v1169_v18  ;;  %v13579_v6 = vcombine.low %v1165_v47, %v1169_v18  ;;  %v1220_v18 = vld [vmem:[%s19698_s1 + $0x2510] sm:$0xff] }
 0x52e   :  { %10982 = vmatpush1.bf16.msra.mxu0 %v13521_v48  ;;  %11515 = vmatpush1.bf16.msra.mxu1 %v13523_v61  ;;  %v1172_v48 = vld [vmem:[%s19698_s1 + $0x2390] sm:$0xff] }
 0x52f   :  { %10983 = vmatprep.subr.bf16.mxu0 %v13530_v39  ;;  %11516 = vmatprep.subr.bf16.mxu1 %v13532_v5  ;;  %v1176_v61 = vld [vmem:[%s19698_s1 + $0x23b0] sm:$0xff]  ;;  %v1173_v39 = vld [vmem:[%s19698_s1 + $0x2398] sm:$0xff] }
 0x530   :  { %v1177_v5 = vld [vmem:[%s19698_s1 + $0x23b8] sm:$0xff]  ;;  %v13586_v10 = vcombine.high %v1172_v48, %v1176_v61  ;;  %v13585_v53 = vcombine.low %v1172_v48, %v1176_v61 }
 0x531   :  { %v13588_v54 = vcombine.high %v1173_v39, %v1177_v5  ;;  %v13587_v20 = vcombine.low %v1173_v39, %v1177_v5  ;;  %v1228_v39 = vld [vmem:[%s19698_s1 + $0x2550] sm:$0xff] }
 0x532   :  { %10984 = vmatpush1.bf16.msra.mxu0 %v13529_v46  ;;  %11517 = vmatpush1.bf16.msra.mxu1 %v13531_v13  ;;  %v1180_v46 = vld [vmem:[%s19698_s1 + $0x23d0] sm:$0xff] }
 0x533   :  { %10985 = vmatprep.subr.bf16.mxu0 %v13538_v14  ;;  %11518 = vmatprep.subr.bf16.mxu1 %v13540_v17  ;;  %v1184_v13 = vld [vmem:[%s19698_s1 + $0x23f0] sm:$0xff]  ;;  %v1181_v14 = vld [vmem:[%s19698_s1 + $0x23d8] sm:$0xff] }
 0x534   :  { %v1185_v17 = vld [vmem:[%s19698_s1 + $0x23f8] sm:$0xff]  ;;  %v13594_v59 = vcombine.high %v1180_v46, %v1184_v13  ;;  %v13593_v15 = vcombine.low %v1180_v46, %v1184_v13  ;;  %v1232_v5 = vld [vmem:[%s19698_s1 + $0x2570] sm:$0xff] }
 0x535   :  { %v13596_v24 = vcombine.high %v1181_v14, %v1185_v17  ;;  %v13595_v16 = vcombine.low %v1181_v14, %v1185_v17  ;;  %v13642_v46 = vcombine.high %v1228_v39, %v1232_v5  ;;  %v1236_v14 = vld [vmem:[%s19698_s1 + $0x2590] sm:$0xff] }
 0x536   :  { %10986 = vmatpush1.bf16.msra.mxu0 %v13537_v58  ;;  %11519 = vmatpush1.bf16.msra.mxu1 %v13539_v26  ;;  %v1188_v58 = vld [vmem:[%s19698_s1 + $0x2410] sm:$0xff] }
 0x537   :  { %10987 = vmatprep.subr.bf16.mxu0 %v13546_v63  ;;  %11520 = vmatprep.subr.bf16.mxu1 %v13548_v36  ;;  %v1192_v26 = vld [vmem:[%s19698_s1 + $0x2430] sm:$0xff]  ;;  %v1189_v63 = vld [vmem:[%s19698_s1 + $0x2418] sm:$0xff] }
 0x538   :  { %v1193_v36 = vld [vmem:[%s19698_s1 + $0x2438] sm:$0xff]  ;;  %v13602_v28 = vcombine.high %v1188_v58, %v1192_v26  ;;  %v13601_v29 = vcombine.low %v1188_v58, %v1192_v26  ;;  %v1240_v17 = vld [vmem:[%s19698_s1 + $0x25b0] sm:$0xff] }
 0x539   :  { %v13604_v12 = vcombine.high %v1189_v63, %v1193_v36  ;;  %v13603_v32 = vcombine.low %v1189_v63, %v1193_v36  ;;  %v13650_v58 = vcombine.high %v1236_v14, %v1240_v17  ;;  %v1244_v63 = vld [vmem:[%s19698_s1 + $0x25d0] sm:$0xff] }
 0x53a   :  { %10988 = vmatpush1.bf16.msra.mxu0 %v13545_v57  ;;  %11521 = vmatpush1.bf16.msra.mxu1 %v13547_v22  ;;  %v1196_v57 = vld [vmem:[%s19698_s1 + $0x2450] sm:$0xff] }
 0x53b   :  { %10989 = vmatprep.subr.bf16.mxu0 %v13554_v9  ;;  %11522 = vmatprep.subr.bf16.mxu1 %v13556_v55  ;;  %v1200_v22 = vld [vmem:[%s19698_s1 + $0x2470] sm:$0xff]  ;;  %v1197_v9 = vld [vmem:[%s19698_s1 + $0x2458] sm:$0xff] }
 0x53c   :  { %v1201_v55 = vld [vmem:[%s19698_s1 + $0x2478] sm:$0xff]  ;;  %v13610_v27 = vcombine.high %v1196_v57, %v1200_v22  ;;  %v13609_v1 = vcombine.low %v1196_v57, %v1200_v22  ;;  %v1248_v36 = vld [vmem:[%s19698_s1 + $0x25f0] sm:$0xff] }
 0x53d   :  { %v13612_v45 = vcombine.high %v1197_v9, %v1201_v55  ;;  %v13611_v21 = vcombine.low %v1197_v9, %v1201_v55  ;;  %v13658_v57 = vcombine.high %v1244_v63, %v1248_v36  ;;  %v1252_v9 = vld [vmem:[%s19698_s1 + $0x2610] sm:$0xff] }
 0x53e   :  { %10990 = vmatpush1.bf16.msra.mxu0 %v13553_v33  ;;  %11523 = vmatpush1.bf16.msra.mxu1 %v13555_v34  ;;  %v1204_v33 = vld [vmem:[%s19698_s1 + $0x2490] sm:$0xff] }
 0x53f   :  { %10991 = vmatprep.subr.bf16.mxu0 %v13562_v35  ;;  %11524 = vmatprep.subr.bf16.mxu1 %v13564_v37  ;;  %v1208_v34 = vld [vmem:[%s19698_s1 + $0x24b0] sm:$0xff]  ;;  %v1205_v35 = vld [vmem:[%s19698_s1 + $0x2498] sm:$0xff] }
 0x540   :  { %v1209_v37 = vld [vmem:[%s19698_s1 + $0x24b8] sm:$0xff]  ;;  %v13618_v31 = vcombine.high %v1204_v33, %v1208_v34  ;;  %v1256_v55 = vld [vmem:[%s19698_s1 + $0x2630] sm:$0xff] }
 0x541   :  { %v13620_v38 = vcombine.high %v1205_v35, %v1209_v37  ;;  %v13619_v42 = vcombine.low %v1205_v35, %v1209_v37  ;;  %v1260_v35 = vld [vmem:[%s19698_s1 + $0x2650] sm:$0xff] }
 0x542   :  { %10992 = vmatpush1.bf16.msra.mxu0 %v13561_v40  ;;  %11525 = vmatpush1.bf16.msra.mxu1 %v13563_v41  ;;  %v1212_v40 = vld [vmem:[%s19698_s1 + $0x24d0] sm:$0xff] }
 0x543   :  { %10993 = vmatprep.subr.bf16.mxu0 %v13570_v19  ;;  %11526 = vmatprep.subr.bf16.mxu1 %v13572_v25  ;;  %v1216_v41 = vld [vmem:[%s19698_s1 + $0x24f0] sm:$0xff]  ;;  %v1217_v19 = vld [vmem:[%s19698_s1 + $0x24f8] sm:$0xff]  ;;  %v13617_v25 = vcombine.low %v1204_v33, %v1208_v34  ;;  %v13666_v33 = vcombine.high %v1252_v9, %v1256_v55 }
 0x544   :  { %v13626_v44 = vcombine.high %v1212_v40, %v1216_v41  ;;  %v1264_v37 = vld [vmem:[%s19698_s1 + $0x2670] sm:$0xff] }
 0x546   :  { %10994 = vmatpush1.bf16.msra.mxu0 %v13569_v52  ;;  %11527 = vmatpush1.bf16.msra.mxu1 %v13571_v56  ;;  %v1224_v52 = vld [vmem:[%s19698_s1 + $0x2530] sm:$0xff]  ;;  %v1225_v56 = vld [vmem:[%s19698_s1 + $0x2538] sm:$0xff] }
 0x547   :  { %10995 = vmatprep.subr.bf16.mxu0 %v13578_v30  ;;  %11528 = vmatprep.subr.bf16.mxu1 %v13580_v3  ;;  %v13625_v30 = vcombine.low %v1212_v40, %v1216_v41  ;;  %v13634_v48 = vcombine.high %v1220_v18, %v1224_v52  ;;  %v13674_v40 = vcombine.high %v1260_v35, %v1264_v37 }
 0x54a   :  { %10996 = vmatpush1.bf16.msra.mxu0 %v13577_v23  ;;  %11529 = vmatpush1.bf16.msra.mxu1 %v13579_v6  ;;  %v1229_v23 = vld [vmem:[%s19698_s1 + $0x2558] sm:$0xff] }
 0x54b   :  { %10997 = vmatprep.subr.bf16.mxu0 %v13586_v10  ;;  %11530 = vmatprep.subr.bf16.mxu1 %v13588_v54  ;;  %v1233_v6 = vld [vmem:[%s19698_s1 + $0x2578] sm:$0xff]  ;;  %v13633_v10 = vcombine.low %v1220_v18, %v1224_v52 }
 0x54c   :  { %v13644_v13 = vcombine.high %v1229_v23, %v1233_v6 }
 0x54e   :  { %10998 = vmatpush1.bf16.msra.mxu0 %v13585_v53  ;;  %11531 = vmatpush1.bf16.msra.mxu1 %v13587_v20  ;;  %v1237_v53 = vld [vmem:[%s19698_s1 + $0x2598] sm:$0xff] }
 0x54f   :  { %10999 = vmatprep.subr.bf16.mxu0 %v13594_v59  ;;  %11532 = vmatprep.subr.bf16.mxu1 %v13596_v24  ;;  %v1241_v20 = vld [vmem:[%s19698_s1 + $0x25b8] sm:$0xff]  ;;  %v13641_v59 = vcombine.low %v1228_v39, %v1232_v5  ;;  %v13643_v24 = vcombine.low %v1229_v23, %v1233_v6  ;;  %v1284_v23 = vld [vmem:[%s19698_s1 + $0x2710] sm:$0xff] }
 0x550   :  { %v13652_v26 = vcombine.high %v1237_v53, %v1241_v20  ;;  %v1288_v6 = vld [vmem:[%s19698_s1 + $0x2730] sm:$0xff] }
 0x552   :  { %11000 = vmatpush1.bf16.msra.mxu0 %v13593_v15  ;;  %11533 = vmatpush1.bf16.msra.mxu1 %v13595_v16  ;;  %v1245_v15 = vld [vmem:[%s19698_s1 + $0x25d8] sm:$0xff] }
 0x553   :  { %11010 = vmatprep.subr.bf16.mxu0 %v13602_v28  ;;  %11543 = vmatprep.subr.bf16.mxu1 %v13604_v12  ;;  %v1249_v16 = vld [vmem:[%s19698_s1 + $0x25f8] sm:$0xff]  ;;  %v13649_v28 = vcombine.low %v1236_v14, %v1240_v17  ;;  %v13651_v12 = vcombine.low %v1237_v53, %v1241_v20  ;;  %v13698_v14 = vcombine.high %v1284_v23, %v1288_v6  ;;  %v1292_v53 = vld [vmem:[%s19698_s1 + $0x2750] sm:$0xff] }
 0x554   :  { %v13660_v22 = vcombine.high %v1245_v15, %v1249_v16  ;;  %v1296_v20 = vld [vmem:[%s19698_s1 + $0x2770] sm:$0xff] }
 0x555   :  { %11002 = vmatmul.mubr.bf16.vlgmr.msra.gmra.mrb[4].mxu0 %v16390_v50  ;;  %11535 = vmatmul.mubr.bf16.vlgmr.msra.gmra.mrb[4].mxu1 %v16390_v50  ;;  %v1213_v50 = vld [vmem:[%s19698_s1 + $0x24d8] sm:$0xff] }
 0x556   :  { %11011 = vmatpush1.bf16.msra.mxu0 %v13601_v29  ;;  %11544 = vmatpush1.bf16.msra.mxu1 %v13603_v32  ;;  %v13628_v47 = vcombine.high %v1213_v50, %v1217_v19  ;;  %v13627_v3 = vcombine.low %v1213_v50, %v1217_v19  ;;  %v1253_v29 = vld [vmem:[%s19698_s1 + $0x2618] sm:$0xff]  ;;  %v1268_v50 = vld [vmem:[%s19698_s1 + $0x2690] sm:$0xff] }
 0x557   :  { %11012 = vmatprep.subr.bf16.mxu0 %v13610_v27  ;;  %11545 = vmatprep.subr.bf16.mxu1 %v13612_v45  ;;  %v1257_v32 = vld [vmem:[%s19698_s1 + $0x2638] sm:$0xff]  ;;  %v13657_v27 = vcombine.low %v1244_v63, %v1248_v36  ;;  %v13659_v45 = vcombine.low %v1245_v15, %v1249_v16  ;;  %v1272_v19 = vld [vmem:[%s19698_s1 + $0x26b0] sm:$0xff]  ;;  %v13706_v63 = vcombine.high %v1292_v53, %v1296_v20 }
 0x558   :  { %11042 = vmatprep.mubr.bf16.mxu0 %v16411_v62  ;;  %11575 = vmatprep.mubr.bf16.mxu1 %v16411_v62  ;;  %v1221_v62 = vld [vmem:[%s19698_s1 + $0x2518] sm:$0xff]  ;;  %v13668_v34 = vcombine.high %v1253_v29, %v1257_v32  ;;  %v13682_v18 = vcombine.high %v1268_v50, %v1272_v19  ;;  %v1300_v15 = vld [vmem:[%s19698_s1 + $0x2790] sm:$0xff] }
 0x559   :  { %v13636_v61 = vcombine.high %v1221_v62, %v1225_v56  ;;  %v13635_v54 = vcombine.low %v1221_v62, %v1225_v56  ;;  %v1276_v62 = vld [vmem:[%s19698_s1 + $0x26d0] sm:$0xff] }
 0x55a   :  { %11013 = vmatpush1.bf16.msra.mxu0 %v13609_v1  ;;  %11546 = vmatpush1.bf16.msra.mxu1 %v13611_v21  ;;  %v1261_v1 = vld [vmem:[%s19698_s1 + $0x2658] sm:$0xff]  ;;  %v1280_v56 = vld [vmem:[%s19698_s1 + $0x26f0] sm:$0xff] }
 0x55b   :  { %11014 = vmatprep.subr.bf16.mxu0 %v13618_v31  ;;  %11547 = vmatprep.subr.bf16.mxu1 %v13620_v38  ;;  %v1265_v21 = vld [vmem:[%s19698_s1 + $0x2678] sm:$0xff]  ;;  %v13665_v31 = vcombine.low %v1252_v9, %v1256_v55  ;;  %v13667_v38 = vcombine.low %v1253_v29, %v1257_v32  ;;  %v13690_v39 = vcombine.high %v1276_v62, %v1280_v56  ;;  %v1304_v16 = vld [vmem:[%s19698_s1 + $0x27b0] sm:$0xff] }
 0x55c   :  { %v13676_v41 = vcombine.high %v1261_v1, %v1265_v21  ;;  %v13714_v9 = vcombine.high %v1300_v15, %v1304_v16  ;;  %v1308_v29 = vld [vmem:[%s19698_s1 + $0x27d0] sm:$0xff] }
 0x55d   :  { %v1312_v32 = vld [vmem:[%s19698_s1 + $0x27f0] sm:$0xff] }
 0x55e   :  { %11015 = vmatpush1.bf16.msra.mxu0 %v13617_v25  ;;  %11548 = vmatpush1.bf16.msra.mxu1 %v13619_v42  ;;  %v1269_v25 = vld [vmem:[%s19698_s1 + $0x2698] sm:$0xff] }
 0x55f   :  { %11016 = vmatprep.subr.bf16.mxu0 %v13626_v44  ;;  %11549 = vmatprep.subr.bf16.mxu1 %v13628_v47  ;;  %v1273_v42 = vld [vmem:[%s19698_s1 + $0x26b8] sm:$0xff]  ;;  %v13673_v44 = vcombine.low %v1260_v35, %v1264_v37  ;;  %v13675_v47 = vcombine.low %v1261_v1, %v1265_v21  ;;  %v13722_v35 = vcombine.high %v1308_v29, %v1312_v32  ;;  %v1316_v1 = vld [vmem:[%s19698_s1 + $0x2810] sm:$0xff] }
 0x560   :  { %v13684_v52 = vcombine.high %v1269_v25, %v1273_v42  ;;  %v1320_v21 = vld [vmem:[%s19698_s1 + $0x2830] sm:$0xff] }
 0x562   :  { %11017 = vmatpush1.bf16.msra.mxu0 %v13625_v30  ;;  %11550 = vmatpush1.bf16.msra.mxu1 %v13627_v3  ;;  %v1277_v30 = vld [vmem:[%s19698_s1 + $0x26d8] sm:$0xff] }
 0x563   :  { %11018 = vmatprep.subr.bf16.mxu0 %v13634_v48  ;;  %11551 = vmatprep.subr.bf16.mxu1 %v13636_v61  ;;  %v1281_v3 = vld [vmem:[%s19698_s1 + $0x26f8] sm:$0xff]  ;;  %v13681_v48 = vcombine.low %v1268_v50, %v1272_v19  ;;  %v13683_v61 = vcombine.low %v1269_v25, %v1273_v42  ;;  %v13730_v50 = vcombine.high %v1316_v1, %v1320_v21  ;;  %v1324_v25 = vld [vmem:[%s19698_s1 + $0x2850] sm:$0xff] }
 0x564   :  { %v13692_v5 = vcombine.high %v1277_v30, %v1281_v3  ;;  %v1328_v42 = vld [vmem:[%s19698_s1 + $0x2870] sm:$0xff] }
 0x566   :  { %11019 = vmatpush1.bf16.msra.mxu0 %v13633_v10  ;;  %11552 = vmatpush1.bf16.msra.mxu1 %v13635_v54  ;;  %v1285_v10 = vld [vmem:[%s19698_s1 + $0x2718] sm:$0xff] }
 0x567   :  { %11020 = vmatprep.subr.bf16.mxu0 %v13642_v46  ;;  %11553 = vmatprep.subr.bf16.mxu1 %v13644_v13  ;;  %v1289_v54 = vld [vmem:[%s19698_s1 + $0x2738] sm:$0xff]  ;;  %v13689_v46 = vcombine.low %v1276_v62, %v1280_v56  ;;  %v13691_v13 = vcombine.low %v1277_v30, %v1281_v3  ;;  %v13738_v62 = vcombine.high %v1324_v25, %v1328_v42  ;;  %v1332_v30 = vld [vmem:[%s19698_s1 + $0x2890] sm:$0xff] }
 0x568   :  { %v13700_v17 = vcombine.high %v1285_v10, %v1289_v54  ;;  %v1336_v3 = vld [vmem:[%s19698_s1 + $0x28b0] sm:$0xff] }
 0x56a   :  { %11021 = vmatpush1.bf16.msra.mxu0 %v13641_v59  ;;  %11554 = vmatpush1.bf16.msra.mxu1 %v13643_v24  ;;  %v1293_v59 = vld [vmem:[%s19698_s1 + $0x2758] sm:$0xff] }
 0x56b   :  { %11022 = vmatprep.subr.bf16.mxu0 %v13650_v58  ;;  %11555 = vmatprep.subr.bf16.mxu1 %v13652_v26  ;;  %v1297_v24 = vld [vmem:[%s19698_s1 + $0x2778] sm:$0xff]  ;;  %v13697_v58 = vcombine.low %v1284_v23, %v1288_v6  ;;  %v13699_v26 = vcombine.low %v1285_v10, %v1289_v54  ;;  %v13746_v23 = vcombine.high %v1332_v30, %v1336_v3  ;;  %v1340_v10 = vld [vmem:[%s19698_s1 + $0x28d0] sm:$0xff] }
 0x56c   :  { %v13708_v36 = vcombine.high %v1293_v59, %v1297_v24  ;;  %v1344_v54 = vld [vmem:[%s19698_s1 + $0x28f0] sm:$0xff] }
 0x56e   :  { %11023 = vmatpush1.bf16.msra.mxu0 %v13649_v28  ;;  %11556 = vmatpush1.bf16.msra.mxu1 %v13651_v12  ;;  %v1301_v28 = vld [vmem:[%s19698_s1 + $0x2798] sm:$0xff] }
 0x56f   :  { %11024 = vmatprep.subr.bf16.mxu0 %v13658_v57  ;;  %11557 = vmatprep.subr.bf16.mxu1 %v13660_v22  ;;  %v1305_v12 = vld [vmem:[%s19698_s1 + $0x27b8] sm:$0xff]  ;;  %v13705_v57 = vcombine.low %v1292_v53, %v1296_v20  ;;  %v13707_v22 = vcombine.low %v1293_v59, %v1297_v24  ;;  %v1348_v20 = vld [vmem:[%s19698_s1 + $0x2910] sm:$0xff] }
 0x570   :  { %v13716_v55 = vcombine.high %v1301_v28, %v1305_v12  ;;  %v1352_v59 = vld [vmem:[%s19698_s1 + $0x2930] sm:$0xff]  ;;  %v1353_v24 = vld [vmem:[%s19698_s1 + $0x2938] sm:$0xff] }
 0x572   :  { %11025 = vmatpush1.bf16.msra.mxu0 %v13657_v27  ;;  %11558 = vmatpush1.bf16.msra.mxu1 %v13659_v45  ;;  %v1309_v27 = vld [vmem:[%s19698_s1 + $0x27d8] sm:$0xff] }
 0x573   :  { %11026 = vmatprep.subr.bf16.mxu0 %v13666_v33  ;;  %11559 = vmatprep.subr.bf16.mxu1 %v13668_v34  ;;  %v1313_v45 = vld [vmem:[%s19698_s1 + $0x27f8] sm:$0xff]  ;;  %v13713_v33 = vcombine.low %v1300_v15, %v1304_v16  ;;  %v13715_v34 = vcombine.low %v1301_v28, %v1305_v12  ;;  %v1356_v15 = vld [vmem:[%s19698_s1 + $0x2950] sm:$0xff] }
 0x574   :  { %v13724_v37 = vcombine.high %v1309_v27, %v1313_v45  ;;  %v1360_v16 = vld [vmem:[%s19698_s1 + $0x2970] sm:$0xff]  ;;  %v1357_v28 = vld [vmem:[%s19698_s1 + $0x2958] sm:$0xff] }
 0x575   :  { %v1361_v12 = vld [vmem:[%s19698_s1 + $0x2978] sm:$0xff] }
 0x576   :  { %11027 = vmatpush1.bf16.msra.mxu0 %v13665_v31  ;;  %11560 = vmatpush1.bf16.msra.mxu1 %v13667_v38  ;;  %v1317_v31 = vld [vmem:[%s19698_s1 + $0x2818] sm:$0xff] }
 0x577   :  { %11028 = vmatprep.subr.bf16.mxu0 %v13674_v40  ;;  %11561 = vmatprep.subr.bf16.mxu1 %v13676_v41  ;;  %v1321_v38 = vld [vmem:[%s19698_s1 + $0x2838] sm:$0xff]  ;;  %v13721_v40 = vcombine.low %v1308_v29, %v1312_v32  ;;  %v13723_v41 = vcombine.low %v1309_v27, %v1313_v45  ;;  %v1368_v29 = vld [vmem:[%s19698_s1 + $0x29b0] sm:$0xff]  ;;  %v13772_v32 = vcombine.high %v1357_v28, %v1361_v12 }
 0x578   :  { %v13732_v19 = vcombine.high %v1317_v31, %v1321_v38  ;;  %v1365_v27 = vld [vmem:[%s19698_s1 + $0x2998] sm:$0xff] }
 0x579   :  { %v1369_v45 = vld [vmem:[%s19698_s1 + $0x29b8] sm:$0xff] }
 0x57a   :  { %11029 = vmatpush1.bf16.msra.mxu0 %v13673_v44  ;;  %11562 = vmatpush1.bf16.msra.mxu1 %v13675_v47  ;;  %v1325_v44 = vld [vmem:[%s19698_s1 + $0x2858] sm:$0xff] }
 0x57b   :  { %11030 = vmatprep.subr.bf16.mxu0 %v13682_v18  ;;  %11563 = vmatprep.subr.bf16.mxu1 %v13684_v52  ;;  %v1329_v47 = vld [vmem:[%s19698_s1 + $0x2878] sm:$0xff]  ;;  %v13729_v18 = vcombine.low %v1316_v1, %v1320_v21  ;;  %v13731_v52 = vcombine.low %v1317_v31, %v1321_v38  ;;  %v1376_v1 = vld [vmem:[%s19698_s1 + $0x29f0] sm:$0xff]  ;;  %v13780_v21 = vcombine.high %v1365_v27, %v1369_v45 }
 0x57c   :  { %v13740_v56 = vcombine.high %v1325_v44, %v1329_v47  ;;  %v1373_v31 = vld [vmem:[%s19698_s1 + $0x29d8] sm:$0xff] }
 0x57d   :  { %v1377_v38 = vld [vmem:[%s19698_s1 + $0x29f8] sm:$0xff] }
 0x57e   :  { %11031 = vmatpush1.bf16.msra.mxu0 %v13681_v48  ;;  %11564 = vmatpush1.bf16.msra.mxu1 %v13683_v61  ;;  %v1333_v48 = vld [vmem:[%s19698_s1 + $0x2898] sm:$0xff] }
 0x57f   :  { %11032 = vmatprep.subr.bf16.mxu0 %v13690_v39  ;;  %11565 = vmatprep.subr.bf16.mxu1 %v13692_v5  ;;  %v1337_v61 = vld [vmem:[%s19698_s1 + $0x28b8] sm:$0xff]  ;;  %v13737_v39 = vcombine.low %v1324_v25, %v1328_v42  ;;  %v13739_v5 = vcombine.low %v1325_v44, %v1329_v47  ;;  %v1384_v25 = vld [vmem:[%s19698_s1 + $0x2a30] sm:$0xff]  ;;  %v13788_v42 = vcombine.high %v1373_v31, %v1377_v38 }
 0x580   :  { %v13748_v6 = vcombine.high %v1333_v48, %v1337_v61  ;;  %v1381_v44 = vld [vmem:[%s19698_s1 + $0x2a18] sm:$0xff] }
 0x581   :  { %v1385_v47 = vld [vmem:[%s19698_s1 + $0x2a38] sm:$0xff] }
 0x582   :  { %11033 = vmatpush1.bf16.msra.mxu0 %v13689_v46  ;;  %11566 = vmatpush1.bf16.msra.mxu1 %v13691_v13  ;;  %v1345_v46 = vld [vmem:[%s19698_s1 + $0x28f8] sm:$0xff]  ;;  %v13745_v13 = vcombine.low %v1332_v30, %v1336_v3  ;;  %v1392_v30 = vld [vmem:[%s19698_s1 + $0x2a70] sm:$0xff]  ;;  %v13796_v3 = vcombine.high %v1381_v44, %v1385_v47 }
 0x583   :  { %11034 = vmatprep.subr.bf16.mxu0 %v13698_v14  ;;  %11567 = vmatprep.subr.bf16.mxu1 %v13700_v17  ;;  %v13747_v14 = vcombine.low %v1333_v48, %v1337_v61  ;;  %v13754_v17 = vcombine.high %v1340_v10, %v1344_v54  ;;  %v1389_v48 = vld [vmem:[%s19698_s1 + $0x2a58] sm:$0xff] }
 0x584   :  { %v1393_v61 = vld [vmem:[%s19698_s1 + $0x2a78] sm:$0xff] }
 0x586   :  { %11035 = vmatpush1.bf16.msra.mxu0 %v13697_v58  ;;  %11568 = vmatpush1.bf16.msra.mxu1 %v13699_v26  ;;  %v13753_v58 = vcombine.low %v1340_v10, %v1344_v54  ;;  %v1400_v10 = vld [vmem:[%s19698_s1 + $0x2ab0] sm:$0xff]  ;;  %v13804_v54 = vcombine.high %v1389_v48, %v1393_v61 }
 0x587   :  { %11036 = vmatprep.subr.bf16.mxu0 %v13706_v63  ;;  %11569 = vmatprep.subr.bf16.mxu1 %v13708_v36  ;;  %v13762_v63 = vcombine.high %v1348_v20, %v1352_v59 }
 0x58a   :  { %11037 = vmatpush1.bf16.msra.mxu0 %v13705_v57  ;;  %11570 = vmatpush1.bf16.msra.mxu1 %v13707_v22  ;;  %v13761_v57 = vcombine.low %v1348_v20, %v1352_v59  ;;  %v1408_v20 = vld [vmem:[%s19698_s1 + $0x2af0] sm:$0xff] }
 0x58b   :  { %11038 = vmatprep.subr.bf16.mxu0 %v13714_v9  ;;  %11571 = vmatprep.subr.bf16.mxu1 %v13716_v55  ;;  %v13770_v9 = vcombine.high %v1356_v15, %v1360_v16  ;;  %v1364_v55 = vld [vmem:[%s19698_s1 + $0x2990] sm:$0xff] }
 0x58e   :  { %11039 = vmatpush1.bf16.msra.mxu0 %v13713_v33  ;;  %11572 = vmatpush1.bf16.msra.mxu1 %v13715_v34  ;;  %v13769_v33 = vcombine.low %v1356_v15, %v1360_v16  ;;  %v1372_v34 = vld [vmem:[%s19698_s1 + $0x29d0] sm:$0xff] }
 0x58f   :  { %11040 = vmatprep.subr.bf16.mxu0 %v13722_v35  ;;  %11573 = vmatprep.subr.bf16.mxu1 %v13724_v37  ;;  %v13771_v35 = vcombine.low %v1357_v28, %v1361_v12  ;;  %v13778_v37 = vcombine.high %v1364_v55, %v1368_v29  ;;  %v1416_v15 = vld [vmem:[%s19698_s1 + $0x2b30] sm:$0xff]  ;;  %v1413_v28 = vld [vmem:[%s19698_s1 + $0x2b18] sm:$0xff] }
 0x590   :  { %v1417_v12 = vld [vmem:[%s19698_s1 + $0x2b38] sm:$0xff] }
 0x592   :  { %11041 = vmatpush1.bf16.msra.mxu0 %v13721_v40  ;;  %11574 = vmatpush1.bf16.msra.mxu1 %v13723_v41  ;;  %v13777_v40 = vcombine.low %v1364_v55, %v1368_v29  ;;  %v1380_v41 = vld [vmem:[%s19698_s1 + $0x2a10] sm:$0xff] }
 0x593   :  { %11051 = vmatprep.subr.bf16.mxu0 %v13730_v50  ;;  %11584 = vmatprep.subr.bf16.mxu1 %v13732_v19  ;;  %v13779_v50 = vcombine.low %v1365_v27, %v1369_v45  ;;  %v13786_v19 = vcombine.high %v1372_v34, %v1376_v1  ;;  %v1424_v29 = vld [vmem:[%s19698_s1 + $0x2b70] sm:$0xff]  ;;  %v1421_v27 = vld [vmem:[%s19698_s1 + $0x2b58] sm:$0xff] }
 0x594   :  { %v1425_v45 = vld [vmem:[%s19698_s1 + $0x2b78] sm:$0xff] }
 0x595   :  { %11043 = vmatmul.mubr.bf16.vlgmr.msra.gmra.mrb[4].mxu0 %v16599_v43  ;;  %11576 = vmatmul.mubr.bf16.vlgmr.msra.gmra.mrb[4].mxu1 %v16599_v43  ;;  %v1341_v43 = vld [vmem:[%s19698_s1 + $0x28d8] sm:$0xff] }
 0x596   :  { %11052 = vmatpush1.bf16.msra.mxu0 %v13729_v18  ;;  %11585 = vmatpush1.bf16.msra.mxu1 %v13731_v52  ;;  %v13756_v53 = vcombine.high %v1341_v43, %v1345_v46  ;;  %v13755_v26 = vcombine.low %v1341_v43, %v1345_v46  ;;  %v13785_v18 = vcombine.low %v1372_v34, %v1376_v1  ;;  %v1388_v52 = vld [vmem:[%s19698_s1 + $0x2a50] sm:$0xff]  ;;  %v1397_v43 = vld [vmem:[%s19698_s1 + $0x2a98] sm:$0xff] }
 0x597   :  { %11053 = vmatprep.subr.bf16.mxu0 %v13738_v62  ;;  %11586 = vmatprep.subr.bf16.mxu1 %v13740_v56  ;;  %v13787_v62 = vcombine.low %v1373_v31, %v1377_v38  ;;  %v13794_v56 = vcombine.high %v1380_v41, %v1384_v25  ;;  %v1401_v46 = vld [vmem:[%s19698_s1 + $0x2ab8] sm:$0xff]  ;;  %v1428_v34 = vld [vmem:[%s19698_s1 + $0x2b90] sm:$0xff]  ;;  %v13836_v38 = vcombine.high %v1421_v27, %v1425_v45 }
 0x598   :  { %11083 = vmatprep.mubr.bf16.mxu0 %v16620_v60  ;;  %11616 = vmatprep.mubr.bf16.mxu1 %v16620_v60  ;;  %v1349_v60 = vld [vmem:[%s19698_s1 + $0x2918] sm:$0xff]  ;;  %v13812_v59 = vcombine.high %v1397_v43, %v1401_v46 }
 0x599   :  { %v13764_v36 = vcombine.high %v1349_v60, %v1353_v24  ;;  %v13763_v22 = vcombine.low %v1349_v60, %v1353_v24  ;;  %v1405_v60 = vld [vmem:[%s19698_s1 + $0x2ad8] sm:$0xff] }
 0x59a   :  { %11054 = vmatpush1.bf16.msra.mxu0 %v13737_v39  ;;  %11587 = vmatpush1.bf16.msra.mxu1 %v13739_v5  ;;  %v13793_v39 = vcombine.low %v1380_v41, %v1384_v25  ;;  %v1396_v5 = vld [vmem:[%s19698_s1 + $0x2a90] sm:$0xff]  ;;  %v1409_v24 = vld [vmem:[%s19698_s1 + $0x2af8] sm:$0xff] }
 0x59b   :  { %11055 = vmatprep.subr.bf16.mxu0 %v13746_v23  ;;  %11588 = vmatprep.subr.bf16.mxu1 %v13748_v6  ;;  %v13795_v23 = vcombine.low %v1381_v44, %v1385_v47  ;;  %v13802_v6 = vcombine.high %v1388_v52, %v1392_v30  ;;  %v13820_v16 = vcombine.high %v1405_v60, %v1409_v24  ;;  %v1433_v31 = vld [vmem:[%s19698_s1 + $0x2bb8] sm:$0xff]  ;;  %v1436_v41 = vld [vmem:[%s19698_s1 + $0x2bd0] sm:$0xff] }
 0x59c   :  { %v1440_v25 = vld [vmem:[%s19698_s1 + $0x2bf0] sm:$0xff]  ;;  %v1437_v44 = vld [vmem:[%s19698_s1 + $0x2bd8] sm:$0xff] }
 0x59d   :  { %v1441_v47 = vld [vmem:[%s19698_s1 + $0x2bf8] sm:$0xff] }
 0x59e   :  { %11056 = vmatpush1.bf16.msra.mxu0 %v13745_v13  ;;  %11589 = vmatpush1.bf16.msra.mxu1 %v13747_v14  ;;  %v13801_v13 = vcombine.low %v1388_v52, %v1392_v30  ;;  %v1404_v14 = vld [vmem:[%s19698_s1 + $0x2ad0] sm:$0xff] }
 0x59f   :  { %11057 = vmatprep.subr.bf16.mxu0 %v13754_v17  ;;  %11590 = vmatprep.subr.bf16.mxu1 %v13756_v53  ;;  %v13803_v17 = vcombine.low %v1389_v48, %v1393_v61  ;;  %v13810_v53 = vcombine.high %v1396_v5, %v1400_v10  ;;  %v1444_v52 = vld [vmem:[%s19698_s1 + $0x2c10] sm:$0xff]  ;;  %v1445_v48 = vld [vmem:[%s19698_s1 + $0x2c18] sm:$0xff] }
 0x5a0   :  { %v1448_v30 = vld [vmem:[%s19698_s1 + $0x2c30] sm:$0xff]  ;;  %v1449_v61 = vld [vmem:[%s19698_s1 + $0x2c38] sm:$0xff] }
 0x5a2   :  { %11058 = vmatpush1.bf16.msra.mxu0 %v13753_v58  ;;  %11591 = vmatpush1.bf16.msra.mxu1 %v13755_v26  ;;  %v13809_v58 = vcombine.low %v1396_v5, %v1400_v10  ;;  %v1412_v26 = vld [vmem:[%s19698_s1 + $0x2b10] sm:$0xff] }
 0x5a3   :  { %11059 = vmatprep.subr.bf16.mxu0 %v13762_v63  ;;  %11592 = vmatprep.subr.bf16.mxu1 %v13764_v36  ;;  %v13811_v63 = vcombine.low %v1397_v43, %v1401_v46  ;;  %v13818_v36 = vcombine.high %v1404_v14, %v1408_v20  ;;  %v13826_v55 = vcombine.high %v1412_v26, %v1416_v15  ;;  %v1452_v5 = vld [vmem:[%s19698_s1 + $0x2c50] sm:$0xff]  ;;  %v1453_v43 = vld [vmem:[%s19698_s1 + $0x2c58] sm:$0xff] }
 0x5a4   :  { %v1456_v10 = vld [vmem:[%s19698_s1 + $0x2c70] sm:$0xff]  ;;  %v1457_v46 = vld [vmem:[%s19698_s1 + $0x2c78] sm:$0xff] }
 0x5a6   :  { %11060 = vmatpush1.bf16.msra.mxu0 %v13761_v57  ;;  %11593 = vmatpush1.bf16.msra.mxu1 %v13763_v22  ;;  %v13817_v57 = vcombine.low %v1404_v14, %v1408_v20  ;;  %v1420_v22 = vld [vmem:[%s19698_s1 + $0x2b50] sm:$0xff] }
 0x5a7   :  { %11061 = vmatprep.subr.bf16.mxu0 %v13770_v9  ;;  %11594 = vmatprep.subr.bf16.mxu1 %v13772_v32  ;;  %v13819_v9 = vcombine.low %v1405_v60, %v1409_v24  ;;  %v13828_v32 = vcombine.high %v1413_v28, %v1417_v12  ;;  %v13834_v1 = vcombine.high %v1420_v22, %v1424_v29  ;;  %v1460_v14 = vld [vmem:[%s19698_s1 + $0x2c90] sm:$0xff]  ;;  %v1461_v60 = vld [vmem:[%s19698_s1 + $0x2c98] sm:$0xff] }
 0x5a8   :  { %v1464_v20 = vld [vmem:[%s19698_s1 + $0x2cb0] sm:$0xff]  ;;  %v1465_v24 = vld [vmem:[%s19698_s1 + $0x2cb8] sm:$0xff] }
 0x5aa   :  { %11062 = vmatpush1.bf16.msra.mxu0 %v13769_v33  ;;  %11595 = vmatpush1.bf16.msra.mxu1 %v13771_v35  ;;  %v13825_v33 = vcombine.low %v1412_v26, %v1416_v15  ;;  %v1432_v35 = vld [vmem:[%s19698_s1 + $0x2bb0] sm:$0xff] }
 0x5ab   :  { %11063 = vmatprep.subr.bf16.mxu0 %v13778_v37  ;;  %11596 = vmatprep.subr.bf16.mxu1 %v13780_v21  ;;  %v13827_v37 = vcombine.low %v1413_v28, %v1417_v12  ;;  %v1429_v21 = vld [vmem:[%s19698_s1 + $0x2b98] sm:$0xff]  ;;  %v1468_v26 = vld [vmem:[%s19698_s1 + $0x2cd0] sm:$0xff]  ;;  %v13873_v12 = vcombine.low %v1460_v14, %v1464_v20 }
 0x5ac   :  { %v1472_v15 = vld [vmem:[%s19698_s1 + $0x2cf0] sm:$0xff]  ;;  %v1469_v28 = vld [vmem:[%s19698_s1 + $0x2cd8] sm:$0xff] }
 0x5ae   :  { %11064 = vmatpush1.bf16.msra.mxu0 %v13777_v40  ;;  %11597 = vmatpush1.bf16.msra.mxu1 %v13779_v50  ;;  %v13833_v40 = vcombine.low %v1420_v22, %v1424_v29  ;;  %v13835_v50 = vcombine.low %v1421_v27, %v1425_v45  ;;  %v1480_v22 = vld [vmem:[%s19698_s1 + $0x2d30] sm:$0xff]  ;;  %v1477_v29 = vld [vmem:[%s19698_s1 + $0x2d18] sm:$0xff]  ;;  %v13881_v27 = vcombine.low %v1468_v26, %v1472_v15 }
 0x5af   :  { %11065 = vmatprep.subr.bf16.mxu0 %v13786_v19  ;;  %11598 = vmatprep.subr.bf16.mxu1 %v13788_v42  ;;  %v13842_v19 = vcombine.high %v1428_v34, %v1432_v35  ;;  %v13844_v42 = vcombine.high %v1429_v21, %v1433_v31  ;;  %v1484_v45 = vld [vmem:[%s19698_s1 + $0x2d50] sm:$0xff] }
 0x5b2   :  { %11066 = vmatpush1.bf16.msra.mxu0 %v13785_v18  ;;  %11599 = vmatpush1.bf16.msra.mxu1 %v13787_v62  ;;  %v13841_v18 = vcombine.low %v1428_v34, %v1432_v35  ;;  %v13843_v62 = vcombine.low %v1429_v21, %v1433_v31  ;;  %v1489_v21 = vld [vmem:[%s19698_s1 + $0x2d78] sm:$0xff] }
 0x5b3   :  { %11067 = vmatprep.subr.bf16.mxu0 %v13794_v56  ;;  %11600 = vmatprep.subr.bf16.mxu1 %v13796_v3  ;;  %v13850_v56 = vcombine.high %v1436_v41, %v1440_v25  ;;  %v13852_v3 = vcombine.high %v1437_v44, %v1441_v47 }
 0x5b6   :  { %11068 = vmatpush1.bf16.msra.mxu0 %v13793_v39  ;;  %11601 = vmatpush1.bf16.msra.mxu1 %v13795_v23  ;;  %v13849_v39 = vcombine.low %v1436_v41, %v1440_v25  ;;  %v13851_v23 = vcombine.low %v1437_v44, %v1441_v47  ;;  %v1493_v25 = vld [vmem:[%s19698_s1 + $0x2d98] sm:$0xff] }
 0x5b7   :  { %11069 = vmatprep.subr.bf16.mxu0 %v13802_v6  ;;  %11602 = vmatprep.subr.bf16.mxu1 %v13804_v54  ;;  %v13858_v6 = vcombine.high %v1444_v52, %v1448_v30  ;;  %v13860_v54 = vcombine.high %v1445_v48, %v1449_v61 }
 0x5ba   :  { %11070 = vmatpush1.bf16.msra.mxu0 %v13801_v13  ;;  %11603 = vmatpush1.bf16.msra.mxu1 %v13803_v17  ;;  %v13857_v13 = vcombine.low %v1444_v52, %v1448_v30  ;;  %v13859_v17 = vcombine.low %v1445_v48, %v1449_v61  ;;  %v1501_v30 = vld [vmem:[%s19698_s1 + $0x2dd8] sm:$0xff] }
 0x5bb   :  { %11071 = vmatprep.subr.bf16.mxu0 %v13810_v53  ;;  %11604 = vmatprep.subr.bf16.mxu1 %v13812_v59  ;;  %v13866_v53 = vcombine.high %v1452_v5, %v1456_v10  ;;  %v13868_v59 = vcombine.high %v1453_v43, %v1457_v46 }
 0x5be   :  { %11072 = vmatpush1.bf16.msra.mxu0 %v13809_v58  ;;  %11605 = vmatpush1.bf16.msra.mxu1 %v13811_v63  ;;  %v13865_v58 = vcombine.low %v1452_v5, %v1456_v10  ;;  %v13867_v63 = vcombine.low %v1453_v43, %v1457_v46  ;;  %v1509_v10 = vld [vmem:[%s19698_s1 + $0x2e18] sm:$0xff] }
 0x5bf   :  { %11073 = vmatprep.subr.bf16.mxu0 %v13818_v36  ;;  %11606 = vmatprep.subr.bf16.mxu1 %v13820_v16  ;;  %v13874_v36 = vcombine.high %v1460_v14, %v1464_v20  ;;  %v13876_v16 = vcombine.high %v1461_v60, %v1465_v24  ;;  %v1517_v20 = vld [vmem:[%s19698_s1 + $0x2e58] sm:$0xff] }
 0x5c2   :  { %11074 = vmatpush1.bf16.msra.mxu0 %v13817_v57  ;;  %11607 = vmatpush1.bf16.msra.mxu1 %v13819_v9  ;;  %v1476_v57 = vld [vmem:[%s19698_s1 + $0x2d10] sm:$0xff]  ;;  %v13875_v9 = vcombine.low %v1461_v60, %v1465_v24 }
 0x5c3   :  { %11075 = vmatprep.subr.bf16.mxu0 %v13826_v55  ;;  %11608 = vmatprep.subr.bf16.mxu1 %v13828_v32  ;;  %v13882_v55 = vcombine.high %v1468_v26, %v1472_v15  ;;  %v13890_v35 = vcombine.high %v1476_v57, %v1480_v22  ;;  %v13889_v31 = vcombine.low %v1476_v57, %v1480_v22  ;;  %v1525_v15 = vld [vmem:[%s19698_s1 + $0x2e98] sm:$0xff]  ;;  %v1532_v22 = vld [vmem:[%s19698_s1 + $0x2ed0] sm:$0xff] }
 0x5c6   :  { %11076 = vmatpush1.bf16.msra.mxu0 %v13825_v33  ;;  %11609 = vmatpush1.bf16.msra.mxu1 %v13827_v37  ;;  %v1488_v33 = vld [vmem:[%s19698_s1 + $0x2d70] sm:$0xff] }
 0x5c7   :  { %11077 = vmatprep.subr.bf16.mxu0 %v13834_v1  ;;  %11610 = vmatprep.subr.bf16.mxu1 %v13836_v38  ;;  %v1485_v1 = vld [vmem:[%s19698_s1 + $0x2d58] sm:$0xff]  ;;  %v13897_v44 = vcombine.low %v1484_v45, %v1488_v33 }
 0x5c8   :  { %v13900_v41 = vcombine.high %v1485_v1, %v1489_v21  ;;  %v13899_v47 = vcombine.low %v1485_v1, %v1489_v21 }
 0x5ca   :  { %11078 = vmatpush1.bf16.msra.mxu0 %v13833_v40  ;;  %11611 = vmatpush1.bf16.msra.mxu1 %v13835_v50  ;;  %v13898_v40 = vcombine.high %v1484_v45, %v1488_v33  ;;  %v1492_v50 = vld [vmem:[%s19698_s1 + $0x2d90] sm:$0xff] }
 0x5cb   :  { %11079 = vmatprep.subr.bf16.mxu0 %v13842_v19  ;;  %11612 = vmatprep.subr.bf16.mxu1 %v13844_v42  ;;  %v1496_v19 = vld [vmem:[%s19698_s1 + $0x2db0] sm:$0xff]  ;;  %v1497_v42 = vld [vmem:[%s19698_s1 + $0x2db8] sm:$0xff] }
 0x5cc   :  { %v13908_v52 = vcombine.high %v1493_v25, %v1497_v42  ;;  %v13905_v48 = vcombine.low %v1492_v50, %v1496_v19  ;;  %v13907_v61 = vcombine.low %v1493_v25, %v1497_v42  ;;  %v1540_v33 = vld [vmem:[%s19698_s1 + $0x2f10] sm:$0xff] }
 0x5ce   :  { %11080 = vmatpush1.bf16.msra.mxu0 %v13841_v18  ;;  %11613 = vmatpush1.bf16.msra.mxu1 %v13843_v62  ;;  %v13906_v18 = vcombine.high %v1492_v50, %v1496_v19  ;;  %v1500_v62 = vld [vmem:[%s19698_s1 + $0x2dd0] sm:$0xff]  ;;  %v1549_v50 = vld [vmem:[%s19698_s1 + $0x2f58] sm:$0xff] }
 0x5cf   :  { %11081 = vmatprep.subr.bf16.mxu0 %v13850_v56  ;;  %11614 = vmatprep.subr.bf16.mxu1 %v13852_v3  ;;  %v1504_v56 = vld [vmem:[%s19698_s1 + $0x2df0] sm:$0xff]  ;;  %v1505_v3 = vld [vmem:[%s19698_s1 + $0x2df8] sm:$0xff] }
 0x5d0   :  { %v13916_v5 = vcombine.high %v1501_v30, %v1505_v3  ;;  %v13913_v43 = vcombine.low %v1500_v62, %v1504_v56  ;;  %v13915_v46 = vcombine.low %v1501_v30, %v1505_v3  ;;  %v1553_v19 = vld [vmem:[%s19698_s1 + $0x2f78] sm:$0xff] }
 0x5d1   :  { %v13963_v3 = vcombine.low %v1549_v50, %v1553_v19 }
 0x5d2   :  { %11082 = vmatpush1.bf16.msra.mxu0 %v13849_v39  ;;  %11615 = vmatpush1.bf16.msra.mxu1 %v13851_v23  ;;  %v13914_v39 = vcombine.high %v1500_v62, %v1504_v56  ;;  %v1508_v23 = vld [vmem:[%s19698_s1 + $0x2e10] sm:$0xff]  ;;  %v1557_v62 = vld [vmem:[%s19698_s1 + $0x2f98] sm:$0xff] }
 0x5d3   :  { %11092 = vmatprep.subr.bf16.mxu0 %v13858_v6  ;;  %11625 = vmatprep.subr.bf16.mxu1 %v13860_v54  ;;  %v1512_v6 = vld [vmem:[%s19698_s1 + $0x2e30] sm:$0xff]  ;;  %v1513_v54 = vld [vmem:[%s19698_s1 + $0x2e38] sm:$0xff] }
 0x5d4   :  { %v13924_v14 = vcombine.high %v1509_v10, %v1513_v54  ;;  %v13921_v60 = vcombine.low %v1508_v23, %v1512_v6  ;;  %v13923_v24 = vcombine.low %v1509_v10, %v1513_v54  ;;  %v1561_v56 = vld [vmem:[%s19698_s1 + $0x2fb8] sm:$0xff] }
 0x5d5   :  { %11084 = vmatmul.mubr.bf16.vlgmr.msra.gmra.mrb[4].mxu0 %v16808_v51  ;;  %11617 = vmatmul.mubr.bf16.vlgmr.msra.gmra.mrb[4].mxu1 %v16808_v51  ;;  %v1473_v51 = vld [vmem:[%s19698_s1 + $0x2cf8] sm:$0xff]  ;;  %v13971_v54 = vcombine.low %v1557_v62, %v1561_v56 }
 0x5d6   :  { %11093 = vmatpush1.bf16.msra.mxu0 %v13857_v13  ;;  %11626 = vmatpush1.bf16.msra.mxu1 %v13859_v17  ;;  %v13884_v32 = vcombine.high %v1469_v28, %v1473_v51  ;;  %v13883_v34 = vcombine.low %v1469_v28, %v1473_v51  ;;  %v13922_v13 = vcombine.high %v1508_v23, %v1512_v6  ;;  %v1516_v17 = vld [vmem:[%s19698_s1 + $0x2e50] sm:$0xff]  ;;  %v1565_v23 = vld [vmem:[%s19698_s1 + $0x2fd8] sm:$0xff] }
 0x5d7   :  { %11094 = vmatprep.subr.bf16.mxu0 %v13866_v53  ;;  %11627 = vmatprep.subr.bf16.mxu1 %v13868_v59  ;;  %v1520_v53 = vld [vmem:[%s19698_s1 + $0x2e70] sm:$0xff]  ;;  %v1521_v59 = vld [vmem:[%s19698_s1 + $0x2e78] sm:$0xff] }
 0x5d8   :  { %11124 = vmatprep.mubr.bf16.mxu0 %v16829_v2  ;;  %11657 = vmatprep.mubr.bf16.mxu1 %v16829_v2  ;;  %v1481_v2 = vld [vmem:[%s19698_s1 + $0x2d38] sm:$0xff]  ;;  %v13932_v26 = vcombine.high %v1517_v20, %v1521_v59  ;;  %v13929_v28 = vcombine.low %v1516_v17, %v1520_v53  ;;  %v13931_v51 = vcombine.low %v1517_v20, %v1521_v59 }
 0x5d9   :  { %v13892_v37 = vcombine.high %v1477_v29, %v1481_v2  ;;  %v13891_v38 = vcombine.low %v1477_v29, %v1481_v2  ;;  %v1537_v29 = vld [vmem:[%s19698_s1 + $0x2ef8] sm:$0xff] }
 0x5da   :  { %11095 = vmatpush1.bf16.msra.mxu0 %v13865_v58  ;;  %11628 = vmatpush1.bf16.msra.mxu1 %v13867_v63  ;;  %v13930_v58 = vcombine.high %v1516_v17, %v1520_v53  ;;  %v1524_v63 = vld [vmem:[%s19698_s1 + $0x2e90] sm:$0xff]  ;;  %v1569_v6 = vld [vmem:[%s19698_s1 + $0x2ff8] sm:$0xff]  ;;  %v1604_v17 = vlaneseq }
 0x5db   :  { %11096 = vmatprep.subr.bf16.mxu0 %v13874_v36  ;;  %11629 = vmatprep.subr.bf16.mxu1 %v13876_v16  ;;  %v1528_v36 = vld [vmem:[%s19698_s1 + $0x2eb0] sm:$0xff]  ;;  %v1529_v16 = vld [vmem:[%s19698_s1 + $0x2eb8] sm:$0xff] }
 0x5dc   :  { %v13940_v57 = vcombine.high %v1525_v15, %v1529_v16  ;;  %v13937_v2 = vcombine.low %v1524_v63, %v1528_v36  ;;  %v1573_v53 = vld [vmem:[%s19698_s1 + $0x3018] sm:$0xff] }
 0x5dd   :  { %v1577_v20 = vld [vmem:[%s19698_s1 + $0x3038] sm:$0xff] }
 0x5de   :  { %11097 = vmatpush1.bf16.msra.mxu0 %v13873_v12  ;;  %11630 = vmatpush1.bf16.msra.mxu1 %v13875_v9  ;;  %v13938_v12 = vcombine.high %v1524_v63, %v1528_v36  ;;  %v1536_v9 = vld [vmem:[%s19698_s1 + $0x2ef0] sm:$0xff]  ;;  %v19434_v36 = vshrl.u32 %v1604_v17, 7  ;;  %v14414_v17 = vld [vmem:[%s19700_s3 + $0x60] sm:$0xff]  }
 0x5df   :  { %11098 = vmatprep.subr.bf16.mxu0 %v13882_v55  ;;  %11631 = vmatprep.subr.bf16.mxu1 %v13884_v32  ;;  %v1533_v55 = vld [vmem:[%s19698_s1 + $0x2ed8] sm:$0xff]  ;;  %v13939_v32 = vcombine.low %v1525_v15, %v1529_v16  ;;  %v13945_v1 = vcombine.low %v1532_v22, %v1536_v9  ;;  %v1584_v63 = vld [vmem:[%s19698_s1 + $0x3070] sm:$0xff] }
 0x5e0   :  { %v13948_v45 = vcombine.high %v1533_v55, %v1537_v29  ;;  %v13947_v21 = vcombine.low %v1533_v55, %v1537_v29  ;;  %v1581_v15 = vld [vmem:[%s19698_s1 + $0x3058] sm:$0xff]  ;;  %v1610_v55 = vsub.s32 1, %v19434_v36 }
 0x5e1   :  { %v1585_v16 = vld [vmem:[%s19698_s1 + $0x3078] sm:$0xff] }
 0x5e2   :  { %11099 = vmatpush1.bf16.msra.mxu0 %v13881_v27  ;;  %11632 = vmatpush1.bf16.msra.mxu1 %v13883_v34  ;;  %v13946_v27 = vcombine.high %v1532_v22, %v1536_v9  ;;  %v1544_v34 = vld [vmem:[%s19698_s1 + $0x2f30] sm:$0xff]  ;;  %v1589_v29 = vld [vmem:[%s19698_s1 + $0x3098] sm:$0xff] }
 0x5e3   :  { %11100 = vmatprep.subr.bf16.mxu0 %v13890_v35  ;;  %11633 = vmatprep.subr.bf16.mxu1 %v13892_v37  ;;  %v1541_v35 = vld [vmem:[%s19698_s1 + $0x2f18] sm:$0xff]  ;;  %v13953_v25 = vcombine.low %v1540_v33, %v1544_v34  ;;  %v1588_v22 = vld [vmem:[%s19698_s1 + $0x3090] sm:$0xff] }
 0x5e4   :  { %v1545_v37 = vld [vmem:[%s19698_s1 + $0x2f38] sm:$0xff]  ;;  %v1592_v9 = vld [vmem:[%s19698_s1 + $0x30b0] sm:$0xff] }
 0x5e5   :  { %v13955_v42 = vcombine.low %v1541_v35, %v1545_v37 }
 0x5e6   :  { %11101 = vmatpush1.bf16.msra.mxu0 %v13889_v31  ;;  %11634 = vmatpush1.bf16.msra.mxu1 %v13891_v38  ;;  %v13954_v31 = vcombine.high %v1540_v33, %v1544_v34  ;;  %v13956_v38 = vcombine.high %v1541_v35, %v1545_v37  ;;  %v13995_v33 = vcombine.low %v1581_v15, %v1585_v16  ;;  %v1596_v37 = vld [vmem:[%s19698_s1 + $0x30d0] sm:$0xff] }
 0x5e7   :  { %11102 = vmatprep.subr.bf16.mxu0 %v13898_v40  ;;  %11635 = vmatprep.subr.bf16.mxu1 %v13900_v41  ;;  %v1548_v40 = vld [vmem:[%s19698_s1 + $0x2f50] sm:$0xff]  ;;  %v14002_v34 = vcombine.high %v1588_v22, %v1592_v9 }
 0x5e8   :  { %v1552_v41 = vld [vmem:[%s19698_s1 + $0x2f70] sm:$0xff] }
 0x5e9   :  { %v13961_v30 = vcombine.low %v1548_v40, %v1552_v41 }
 0x5ea   :  { %11103 = vmatpush1.bf16.msra.mxu0 %v13897_v44  ;;  %11636 = vmatpush1.bf16.msra.mxu1 %v13899_v47  ;;  %v13962_v44 = vcombine.high %v1548_v40, %v1552_v41  ;;  %v13964_v47 = vcombine.high %v1549_v50, %v1553_v19  ;;  %v14001_v40 = vcombine.low %v1588_v22, %v1592_v9  ;;  %v14425_v9 = vld [vmem:[%s19700_s3 + $0xb0] sm:$0xff]  }
 0x5eb   :  { %11104 = vmatprep.subr.bf16.mxu0 %v13906_v18  ;;  %11637 = vmatprep.subr.bf16.mxu1 %v13908_v52  ;;  %v1556_v18 = vld [vmem:[%s19698_s1 + $0x2f90] sm:$0xff] }
 0x5ec   :  { %v1560_v52 = vld [vmem:[%s19698_s1 + $0x2fb0] sm:$0xff] }
 0x5ed   :  { %v13969_v10 = vcombine.low %v1556_v18, %v1560_v52 }
 0x5ee   :  { %11105 = vmatpush1.bf16.msra.mxu0 %v13905_v48  ;;  %11638 = vmatpush1.bf16.msra.mxu1 %v13907_v61  ;;  %v13970_v48 = vcombine.high %v1556_v18, %v1560_v52  ;;  %v13972_v61 = vcombine.high %v1557_v62, %v1561_v56  ;;  %v14399_v18 = vld [vmem:[%s19700_s3 + $0xc0] sm:$0xff]   ;;  %v14402_v56 = vld [vmem:[%s19700_s3 + $0x48] sm:$0xff]  }
 0x5ef   :  { %11106 = vmatprep.subr.bf16.mxu0 %v13914_v39  ;;  %11639 = vmatprep.subr.bf16.mxu1 %v13916_v5  ;;  %v1564_v39 = vld [vmem:[%s19698_s1 + $0x2fd0] sm:$0xff] }
 0x5f0   :  { %v1568_v5 = vld [vmem:[%s19698_s1 + $0x2ff0] sm:$0xff] }
 0x5f1   :  { %v13977_v59 = vcombine.low %v1564_v39, %v1568_v5 }
 0x5f2   :  { %11107 = vmatpush1.bf16.msra.mxu0 %v13913_v43  ;;  %11640 = vmatpush1.bf16.msra.mxu1 %v13915_v46  ;;  %v13978_v43 = vcombine.high %v1564_v39, %v1568_v5  ;;  %v13980_v46 = vcombine.high %v1565_v23, %v1569_v6  ;;  %v14404_v39 = vld [vmem:[%s19700_s3 + $0x8] sm:$0xff]  }
 0x5f3   :  { %11108 = vmatprep.subr.bf16.mxu0 %v13922_v13  ;;  %11641 = vmatprep.subr.bf16.mxu1 %v13924_v14  ;;  %v1572_v13 = vld [vmem:[%s19698_s1 + $0x3010] sm:$0xff]  ;;  %v14405_v5 = vld [vmem:[%s19700_s3 + $0x88] sm:$0xff]  }
 0x5f4   :  { %v1576_v14 = vld [vmem:[%s19698_s1 + $0x3030] sm:$0xff] }
 0x5f6   :  { %11109 = vmatpush1.bf16.msra.mxu0 %v13921_v60  ;;  %11642 = vmatpush1.bf16.msra.mxu1 %v13923_v24  ;;  %v13979_v60 = vcombine.low %v1565_v23, %v1569_v6  ;;  %v13986_v24 = vcombine.high %v1572_v13, %v1576_v14  ;;  %v14406_v23 = vld [vmem:[%s19700_s3 + $0x50] sm:$0xff]  }
 0x5f7   :  { %11110 = vmatprep.subr.bf16.mxu0 %v13930_v58  ;;  %11643 = vmatprep.subr.bf16.mxu1 %v13932_v26  ;;  %v13988_v58 = vcombine.high %v1573_v53, %v1577_v20  ;;  %v1580_v26 = vld [vmem:[%s19698_s1 + $0x3050] sm:$0xff] }
 0x5f8   :  { %v14407_v6 = vld [vmem:[%s19700_s3 + $0xd0] sm:$0xff]  }
 0x5fa   :  { %11111 = vmatpush1.bf16.msra.mxu0 %v13929_v28  ;;  %11644 = vmatpush1.bf16.msra.mxu1 %v13931_v51  ;;  %v13985_v28 = vcombine.low %v1572_v13, %v1576_v14  ;;  %v13987_v51 = vcombine.low %v1573_v53, %v1577_v20  ;;  %v14412_v13 = vld [vmem:[%s19700_s3 + $0x18] sm:$0xff]   ;;  %v14415_v53 = vld [vmem:[%s19700_s3 + $0xe0] sm:$0xff]  }
 0x5fb   :  { %11112 = vmatprep.subr.bf16.mxu0 %v13938_v12  ;;  %11645 = vmatprep.subr.bf16.mxu1 %v13940_v57  ;;  %v13994_v12 = vcombine.high %v1580_v26, %v1584_v63  ;;  %v13996_v57 = vcombine.high %v1581_v15, %v1585_v16  ;;  %v14413_v14 = vld [vmem:[%s19700_s3 + $0x98] sm:$0xff]   ;;  %v14416_v20 = vld [vmem:[%s19700_s3 + $0x20] sm:$0xff]   ;;  %v14421_v16 = vld [vmem:[%s19700_s3 + $0xa8] sm:$0xff]  }
 0x5fe   :  { %11113 = vmatpush1.bf16.msra.mxu0 %v13937_v2  ;;  %11646 = vmatpush1.bf16.msra.mxu1 %v13939_v32  ;;  %v1593_v2 = vld [vmem:[%s19698_s1 + $0x30b8] sm:$0xff]  ;;  %v19459_v32 = vld [vmem:[%s19701_s2] sm:$0xff] }
 0x5ff   :  { %11114 = vmatprep.subr.bf16.mxu0 %v13946_v27  ;;  %11647 = vmatprep.subr.bf16.mxu1 %v13948_v45  ;;  %v1618_v27 = vsub.s32 3, %v19434_v36  ;;  %v13993_v45 = vcombine.low %v1580_v26, %v1584_v63  ;;  %v14004_v35 = vcombine.high %v1589_v29, %v1593_v2  ;;  %v14003_v41 = vcombine.low %v1589_v29, %v1593_v2  ;;  %v14419_v26 = vld [vmem:[%s19700_s3 + $0xe8] sm:$0xff]   ;;  %v14427_v2 = vld [vmem:[%s19700_s3 + $0xf8] sm:$0xff]  }
 0x600   :  { %v14420_v63 = vld [vmem:[%s19700_s3 + $0x28] sm:$0xff]  }
 0x602   :  { %11115 = vmatpush1.bf16.msra.mxu0 %v13945_v1  ;;  %11648 = vmatpush1.bf16.msra.mxu1 %v13947_v21  ;;  %v1600_v1 = vld [vmem:[%s19698_s1 + $0x30f0] sm:$0xff]  ;;  %v1611_v21 = vrot.slane %v19459_v32, %v1610_v55  ;;  %v14426_v55 = vld [vmem:[%s19700_s3 + $0x78] sm:$0xff]  }
 0x603   :  { %11116 = vmatprep.subr.bf16.mxu0 %v13954_v31  ;;  %11649 = vmatprep.subr.bf16.mxu1 %v13956_v38  ;;  %v1601_v31 = vld [vmem:[%s19698_s1 + $0x30f8] sm:$0xff]  ;;  %v1619_v38 = vrot.slane %v19459_v32, %v1618_v27  ;;  %v14010_v50 = vcombine.high %v1596_v37, %v1600_v1 }
 0x606   :  { %11117 = vmatpush1.bf16.msra.mxu0 %v13953_v25  ;;  %11650 = vmatpush1.bf16.msra.mxu1 %v13955_v42  ;;  %v14171_v25 = vadd.f32 %v17742_v8, %v1611_v21  ;;  %v14173_v42 = vadd.f32 %v17750_v11, %v1619_v38  ;;  %v14400_v8 = vld [vmem:[%s19700_s3] sm:$0xff]   ;;  %v14434_v21 = vld [vmem:[%s19700_s3 + $0x148] sm:$0xff]  }
 0x607   :  { %11118 = vmatprep.subr.bf16.mxu0 %v13962_v44  ;;  %11651 = vmatprep.subr.bf16.mxu1 %v13964_v47  ;;  %v14009_v44 = vcombine.low %v1596_v37, %v1600_v1  ;;  %v14401_v11 = vld [vmem:[%s19700_s3 + $0x80] sm:$0xff]   ;;  %v14436_v38 = vld [vmem:[%s19700_s3 + $0x108] sm:$0xff]  }
 0x608   :  { %v11708_v52 = vmax.f32 %v14171_v25, 0.0  ;;  %v11710_v62 = vmax.f32 %v14173_v42, 0.0  ;;  %v14433_v1 = vld [vmem:[%s19700_s3 + $0x180] sm:$0xff]   ;;  %v14441_v25 = vld [vmem:[%s19700_s3 + $0x190] sm:$0xff]   ;;  %v14442_v42 = vld [vmem:[%s19700_s3 + $0x158] sm:$0xff]  }
 0x60a   :  { %11119 = vmatpush1.bf16.msra.mxu0 %v13961_v30  ;;  %11652 = vmatpush1.bf16.msra.mxu1 %v13963_v3  ;;  %v11716_v30 = vpack.c.bf16 %v11708_v52, %v11708_v52  ;;  %v14462_v3 = vld [vmem:[%s19699_s0 + $0x60] ss:$0 sps:$4 sm:$0xff]  }
 0x60b   :  { %11120 = vmatprep.subr.bf16.mxu0 %v13970_v48  ;;  %11653 = vmatprep.subr.bf16.mxu1 %v13972_v61  ;;  %v14403_v48 = vld [vmem:[%s19700_s3 + $0xc8] sm:$0xff]   ;;  %v11718_v61 = vpack.c.bf16 %v11710_v62, %v11710_v62  ;;  %v14447_v52 = vld [vmem:[%s19700_s3 + $0x1e0] sm:$0xff]  }
 0x60c   :  { %v14448_v62 = vld [vmem:[%s19700_s3 + $0x120] sm:$0xff]  }
 0x60e   :  { %11121 = vmatpush1.bf16.msra.mxu0 %v13969_v10  ;;  %11654 = vmatpush1.bf16.msra.mxu1 %v13971_v54  ;;  %v14408_v10 = vld [vmem:[%s19700_s3 + $0x10] sm:$0xff]  }
 0x60f   :  { %11122 = vmatprep.subr.bf16.mxu0 %v13978_v43  ;;  %11655 = vmatprep.subr.bf16.mxu1 %v13980_v46  ;;  %v14409_v54 = vld [vmem:[%s19700_s3 + $0x90] sm:$0xff]   ;;  %v14410_v43 = vld [vmem:[%s19700_s3 + $0x58] sm:$0xff]  }
 0x610   :  { %v14411_v46 = vld [vmem:[%s19700_s3 + $0xd8] sm:$0xff]  }
 0x612   :  { %11123 = vmatpush1.bf16.msra.mxu0 %v13977_v59  ;;  %11656 = vmatpush1.bf16.msra.mxu1 %v13979_v60  ;;  %v1606_v59 = vsub.s32 0, %v19434_v36  ;;  %v14417_v60 = vld [vmem:[%s19700_s3 + $0xa0] sm:$0xff]  }
 0x613   :  { %11133 = vmatprep.subr.bf16.mxu0 %v13986_v24  ;;  %11666 = vmatprep.subr.bf16.mxu1 %v13988_v58  ;;  %v14418_v24 = vld [vmem:[%s19700_s3 + $0x68] sm:$0xff]   ;;  %v1614_v58 = vsub.s32 2, %v19434_v36 }
 0x614   :  { %v1607_v15 = vrot.slane %v19459_v32, %v1606_v59 }
 0x615   :  { %11125 = vmatmul.mubr.bf16.vlgmr.msra.gmra.mrb[4].mxu0 %v17017_v4  ;;  %11658 = vmatmul.mubr.bf16.vlgmr.msra.gmra.mrb[4].mxu1 %v17017_v4  ;;  %v1597_v4 = vld [vmem:[%s19698_s1 + $0x30d8] sm:$0xff] }
 0x616   :  { %11134 = vmatpush1.bf16.msra.mxu0 %v13985_v28  ;;  %11667 = vmatpush1.bf16.msra.mxu1 %v13987_v51  ;;  %v14012_v19 = vcombine.high %v1597_v4, %v1601_v31  ;;  %v14011_v47 = vcombine.low %v1597_v4, %v1601_v31  ;;  %v14422_v28 = vld [vmem:[%s19700_s3 + $0x70] sm:$0xff]   ;;  %v1615_v51 = vrot.slane %v19459_v32, %v1614_v58  ;;  %v14435_v31 = vld [vmem:[%s19700_s3 + $0x1c8] sm:$0xff]  }
 0x617   :  { %11135 = vmatprep.subr.bf16.mxu0 %v13994_v12  ;;  %11668 = vmatprep.subr.bf16.mxu1 %v13996_v57  ;;  %v14423_v12 = vld [vmem:[%s19700_s3 + $0xf0] sm:$0xff]   ;;  %v14170_v22 = vadd.f32 %v17732_v0, %v1607_v15  ;;  %v14428_v0 = vld [vmem:[%s19700_s3 + $0x38] sm:$0xff]  }
 0x618   :  { %11165 = vmatprep.mubr.bf16.mxu0 %v14463_v49  ;;  %11698 = vmatprep.mubr.bf16.mxu1 %v14463_v49  ;;  %v14398_v49 = vld [vmem:[%s19700_s3 + $0x40] sm:$0xff]   ;;  %v14424_v57 = vld [vmem:[%s19700_s3 + $0x30] sm:$0xff]   ;;  %v14172_v29 = vadd.f32 %v17740_v7, %v1615_v51 }
 0x619   :  { %v11707_v27 = vmax.f32 %v14170_v22, 0.0  ;;  %v14430_v7 = vld [vmem:[%s19700_s3 + $0x140] sm:$0xff]  }
 0x61a   :  { %11136 = vmatpush1.bf16.msra.mxu0 %v13993_v45  ;;  %11669 = vmatpush1.bf16.msra.mxu1 %v13995_v33  ;;  %v14429_v45 = vld [vmem:[%s19700_s3 + $0xb8] sm:$0xff]   ;;  %v11709_v33 = vmax.f32 %v14172_v29, 0.0 }
 0x61b   :  { %11137 = vmatprep.subr.bf16.mxu0 %v14002_v34  ;;  %11670 = vmatprep.subr.bf16.mxu1 %v14004_v35  ;;  %v14431_v34 = vld [vmem:[%s19700_s3 + $0x1c0] sm:$0xff]   ;;  %v11715_v37 = vpack.c.bf16 %v11707_v27, %v11707_v27 }
 0x61c   :  { %v14432_v35 = vld [vmem:[%s19700_s3 + $0x100] sm:$0xff]   ;;  %v11717_v4 = vpack.c.bf16 %v11709_v33, %v11709_v33 }
 0x61d   :  { %v14017_v33 = vld [vmem:[%s19702_s4] ss:$0 sm:$0xff] }
 0x61e   :  { %11138 = vmatpush1.bf16.msra.mxu0 %v14001_v40  ;;  %11671 = vmatpush1.bf16.msra.mxu1 %v14003_v41  ;;  %v14437_v40 = vld [vmem:[%s19700_s3 + $0x188] sm:$0xff]   ;;  %v14438_v41 = vld [vmem:[%s19700_s3 + $0x150] sm:$0xff]  }
 0x61f   :  { %11139 = vmatprep.subr.bf16.mxu0 %v14010_v50  ;;  %11672 = vmatprep.subr.bf16.mxu1 %v14012_v19  ;;  %v14439_v50 = vld [vmem:[%s19700_s3 + $0x1d0] sm:$0xff]  }
 0x620   :  { %v14440_v19 = vld [vmem:[%s19700_s3 + $0x110] sm:$0xff]  }
 0x622   :  { %11140 = vmatpush1.bf16.msra.mxu0 %v14009_v44  ;;  %11673 = vmatpush1.bf16.msra.mxu1 %v14011_v47  ;;  %v14443_v44 = vld [vmem:[%s19700_s3 + $0x1d8] sm:$0xff]  }
 0x623   :  { %14082 = vmatprep.subr.bf16.mxu0 %v14398_v49  ;;  %14104 = vmatprep.subr.bf16.mxu1 %v14399_v18  ;;  %v14444_v47 = vld [vmem:[%s19700_s3 + $0x118] sm:$0xff]   ;;  %v14446_v18 = vld [vmem:[%s19700_s3 + $0x160] sm:$0xff]  }
 0x624   :  { %v14445_v49 = vld [vmem:[%s19700_s3 + $0x198] sm:$0xff]  }
 0x625   :  { %14015 = vmatmul.mubr.msk.bf16.vlgmr.msra.gmra.mrb[4].mxu0 %vm9571_vm0, %v14462_v3  ;;  %14016 = vmatmul.mubr.msk.bf16.vlgmr.msra.gmra.mrb[4].mxu1 %vm9571_vm0, %v14462_v3  ;;  %v14453_v3 = vld [vmem:[%s19700_s3 + $0x1a8] sm:$0xff]  }
 0x626   :  { %14083 = vmatpush3.bf16.msra.mxu0 %v14400_v8  ;;  %12274 = vmatprep.mubr.bf16.mxu0 %v11716_v30  ;;  %v14449_v8 = vld [vmem:[%s19700_s3 + $0x1a0] sm:$0xff]   ;;  %v14452_v30 = vld [vmem:[%s19700_s3 + $0x128] sm:$0xff]  }
 0x627   :  { %14105 = vmatpush3.bf16.msra.mxu1 %v14401_v11  ;;  %12314 = vmatprep.mubr.bf16.mxu1 %v11718_v61  ;;  %v14450_v11 = vld [vmem:[%s19700_s3 + $0x168] sm:$0xff]   ;;  %v14455_v61 = vld [vmem:[%s19700_s3 + $0x1f0] sm:$0xff]  }
 0x628   :  { %14084 = vmatprep.subr.bf16.mxu0 %v14402_v56  ;;  %14106 = vmatprep.subr.bf16.mxu1 %v14403_v48  ;;  %v14451_v56 = vld [vmem:[%s19700_s3 + $0x1e8] sm:$0xff]   ;;  %v14454_v48 = vld [vmem:[%s19700_s3 + $0x170] sm:$0xff]  }
 0x62a   :  { %14085 = vmatpush3.bf16.msra.mxu0 %v14404_v39  ;;  %v14456_v39 = vld [vmem:[%s19700_s3 + $0x130] sm:$0xff]  }
 0x62b   :  { %14107 = vmatpush3.bf16.msra.mxu1 %v14405_v5  ;;  %14086 = vmatprep.subr.bf16.mxu0 %v14406_v23  ;;  %v14457_v5 = vld [vmem:[%s19700_s3 + $0x1b0] sm:$0xff]   ;;  %v14458_v23 = vld [vmem:[%s19700_s3 + $0x178] sm:$0xff]  }
 0x62c   :  { %14108 = vmatprep.subr.bf16.mxu1 %v14407_v6  ;;  %v14459_v6 = vld [vmem:[%s19700_s3 + $0x1f8] sm:$0xff]  }
 0x62e   :  { %14087 = vmatpush3.bf16.msra.mxu0 %v14408_v10  ;;  %v14460_v10 = vld [vmem:[%s19700_s3 + $0x138] sm:$0xff]  }
 0x62f   :  { %14109 = vmatpush3.bf16.msra.mxu1 %v14409_v54  ;;  %14088 = vmatprep.subr.bf16.mxu0 %v14410_v43  ;;  %v14461_v54 = vld [vmem:[%s19700_s3 + $0x1b8] sm:$0xff]   ;;  %v1622_v43 = vsub.s32 4, %v19434_v36 }
 0x630   :  { %14110 = vmatprep.subr.bf16.mxu1 %v14411_v46  ;;  %v1630_v46 = vsub.s32 6, %v19434_v36 }
 0x632   :  { %14089 = vmatpush3.bf16.msra.mxu0 %v14412_v13  ;;  %v1626_v13 = vsub.s32 5, %v19434_v36 }
 0x633   :  { %14111 = vmatpush3.bf16.msra.mxu1 %v14413_v14  ;;  %14090 = vmatprep.subr.bf16.mxu0 %v14414_v17  ;;  %v1634_v14 = vsub.s32 7, %v19434_v36  ;;  %v1623_v17 = vrot.slane %v19459_v32, %v1622_v43 }
 0x634   :  { %14112 = vmatprep.subr.bf16.mxu1 %v14415_v53  ;;  %v1631_v53 = vrot.slane %v19459_v32, %v1630_v46 }
 0x635   :  { %v1635_v59 = vrot.slane %v19459_v32, %v1634_v14 }
 0x636   :  { %14091 = vmatpush3.bf16.msra.mxu0 %v14416_v20  ;;  %v1627_v20 = vrot.slane %v19459_v32, %v1626_v13 }
 0x637   :  { %14113 = vmatpush3.bf16.msra.mxu1 %v14417_v60  ;;  %14092 = vmatprep.subr.bf16.mxu0 %v14418_v24 }
 0x638   :  { %14114 = vmatprep.subr.bf16.mxu1 %v14419_v26 }
 0x63a   :  { %14093 = vmatpush3.bf16.msra.mxu0 %v14420_v63 }
 0x63b   :  { %14115 = vmatpush3.bf16.msra.mxu1 %v14421_v16  ;;  %14094 = vmatprep.subr.bf16.mxu0 %v14422_v28 }
 0x63c   :  { %14116 = vmatprep.subr.bf16.mxu1 %v14423_v12 }
 0x63e   :  { %14095 = vmatpush3.bf16.msra.mxu0 %v14424_v57 }
 0x63f   :  { %14117 = vmatpush3.bf16.msra.mxu1 %v14425_v9  ;;  %14096 = vmatprep.subr.bf16.mxu0 %v14426_v55 }
 0x640   :  { %14118 = vmatprep.subr.bf16.mxu1 %v14427_v2 }
 0x642   :  { %14097 = vmatpush3.bf16.msra.mxu0 %v14428_v0 }
 0x643   :  { %14119 = vmatpush3.bf16.msra.mxu1 %v14429_v45  ;;  %14126 = vmatprep.subr.bf16.mxu0 %v14430_v7 }
 0x644   :  { %14148 = vmatprep.subr.bf16.mxu1 %v14431_v34 }
 0x645   :  { %12275 = vmatmul.mubr.bf16.vlgmr.msra.gmra.mrb[8].mxu0 %v11715_v37 }
 0x646   :  { %12315 = vmatmul.mubr.bf16.vlgmr.msra.gmra.mrb[8].mxu1 %v11717_v4  ;;  %14127 = vmatpush3.bf16.msra.mxu0 %v14432_v35 }
 0x647   :  { %14149 = vmatpush3.bf16.msra.mxu1 %v14433_v1  ;;  %14128 = vmatprep.subr.bf16.mxu0 %v14434_v21 }
 0x648   :  { %14150 = vmatprep.subr.bf16.mxu1 %v14435_v31 }
 0x64a   :  { %14129 = vmatpush3.bf16.msra.mxu0 %v14436_v38 }
 0x64b   :  { %14151 = vmatpush3.bf16.msra.mxu1 %v14437_v40  ;;  %14130 = vmatprep.subr.bf16.mxu0 %v14438_v41 }
 0x64c   :  { %14152 = vmatprep.subr.bf16.mxu1 %v14439_v50 }
 0x64e   :  { %14131 = vmatpush3.bf16.msra.mxu0 %v14440_v19 }
 0x64f   :  { %14153 = vmatpush3.bf16.msra.mxu1 %v14441_v25  ;;  %14132 = vmatprep.subr.bf16.mxu0 %v14442_v42 }
 0x650   :  { %14154 = vmatprep.subr.bf16.mxu1 %v14443_v44 }
 0x652   :  { %14133 = vmatpush3.bf16.msra.mxu0 %v14444_v47 }
 0x653   :  { %14155 = vmatpush3.bf16.msra.mxu1 %v14445_v49  ;;  %14134 = vmatprep.subr.bf16.mxu0 %v14446_v18 }
 0x654   :  { %14156 = vmatprep.subr.bf16.mxu1 %v14447_v52 }
 0x656   :  { %14135 = vmatpush3.bf16.msra.mxu0 %v14448_v62 }
 0x657   :  { %14157 = vmatpush3.bf16.msra.mxu1 %v14449_v8  ;;  %14136 = vmatprep.subr.bf16.mxu0 %v14450_v11 }
 0x658   :  { %14158 = vmatprep.subr.bf16.mxu1 %v14451_v56 }
 0x65a   :  { %14137 = vmatpush3.bf16.msra.mxu0 %v14452_v30  ;;  %v14464_v30 = vmov 6  }
 0x65b   :  { %14159 = vmatpush3.bf16.msra.mxu1 %v14453_v3  ;;  %14138 = vmatprep.subr.bf16.mxu0 %v14454_v48 }
 0x65c   :  { %14160 = vmatprep.subr.bf16.mxu1 %v14455_v61  ;;  %14372 = vset.pattern.permute.xlu0 %v14464_v30 }
 0x65e   :  { %14139 = vmatpush3.bf16.msra.mxu0 %v14456_v39 }
 0x65f   :  { %14161 = vmatpush3.bf16.msra.mxu1 %v14457_v5  ;;  %14140 = vmatprep.subr.bf16.mxu0 %v14458_v23 }
 0x660   :  { %14162 = vmatprep.subr.bf16.mxu1 %v14459_v6 }
 0x662   :  { %14141 = vmatpush3.bf16.msra.mxu0 %v14460_v10 }
 0x663   :  { %14163 = vmatpush3.bf16.msra.mxu1 %v14461_v54 }
 0x6f8   :  { %v11167_v60 = vpop.f32.mrb[4].mxu0  ;;  %v11700_v58 = vpop.f32.mrb[4].mxu1 }
 0x6f9   :  { %v14174_v24 = vadd.f32 %v11167_v60, %v1623_v17  ;;  %v11169_v26 = vpop.f32.mrb[5].mxu0  ;;  %v14176_v63 = vadd.f32 %v11700_v58, %v1631_v53  ;;  %v11702_v16 = vpop.f32.mrb[5].mxu1 }
 0x6fa   :  { %v14175_v15 = vadd.f32 %v11169_v26, %v1627_v20  ;;  %v11171_v28 = vpop.f32.mrb[6].mxu0  ;;  %v14177_v12 = vadd.f32 %v11702_v16, %v1635_v59  ;;  %v11704_v57 = vpop.f32.mrb[6].mxu1 }
 0x6fb   :  { %v11711_v51 = vmax.f32 %v14174_v24, 0.0  ;;  %v11172_v36 = vpop.f32.mrb[7].mxu0  ;;  %v11713_v22 = vmax.f32 %v14176_v63, 0.0  ;;  %v11705_v55 = vpop.f32.mrb[7].mxu1 }
 0x6fc   :  { %v11712_v9 = vmax.f32 %v14175_v15, 0.0  ;;  %v11714_v29 = vmax.f32 %v14177_v12, 0.0 }
 0x6fd   :  { %v11719_v0 = vpack.c.bf16 %v11711_v51, %v11711_v51  ;;  %v11721_v32 = vpack.c.bf16 %v11713_v22, %v11713_v22 }
 0x6fe   :  { %v11720_v2 = vpack.c.bf16 %v11712_v9, %v11712_v9  ;;  %v11722_v27 = vpack.c.bf16 %v11714_v29, %v11714_v29 }
 0x700   :  { %12354 = vmatprep.mubr.bf16.mxu0 %v11720_v2  ;;  %12394 = vmatprep.mubr.bf16.mxu1 %v11722_v27 }
 0x701   :  { %12355 = vmatmul.mubr.bf16.vlgmr.msra.gmra.mrb[12].mxu0 %v11719_v0  ;;  %12395 = vmatmul.mubr.bf16.vlgmr.msra.gmra.mrb[12].mxu1 %v11721_v32 }
 0x718   :  { %v14098_v45 = vpop.f32.mrb[8].mxu0 }
 0x719   :  { %v14120_v7 = vpop.f32.mrb[8].mxu1  ;;  %v14099_v34 = vpop.f32.mrb[9].mxu0 }
 0x71a   :  { %v14100_v35 = vadd.f32 %v14099_v34, %v14098_v45  ;;  %v14121_v37 = vpop.f32.mrb[9].mxu1  ;;  %v14101_v1 = vpop.f32.mrb[10].mxu0 }
 0x71b   :  { %v14122_v21 = vadd.f32 %v14121_v37, %v14120_v7  ;;  %v14123_v4 = vpop.f32.mrb[10].mxu1  ;;  %v14102_v31 = vpop.f32.mrb[11].mxu0 }
 0x71c   :  { %v12277_v38 = vadd.f32 %v14100_v35, %v14017_v33  ;;  %v14124_v40 = vpop.f32.mrb[11].mxu1 }
 0x71e   :  { %v12317_v41 = vadd.f32 %v14122_v21, %v12277_v38 }
 0x7d4   :  { %v14142_v50 = vpop.f32.mrb[12].mxu0  ;;  %v14164_v19 = vpop.f32.mrb[12].mxu1 }
 0x7d5   :  { %v14143_v25 = vpop.f32.mrb[13].mxu0  ;;  %v14165_v44 = vpop.f32.mrb[13].mxu1 }
 0x7d6   :  { %v14144_v42 = vadd.f32 %v14143_v25, %v14142_v50  ;;  %v14145_v47 = vpop.f32.mrb[14].mxu0  ;;  %v14166_v49 = vadd.f32 %v14165_v44, %v14164_v19  ;;  %v14167_v18 = vpop.f32.mrb[14].mxu1 }
 0x7d7   :  { %v14146_v52 = vpop.f32.mrb[15].mxu0  ;;  %v14168_v8 = vpop.f32.mrb[15].mxu1 }
 0x7d8   :  { %v12357_v62 = vadd.f32 %v14144_v42, %v12317_v41 }
 0x7da   :  { %v12397_v11 = vadd.f32 %v14166_v49, %v12357_v62 }
 0x7dc   :  { %v12403_v56 = vsel %vm12402_vm1, %v12397_v11, 0.0 }
 0x7dd   :  { %12404 = vadd.xlane.f32.xlu0 %v12403_v56 }
 0x86a   :  { %v12405_v3 = vpop.xlane.xlu0 %12404 }
 0x86b   :  { %v12407_v48 = vmul.f32 0.16666667, %v12405_v3 }
 0x86d   :  { %v12408_v61 = vsub.f32 %v12397_v11, %v12407_v48 }
 0x86f   :  { %12411 = vperm.xlu0 %14372, %v12408_v61  }
 0x8ee   :  { %v12412_v39 = vpop.permute.xlu0 %12411 }
 0x8ef   :  { %v12414_v5 = vadd.f32 %v12412_v39, %v12397_v11 }
 0x8f1   :  { %12415 = vst [vmem:[%s19703_s5] sm:$0xff] %v12414_v5 }

</bundles_post_ra>
